<compile_context>
chip_gen: v7x
topology: tpu7x:2x2x1
jax: 0.10.0
libtpu: 0.0.40
codegen_flags: <defaults>
</compile_context>

<pallas_src>
import functools
import numpy as np

import jax
import jax.numpy as jnp
from jax import lax
from jax.experimental import pallas as pl
from jax.experimental.pallas import tpu as pltpu

EPS = 1e-5                      # PyTorch BatchNorm2d default eps
MATMUL_DTYPE = jnp.bfloat16     # MXU operand dtype (accumulation stays f32)


# ---------------------------------------------------------------------------
# Parameter helpers (host-side glue)
# ---------------------------------------------------------------------------
def _fold_bn(gamma, beta, mean, var, eps=EPS):
    scale = gamma / jnp.sqrt(var + eps)
    bias = beta - mean * scale
    return (scale.reshape(1, -1).astype(jnp.float32),
            bias.reshape(1, -1).astype(jnp.float32))


def expand_grouped(wg, groups):
    """PyTorch grouped-conv weight (Co, Ci/g, 3, 3) -> dense block-diagonal
    weight with layout (tap = ky*3+kx, Cin, Cout)."""
    wg = np.asarray(wg)
    Co, Cig, kh, kw = wg.shape
    Ci = Cig * groups
    opg = Co // groups
    dense = np.zeros((kh * kw, Ci, Co), np.float32)
    for g in range(groups):
        blk = wg[g * opg:(g + 1) * opg]                       # (opg, Cig, 3, 3)
        blk = np.transpose(blk, (2, 3, 1, 0)).reshape(kh * kw, Cig, opg)
        dense[:, g * Cig:(g + 1) * Cig, g * opg:(g + 1) * opg] = blk
    return jnp.asarray(dense)


def convert_params(tw, dilations, group_width, mdt=MATMUL_DTYPE):
    """PyTorch-shaped weights -> kernel layout (bf16 matmul weights, f32 BN)."""
    ns = len(dilations)
    Cout = tw["conv1_w"].shape[0]
    temp = Cout // ns
    groups = temp // group_width
    kp = {}

    w1 = tw["conv1_w"][:, :, 0, 0].T                            # (Cin, Cout)
    kp["w1"] = jnp.stack([w1[:, i * temp:(i + 1) * temp]
                          for i in range(ns)]).astype(mdt)      # (ns, Cin, temp)
    s1, b1 = _fold_bn(*tw["bn1"])
    kp["bn1_scale"] = jnp.stack([s1[:, i * temp:(i + 1) * temp] for i in range(ns)])
    kp["bn1_bias"] = jnp.stack([b1[:, i * temp:(i + 1) * temp] for i in range(ns)])

    # conv2: expand grouped weight to block-diagonal (9, temp, temp) and stack
    # the 9 taps along the contraction axis -> (9*temp, temp)
    w2 = [expand_grouped(w, groups).reshape(9 * temp, temp) for w in tw["conv2_w"]]
    kp["w2"] = jnp.stack(w2).astype(mdt)                        # (ns, 9*temp, temp)
    s2, b2 = _fold_bn(*tw["bn2"])
    kp["bn2_scale"] = jnp.stack([s2[:, i * temp:(i + 1) * temp] for i in range(ns)])
    kp["bn2_bias"] = jnp.stack([b2[:, i * temp:(i + 1) * temp] for i in range(ns)])

    kp["w3"] = tw["conv3_w"][:, :, 0, 0].T.astype(mdt)          # (Cout, Cout)
    kp["bn3_scale"], kp["bn3_bias"] = _fold_bn(*tw["bn3"])

    kp["se_w1"] = tw["se_w1"][:, :, 0, 0].T.astype(mdt)         # (Cout, Cse)
    kp["se_b1"] = tw["se_b1"].reshape(1, -1).astype(jnp.float32)
    kp["se_w2"] = tw["se_w2"][:, :, 0, 0].T.astype(mdt)         # (Cse, Cout)
    kp["se_b2"] = tw["se_b2"].reshape(1, -1).astype(jnp.float32)

    kp["w_sc"] = tw["sc_w"][:, :, 0, 0].T.astype(mdt)           # (Cin, Cout)
    kp["sc_scale"], kp["sc_bias"] = _fold_bn(*tw["bn_sc"])
    return kp


def _phase_decompose(x, d, s, Lh, Lw):
    """Pad x (N,H,W,C) by the conv padding `d` (plus round-up so every one of
    the s*s stride phases has extent (Lh, Lw)) and split into stride phases.
    Returns (N, s*s*Lh, Lw, C); phase p = ry*s+rx occupies rows [p*Lh,(p+1)*Lh).
    """
    N, H, W, C = x.shape
    xp = jnp.pad(x, ((0, 0), (d, s * Lh - H - d), (d, s * Lw - W - d), (0, 0)))
    xp = xp.reshape(N, Lh, s, Lw, s, C).transpose(0, 2, 4, 1, 3, 5)
    return xp.reshape(N, s * s * Lh, Lw, C)


# ---------------------------------------------------------------------------
# The fused DBlock Pallas kernel
# ---------------------------------------------------------------------------
def _make_dblock_kernel(dilations, stride, Lhs, Lws, Ho, Wo, Cin, Cout, temp,
                        pool, sc_mode):
    ns = len(dilations)
    HoWo = Ho * Wo
    mdt = MATMUL_DTYPE

    def kernel(*args):
        it = iter(args)
        xpd = [next(it) for _ in range(ns)]           # phase-decomposed x (bf16)
        msk = [next(it) for _ in range(ns)]           # 0/1 padding masks (f32)
        xs_ref = next(it)                             # shortcut input (bf16)
        w1_ref, b1s_ref, b1b_ref = next(it), next(it), next(it)
        w2_ref, b2s_ref, b2b_ref = next(it), next(it), next(it)
        sw1_ref, sb1_ref, sw2_ref, sb2_ref = next(it), next(it), next(it), next(it)
        w3_ref, b3s_ref, b3b_ref = next(it), next(it), next(it)
        if sc_mode == "conv":
            wsc_ref, scs_ref, scb_ref = next(it), next(it), next(it)
        o_ref = next(it)
        ypd = [next(it) for _ in range(ns)]           # per-branch VMEM scratch

        # ---------------- shortcut branch ----------------------------------
        if sc_mode == "identity":
            sc = xs_ref[0, 0].astype(jnp.float32)                 # (HoWo, Cout)
        else:
            P = pool * pool
            acc = xs_ref[0, 0].astype(jnp.float32)
            for p in range(1, P):
                acc = acc + xs_ref[0, p].astype(jnp.float32)
            acc = acc * (1.0 / P)                                 # avg pool
            sc = jnp.dot(acc.astype(mdt), wsc_ref[...],
                         preferred_element_type=jnp.float32)
            sc = sc * scs_ref[...] + scb_ref[...]                 # (HoWo, Cout)

        # -------- conv1 + BN1 + ReLU and dilated conv2 + BN2 + ReLU --------
        branch_outs = []
        for i, d in enumerate(dilations):
            Lh, Lw = Lhs[i], Lws[i]
            R = stride * stride * Lh
            x_i = xpd[i][0].reshape(R * Lw, Cin)                  # bf16
            y = jnp.dot(x_i, w1_ref[i], preferred_element_type=jnp.float32)
            # mask restores conv2's zero padding (BN bias otherwise leaks in)
            y = jnp.maximum(y * b1s_ref[i] + b1b_ref[i], 0.0) * msk[i][...]
            ypd[i][...] = y.reshape(R, Lw, temp)

            # im2col via 9 contiguous static slices, stacked along K = 9*temp
            taps = []
            for ky in range(3):
                ry, ay = (ky * d) % stride, (ky * d) // stride
                for kx in range(3):
                    rx, ax = (kx * d) % stride, (kx * d) // stride
                    ph = ry * stride + rx
                    t = ypd[i][ph * Lh + ay:ph * Lh + ay + Ho, ax:ax + Wo, :]
                    taps.append(t.reshape(HoWo, temp))
            patch = jnp.concatenate(taps, axis=-1).astype(mdt)    # (HoWo, 9*temp)
            z = jnp.dot(patch, w2_ref[i], preferred_element_type=jnp.float32)
            z = jnp.maximum(z * b2s_ref[i] + b2b_ref[i], 0.0)
            branch_outs.append(z)

        y2 = branch_outs[0] if ns == 1 else jnp.concatenate(branch_outs, axis=-1)

        # ---------------- SE: avg pool + FC + ReLU + FC + sigmoid ----------
        pooled = jnp.sum(y2, axis=0, keepdims=True) * (1.0 / HoWo)   # (1, Cout)
        g = jnp.dot(pooled.astype(mdt), sw1_ref[...],
                    preferred_element_type=jnp.float32) + sb1_ref[...]
        g = jnp.maximum(g, 0.0)
        g = jax.nn.sigmoid(jnp.dot(g.astype(mdt), sw2_ref[...],
                                   preferred_element_type=jnp.float32) + sb2_ref[...])
        y2 = y2 * g

        # ---------------- conv3 + BN3 + residual add + ReLU ----------------
        y3 = jnp.dot(y2.astype(mdt), w3_ref[...], preferred_element_type=jnp.float32)
        y3 = y3 * b3s_ref[...] + b3b_ref[...] + sc
        # NOTE: Cout=32 => lane-masked stores; acceptable for this toy width.
        o_ref[0] = jnp.maximum(y3, 0.0).astype(o_ref.dtype)

    return kernel


# ---------------------------------------------------------------------------
# DBlock forward wrapper (accepts / returns NCHW)
# ---------------------------------------------------------------------------
def dblock_forward(kp, x_nchw, *, dilations, stride):
    N, Cin, H, W = x_nchw.shape
    Cout = kp["w3"].shape[0]
    ns = len(dilations)
    temp = Cout // ns
    mdt = MATMUL_DTYPE

    x = jnp.transpose(x_nchw, (0, 2, 3, 1)).astype(mdt)        # NHWC, bf16

    Ho = (H - 1) // stride + 1
    Wo = (W - 1) // stride + 1
    HoWo = Ho * Wo

    # conv path: one phase-decomposed copy of x (+ padding mask) per dilation
    Lhs, Lws, xpds, masks = [], [], [], []
    for d in dilations:
        Lh = Ho + -(-2 * d // stride)
        Lw = Wo + -(-2 * d // stride)
        Lhs.append(Lh)
        Lws.append(Lw)
        xpds.append(_phase_decompose(x, d, stride, Lh, Lw))
        ones = jnp.ones((1, H, W, 1), jnp.float32)
        masks.append(_phase_decompose(ones, d, stride, Lh, Lw)
                     .reshape(stride * stride * Lh * Lw, 1))

    # shortcut input
    if stride != 1 or Cin != Cout:
        sc_mode = "conv"
        if stride != 1:
            assert stride == 2
            # TODO(synk): AvgPool2d ceil_mode ragged-edge divisor correction for
            # odd H/W is not implemented; even spatial dims are exact.
            assert H % 2 == 0 and W % 2 == 0
            pool = 2
            xs = x.reshape(N, Ho, 2, Wo, 2, Cin).transpose(0, 2, 4, 1, 3, 5)
            xs = xs.reshape(N, 4, HoWo, Cin)
        else:
            pool = 1
            xs = x.reshape(N, 1, H * W, Cin)
    else:
        sc_mode = "identity"
        pool = 1
        xs = x.reshape(N, 1, H * W, Cin)

    kernel = _make_dblock_kernel(dilations, stride, Lhs, Lws, Ho, Wo,
                                 Cin, Cout, temp, pool, sc_mode)

    weight_args = [kp["w1"], kp["bn1_scale"], kp["bn1_bias"],
                   kp["w2"], kp["bn2_scale"], kp["bn2_bias"],
                   kp["se_w1"], kp["se_b1"], kp["se_w2"], kp["se_b2"],
                   kp["w3"], kp["bn3_scale"], kp["bn3_bias"]]
    if sc_mode == "conv":
        weight_args += [kp["w_sc"], kp["sc_scale"], kp["sc_bias"]]

    operands = xpds + masks + [xs] + weight_args

    def _img_spec(a):
        return pl.BlockSpec((1,) + a.shape[1:],
                            lambda n: (n,) + (0,) * (a.ndim - 1))

    def _bcast_spec(a):
        return pl.BlockSpec(a.shape, lambda n: (0,) * a.ndim)

    in_specs = ([_img_spec(a) for a in xpds]
                + [_bcast_spec(m) for m in masks]
                + [_img_spec(xs)]
                + [_bcast_spec(a) for a in weight_args])

    scratch_shapes = [pltpu.VMEM((stride * stride * Lhs[i], Lws[i], temp),
                                 jnp.float32) for i in range(ns)]

    # advisory cost hint for the XLA scheduler
    flops = 0
    for i in range(ns):
        npix = stride * stride * Lhs[i] * Lws[i]
        flops += 2 * N * npix * Cin * temp           # conv1 (per-branch slice)
        flops += 2 * N * HoWo * 9 * temp * temp      # conv2 (tap-stacked)
    flops += 2 * N * HoWo * Cout * Cout              # conv3
    cse = kp["se_w1"].shape[1]
    flops += 2 * N * 2 * Cout * cse                  # SE FCs
    if sc_mode == "conv":
        flops += 2 * N * HoWo * Cin * Cout           # shortcut 1x1
    bytes_accessed = int(sum(int(np.prod(a.shape)) * a.dtype.itemsize
                             for a in operands) + N * HoWo * Cout * 4)

    out = pl.pallas_call(
        kernel,
        out_shape=jax.ShapeDtypeStruct((N, HoWo, Cout), jnp.float32),
        grid=(N,),
        in_specs=in_specs,
        out_specs=pl.BlockSpec((1, HoWo, Cout), lambda n: (n, 0, 0)),
        scratch_shapes=scratch_shapes,
        compiler_params=pltpu.CompilerParams(
            dimension_semantics=("parallel",)),
        cost_estimate=pl.CostEstimate(flops=int(flops),
                                      transcendentals=int(N * Cout),
                                      bytes_accessed=bytes_accessed),
    )(*operands)

    return jnp.transpose(out.reshape(N, Ho, Wo, Cout), (0, 3, 1, 2))  # NCHW


# ---------------------------------------------------------------------------
# Deterministic parameter construction (PyTorch-shaped)
# ---------------------------------------------------------------------------
def make_torch_params(key, Cin, Cout, dilations, group_width):
    num_splits = len(dilations)
    temp = Cout // num_splits
    w_se = Cin // 4                      # attention == 'se'
    keys = iter(jax.random.split(key, 32))

    def nrm(shape, s=0.1):
        return s * jax.random.normal(next(keys), shape, jnp.float32)

    def bn(C):
        gamma = 1.0 + 0.1 * jax.random.normal(next(keys), (C,), jnp.float32)
        beta = 0.1 * jax.random.normal(next(keys), (C,), jnp.float32)
        mean = 0.1 * jax.random.normal(next(keys), (C,), jnp.float32)
        var = 1.0 + 0.1 * jnp.abs(jax.random.normal(next(keys), (C,), jnp.float32))
        return (gamma, beta, mean, var)

    tw = {}
    tw["conv1_w"] = nrm((Cout, Cin, 1, 1))
    tw["bn1"] = bn(Cout)
    tw["conv2_w"] = [nrm((temp, group_width, 3, 3)) for _ in dilations]
    tw["bn2"] = bn(Cout)
    tw["conv3_w"] = nrm((Cout, Cout, 1, 1))
    tw["bn3"] = bn(Cout)
    tw["se_w1"] = nrm((w_se, Cout, 1, 1)); tw["se_b1"] = nrm((w_se,))
    tw["se_w2"] = nrm((Cout, w_se, 1, 1)); tw["se_b2"] = nrm((Cout,))
    tw["sc_w"] = nrm((Cout, Cin, 1, 1))
    tw["bn_sc"] = bn(Cout)
    return tw


# ---------------------------------------------------------------------------
# Pure-JAX reference (NCHW, mirrors the PyTorch forward, eval-mode BN, f32)
# ---------------------------------------------------------------------------
def conv2d_nchw(x, w, stride=1, dilation=1, groups=1, padding=0):
    return lax.conv_general_dilated(
        x, w, window_strides=(stride, stride),
        padding=((padding, padding), (padding, padding)),
        rhs_dilation=(dilation, dilation),
        feature_group_count=groups,
        dimension_numbers=("NCHW", "OIHW", "NCHW"),
        precision=lax.Precision.HIGHEST)


def bn_nchw(x, gamma, beta, mean, var):
    inv = gamma / jnp.sqrt(var + EPS)
    return (x - mean[None, :, None, None]) * inv[None, :, None, None] \
        + beta[None, :, None, None]


def dblock_reference(tw, x, dilations, group_width, stride):
    Cin = x.shape[1]
    Cout = tw["conv1_w"].shape[0]
    if stride != 1 or Cin != Cout:
        s = x
        if stride != 1:
            N, C, H, W = s.shape
            s = s.reshape(N, C, H // 2, 2, W // 2, 2).mean(axis=(3, 5))
            s = conv2d_nchw(s, tw["sc_w"])
        else:
            s = conv2d_nchw(s, tw["sc_w"], stride=stride)
        s = bn_nchw(s, *tw["bn_sc"])
    else:
        s = x
    y = jax.nn.relu(bn_nchw(conv2d_nchw(x, tw["conv1_w"]), *tw["bn1"]))
    num_splits = len(dilations)
    temp = Cout // num_splits
    groups = temp // group_width
    parts = []
    for i, d in enumerate(dilations):
        xi = y[:, i * temp:(i + 1) * temp]
        parts.append(conv2d_nchw(xi, tw["conv2_w"][i], stride=stride,
                                 dilation=d, groups=groups, padding=d))
    y = jax.nn.relu(bn_nchw(jnp.concatenate(parts, axis=1), *tw["bn2"]))
    g = jnp.mean(y, axis=(2, 3), keepdims=True)
    g = jax.nn.relu(jnp.einsum("nchw,oc->nohw", g, tw["se_w1"][:, :, 0, 0],
                               precision=lax.Precision.HIGHEST)
                    + tw["se_b1"][None, :, None, None])
    g = jax.nn.sigmoid(jnp.einsum("nchw,oc->nohw", g, tw["se_w2"][:, :, 0, 0],
                                  precision=lax.Precision.HIGHEST)
                       + tw["se_b2"][None, :, None, None])
    y = y * g
    y = bn_nchw(conv2d_nchw(y, tw["conv3_w"]), *tw["bn3"])
    return jax.nn.relu(y + s)


# ---------------------------------------------------------------------------
if __name__ == "__main__":
    # DBlock(in_channels=16, out_channels=32, dilations=(1, 2), group_width=8,
    #        stride=2, attention='se')
    Cin, Cout = 16, 32
    dilations = (1, 2)
    group_width = 8
    stride = 2
    N, H, W = 2, 16, 16

    key = jax.random.PRNGKey(0)
    kx, kparam = jax.random.split(key)
    x = jax.random.normal(kx, (N, Cin, H, W), jnp.float32)   # NCHW like PyTorch

    tw = make_torch_params(kparam, Cin, Cout, dilations, group_width)
    kp = convert_params(tw, dilations, group_width)

    fwd = jax.jit(functools.partial(dblock_forward,
                                    dilations=dilations, stride=stride))
    out = jax.block_until_ready(fwd(kp, x))

    ref = dblock_reference(tw, x, dilations, group_width, stride)
    # bf16 MXU operands (f32 accumulation) -> tolerance loosened vs pure f32.
    np.testing.assert_allclose(np.asarray(out), np.asarray(ref),
                               rtol=2e-2, atol=2e-2)
    print("KERNEL_OK")
</pallas_src>

<mosaic_0001>
module attributes {stable_mosaic.version = 11 : i64} {
  func.func @kernel(%arg0: i32, %arg1: memref<1x36x9x16xbf16, #tpu.memory_space<vmem>>, %arg2: memref<1x40x10x16xbf16, #tpu.memory_space<vmem>>, %arg3: memref<324x1xf32, #tpu.memory_space<vmem>>, %arg4: memref<400x1xf32, #tpu.memory_space<vmem>>, %arg5: memref<1x4x64x16xbf16, #tpu.memory_space<vmem>>, %arg6: memref<2x16x16xbf16, #tpu.memory_space<vmem>>, %arg7: memref<2x1x16xf32, #tpu.memory_space<vmem>>, %arg8: memref<2x1x16xf32, #tpu.memory_space<vmem>>, %arg9: memref<2x144x16xbf16, #tpu.memory_space<vmem>>, %arg10: memref<2x1x16xf32, #tpu.memory_space<vmem>>, %arg11: memref<2x1x16xf32, #tpu.memory_space<vmem>>, %arg12: memref<32x4xbf16, #tpu.memory_space<vmem>>, %arg13: memref<1x4xf32, #tpu.memory_space<vmem>>, %arg14: memref<4x32xbf16, #tpu.memory_space<vmem>>, %arg15: memref<1x32xf32, #tpu.memory_space<vmem>>, %arg16: memref<32x32xbf16, #tpu.memory_space<vmem>>, %arg17: memref<1x32xf32, #tpu.memory_space<vmem>>, %arg18: memref<1x32xf32, #tpu.memory_space<vmem>>, %arg19: memref<16x32xbf16, #tpu.memory_space<vmem>>, %arg20: memref<1x32xf32, #tpu.memory_space<vmem>>, %arg21: memref<1x32xf32, #tpu.memory_space<vmem>>, %arg22: memref<1x64x32xf32, #tpu.memory_space<vmem>>, %arg23: memref<36x9x16xf32, #tpu.memory_space<vmem>>, %arg24: memref<40x10x16xf32, #tpu.memory_space<vmem>>) attributes {dimension_semantics = [#tpu.dimension_semantics<parallel>], iteration_bounds = array<i64: 2>, scalar_prefetch = 0 : i64, scratch_operands = 2 : i64, tpu.core_type = #tpu.core_type<tc>, window_params = [{transform_indices = @transform_0, window_bounds = array<i64: 1, 36, 9, 16>}, {transform_indices = @transform_1, window_bounds = array<i64: 1, 40, 10, 16>}, {pipeline_mode = #tpu.pipeline_mode<synchronous>, transform_indices = @transform_2, window_bounds = array<i64: 324, 1>}, {pipeline_mode = #tpu.pipeline_mode<synchronous>, transform_indices = @transform_3, window_bounds = array<i64: 400, 1>}, {transform_indices = @transform_4, window_bounds = array<i64: 1, 4, 64, 16>}, {pipeline_mode = #tpu.pipeline_mode<synchronous>, transform_indices = @transform_5, window_bounds = array<i64: 2, 16, 16>}, {pipeline_mode = #tpu.pipeline_mode<synchronous>, transform_indices = @transform_6, window_bounds = array<i64: 2, 1, 16>}, {pipeline_mode = #tpu.pipeline_mode<synchronous>, transform_indices = @transform_7, window_bounds = array<i64: 2, 1, 16>}, {pipeline_mode = #tpu.pipeline_mode<synchronous>, transform_indices = @transform_8, window_bounds = array<i64: 2, 144, 16>}, {pipeline_mode = #tpu.pipeline_mode<synchronous>, transform_indices = @transform_9, window_bounds = array<i64: 2, 1, 16>}, {pipeline_mode = #tpu.pipeline_mode<synchronous>, transform_indices = @transform_10, window_bounds = array<i64: 2, 1, 16>}, {pipeline_mode = #tpu.pipeline_mode<synchronous>, transform_indices = @transform_11, window_bounds = array<i64: 32, 4>}, {pipeline_mode = #tpu.pipeline_mode<synchronous>, transform_indices = @transform_12, window_bounds = array<i64: 1, 4>}, {pipeline_mode = #tpu.pipeline_mode<synchronous>, transform_indices = @transform_13, window_bounds = array<i64: 4, 32>}, {pipeline_mode = #tpu.pipeline_mode<synchronous>, transform_indices = @transform_14, window_bounds = array<i64: 1, 32>}, {pipeline_mode = #tpu.pipeline_mode<synchronous>, transform_indices = @transform_15, window_bounds = array<i64: 32, 32>}, {pipeline_mode = #tpu.pipeline_mode<synchronous>, transform_indices = @transform_16, window_bounds = array<i64: 1, 32>}, {pipeline_mode = #tpu.pipeline_mode<synchronous>, transform_indices = @transform_17, window_bounds = array<i64: 1, 32>}, {pipeline_mode = #tpu.pipeline_mode<synchronous>, transform_indices = @transform_18, window_bounds = array<i64: 16, 32>}, {pipeline_mode = #tpu.pipeline_mode<synchronous>, transform_indices = @transform_19, window_bounds = array<i64: 1, 32>}, {pipeline_mode = #tpu.pipeline_mode<synchronous>, transform_indices = @transform_20, window_bounds = array<i64: 1, 32>}, {transform_indices = @transform_21, window_bounds = array<i64: 1, 64, 32>}]} {
    %c0 = arith.constant 0 : index
    %c0_0 = arith.constant 0 : index
    %c0_1 = arith.constant 0 : index
    %c0_2 = arith.constant 0 : index
    %0 = vector.load %arg5[%c0, %c0_0, %c0_1, %c0_2] : memref<1x4x64x16xbf16, #tpu.memory_space<vmem>>, vector<1x1x64x16xbf16>
    %1 = vector.shape_cast %0 : vector<1x1x64x16xbf16> to vector<64x16xbf16>
    %2 = arith.extf %1 : vector<64x16xbf16> to vector<64x16xf32>
    %c0_3 = arith.constant 0 : index
    %c1 = arith.constant 1 : index
    %c0_4 = arith.constant 0 : index
    %c0_5 = arith.constant 0 : index
    %3 = vector.load %arg5[%c0_3, %c1, %c0_4, %c0_5] : memref<1x4x64x16xbf16, #tpu.memory_space<vmem>>, vector<1x1x64x16xbf16>
    %4 = vector.shape_cast %3 : vector<1x1x64x16xbf16> to vector<64x16xbf16>
    %5 = arith.extf %4 : vector<64x16xbf16> to vector<64x16xf32>
    %6 = arith.addf %2, %5 : vector<64x16xf32>
    %c0_6 = arith.constant 0 : index
    %c2 = arith.constant 2 : index
    %c0_7 = arith.constant 0 : index
    %c0_8 = arith.constant 0 : index
    %7 = vector.load %arg5[%c0_6, %c2, %c0_7, %c0_8] : memref<1x4x64x16xbf16, #tpu.memory_space<vmem>>, vector<1x1x64x16xbf16>
    %8 = vector.shape_cast %7 : vector<1x1x64x16xbf16> to vector<64x16xbf16>
    %9 = arith.extf %8 : vector<64x16xbf16> to vector<64x16xf32>
    %10 = arith.addf %6, %9 : vector<64x16xf32>
    %c0_9 = arith.constant 0 : index
    %c3 = arith.constant 3 : index
    %c0_10 = arith.constant 0 : index
    %c0_11 = arith.constant 0 : index
    %11 = vector.load %arg5[%c0_9, %c3, %c0_10, %c0_11] : memref<1x4x64x16xbf16, #tpu.memory_space<vmem>>, vector<1x1x64x16xbf16>
    %12 = vector.shape_cast %11 : vector<1x1x64x16xbf16> to vector<64x16xbf16>
    %13 = arith.extf %12 : vector<64x16xbf16> to vector<64x16xf32>
    %14 = arith.addf %10, %13 : vector<64x16xf32>
    %cst = arith.constant 2.500000e-01 : f32
    %15 = vector.broadcast %cst : f32 to vector<64x16xf32>
    %16 = arith.mulf %14, %15 : vector<64x16xf32>
    %17 = arith.truncf %16 : vector<64x16xf32> to vector<64x16xbf16>
    %c0_12 = arith.constant 0 : index
    %c0_13 = arith.constant 0 : index
    %18 = vector.load %arg19[%c0_12, %c0_13] : memref<16x32xbf16, #tpu.memory_space<vmem>>, vector<16x32xbf16>
    %cst_14 = arith.constant dense<0.000000e+00> : vector<64x32xf32>
    %19 = tpu.matmul %17, %18, %cst_14 {dimension_numbers = #tpu.dot_dimension_numbers<[1], [0], [0], [1], [0, 0, 1, 1], [], []>} : vector<64x16xbf16>, vector<16x32xbf16>, vector<64x32xf32> -> vector<64x32xf32>
    %c0_15 = arith.constant 0 : index
    %c0_16 = arith.constant 0 : index
    %20 = vector.load %arg20[%c0_15, %c0_16] : memref<1x32xf32, #tpu.memory_space<vmem>>, vector<1x32xf32>
    %21 = vector.broadcast %20 : vector<1x32xf32> to vector<64x32xf32>
    %22 = arith.mulf %19, %21 : vector<64x32xf32>
    %c0_17 = arith.constant 0 : index
    %c0_18 = arith.constant 0 : index
    %23 = vector.load %arg21[%c0_17, %c0_18] : memref<1x32xf32, #tpu.memory_space<vmem>>, vector<1x32xf32>
    %24 = vector.broadcast %23 : vector<1x32xf32> to vector<64x32xf32>
    %25 = arith.addf %22, %24 : vector<64x32xf32>
    %c0_19 = arith.constant 0 : index
    %c0_20 = arith.constant 0 : index
    %c0_21 = arith.constant 0 : index
    %c0_22 = arith.constant 0 : index
    %26 = vector.load %arg1[%c0_19, %c0_20, %c0_21, %c0_22] : memref<1x36x9x16xbf16, #tpu.memory_space<vmem>>, vector<1x36x9x16xbf16>
    %27 = vector.shape_cast %26 : vector<1x36x9x16xbf16> to vector<36x9x16xbf16>
    %28 = vector.shape_cast %27 : vector<36x9x16xbf16> to vector<324x16xbf16>
    %c0_23 = arith.constant 0 : index
    %c0_24 = arith.constant 0 : index
    %c0_25 = arith.constant 0 : index
    %29 = vector.load %arg6[%c0_23, %c0_24, %c0_25] : memref<2x16x16xbf16, #tpu.memory_space<vmem>>, vector<1x16x16xbf16>
    %30 = vector.shape_cast %29 : vector<1x16x16xbf16> to vector<16x16xbf16>
    %cst_26 = arith.constant dense<0.000000e+00> : vector<324x16xf32>
    %31 = tpu.matmul %28, %30, %cst_26 {dimension_numbers = #tpu.dot_dimension_numbers<[1], [0], [0], [1], [0, 0, 1, 1], [], []>} : vector<324x16xbf16>, vector<16x16xbf16>, vector<324x16xf32> -> vector<324x16xf32>
    %c0_27 = arith.constant 0 : index
    %c0_28 = arith.constant 0 : index
    %c0_29 = arith.constant 0 : index
    %32 = vector.load %arg7[%c0_27, %c0_28, %c0_29] : memref<2x1x16xf32, #tpu.memory_space<vmem>>, vector<1x1x16xf32>
    %33 = vector.shape_cast %32 : vector<1x1x16xf32> to vector<1x16xf32>
    %34 = vector.broadcast %33 : vector<1x16xf32> to vector<324x16xf32>
    %35 = arith.mulf %31, %34 : vector<324x16xf32>
    %c0_30 = arith.constant 0 : index
    %c0_31 = arith.constant 0 : index
    %c0_32 = arith.constant 0 : index
    %36 = vector.load %arg8[%c0_30, %c0_31, %c0_32] : memref<2x1x16xf32, #tpu.memory_space<vmem>>, vector<1x1x16xf32>
    %37 = vector.shape_cast %36 : vector<1x1x16xf32> to vector<1x16xf32>
    %38 = vector.broadcast %37 : vector<1x16xf32> to vector<324x16xf32>
    %39 = arith.addf %35, %38 : vector<324x16xf32>
    %cst_33 = arith.constant 0.000000e+00 : f32
    %40 = vector.broadcast %cst_33 : f32 to vector<324x16xf32>
    %41 = arith.maximumf %39, %40 : vector<324x16xf32>
    %c0_34 = arith.constant 0 : index
    %c0_35 = arith.constant 0 : index
    %42 = vector.load %arg3[%c0_34, %c0_35] : memref<324x1xf32, #tpu.memory_space<vmem>>, vector<324x1xf32>
    %43 = vector.broadcast %42 : vector<324x1xf32> to vector<324x16xf32>
    %44 = arith.mulf %41, %43 : vector<324x16xf32>
    %45 = vector.shape_cast %44 : vector<324x16xf32> to vector<36x9x16xf32>
    %c0_36 = arith.constant 0 : index
    %c0_37 = arith.constant 0 : index
    %c0_38 = arith.constant 0 : index
    %46 = vector.load %arg23[%c0_36, %c0_37, %c0_38] : memref<36x9x16xf32, #tpu.memory_space<vmem>>, vector<36x9x16xf32>
    tpu.vector_store %arg23[%c0_36, %c0_37, %c0_38], %45 {strides = array<i32>} : memref<36x9x16xf32, #tpu.memory_space<vmem>>, vector<36x9x16xf32>,
    %c0_39 = arith.constant 0 : index
    %c0_40 = arith.constant 0 : index
    %c0_41 = arith.constant 0 : index
    %47 = vector.load %arg23[%c0_39, %c0_40, %c0_41] : memref<36x9x16xf32, #tpu.memory_space<vmem>>, vector<8x8x16xf32>
    %48 = vector.shape_cast %47 : vector<8x8x16xf32> to vector<64x16xf32>
    %c9 = arith.constant 9 : index
    %c0_42 = arith.constant 0 : index
    %c0_43 = arith.constant 0 : index
    %49 = vector.load %arg23[%c9, %c0_42, %c0_43] : memref<36x9x16xf32, #tpu.memory_space<vmem>>, vector<8x8x16xf32>
    %50 = vector.shape_cast %49 : vector<8x8x16xf32> to vector<64x16xf32>
    %c0_44 = arith.constant 0 : index
    %c1_45 = arith.constant 1 : index
    %c0_46 = arith.constant 0 : index
    %51 = vector.load %arg23[%c0_44, %c1_45, %c0_46] : memref<36x9x16xf32, #tpu.memory_space<vmem>>, vector<8x8x16xf32>
    %52 = vector.shape_cast %51 : vector<8x8x16xf32> to vector<64x16xf32>
    %c18 = arith.constant 18 : index
    %c0_47 = arith.constant 0 : index
    %c0_48 = arith.constant 0 : index
    %53 = vector.load %arg23[%c18, %c0_47, %c0_48] : memref<36x9x16xf32, #tpu.memory_space<vmem>>, vector<8x8x16xf32>
    %54 = vector.shape_cast %53 : vector<8x8x16xf32> to vector<64x16xf32>
    %c27 = arith.constant 27 : index
    %c0_49 = arith.constant 0 : index
    %c0_50 = arith.constant 0 : index
    %55 = vector.load %arg23[%c27, %c0_49, %c0_50] : memref<36x9x16xf32, #tpu.memory_space<vmem>>, vector<8x8x16xf32>
    %56 = vector.shape_cast %55 : vector<8x8x16xf32> to vector<64x16xf32>
    %c18_51 = arith.constant 18 : index
    %c1_52 = arith.constant 1 : index
    %c0_53 = arith.constant 0 : index
    %57 = vector.load %arg23[%c18_51, %c1_52, %c0_53] : memref<36x9x16xf32, #tpu.memory_space<vmem>>, vector<8x8x16xf32>
    %58 = vector.shape_cast %57 : vector<8x8x16xf32> to vector<64x16xf32>
    %c1_54 = arith.constant 1 : index
    %c0_55 = arith.constant 0 : index
    %c0_56 = arith.constant 0 : index
    %59 = vector.load %arg23[%c1_54, %c0_55, %c0_56] : memref<36x9x16xf32, #tpu.memory_space<vmem>>, vector<8x8x16xf32>
    %60 = vector.shape_cast %59 : vector<8x8x16xf32> to vector<64x16xf32>
    %c10 = arith.constant 10 : index
    %c0_57 = arith.constant 0 : index
    %c0_58 = arith.constant 0 : index
    %61 = vector.load %arg23[%c10, %c0_57, %c0_58] : memref<36x9x16xf32, #tpu.memory_space<vmem>>, vector<8x8x16xf32>
    %62 = vector.shape_cast %61 : vector<8x8x16xf32> to vector<64x16xf32>
    %c1_59 = arith.constant 1 : index
    %c1_60 = arith.constant 1 : index
    %c0_61 = arith.constant 0 : index
    %63 = vector.load %arg23[%c1_59, %c1_60, %c0_61] : memref<36x9x16xf32, #tpu.memory_space<vmem>>, vector<8x8x16xf32>
    %64 = vector.shape_cast %63 : vector<8x8x16xf32> to vector<64x16xf32>
    %65 = tpu.concatenate %48, %50, %52, %54, %56, %58, %60, %62, %64 in 1 : vector<64x16xf32>, vector<64x16xf32>, vector<64x16xf32>, vector<64x16xf32>, vector<64x16xf32>, vector<64x16xf32>, vector<64x16xf32>, vector<64x16xf32>, vector<64x16xf32> -> vector<64x144xf32>
    %66 = arith.truncf %65 : vector<64x144xf32> to vector<64x144xbf16>
    %c0_62 = arith.constant 0 : index
    %c0_63 = arith.constant 0 : index
    %c0_64 = arith.constant 0 : index
    %67 = vector.load %arg9[%c0_62, %c0_63, %c0_64] : memref<2x144x16xbf16, #tpu.memory_space<vmem>>, vector<1x144x16xbf16>
    %68 = vector.shape_cast %67 : vector<1x144x16xbf16> to vector<144x16xbf16>
    %cst_65 = arith.constant dense<0.000000e+00> : vector<64x16xf32>
    %69 = tpu.matmul %66, %68, %cst_65 {dimension_numbers = #tpu.dot_dimension_numbers<[1], [0], [0], [1], [0, 0, 1, 1], [], []>} : vector<64x144xbf16>, vector<144x16xbf16>, vector<64x16xf32> -> vector<64x16xf32>
    %c0_66 = arith.constant 0 : index
    %c0_67 = arith.constant 0 : index
    %c0_68 = arith.constant 0 : index
    %70 = vector.load %arg10[%c0_66, %c0_67, %c0_68] : memref<2x1x16xf32, #tpu.memory_space<vmem>>, vector<1x1x16xf32>
    %71 = vector.shape_cast %70 : vector<1x1x16xf32> to vector<1x16xf32>
    %72 = vector.broadcast %71 : vector<1x16xf32> to vector<64x16xf32>
    %73 = arith.mulf %69, %72 : vector<64x16xf32>
    %c0_69 = arith.constant 0 : index
    %c0_70 = arith.constant 0 : index
    %c0_71 = arith.constant 0 : index
    %74 = vector.load %arg11[%c0_69, %c0_70, %c0_71] : memref<2x1x16xf32, #tpu.memory_space<vmem>>, vector<1x1x16xf32>
    %75 = vector.shape_cast %74 : vector<1x1x16xf32> to vector<1x16xf32>
    %76 = vector.broadcast %75 : vector<1x16xf32> to vector<64x16xf32>
    %77 = arith.addf %73, %76 : vector<64x16xf32>
    %cst_72 = arith.constant 0.000000e+00 : f32
    %78 = vector.broadcast %cst_72 : f32 to vector<64x16xf32>
    %79 = arith.maximumf %77, %78 : vector<64x16xf32>
    %c0_73 = arith.constant 0 : index
    %c0_74 = arith.constant 0 : index
    %c0_75 = arith.constant 0 : index
    %c0_76 = arith.constant 0 : index
    %80 = vector.load %arg2[%c0_73, %c0_74, %c0_75, %c0_76] : memref<1x40x10x16xbf16, #tpu.memory_space<vmem>>, vector<1x40x10x16xbf16>
    %81 = vector.shape_cast %80 : vector<1x40x10x16xbf16> to vector<40x10x16xbf16>
    %82 = vector.shape_cast %81 : vector<40x10x16xbf16> to vector<400x16xbf16>
    %c1_77 = arith.constant 1 : index
    %c0_78 = arith.constant 0 : index
    %c0_79 = arith.constant 0 : index
    %83 = vector.load %arg6[%c1_77, %c0_78, %c0_79] : memref<2x16x16xbf16, #tpu.memory_space<vmem>>, vector<1x16x16xbf16>
    %84 = vector.shape_cast %83 : vector<1x16x16xbf16> to vector<16x16xbf16>
    %cst_80 = arith.constant dense<0.000000e+00> : vector<400x16xf32>
    %85 = tpu.matmul %82, %84, %cst_80 {dimension_numbers = #tpu.dot_dimension_numbers<[1], [0], [0], [1], [0, 0, 1, 1], [], []>} : vector<400x16xbf16>, vector<16x16xbf16>, vector<400x16xf32> -> vector<400x16xf32>
    %c1_81 = arith.constant 1 : index
    %c0_82 = arith.constant 0 : index
    %c0_83 = arith.constant 0 : index
    %86 = vector.load %arg7[%c1_81, %c0_82, %c0_83] : memref<2x1x16xf32, #tpu.memory_space<vmem>>, vector<1x1x16xf32>
    %87 = vector.shape_cast %86 : vector<1x1x16xf32> to vector<1x16xf32>
    %88 = vector.broadcast %87 : vector<1x16xf32> to vector<400x16xf32>
    %89 = arith.mulf %85, %88 : vector<400x16xf32>
    %c1_84 = arith.constant 1 : index
    %c0_85 = arith.constant 0 : index
    %c0_86 = arith.constant 0 : index
    %90 = vector.load %arg8[%c1_84, %c0_85, %c0_86] : memref<2x1x16xf32, #tpu.memory_space<vmem>>, vector<1x1x16xf32>
    %91 = vector.shape_cast %90 : vector<1x1x16xf32> to vector<1x16xf32>
    %92 = vector.broadcast %91 : vector<1x16xf32> to vector<400x16xf32>
    %93 = arith.addf %89, %92 : vector<400x16xf32>
    %cst_87 = arith.constant 0.000000e+00 : f32
    %94 = vector.broadcast %cst_87 : f32 to vector<400x16xf32>
    %95 = arith.maximumf %93, %94 : vector<400x16xf32>
    %c0_88 = arith.constant 0 : index
    %c0_89 = arith.constant 0 : index
    %96 = vector.load %arg4[%c0_88, %c0_89] : memref<400x1xf32, #tpu.memory_space<vmem>>, vector<400x1xf32>
    %97 = vector.broadcast %96 : vector<400x1xf32> to vector<400x16xf32>
    %98 = arith.mulf %95, %97 : vector<400x16xf32>
    %99 = vector.shape_cast %98 : vector<400x16xf32> to vector<40x10x16xf32>
    %c0_90 = arith.constant 0 : index
    %c0_91 = arith.constant 0 : index
    %c0_92 = arith.constant 0 : index
    %100 = vector.load %arg24[%c0_90, %c0_91, %c0_92] : memref<40x10x16xf32, #tpu.memory_space<vmem>>, vector<40x10x16xf32>
    tpu.vector_store %arg24[%c0_90, %c0_91, %c0_92], %99 {strides = array<i32>} : memref<40x10x16xf32, #tpu.memory_space<vmem>>, vector<40x10x16xf32>,
    %c0_93 = arith.constant 0 : index
    %c0_94 = arith.constant 0 : index
    %c0_95 = arith.constant 0 : index
    %101 = vector.load %arg24[%c0_93, %c0_94, %c0_95] : memref<40x10x16xf32, #tpu.memory_space<vmem>>, vector<8x8x16xf32>
    %102 = vector.shape_cast %101 : vector<8x8x16xf32> to vector<64x16xf32>
    %c0_96 = arith.constant 0 : index
    %c1_97 = arith.constant 1 : index
    %c0_98 = arith.constant 0 : index
    %103 = vector.load %arg24[%c0_96, %c1_97, %c0_98] : memref<40x10x16xf32, #tpu.memory_space<vmem>>, vector<8x8x16xf32>
    %104 = vector.shape_cast %103 : vector<8x8x16xf32> to vector<64x16xf32>
    %c0_99 = arith.constant 0 : index
    %c2_100 = arith.constant 2 : index
    %c0_101 = arith.constant 0 : index
    %105 = vector.load %arg24[%c0_99, %c2_100, %c0_101] : memref<40x10x16xf32, #tpu.memory_space<vmem>>, vector<8x8x16xf32>
    %106 = vector.shape_cast %105 : vector<8x8x16xf32> to vector<64x16xf32>
    %c1_102 = arith.constant 1 : index
    %c0_103 = arith.constant 0 : index
    %c0_104 = arith.constant 0 : index
    %107 = vector.load %arg24[%c1_102, %c0_103, %c0_104] : memref<40x10x16xf32, #tpu.memory_space<vmem>>, vector<8x8x16xf32>
    %108 = vector.shape_cast %107 : vector<8x8x16xf32> to vector<64x16xf32>
    %c1_105 = arith.constant 1 : index
    %c1_106 = arith.constant 1 : index
    %c0_107 = arith.constant 0 : index
    %109 = vector.load %arg24[%c1_105, %c1_106, %c0_107] : memref<40x10x16xf32, #tpu.memory_space<vmem>>, vector<8x8x16xf32>
    %110 = vector.shape_cast %109 : vector<8x8x16xf32> to vector<64x16xf32>
    %c1_108 = arith.constant 1 : index
    %c2_109 = arith.constant 2 : index
    %c0_110 = arith.constant 0 : index
    %111 = vector.load %arg24[%c1_108, %c2_109, %c0_110] : memref<40x10x16xf32, #tpu.memory_space<vmem>>, vector<8x8x16xf32>
    %112 = vector.shape_cast %111 : vector<8x8x16xf32> to vector<64x16xf32>
    %c2_111 = arith.constant 2 : index
    %c0_112 = arith.constant 0 : index
    %c0_113 = arith.constant 0 : index
    %113 = vector.load %arg24[%c2_111, %c0_112, %c0_113] : memref<40x10x16xf32, #tpu.memory_space<vmem>>, vector<8x8x16xf32>
    %114 = vector.shape_cast %113 : vector<8x8x16xf32> to vector<64x16xf32>
    %c2_114 = arith.constant 2 : index
    %c1_115 = arith.constant 1 : index
    %c0_116 = arith.constant 0 : index
    %115 = vector.load %arg24[%c2_114, %c1_115, %c0_116] : memref<40x10x16xf32, #tpu.memory_space<vmem>>, vector<8x8x16xf32>
    %116 = vector.shape_cast %115 : vector<8x8x16xf32> to vector<64x16xf32>
    %c2_117 = arith.constant 2 : index
    %c2_118 = arith.constant 2 : index
    %c0_119 = arith.constant 0 : index
    %117 = vector.load %arg24[%c2_117, %c2_118, %c0_119] : memref<40x10x16xf32, #tpu.memory_space<vmem>>, vector<8x8x16xf32>
    %118 = vector.shape_cast %117 : vector<8x8x16xf32> to vector<64x16xf32>
    %119 = tpu.concatenate %102, %104, %106, %108, %110, %112, %114, %116, %118 in 1 : vector<64x16xf32>, vector<64x16xf32>, vector<64x16xf32>, vector<64x16xf32>, vector<64x16xf32>, vector<64x16xf32>, vector<64x16xf32>, vector<64x16xf32>, vector<64x16xf32> -> vector<64x144xf32>
    %120 = arith.truncf %119 : vector<64x144xf32> to vector<64x144xbf16>
    %c1_120 = arith.constant 1 : index
    %c0_121 = arith.constant 0 : index
    %c0_122 = arith.constant 0 : index
    %121 = vector.load %arg9[%c1_120, %c0_121, %c0_122] : memref<2x144x16xbf16, #tpu.memory_space<vmem>>, vector<1x144x16xbf16>
    %122 = vector.shape_cast %121 : vector<1x144x16xbf16> to vector<144x16xbf16>
    %cst_123 = arith.constant dense<0.000000e+00> : vector<64x16xf32>
    %123 = tpu.matmul %120, %122, %cst_123 {dimension_numbers = #tpu.dot_dimension_numbers<[1], [0], [0], [1], [0, 0, 1, 1], [], []>} : vector<64x144xbf16>, vector<144x16xbf16>, vector<64x16xf32> -> vector<64x16xf32>
    %c1_124 = arith.constant 1 : index
    %c0_125 = arith.constant 0 : index
    %c0_126 = arith.constant 0 : index
    %124 = vector.load %arg10[%c1_124, %c0_125, %c0_126] : memref<2x1x16xf32, #tpu.memory_space<vmem>>, vector<1x1x16xf32>
    %125 = vector.shape_cast %124 : vector<1x1x16xf32> to vector<1x16xf32>
    %126 = vector.broadcast %125 : vector<1x16xf32> to vector<64x16xf32>
    %127 = arith.mulf %123, %126 : vector<64x16xf32>
    %c1_127 = arith.constant 1 : index
    %c0_128 = arith.constant 0 : index
    %c0_129 = arith.constant 0 : index
    %128 = vector.load %arg11[%c1_127, %c0_128, %c0_129] : memref<2x1x16xf32, #tpu.memory_space<vmem>>, vector<1x1x16xf32>
    %129 = vector.shape_cast %128 : vector<1x1x16xf32> to vector<1x16xf32>
    %130 = vector.broadcast %129 : vector<1x16xf32> to vector<64x16xf32>
    %131 = arith.addf %127, %130 : vector<64x16xf32>
    %cst_130 = arith.constant 0.000000e+00 : f32
    %132 = vector.broadcast %cst_130 : f32 to vector<64x16xf32>
    %133 = arith.maximumf %131, %132 : vector<64x16xf32>
    %134 = tpu.concatenate %79, %133 in 1 : vector<64x16xf32>, vector<64x16xf32> -> vector<64x32xf32>
    %cst_131 = arith.constant dense<0.000000e+00> : vector<32xf32>
    %135 = vector.multi_reduction <add>, %134, %cst_131 [0] : vector<64x32xf32> to vector<32xf32>
    %136 = vector.shape_cast %135 : vector<32xf32> to vector<1x32xf32>
    %cst_132 = arith.constant 1.562500e-02 : f32
    %137 = vector.broadcast %cst_132 : f32 to vector<1x32xf32>
    %138 = arith.mulf %136, %137 : vector<1x32xf32>
    %139 = arith.truncf %138 : vector<1x32xf32> to vector<1x32xbf16>
    %c0_133 = arith.constant 0 : index
    %c0_134 = arith.constant 0 : index
    %140 = vector.load %arg12[%c0_133, %c0_134] : memref<32x4xbf16, #tpu.memory_space<vmem>>, vector<32x4xbf16>
    %cst_135 = arith.constant dense<0.000000e+00> : vector<1x4xf32>
    %141 = tpu.matmul %139, %140, %cst_135 {dimension_numbers = #tpu.dot_dimension_numbers<[1], [0], [0], [1], [0, 0, 1, 1], [], []>} : vector<1x32xbf16>, vector<32x4xbf16>, vector<1x4xf32> -> vector<1x4xf32>
    %c0_136 = arith.constant 0 : index
    %c0_137 = arith.constant 0 : index
    %142 = vector.load %arg13[%c0_136, %c0_137] : memref<1x4xf32, #tpu.memory_space<vmem>>, vector<1x4xf32>
    %143 = arith.addf %141, %142 : vector<1x4xf32>
    %cst_138 = arith.constant 0.000000e+00 : f32
    %144 = vector.broadcast %cst_138 : f32 to vector<1x4xf32>
    %145 = arith.maximumf %143, %144 : vector<1x4xf32>
    %146 = arith.truncf %145 : vector<1x4xf32> to vector<1x4xbf16>
    %c0_139 = arith.constant 0 : index
    %c0_140 = arith.constant 0 : index
    %147 = vector.load %arg14[%c0_139, %c0_140] : memref<4x32xbf16, #tpu.memory_space<vmem>>, vector<4x32xbf16>
    %cst_141 = arith.constant dense<0.000000e+00> : vector<1x32xf32>
    %148 = tpu.matmul %146, %147, %cst_141 {dimension_numbers = #tpu.dot_dimension_numbers<[1], [0], [0], [1], [0, 0, 1, 1], [], []>} : vector<1x4xbf16>, vector<4x32xbf16>, vector<1x32xf32> -> vector<1x32xf32>
    %c0_142 = arith.constant 0 : index
    %c0_143 = arith.constant 0 : index
    %149 = vector.load %arg15[%c0_142, %c0_143] : memref<1x32xf32, #tpu.memory_space<vmem>>, vector<1x32xf32>
    %150 = arith.addf %148, %149 : vector<1x32xf32>
    %151 = arith.negf %150 : vector<1x32xf32>
    %152 = math.exp %151 : vector<1x32xf32>
    %cst_144 = arith.constant 1.000000e+00 : f32
    %153 = vector.broadcast %cst_144 : f32 to vector<1x32xf32>
    %154 = arith.addf %153, %152 : vector<1x32xf32>
    %155 = arith.divf %153, %154 : vector<1x32xf32>
    %156 = vector.broadcast %155 : vector<1x32xf32> to vector<64x32xf32>
    %157 = arith.mulf %134, %156 : vector<64x32xf32>
    %158 = arith.truncf %157 : vector<64x32xf32> to vector<64x32xbf16>
    %c0_145 = arith.constant 0 : index
    %c0_146 = arith.constant 0 : index
    %159 = vector.load %arg16[%c0_145, %c0_146] : memref<32x32xbf16, #tpu.memory_space<vmem>>, vector<32x32xbf16>
    %cst_147 = arith.constant dense<0.000000e+00> : vector<64x32xf32>
    %160 = tpu.matmul %158, %159, %cst_147 {dimension_numbers = #tpu.dot_dimension_numbers<[1], [0], [0], [1], [0, 0, 1, 1], [], []>} : vector<64x32xbf16>, vector<32x32xbf16>, vector<64x32xf32> -> vector<64x32xf32>
    %c0_148 = arith.constant 0 : index
    %c0_149 = arith.constant 0 : index
    %161 = vector.load %arg17[%c0_148, %c0_149] : memref<1x32xf32, #tpu.memory_space<vmem>>, vector<1x32xf32>
    %162 = vector.broadcast %161 : vector<1x32xf32> to vector<64x32xf32>
    %163 = arith.mulf %160, %162 : vector<64x32xf32>
    %c0_150 = arith.constant 0 : index
    %c0_151 = arith.constant 0 : index
    %164 = vector.load %arg18[%c0_150, %c0_151] : memref<1x32xf32, #tpu.memory_space<vmem>>, vector<1x32xf32>
    %165 = vector.broadcast %164 : vector<1x32xf32> to vector<64x32xf32>
    %166 = arith.addf %163, %165 : vector<64x32xf32>
    %167 = arith.addf %166, %25 : vector<64x32xf32>
    %cst_152 = arith.constant 0.000000e+00 : f32
    %168 = vector.broadcast %cst_152 : f32 to vector<64x32xf32>
    %169 = arith.maximumf %167, %168 : vector<64x32xf32>
    %c0_153 = arith.constant 0 : index
    %c0_154 = arith.constant 0 : index
    %c0_155 = arith.constant 0 : index
    %170 = vector.load %arg22[%c0_153, %c0_154, %c0_155] : memref<1x64x32xf32, #tpu.memory_space<vmem>>, vector<1x64x32xf32>
    %171 = vector.shape_cast %170 : vector<1x64x32xf32> to vector<64x32xf32>
    %172 = vector.shape_cast %169 : vector<64x32xf32> to vector<1x64x32xf32>
    tpu.vector_store %arg22[%c0_153, %c0_154, %c0_155], %172 {strides = array<i32>} : memref<1x64x32xf32, #tpu.memory_space<vmem>>, vector<1x64x32xf32>,
    return
  }
  func.func @transform_0(%arg0: i32) -> (i32, i32, i32, i32) {
    %c0_i32 = arith.constant 0 : i32
    %c0_i32_0 = arith.constant 0 : i32
    %c0_i32_1 = arith.constant 0 : i32
    %c0_i32_2 = arith.constant 0 : i32
    return %arg0, %c0_i32, %c0_i32_0, %c0_i32_1 : i32, i32, i32, i32
  }
  func.func @transform_1(%arg0: i32) -> (i32, i32, i32, i32) {
    %c0_i32 = arith.constant 0 : i32
    %c0_i32_0 = arith.constant 0 : i32
    %c0_i32_1 = arith.constant 0 : i32
    %c0_i32_2 = arith.constant 0 : i32
    return %arg0, %c0_i32, %c0_i32_0, %c0_i32_1 : i32, i32, i32, i32
  }
  func.func @transform_2(%arg0: i32) -> (i32, i32) {
    %c0_i32 = arith.constant 0 : i32
    %c0_i32_0 = arith.constant 0 : i32
    %c0_i32_1 = arith.constant 0 : i32
    return %c0_i32, %c0_i32_0 : i32, i32
  }
  func.func @transform_3(%arg0: i32) -> (i32, i32) {
    %c0_i32 = arith.constant 0 : i32
    %c0_i32_0 = arith.constant 0 : i32
    %c0_i32_1 = arith.constant 0 : i32
    return %c0_i32, %c0_i32_0 : i32, i32
  }
  func.func @transform_4(%arg0: i32) -> (i32, i32, i32, i32) {
    %c0_i32 = arith.constant 0 : i32
    %c0_i32_0 = arith.constant 0 : i32
    %c0_i32_1 = arith.constant 0 : i32
    %c0_i32_2 = arith.constant 0 : i32
    return %arg0, %c0_i32, %c0_i32_0, %c0_i32_1 : i32, i32, i32, i32
  }
  func.func @transform_5(%arg0: i32) -> (i32, i32, i32) {
    %c0_i32 = arith.constant 0 : i32
    %c0_i32_0 = arith.constant 0 : i32
    %c0_i32_1 = arith.constant 0 : i32
    %c0_i32_2 = arith.constant 0 : i32
    return %c0_i32, %c0_i32_0, %c0_i32_1 : i32, i32, i32
  }
  func.func @transform_6(%arg0: i32) -> (i32, i32, i32) {
    %c0_i32 = arith.constant 0 : i32
    %c0_i32_0 = arith.constant 0 : i32
    %c0_i32_1 = arith.constant 0 : i32
    %c0_i32_2 = arith.constant 0 : i32
    return %c0_i32, %c0_i32_0, %c0_i32_1 : i32, i32, i32
  }
  func.func @transform_7(%arg0: i32) -> (i32, i32, i32) {
    %c0_i32 = arith.constant 0 : i32
    %c0_i32_0 = arith.constant 0 : i32
    %c0_i32_1 = arith.constant 0 : i32
    %c0_i32_2 = arith.constant 0 : i32
    return %c0_i32, %c0_i32_0, %c0_i32_1 : i32, i32, i32
  }
  func.func @transform_8(%arg0: i32) -> (i32, i32, i32) {
    %c0_i32 = arith.constant 0 : i32
    %c0_i32_0 = arith.constant 0 : i32
    %c0_i32_1 = arith.constant 0 : i32
    %c0_i32_2 = arith.constant 0 : i32
    return %c0_i32, %c0_i32_0, %c0_i32_1 : i32, i32, i32
  }
  func.func @transform_9(%arg0: i32) -> (i32, i32, i32) {
    %c0_i32 = arith.constant 0 : i32
    %c0_i32_0 = arith.constant 0 : i32
    %c0_i32_1 = arith.constant 0 : i32
    %c0_i32_2 = arith.constant 0 : i32
    return %c0_i32, %c0_i32_0, %c0_i32_1 : i32, i32, i32
  }
  func.func @transform_10(%arg0: i32) -> (i32, i32, i32) {
    %c0_i32 = arith.constant 0 : i32
    %c0_i32_0 = arith.constant 0 : i32
    %c0_i32_1 = arith.constant 0 : i32
    %c0_i32_2 = arith.constant 0 : i32
    return %c0_i32, %c0_i32_0, %c0_i32_1 : i32, i32, i32
  }
  func.func @transform_11(%arg0: i32) -> (i32, i32) {
    %c0_i32 = arith.constant 0 : i32
    %c0_i32_0 = arith.constant 0 : i32
    %c0_i32_1 = arith.constant 0 : i32
    return %c0_i32, %c0_i32_0 : i32, i32
  }
  func.func @transform_12(%arg0: i32) -> (i32, i32) {
    %c0_i32 = arith.constant 0 : i32
    %c0_i32_0 = arith.constant 0 : i32
    %c0_i32_1 = arith.constant 0 : i32
    return %c0_i32, %c0_i32_0 : i32, i32
  }
  func.func @transform_13(%arg0: i32) -> (i32, i32) {
    %c0_i32 = arith.constant 0 : i32
    %c0_i32_0 = arith.constant 0 : i32
    %c0_i32_1 = arith.constant 0 : i32
    return %c0_i32, %c0_i32_0 : i32, i32
  }
  func.func @transform_14(%arg0: i32) -> (i32, i32) {
    %c0_i32 = arith.constant 0 : i32
    %c0_i32_0 = arith.constant 0 : i32
    %c0_i32_1 = arith.constant 0 : i32
    return %c0_i32, %c0_i32_0 : i32, i32
  }
  func.func @transform_15(%arg0: i32) -> (i32, i32) {
    %c0_i32 = arith.constant 0 : i32
    %c0_i32_0 = arith.constant 0 : i32
    %c0_i32_1 = arith.constant 0 : i32
    return %c0_i32, %c0_i32_0 : i32, i32
  }
  func.func @transform_16(%arg0: i32) -> (i32, i32) {
    %c0_i32 = arith.constant 0 : i32
    %c0_i32_0 = arith.constant 0 : i32
    %c0_i32_1 = arith.constant 0 : i32
    return %c0_i32, %c0_i32_0 : i32, i32
  }
  func.func @transform_17(%arg0: i32) -> (i32, i32) {
    %c0_i32 = arith.constant 0 : i32
    %c0_i32_0 = arith.constant 0 : i32
    %c0_i32_1 = arith.constant 0 : i32
    return %c0_i32, %c0_i32_0 : i32, i32
  }
  func.func @transform_18(%arg0: i32) -> (i32, i32) {
    %c0_i32 = arith.constant 0 : i32
    %c0_i32_0 = arith.constant 0 : i32
    %c0_i32_1 = arith.constant 0 : i32
    return %c0_i32, %c0_i32_0 : i32, i32
  }
  func.func @transform_19(%arg0: i32) -> (i32, i32) {
    %c0_i32 = arith.constant 0 : i32
    %c0_i32_0 = arith.constant 0 : i32
    %c0_i32_1 = arith.constant 0 : i32
    return %c0_i32, %c0_i32_0 : i32, i32
  }
  func.func @transform_20(%arg0: i32) -> (i32, i32) {
    %c0_i32 = arith.constant 0 : i32
    %c0_i32_0 = arith.constant 0 : i32
    %c0_i32_1 = arith.constant 0 : i32
    return %c0_i32, %c0_i32_0 : i32, i32
  }
  func.func @transform_21(%arg0: i32) -> (i32, i32, i32) {
    %c0_i32 = arith.constant 0 : i32
    %c0_i32_0 = arith.constant 0 : i32
    %c0_i32_1 = arith.constant 0 : i32
    return %arg0, %c0_i32, %c0_i32_0 : i32, i32, i32
  }
}

</mosaic_0001>

<bundles_post_ra>
// kernel: dblock_forward.1
= control target key start
LH: loop header
LB: loop body
LE: loop exit
PB: predicated region body
PF: predicated region fallthrough
CT: control target
= control target key end

     0   :  { %s20650_s0 = inlined_call_operand.vmem [shape: bf16[2,36,9,16], index: 0, kind: input, shape index: {}]   ;;  %s20651_s1 = inlined_call_operand.vmem [shape: bf16[2,40,10,16], index: 1, kind: input, shape index: {}]   ;;  %s20652_s2 = inlined_call_operand.vmem [shape: f32[324,1], index: 2, kind: input, shape index: {}]   ;;  %s20653_s3 = inlined_call_operand.vmem [shape: f32[400,1], index: 3, kind: input, shape index: {}]   ;;  %s20654_s4 = inlined_call_operand.vmem [shape: bf16[2,4,64,16], index: 4, kind: input, shape index: {}]   ;;  %s20655_s5 = inlined_call_operand.vmem [shape: bf16[2,16,16], index: 5, kind: input, shape index: {}]   ;;  %s20656_s6 = inlined_call_operand.vmem [shape: f32[2,1,16], index: 6, kind: input, shape index: {}]   ;;  %s20657_s7 = inlined_call_operand.vmem [shape: f32[2,1,16], index: 7, kind: input, shape index: {}]   ;;  %s20658_s8 = inlined_call_operand.vmem [shape: bf16[2,144,16], index: 8, kind: input, shape index: {}]   ;;  %s20659_s9 = inlined_call_operand.vmem [shape: f32[2,1,16], index: 9, kind: input, shape index: {}]   ;;  %s20660_s10 = inlined_call_operand.vmem [shape: f32[2,1,16], index: 10, kind: input, shape index: {}]   ;;  %s20661_s11 = inlined_call_operand.vmem [shape: bf16[32,4], index: 11, kind: input, shape index: {}]   ;;  %s20662_s12 = inlined_call_operand.vmem [shape: f32[1,4], index: 12, kind: input, shape index: {}]   ;;  %s20663_s13 = inlined_call_operand.vmem [shape: bf16[4,32], index: 13, kind: input, shape index: {}]   ;;  %s20664_s14 = inlined_call_operand.vmem [shape: f32[1,32], index: 14, kind: input, shape index: {}]   ;;  %s20665_s15 = inlined_call_operand.vmem [shape: bf16[32,32], index: 15, kind: input, shape index: {}]   ;;  %s20666_s16 = inlined_call_operand.vmem [shape: f32[1,32], index: 16, kind: input, shape index: {}]   ;;  %s20667_s17 = inlined_call_operand.vmem [shape: f32[1,32], index: 17, kind: input, shape index: {}]   ;;  %s20668_s18 = inlined_call_operand.vmem [shape: bf16[16,32], index: 18, kind: input, shape index: {}]   ;;  %s20669_s19 = inlined_call_operand.vmem [shape: f32[1,32], index: 19, kind: input, shape index: {}]   ;;  %s20670_s20 = inlined_call_operand.vmem [shape: f32[1,32], index: 20, kind: input, shape index: {}]   ;;  %s20671_s21 = inlined_call_operand.hbm [shape: f32[2,64,32], index: 21, kind: output, shape index: {}]  }
   0x1   :  { %20707 = sst [smem:[#allocation26_spill]] %s20650_s0 }
   0x2   :  { %20708 = sst [smem:[#allocation27_spill]] %s20651_s1 }
   0x3   :  { %20709 = sst [smem:[#allocation28_spill]] %s20652_s2 }
   0x4   :  { %20710 = sst [smem:[#allocation29_spill]] %s20653_s3 }
   0x5   :  { %20711 = sst [smem:[#allocation30_spill]] %s20654_s4 }
   0x6   :  { %20712 = sst [smem:[#allocation31_spill]] %s20655_s5 }
   0x7   :  { %20713 = sst [smem:[#allocation32_spill]] %s20667_s17 }
   0x8   :  { %20714 = sst [smem:[#allocation33_spill]] %s20668_s18 }
   0x9   :  { %20715 = sst [smem:[#allocation34_spill]] %s20670_s20 }
   0xa   :  { %20716 = sst [smem:[#allocation35_spill]] %s20671_s21 }
   0xb   :  { %26 = vsyncpa [#allocation5], 0 }
   0xc   :  { %28 = vsyncpa [#allocation5 + $0x1], 0  ;;  %s17761_s2 = smov 0   ;;  %s17763_s25 = smov 0  }
   0xd   :  { %s17765_s26 = smov 0   ;;  %s17767_s27 = smov 0  }
   0xe LB: > { %20717 = sst [smem:[#allocation7_spill]] %s17622_s2  ;;  %s17782_s3 = sadd.s32 4294967295, %s17634_s27   ;;  %s17634_s27 = sphi %s17767_s27, %s20773_s27   ;;  %s17630_s26 = sphi %s17765_s26, %s20775_s26   ;;  %s17626_s25 = sphi %s17763_s25, %s20777_s25   ;;  %s17622_s2 = sphi %s17761_s2, %s20776_s2  }
   0xf   : > { %20718 = sst [smem:[#allocation8_spill]] %s17630_s26  ;;  %s16354_s28 = sadd.s32 4294967294, %s17634_s27  }
  0x10   : > { %20719 = sst [smem:[#allocation9_spill]] %s17634_s27  ;;  %s17786_s29 = sadd.s32 1, %s17634_s27  }
  0x11   : > { %20720 = sst [smem:[#allocation10_spill]] %s17782_s3  ;;  %s497_s0 = sadd.s32 1, %s17630_s26 }
  0x12   : > { %20721 = sst [smem:[#allocation11_spill]] %s17786_s29  ;;  %s494_s4 = ssub.s32 %s17634_s27, %s17786_s29 }
  0x13   : > { %p507_p0 = scmp.ne.s32.totalorder %s17630_s26, %s17626_s25  ;;  %p495_p1 = scmp.eq.s32.totalorder %s494_s4, 0 }
  0x14   : > { %p508_p2 = scmp.eq.s32.totalorder %s17782_s3, 1  ;;  %p513_p3 = scmp.ne.s32.totalorder %s17626_s25, %s17622_s2 }
  0x15   : > { %p514_p4 = scmp.eq.s32.totalorder %s16354_s28, 1  ;;  %p16357_p7 = scmp.ge.s32.totalorder %s17634_s27, 1 }
  0x16   : > { %s17797_s30 = scalar_select %p495_p1, %s17630_s26, %s497_s0  }
  0x17   : > { %p17799_p5 = por %p508_p2, %p507_p0  ;;  %p17803_p6 = por %p514_p4, %p513_p3 }
  0x18   : > { %20722 = sst [smem:[#allocation12_spill]] %s17797_s30  ;;  %p610_p8 = scmp.lt.s32.totalorder %s17634_s27, 3 }
  0x19   : > { %s20723_s5 = scalar_select %p17799_p5, 1, 0 }
  0x1a   : > { %s20725_s22 = scalar_select %p17803_p6, 1, 0 }
  0x1b   : > { %20724 = sst [smem:[#allocation13_spill]] %s20723_s5  ;;  %p611_p9 = pnand %p16357_p7, %p610_p8 }
  0x1c   : > { %20726 = sst [smem:[#allocation14_spill]] %s20725_s22 }
  0x1d   : > { %614 = sbr.rel (%p611_p9) target bundleno = 2218 (0x8aa), region = 104 }
  0x24   : > { %s20727_s18 = sld [smem:[#allocation33_spill]]  ;;  %p680_p10 = scmp.lt.s32.totalorder %s17782_s3, 1  ;;  %v1070_v1 = vlaneseq  ;;  %v17636_v2 = vmov 1966171168   ;;  %v20680_v6 = vmov 0.0   ;;  %v20682_v7 = vmov 0  }
  0x25   : > { %v17816_v3 = vunpack.c.l.s4 %v17636_v2  ;;  %s20728_s4 = sld [smem:[#allocation28_spill]]  ;;  %17250 = vset.pattern.permute.xlu1 %v20682_v7  ;;  %s20729_s29 = sld [smem:[#allocation30_spill]]  ;;  %17249 = vset.pattern.permute.xlu0 %v20682_v7  ;;  %vm807_vm0 = vcmask 130048   ;;  %vm17639_vm1 = vmmov 0   ;;  %vm8969_vm2 = vcmask 122880  }
  0x26   : > { %s17814_s24 = scalar_select %p680_p10, %s17782_s3, 1  ;;  %v17843_v14 = vshrl.u32 %v1070_v1, 7  ;;  %9496 = vmatprep.subr.bf16.mxu0 %v20682_v7  ;;  %vm9350_vm3 = vcmask 261120   ;;  %vm9359_vm4 = vcmask 392192   ;;  %vm9368_vm5 = vcmask 523264  }
  0x27   : > { %v1069_v13 = vunpack.c.0.s8 %v17816_v3  ;;  %s20694_s28 = smov 96   ;;  %s20690_s0 = smov 16   ;;  %vm9377_vm6 = vcmask 654336   ;;  %vm9386_vm7 = vcmask 785408   ;;  %vm9395_vm8 = vcmask 916480  }
  0x28   : > { %s16825_s23 = sshll.u32 %s17814_s24, 7  ;;  %20730 = vst [vmem:[#allocation15_spill] sm:$0xff] %v17843_v14  ;;  %s20698_s26 = smov 80   ;;  %vm15278_vm9 = vcmask 123904   ;;  %vm16041_vm10 = vcmask 1041408   ;;  %vm16037_vm11 = vcmask 31744  }
  0x29   : > { %s20704_s2 = smov 64   ;;  %s20745_s30 = smov 16  }
  0x2a   : > { %v17531_v0 = vld [vmem:[%s20727_s18] sm:$0xff]   ;;  %s20688_s18 = smov 112   ;;  %s17195_s3 = smul.u32 320, %s17814_s24 }
  0x2b   : > { %16970 = vmatprep.subr.bf16.mxu1 %v17531_v0  ;;  %v4327_v4 = vld [vmem:[%s20728_s4 + $0x58] sm:$0xff]  ;;  %v4326_v5 = vld [vmem:[%s20728_s4 + $0x50] sm:$0xff]  ;;  %s17830_s22 = scalar_lea.vmem %s20729_s29, %s16825_s23  ;;  %v4337_v8 = vld [vmem:[%s20728_s4 + $0xa8] sm:$0xff]  ;;  %s17194_s23 = smul.u32 288, %s17814_s24 }
  0x2c   : > { %16971 = vmatpush3.bf16.msra.mxu1 %v17531_v0  ;;  %4414 = vperm.xlu1 %17250, %v4327_v4   ;;  %v4317_v9 = vld [vmem:[%s20728_s4 + $0x8] sm:$0xff]  ;;  %v16828_v10 = vld [vmem:[%s17830_s22] sm:$0xff]   ;;  %v16892_v32 = vld [vmem:[%s17830_s22 + $0x10] sm:$0xff]   ;;  %s20731_s29 = sld [smem:[#allocation26_spill]]  ;;  %s20753_s17 = smov 32  }
  0x2d   : > { %16980 = vmatprep.subr.bf16.mxu1 %v20680_v6  ;;  %v16894_v11 = vld [vmem:[%s17830_s22 + $0x20] sm:$0xff]   ;;  %4409 = vperm.xlu0 %17249, %v4326_v5   ;;  %v16829_v15 = vunpack.c.l.bf16 %v16828_v10  ;;  %v16830_v16 = vunpack.c.h.bf16 %v16828_v10  ;;  %v16891_v20 = vld [vmem:[%s17830_s22 + $0x8] sm:$0xff]   ;;  %v16896_v37 = vld [vmem:[%s17830_s22 + $0x30] sm:$0xff]   ;;  %v16837_v47 = vunpack.c.l.bf16 %v16892_v32  ;;  %v16838_v48 = vunpack.c.h.bf16 %v16892_v32  ;;  %s20754_s20 = smov 64   ;;  %s20755_s21 = smov 48  }
  0x2e   : > { %v16898_v12 = vld [vmem:[%s17830_s22 + $0x40] sm:$0xff]   ;;  %v16845_v17 = vunpack.c.l.bf16 %v16894_v11  ;;  %v16846_v18 = vunpack.c.h.bf16 %v16894_v11  ;;  %v16895_v21 = vld [vmem:[%s17830_s22 + $0x28] sm:$0xff]   ;;  %v16833_v30 = vunpack.c.l.bf16 %v16891_v20  ;;  %v16834_v31 = vunpack.c.h.bf16 %v16891_v20  ;;  %v4346_v38 = vld [vmem:[%s20728_s4 + $0xf0] sm:$0xff]  ;;  %s20756_s5 = smov 80  }
  0x2f   : > { %v16902_v19 = vld [vmem:[%s17830_s22 + $0x60] sm:$0xff]   ;;  %v16861_v22 = vunpack.c.l.bf16 %v16898_v12  ;;  %v16862_v23 = vunpack.c.h.bf16 %v16898_v12  ;;  %v16899_v26 = vld [vmem:[%s17830_s22 + $0x48] sm:$0xff]   ;;  %v16849_v33 = vunpack.c.l.bf16 %v16895_v21  ;;  %v16850_v34 = vunpack.c.h.bf16 %v16895_v21  ;;  %v16900_v43 = vld [vmem:[%s17830_s22 + $0x50] sm:$0xff]  }
  0x30   : > { %v16877_v24 = vunpack.c.l.bf16 %v16902_v19  ;;  %v16878_v25 = vunpack.c.h.bf16 %v16902_v19  ;;  %v16903_v27 = vld [vmem:[%s17830_s22 + $0x68] sm:$0xff]   ;;  %v729_v28 = vadd.f32 %v16845_v17, %v16829_v15  ;;  %v730_v29 = vadd.f32 %v16846_v18, %v16830_v16  ;;  %4464 = vperm.xlu1 %17250, %v4337_v8   ;;  %v4316_v44 = vld [vmem:[%s20728_s4] sm:$0xff]  ;;  %v16904_v53 = vld [vmem:[%s17830_s22 + $0x70] sm:$0xff]  }
  0x31   : > { %v16865_v35 = vunpack.c.l.bf16 %v16899_v26  ;;  %v16866_v36 = vunpack.c.h.bf16 %v16899_v26  ;;  %4364 = vperm.xlu0 %17249, %v4317_v9   ;;  %v16881_v41 = vunpack.c.l.bf16 %v16903_v27  ;;  %v16882_v42 = vunpack.c.h.bf16 %v16903_v27  ;;  %v16893_v58 = vld [vmem:[%s17830_s22 + $0x18] sm:$0xff]   ;;  %v4336_v59 = vld [vmem:[%s20728_s4 + $0xa0] sm:$0xff]  ;;  %v4338_v18 = vld [vmem:[%s20728_s4 + $0xb0] sm:$0xff] }
  0x32   : > { %v754_v39 = vadd.f32 %v16861_v22, %v729_v28  ;;  %v755_v40 = vadd.f32 %v16862_v23, %v730_v29  ;;  %v731_v45 = vadd.f32 %v16849_v33, %v16833_v30  ;;  %v732_v46 = vadd.f32 %v16850_v34, %v16834_v31  ;;  %s17869_s1 = scalar_lea.vmem %s20731_s29, %s17194_s23  ;;  %v16897_v0 = vld [vmem:[%s17830_s22 + $0x38] sm:$0xff]   ;;  %v4328_v1 = vld [vmem:[%s20728_s4 + $0x60] sm:$0xff]  ;;  %s20696_s29 = smov 32  }
  0x33   : > { %v16853_v51 = vunpack.c.l.bf16 %v16896_v37  ;;  %v16854_v52 = vunpack.c.h.bf16 %v16896_v37  ;;  %v16869_v56 = vunpack.c.l.bf16 %v16900_v43  ;;  %v16870_v57 = vunpack.c.h.bf16 %v16900_v43  ;;  %v16901_v9 = vld [vmem:[%s17830_s22 + $0x58] sm:$0xff]   ;;  %v16394_v17 = vld.sshfl [vmem:[%s17869_s1] sm:$0x33 pattern:$0x75316420]  ;;  %s20692_s23 = smov 48  }
  0x34   : > { %v779_v49 = vadd.f32 %v16877_v24, %v754_v39  ;;  %v780_v50 = vadd.f32 %v16878_v25, %v755_v40  ;;  %4509 = vperm.xlu1 %17250, %v4346_v38   ;;  %v756_v54 = vadd.f32 %v16865_v35, %v731_v45  ;;  %v757_v55 = vadd.f32 %v16866_v36, %v732_v46  ;;  %v16905_v16 = vld [vmem:[%s17830_s22 + $0x78] sm:$0xff]   ;;  %v16396_v23 = vld.sshfl [vmem:[%s17869_s1 + $0x8] sm:$0x33 pattern:$0x75316420]  ;;  %s20732_s22 = sld [smem:[#allocation31_spill]] }
  0x35   : > { %4359 = vperm.xlu0 %17249, %v4316_v44   ;;  %v733_v62 = vadd.f32 %v16853_v51, %v16837_v47  ;;  %v734_v63 = vadd.f32 %v16854_v52, %v16838_v48  ;;  %v16885_v5 = vunpack.c.l.bf16 %v16904_v53  ;;  %v16886_v8 = vunpack.c.h.bf16 %v16904_v53  ;;  %v16395_v29 = vld.sshfl [vmem:[%s17869_s1 + $0x4] sm:$0x1 pattern:$0x75316420]  ;;  %v4347_v40 = vld [vmem:[%s20728_s4 + $0xf8] sm:$0xff] }
  0x36   : > { %v787_v60 = vmul.f32 0.25, %v779_v49  ;;  %v788_v61 = vmul.f32 0.25, %v780_v50  ;;  %v781_v2 = vadd.f32 %v16881_v41, %v756_v54  ;;  %v782_v4 = vadd.f32 %v16882_v42, %v757_v55  ;;  %v16398_v30 = vld.sshfl [vmem:[%s17869_s1 + $0x10] sm:$0x33 pattern:$0x75316420] }
  0x37   : > { %v758_v11 = vadd.f32 %v16869_v56, %v733_v62  ;;  %v759_v12 = vadd.f32 %v16870_v57, %v734_v63  ;;  %v16841_v15 = vunpack.c.l.bf16 %v16893_v58  ;;  %v16842_v21 = vunpack.c.h.bf16 %v16893_v58  ;;  %v17889_v35 = vld.sshfl [vmem:[%s17869_s1 + $0x18] sm:$0x33 pattern:$0x75316420]  ;;  %v4348_v50 = vld [vmem:[%s20728_s4 + $0x100] sm:$0xff]  ;;  %v4318_v57 = vld [vmem:[%s20728_s4 + $0x10] sm:$0xff] }
  0x38   : > { %v795_v10 = vpack.c.bf16 %v788_v61, %v787_v60  ;;  %4459 = vperm.xlu1 %17250, %v4336_v59   ;;  %v789_v19 = vmul.f32 0.25, %v781_v2  ;;  %v790_v20 = vmul.f32 0.25, %v782_v4  ;;  %v16857_v22 = vunpack.c.l.bf16 %v16897_v0  ;;  %v17901_v45 = vld.sshfl [vmem:[%s17869_s1 + $0xc] sm:$0x1 pattern:$0x75316420] }
  0x39   : > { %4419 = vperm.xlu0 %17249, %v4328_v1   ;;  %v783_v25 = vadd.f32 %v16885_v5, %v758_v11  ;;  %v784_v26 = vadd.f32 %v16886_v8, %v759_v12  ;;  %v16858_v27 = vunpack.c.h.bf16 %v16897_v0  ;;  %v16873_v28 = vunpack.c.l.bf16 %v16901_v9  ;;  %v16399_v2 = vld.sshfl [vmem:[%s17869_s1 + $0x14] sm:$0x1 pattern:$0x75316420]  ;;  %v4329_v4 = vld [vmem:[%s20728_s4 + $0x68] sm:$0xff] }
  0x3a   : > { %16972 = vmatprep.mubr.msk.bf16.mxu1 %vm807_vm0, %v795_v10  ;;  %v17532_v24 = vld [vmem:[%s20732_s22] sm:$0xff]   ;;  %v796_v31 = vpack.c.bf16 %v790_v20, %v789_v19  ;;  %v735_v32 = vadd.f32 %v16857_v22, %v16841_v15  ;;  %v16874_v33 = vunpack.c.h.bf16 %v16901_v9  ;;  %v16889_v34 = vunpack.c.l.bf16 %v16905_v16  ;;  %v4330_v22 = vld [vmem:[%s20728_s4 + $0x70] sm:$0xff] }
  0x3b   : > { %v791_v36 = vmul.f32 0.25, %v783_v25  ;;  %v792_v37 = vmul.f32 0.25, %v784_v26  ;;  %v736_v38 = vadd.f32 %v16858_v27, %v16842_v21  ;;  %v16890_v39 = vunpack.c.h.bf16 %v16905_v16  ;;  %v16401_v27 = vld.sshfl [vmem:[%s17869_s1 + $0x1c] sm:$0x1 pattern:$0x75316420] }
  0x3c   : > { %4469 = vperm.xlu1 %17250, %v4338_v18   ;;  %16973 = vmatmul.mubr.msk.bf16.vlgmr.msra.gmra.mrb[0].mxu1 %vm807_vm0, %v796_v31  ;;  %v760_v41 = vadd.f32 %v16873_v28, %v735_v32  ;;  %v1066_v42 = vcombine.high %v16394_v17, %v16394_v17  ;;  %v17898_v43 = vsub.s32 %v1069_v13, %v17843_v14  ;;  %v4339_v28 = vld [vmem:[%s20728_s4 + $0xb8] sm:$0xff] }
  0x3d   : > { %v1104_v44 = vcombine.high %v16396_v23, %v16396_v23  ;;  %16981 = vmatpush3.bf16.msra.mxu1 %v17532_v24  ;;  %v797_v46 = vpack.c.bf16 %v792_v37, %v791_v36  ;;  %v761_v47 = vadd.f32 %v16874_v33, %v736_v38  ;;  %v1142_v48 = vcombine.high %v16398_v30, %v16398_v30  ;;  %v16402_v33 = vld.sshfl [vmem:[%s17869_s1 + $0x20] sm:$0x33 pattern:$0x75316420] }
  0x3e   : > { %v1180_v49 = vcombine.high %v17889_v35, %v17889_v35  ;;  %v785_v51 = vadd.f32 %v16889_v34, %v760_v41  ;;  %v1073_v52 = vrot.slane %v16394_v17, %v17898_v43  ;;  %v1080_v3 = vrot.slane %v1066_v42, %v17898_v43  ;;  %4514 = vperm.xlu0 %17249, %v4347_v40   ;;  %v4319_v17 = vld [vmem:[%s20728_s4 + $0x18] sm:$0xff]  ;;  %v16403_v38 = vld.sshfl [vmem:[%s17869_s1 + $0x24] sm:$0x1 pattern:$0x75316420] }
  0x3f   : > { %v1096_v13 = vrot.slane %v16395_v29, %v17898_v43  ;;  %16976 = vmatprep.mubr.msk.bf16.mxu1 %vm807_vm0, %v797_v46  ;;  %v786_v53 = vadd.f32 %v16890_v39, %v761_v47  ;;  %v1111_v54 = vrot.slane %v16396_v23, %v17898_v43  ;;  %v1118_v55 = vrot.slane %v1104_v44, %v17898_v43  ;;  %v16404_v44 = vld.sshfl [vmem:[%s17869_s1 + $0x28] sm:$0x33 pattern:$0x75316420] }
  0x40   : > { %v1134_v56 = vrot.slane %v17901_v45, %v17898_v43  ;;  %v793_v58 = vmul.f32 0.25, %v785_v51  ;;  %v2915_v59 = vcombine.low %v1073_v52, %v1080_v3  ;;  %v16556_v60 = vcombine.high %v1073_v52, %v1080_v3  ;;  %4519 = vperm.xlu1 %17250, %v4348_v50   ;;  %15805 = vmatprep.subr.bf16.mxu1 %v20682_v7 }
  0x41   : > { %v17920_v61 = vrot.slane %v16398_v30, %v17898_v43  ;;  %v794_v62 = vmul.f32 0.25, %v786_v53  ;;  %v1119_v63 = vcombine.high %v1111_v54, %v1111_v54  ;;  %v1120_v0 = vcombine.high %v1118_v55, %v1118_v55 }
  0x42   : > { %v2437_v1 = vunpack.i.h.s16 %v1111_v54  ;;  %v2439_v5 = vunpack.i.h.s16 %v1118_v55  ;;  %v16466_v8 = vpack.i.b16 %v1111_v54, %v1096_v13  ;;  %v2925_v9 = vrot.slane %v2915_v59, %v17898_v43  ;;  %4369 = vperm.xlu0 %17249, %v4318_v57  }
  0x43   : > { %v2932_v10 = vrot.slane %v16556_v60, %v17898_v43  ;;  %v798_v11 = vpack.c.bf16 %v794_v62, %v793_v58  ;;  %v2441_v12 = vunpack.i.h.s16 %v1119_v63  ;;  %v1156_v16 = vrot.slane %v1142_v48, %v17898_v43 }
  0x44   : > { %v16467_v15 = vpack.i.b16 %v1118_v55, %v2437_v1  ;;  %v16468_v18 = vpack.i.b16 %v1119_v63, %v2439_v5  ;;  %v1157_v20 = vcombine.high %v17920_v61, %v17920_v61  ;;  %v1172_v21 = vrot.slane %v16399_v2, %v17898_v43  ;;  %4424 = vperm.xlu1 %17250, %v4329_v4   ;;  %v4350_v1 = vld [vmem:[%s20728_s4 + $0x110] sm:$0xff] }
  0x45   : > { %v2947_v19 = vcombine.low %v2925_v9, %v2932_v10  ;;  %16977 = vmatmul.mubr.msk.bf16.gmra.mrb[4].mxu1 %vm807_vm0, %v798_v11  ;;  %v16469_v23 = vpack.i.b16 %v1120_v0, %v2441_v12  ;;  %v1158_v25 = vcombine.high %v1156_v16, %v1156_v16  ;;  %v1187_v26 = vrot.slane %v17889_v35, %v17898_v43  ;;  %v16405_v9 = vld.sshfl [vmem:[%s17869_s1 + $0x2c] sm:$0x1 pattern:$0x75316420] }
  0x46   : > { %v2917_v24 = vcombine.low %v16466_v8, %v16467_v15  ;;  %16982 = vmatprep.mubr.msk.bf16.mxu1 %vm17639_vm1, %v20680_v6  ;;  %v1194_v30 = vrot.slane %v1180_v49, %v17898_v43  ;;  %v2443_v31 = vunpack.i.h.s16 %v1120_v0  ;;  %v2965_v32 = vcombine.low %v1156_v16, %v1157_v20  ;;  %4374 = vperm.xlu0 %17249, %v4319_v17   ;;  %v4320_v49 = vld [vmem:[%s20728_s4 + $0x20] sm:$0xff]  ;;  %v4349_v10 = vld [vmem:[%s20728_s4 + $0x108] sm:$0xff]  ;;  %v16406_v17 = vld.sshfl [vmem:[%s17869_s1 + $0x30] sm:$0x33 pattern:$0x75316420] }
  0x47   : > { %v2955_v29 = vrot.slane %v2947_v19, %v17898_v43  ;;  %v2918_v34 = vcombine.low %v16468_v18, %v16469_v23  ;;  %v1195_v36 = vcombine.high %v1187_v26, %v1187_v26  ;;  %v2455_v37 = vunpack.i.h.s16 %v1187_v26  ;;  %v4321_v18 = vld [vmem:[%s20728_s4 + $0x28] sm:$0xff]  ;;  %v16407_v23 = vld.sshfl [vmem:[%s17869_s1 + $0x34] sm:$0x1 pattern:$0x75316420] }
  0x48   : > { %v2939_v35 = vrot.slane %v2917_v24, %v17898_v43  ;;  %v2457_v39 = vunpack.i.h.s16 %v1194_v30  ;;  %v16470_v40 = vpack.i.b16 %v1134_v56, %v2443_v31  ;;  %v16471_v41 = vpack.i.b16 %v1187_v26, %v1172_v21  ;;  %4429 = vperm.xlu1 %17250, %v4330_v22   ;;  %v4340_v56 = vld [vmem:[%s20728_s4 + $0xc0] sm:$0xff]  ;;  %v16408_v26 = vld.sshfl [vmem:[%s17869_s1 + $0x38] sm:$0x33 pattern:$0x75316420] }
  0x49   : > { %v2981_v42 = vrot.slane %v2965_v32, %v17898_v43  ;;  %v2946_v45 = vrot.slane %v2918_v34, %v17898_v43  ;;  %v16472_v46 = vpack.i.b16 %v1194_v30, %v2455_v37  ;;  %v1196_v47 = vcombine.high %v1194_v30, %v1194_v30 }
  0x4a   : > { %v1210_v48 = vrot.slane %v16401_v27, %v17898_v43  ;;  %v16473_v50 = vpack.i.b16 %v1195_v36, %v2457_v39  ;;  %v2964_v51 = vcombine.low %v16470_v40, %v17920_v61  ;;  %v2966_v52 = vcombine.low %v1158_v25, %v16471_v41  ;;  %4474 = vperm.xlu0 %17249, %v4339_v28   ;;  %v4331_v41 = vld [vmem:[%s20728_s4 + $0x78] sm:$0xff] }
  0x4b   : > { %v1218_v3 = vcombine.high %v16402_v33, %v16402_v33  ;;  %v2948_v13 = vcombine.low %v2939_v35, %v2946_v45  ;;  %v1225_v53 = vrot.slane %v16402_v33, %v17898_v43  ;;  %v1248_v54 = vrot.slane %v16403_v38, %v17898_v43 }
  0x4c   : > { %v1256_v55 = vcombine.high %v16404_v44, %v16404_v44  ;;  %v2967_v57 = vcombine.low %v16472_v46, %v16473_v50  ;;  %v2974_v58 = vrot.slane %v2964_v51, %v17898_v43  ;;  %v2988_v59 = vrot.slane %v2966_v52, %v17898_v43  ;;  %4379 = vperm.xlu1 %17250, %v4320_v49   ;;  %v16409_v52 = vld.sshfl [vmem:[%s17869_s1 + $0x3c] sm:$0x1 pattern:$0x75316420] }
  0x4d   : > { %v1232_v60 = vrot.slane %v1218_v3, %v17898_v43  ;;  %v2962_v61 = vrot.slane %v2948_v13, %v17898_v43  ;;  %v1263_v62 = vrot.slane %v16404_v44, %v17898_v43  ;;  %v2459_v0 = vunpack.i.h.s16 %v1195_v36 }
  0x4e   : > { %v1270_v63 = vrot.slane %v1256_v55, %v17898_v43  ;;  %v2995_v2 = vrot.slane %v2967_v57, %v17898_v43  ;;  %v2996_v4 = vcombine.low %v2974_v58, %v2981_v42  ;;  %v2461_v5 = vunpack.i.h.s16 %v1196_v47  ;;  %4479 = vperm.xlu0 %17249, %v4340_v56   ;;  %v16410_v55 = vld.sshfl [vmem:[%s17869_s1 + $0x40] sm:$0x33 pattern:$0x75316420] }
  0x4f   : > { %v3014_v8 = vcombine.low %v1225_v53, %v1232_v60  ;;  %v2963_v11 = vcombine.low %v2955_v29, %v2962_v61  ;;  %v2473_v12 = vunpack.i.h.s16 %v1263_v62  ;;  %v16474_v15 = vpack.i.b16 %v1196_v47, %v2459_v0  ;;  %v4341_v47 = vld [vmem:[%s20728_s4 + $0xc8] sm:$0xff] }
  0x50   : > { %v16476_v16 = vpack.i.b16 %v1263_v62, %v1248_v54  ;;  %v2997_v19 = vcombine.low %v2988_v59, %v2995_v2  ;;  %v3004_v20 = vrot.slane %v2996_v4, %v17898_v43  ;;  %v16475_v21 = vpack.i.b16 %v1210_v48, %v2461_v5  ;;  %4529 = vperm.xlu1 %17250, %v4350_v1   ;;  %v4342_v1 = vld [vmem:[%s20728_s4 + $0xd0] sm:$0xff] }
  0x51   : > { %v16557_v22 = vcombine.high %v1225_v53, %v1232_v60  ;;  %16983 = vmatmul.mubr.msk.bf16.vlgmr.msra.gmra.mrb[8].mxu1 %vm807_vm0, %v2963_v11  ;;  %v16477_v24 = vpack.i.b16 %v1270_v63, %v2473_v12  ;;  %v3030_v25 = vrot.slane %v3014_v8, %v17898_v43  ;;  %v1271_v27 = vcombine.high %v1263_v62, %v1263_v62  ;;  %v4332_v60 = vld [vmem:[%s20728_s4 + $0x80] sm:$0xff] }
  0x52   : > { %v1272_v28 = vcombine.high %v1270_v63, %v1270_v63  ;;  %16986 = vmatprep.mubr.msk.bf16.mxu1 %vm17639_vm1, %v20680_v6  ;;  %v3011_v29 = vrot.slane %v2997_v19, %v17898_v43  ;;  %v3013_v30 = vcombine.low %v16474_v15, %v16475_v21  ;;  %v1286_v32 = vrot.slane %v16405_v9, %v17898_v43  ;;  %v18023_v9 = vld.sshfl [vmem:[%s17869_s1 + $0x44] sm:$0x1 pattern:$0x75316420]  ;;  %v4322_v21 = vld [vmem:[%s20728_s4 + $0x30] sm:$0xff] }
  0x53   : > { %v3037_v31 = vrot.slane %v16557_v22, %v17898_v43  ;;  %v3016_v33 = vcombine.low %v16476_v16, %v16477_v24  ;;  %v1294_v34 = vcombine.high %v16406_v17, %v16406_v17  ;;  %v1301_v35 = vrot.slane %v16406_v17, %v17898_v43  ;;  %4524 = vperm.xlu0 %17249, %v4349_v10  }
  0x54   : > { %v1324_v36 = vrot.slane %v16407_v23, %v17898_v43  ;;  %v3012_v37 = vcombine.low %v3004_v20, %v3011_v29  ;;  %v3023_v38 = vrot.slane %v3013_v30, %v17898_v43  ;;  %v1339_v39 = vrot.slane %v16408_v26, %v17898_v43  ;;  %4384 = vperm.xlu1 %17250, %v4321_v18   ;;  %v4352_v20 = vld [vmem:[%s20728_s4 + $0x120] sm:$0xff] }
  0x55   : > { %v2475_v40 = vunpack.i.h.s16 %v1270_v63  ;;  %v3044_v42 = vrot.slane %v3016_v33, %v17898_v43  ;;  %v1308_v44 = vrot.slane %v1294_v34, %v17898_v43  ;;  %v1309_v45 = vcombine.high %v1301_v35, %v1301_v35 }
  0x56   : > { %v2477_v46 = vunpack.i.h.s16 %v1271_v27  ;;  %v3045_v48 = vcombine.low %v3023_v38, %v3030_v25  ;;  %v2479_v49 = vunpack.i.h.s16 %v1272_v28  ;;  %v16481_v51 = vpack.i.b16 %v1339_v39, %v1324_v36  ;;  %v16412_v25 = vld.sshfl [vmem:[%s17869_s1 + $0x48] sm:$0x33 pattern:$0x75316420] }
  0x57   : > { %v16478_v50 = vpack.i.b16 %v1271_v27, %v2475_v40  ;;  %v3046_v3 = vcombine.low %v3037_v31, %v3044_v42  ;;  %v1310_v13 = vcombine.high %v1308_v44, %v1308_v44  ;;  %v3064_v54 = vcombine.low %v1308_v44, %v1309_v45  ;;  %4434 = vperm.xlu0 %17249, %v4331_v41   ;;  %v16413_v31 = vld.sshfl [vmem:[%s17869_s1 + $0x4c] sm:$0x1 pattern:$0x75316420]  ;;  %v4351_v41 = vld [vmem:[%s20728_s4 + $0x118] sm:$0xff] }
  0x58   : > { %v16479_v53 = vpack.i.b16 %v1272_v28, %v2477_v46  ;;  %v3053_v56 = vrot.slane %v3045_v48, %v17898_v43  ;;  %v16480_v57 = vpack.i.b16 %v1286_v32, %v2479_v49  ;;  %v1332_v58 = vcombine.high %v16408_v26, %v16408_v26  ;;  %4484 = vperm.xlu1 %17250, %v4341_v47   ;;  %v16414_v36 = vld.sshfl [vmem:[%s17869_s1 + $0x50] sm:$0x33 pattern:$0x75316420]  ;;  %v4333_v47 = vld [vmem:[%s20728_s4 + $0x88] sm:$0xff] }
  0x59   : > { %v1347_v59 = vcombine.high %v1339_v39, %v1339_v39  ;;  %16987 = vmatmul.mubr.msk.bf16.gmra.mrb[12].mxu1 %vm807_vm0, %v3012_v37  ;;  %v3060_v61 = vrot.slane %v3046_v3, %v17898_v43  ;;  %v3065_v63 = vcombine.low %v1310_v13, %v16481_v51  ;;  %v3086_v0 = vrot.slane %v3064_v54, %v17898_v43 }
  0x5a   : > { %v3062_v62 = vcombine.low %v16478_v50, %v16479_v53  ;;  %16990 = vmatprep.mubr.msk.bf16.mxu1 %vm17639_vm1, %v20680_v6  ;;  %v3063_v2 = vcombine.low %v16480_v57, %v1301_v35  ;;  %v1346_v4 = vrot.slane %v1332_v58, %v17898_v43  ;;  %v1362_v5 = vrot.slane %v16409_v52, %v17898_v43  ;;  %v4344_v58 = vld [vmem:[%s20728_s4 + $0xe0] sm:$0xff] }
  0x5b   : > { %v1370_v8 = vcombine.high %v16410_v55, %v16410_v55  ;;  %v3061_v10 = vcombine.low %v3053_v56, %v3060_v61  ;;  %v3093_v12 = vrot.slane %v3065_v63, %v17898_v43  ;;  %v1377_v15 = vrot.slane %v16410_v55, %v17898_v43  ;;  %4439 = vperm.xlu0 %17249, %v4332_v60  }
  0x5c   : > { %v3072_v11 = vrot.slane %v3062_v62, %v17898_v43  ;;  %v3079_v16 = vrot.slane %v3063_v2, %v17898_v43  ;;  %v1348_v17 = vcombine.high %v1346_v4, %v1346_v4  ;;  %v2491_v19 = vunpack.i.h.s16 %v1339_v39  ;;  %4489 = vperm.xlu1 %17250, %v4342_v1  }
  0x5d   : > { %v1384_v18 = vrot.slane %v1370_v8, %v17898_v43  ;;  %v3095_v22 = vcombine.low %v3086_v0, %v3093_v12  ;;  %v2493_v23 = vunpack.i.h.s16 %v1346_v4  ;;  %v2495_v24 = vunpack.i.h.s16 %v1347_v59  ;;  %v16415_v0 = vld.sshfl [vmem:[%s17869_s1 + $0x54] sm:$0x1 pattern:$0x75316420] }
  0x5e   : > { %v1400_v26 = vrot.slane %v18023_v9, %v17898_v43  ;;  %v3094_v27 = vcombine.low %v3072_v11, %v3079_v16  ;;  %v2497_v28 = vunpack.i.h.s16 %v1348_v17  ;;  %v16482_v29 = vpack.i.b16 %v1346_v4, %v2491_v19  ;;  %v16416_v8 = vld.sshfl [vmem:[%s17869_s1 + $0x58] sm:$0x33 pattern:$0x75316420]  ;;  %v4334_v9 = vld [vmem:[%s20728_s4 + $0x90] sm:$0xff] }
  0x5f   : > { %v3113_v30 = vcombine.low %v1377_v15, %v1384_v18  ;;  %v3109_v32 = vrot.slane %v3095_v22, %v17898_v43  ;;  %v16483_v33 = vpack.i.b16 %v1347_v59, %v2493_v23  ;;  %v16484_v34 = vpack.i.b16 %v1348_v17, %v2495_v24  ;;  %4389 = vperm.xlu0 %17249, %v4322_v21   ;;  %v4323_v59 = vld [vmem:[%s20728_s4 + $0x38] sm:$0xff] }
  0x60   : > { %v16558_v35 = vcombine.high %v1377_v15, %v1384_v18  ;;  %v3102_v37 = vrot.slane %v3094_v27, %v17898_v43  ;;  %v16485_v38 = vpack.i.b16 %v1362_v5, %v2497_v28  ;;  %v1408_v40 = vcombine.high %v16412_v25, %v16412_v25  ;;  %4539 = vperm.xlu1 %17250, %v4352_v20   ;;  %v16417_v15 = vld.sshfl [vmem:[%s17869_s1 + $0x5c] sm:$0x1 pattern:$0x75316420] }
  0x61   : > { %v3135_v39 = vrot.slane %v3113_v30, %v17898_v43  ;;  %16991 = vmatmul.mubr.msk.bf16.gmra.mrb[16].mxu1 %vm807_vm0, %v3061_v10  ;;  %v3111_v42 = vcombine.low %v16482_v29, %v16483_v33  ;;  %v1415_v45 = vrot.slane %v16412_v25, %v17898_v43  ;;  %v1438_v46 = vrot.slane %v16413_v31, %v17898_v43  ;;  %v16418_v20 = vld.sshfl [vmem:[%s17869_s1 + $0x60] sm:$0x33 pattern:$0x75316420] }
  0x62   : > { %v3142_v44 = vrot.slane %v16558_v35, %v17898_v43  ;;  %16994 = vmatprep.mubr.msk.bf16.mxu1 %vm17639_vm1, %v20680_v6  ;;  %v3110_v48 = vcombine.low %v3102_v37, %v3109_v32  ;;  %v3112_v49 = vcombine.low %v16484_v34, %v16485_v38  ;;  %v1422_v50 = vrot.slane %v1408_v40, %v17898_v43  ;;  %v4354_v35 = vld [vmem:[%s20728_s4 + $0x130] sm:$0xff] }
  0x63   : > { %v1446_v51 = vcombine.high %v16414_v36, %v16414_v36  ;;  %v3121_v52 = vrot.slane %v3111_v42, %v17898_v43  ;;  %v1423_v13 = vcombine.high %v1415_v45, %v1415_v45  ;;  %v1453_v53 = vrot.slane %v16414_v36, %v17898_v43  ;;  %4534 = vperm.xlu0 %17249, %v4351_v41   ;;  %v4324_v36 = vld [vmem:[%s20728_s4 + $0x40] sm:$0xff] }
  0x64   : > { %v3144_v3 = vcombine.low %v3135_v39, %v3142_v44  ;;  %v3128_v54 = vrot.slane %v3112_v49, %v17898_v43  ;;  %v1424_v55 = vcombine.high %v1422_v50, %v1422_v50  ;;  %v2509_v57 = vunpack.i.h.s16 %v1415_v45  ;;  %4444 = vperm.xlu1 %17250, %v4333_v47   ;;  %v16419_v41 = vld.sshfl [vmem:[%s17869_s1 + $0x64] sm:$0x1 pattern:$0x75316420] }
  0x65   : > { %v1460_v56 = vrot.slane %v1446_v51, %v17898_v43  ;;  %v1461_v61 = vcombine.high %v1453_v53, %v1453_v53  ;;  %v2511_v62 = vunpack.i.h.s16 %v1422_v50  ;;  %v2513_v63 = vunpack.i.h.s16 %v1423_v13  ;;  %v16420_v47 = vld.sshfl [vmem:[%s17869_s1 + $0x68] sm:$0x33 pattern:$0x75316420] }
  0x66   : > { %v18068_v60 = vrot.slane %v3144_v3, %v17898_v43  ;;  %v3143_v1 = vcombine.low %v3121_v52, %v3128_v54  ;;  %v2515_v2 = vunpack.i.h.s16 %v1424_v55  ;;  %v16486_v4 = vpack.i.b16 %v1415_v45, %v1400_v26  ;;  %v4353_v26 = vld [vmem:[%s20728_s4 + $0x128] sm:$0xff] }
  0x67   : > { %v16487_v5 = vpack.i.b16 %v1422_v50, %v2509_v57  ;;  %v16488_v10 = vpack.i.b16 %v1423_v13, %v2511_v62  ;;  %v16489_v11 = vpack.i.b16 %v1424_v55, %v2513_v63  ;;  %v3163_v12 = vcombine.low %v1460_v56, %v1461_v61  ;;  %4394 = vperm.xlu0 %17249, %v4323_v59   ;;  %v16421_v52 = vld.sshfl [vmem:[%s17869_s1 + $0x6c] sm:$0x1 pattern:$0x75316420] }
  0x68   : > { %v1462_v16 = vcombine.high %v1460_v56, %v1460_v56  ;;  %v3151_v17 = vrot.slane %v3143_v1, %v17898_v43  ;;  %v16490_v18 = vpack.i.b16 %v1438_v46, %v2515_v2  ;;  %v1476_v21 = vrot.slane %v16415_v0, %v17898_v43  ;;  %4499 = vperm.xlu1 %17250, %v4344_v58   ;;  %v16422_v55 = vld.sshfl [vmem:[%s17869_s1 + $0x70] sm:$0x33 pattern:$0x75316420]  ;;  %v4325_v1 = vld [vmem:[%s20728_s4 + $0x48] sm:$0xff] }
  0x69   : > { %v3160_v19 = vcombine.low %v16486_v4, %v16487_v5  ;;  %16995 = vmatmul.mubr.msk.bf16.gmra.mrb[20].mxu1 %vm807_vm0, %v3110_v48  ;;  %v3161_v22 = vcombine.low %v16488_v10, %v16489_v11  ;;  %v3191_v23 = vrot.slane %v3163_v12, %v17898_v43  ;;  %v1484_v24 = vcombine.high %v16416_v8, %v16416_v8 }
  0x6a   : > { %v1491_v25 = vrot.slane %v16416_v8, %v17898_v43  ;;  %16998 = vmatprep.mubr.msk.bf16.mxu1 %vm17639_vm1, %v20680_v6  ;;  %v3159_v27 = vcombine.low %v3151_v17, %v18068_v60  ;;  %v3162_v28 = vcombine.low %v16490_v18, %v1453_v53  ;;  %v1514_v30 = vrot.slane %v16417_v15, %v17898_v43  ;;  %v4343_v60 = vld [vmem:[%s20728_s4 + $0xd8] sm:$0xff] }
  0x6b   : > { %v3170_v29 = vrot.slane %v3160_v19, %v17898_v43  ;;  %v3177_v31 = vrot.slane %v3161_v22, %v17898_v43  ;;  %v1498_v32 = vrot.slane %v1484_v24, %v17898_v43  ;;  %v1522_v34 = vcombine.high %v16418_v20, %v16418_v20  ;;  %4449 = vperm.xlu0 %17249, %v4334_v9   ;;  %v4335_v19 = vld [vmem:[%s20728_s4 + $0x98] sm:$0xff]  ;;  %v16423_v24 = vld.sshfl [vmem:[%s17869_s1 + $0x74] sm:$0x1 pattern:$0x75316420] }
  0x6c   : > { %v1499_v33 = vcombine.high %v1491_v25, %v1491_v25  ;;  %v3184_v37 = vrot.slane %v3162_v28, %v17898_v43  ;;  %v1529_v38 = vrot.slane %v16418_v20, %v17898_v43  ;;  %v2527_v39 = vunpack.i.h.s16 %v1491_v25  ;;  %4544 = vperm.xlu1 %17250, %v4353_v26  }
  0x6d   : > { %v16491_v40 = vpack.i.b16 %v1491_v25, %v1476_v21  ;;  %v3192_v42 = vcombine.low %v3170_v29, %v3177_v31  ;;  %v1500_v44 = vcombine.high %v1498_v32, %v1498_v32  ;;  %v1536_v45 = vrot.slane %v1522_v34, %v17898_v43  ;;  %v4345_v25 = vld [vmem:[%s20728_s4 + $0xe8] sm:$0xff]  ;;  %v16424_v29 = vld.sshfl [vmem:[%s17869_s1 + $0x78] sm:$0x33 pattern:$0x75316420] }
  0x6e   : > { %v2529_v46 = vunpack.i.h.s16 %v1498_v32  ;;  %v3193_v48 = vcombine.low %v3184_v37, %v3191_v23  ;;  %v2531_v49 = vunpack.i.h.s16 %v1499_v33  ;;  %v16492_v50 = vpack.i.b16 %v1498_v32, %v2527_v39 }
  0x6f   : > { %v3209_v51 = vcombine.low %v1462_v16, %v16491_v40  ;;  %v3200_v3 = vrot.slane %v3192_v42, %v17898_v43  ;;  %v2533_v13 = vunpack.i.h.s16 %v1500_v44  ;;  %v3212_v54 = vcombine.low %v1529_v38, %v1536_v45  ;;  %4399 = vperm.xlu0 %17249, %v4324_v36   ;;  %v4355_v40 = vld [vmem:[%s20728_s4 + $0x138] sm:$0xff] }
  0x70   : > { %v16493_v53 = vpack.i.b16 %v1499_v33, %v2529_v46  ;;  %v3207_v56 = vrot.slane %v3193_v48, %v17898_v43  ;;  %v16494_v57 = vpack.i.b16 %v1500_v44, %v2531_v49  ;;  %v1552_v59 = vrot.slane %v16419_v41, %v17898_v43  ;;  %4549 = vperm.xlu1 %17250, %v4354_v35   ;;  %v16425_v35 = vld.sshfl [vmem:[%s17869_s1 + $0x7c] sm:$0x1 pattern:$0x75316420] }
  0x71   : > { %v3219_v58 = vrot.slane %v3209_v51, %v17898_v43  ;;  %16999 = vmatmul.mubr.msk.bf16.gmra.mrb[24].mxu1 %vm807_vm0, %v3159_v27  ;;  %v16495_v61 = vpack.i.b16 %v1514_v30, %v2533_v13  ;;  %v3240_v63 = vrot.slane %v3212_v54, %v17898_v43  ;;  %v1560_v0 = vcombine.high %v16420_v47, %v16420_v47 }
  0x72   : > { %v3210_v62 = vcombine.low %v16492_v50, %v16493_v53  ;;  %17002 = vmatprep.mubr.msk.bf16.mxu1 %vm17639_vm1, %v20680_v6  ;;  %v3208_v2 = vcombine.low %v3200_v3, %v3207_v56  ;;  %v1567_v4 = vrot.slane %v16420_v47, %v17898_v43  ;;  %v1590_v5 = vrot.slane %v16421_v52, %v17898_v43  ;;  %v16426_v56 = vld.sshfl [vmem:[%s17869_s1 + $0x80] sm:$0x33 pattern:$0x75316420] }
  0x73   : > { %v1605_v8 = vrot.slane %v16422_v55, %v17898_v43  ;;  %v3211_v9 = vcombine.low %v16494_v57, %v16495_v61  ;;  %v1574_v11 = vrot.slane %v1560_v0, %v17898_v43  ;;  %v16559_v12 = vcombine.high %v1529_v38, %v1536_v45  ;;  %4494 = vperm.xlu0 %17249, %v4343_v60   ;;  %v16427_v61 = vld.sshfl [vmem:[%s17869_s1 + $0x84] sm:$0x1 pattern:$0x75316420] }
  0x74   : > { %v3226_v10 = vrot.slane %v3210_v62, %v17898_v43  ;;  %v1575_v15 = vcombine.high %v1567_v4, %v1567_v4  ;;  %v2545_v16 = vunpack.i.h.s16 %v1567_v4  ;;  %v16496_v17 = vpack.i.b16 %v1567_v4, %v1552_v59  ;;  %4404 = vperm.xlu1 %17250, %v4325_v1  }
  0x75   : > { %v1598_v18 = vcombine.high %v16422_v55, %v16422_v55  ;;  %v3233_v20 = vrot.slane %v3211_v9, %v17898_v43  ;;  %v1576_v22 = vcombine.high %v1574_v11, %v1574_v11  ;;  %v2547_v23 = vunpack.i.h.s16 %v1574_v11 }
  0x76   : > { %v3241_v21 = vcombine.low %v3219_v58, %v3226_v10  ;;  %v2549_v26 = vunpack.i.h.s16 %v1575_v15  ;;  %v16497_v27 = vpack.i.b16 %v1574_v11, %v2545_v16  ;;  %v3268_v28 = vrot.slane %v16559_v12, %v17898_v43  ;;  %v18157_v10 = vld.sshfl [vmem:[%s17869_s1 + $0x8c] sm:$0x1 pattern:$0x75316420] }
  0x77   : > { %v1612_v30 = vrot.slane %v1598_v18, %v17898_v43  ;;  %v3242_v31 = vcombine.low %v3233_v20, %v3240_v63  ;;  %v2551_v33 = vunpack.i.h.s16 %v1576_v22  ;;  %v16498_v34 = vpack.i.b16 %v1575_v15, %v2547_v23  ;;  %4454 = vperm.xlu0 %17249, %v4335_v19  }
  0x78   : > { %v3249_v32 = vrot.slane %v3241_v21, %v17898_v43  ;;  %v16499_v36 = vpack.i.b16 %v1576_v22, %v2549_v26  ;;  %v3259_v37 = vcombine.low %v16496_v17, %v16497_v27  ;;  %v1613_v38 = vcombine.high %v1605_v8, %v1605_v8  ;;  %4504 = vperm.xlu1 %17250, %v4345_v25  }
  0x79   : > { %v1614_v39 = vcombine.high %v1612_v30, %v1612_v30  ;;  %17003 = vmatmul.mubr.msk.bf16.gmra.mrb[28].mxu1 %vm807_vm0, %v3208_v2  ;;  %v3256_v41 = vrot.slane %v3242_v31, %v17898_v43  ;;  %v16500_v42 = vpack.i.b16 %v1590_v5, %v2551_v33  ;;  %v1628_v44 = vrot.slane %v16423_v24, %v17898_v43  ;;  %v16428_v2 = vld.sshfl [vmem:[%s17869_s1 + $0x88] sm:$0x33 pattern:$0x75316420] }
  0x7a   : > { %v1636_v45 = vcombine.high %v16424_v29, %v16424_v29  ;;  %17006 = vmatprep.mubr.msk.bf16.mxu1 %vm17639_vm1, %v20680_v6  ;;  %v3260_v46 = vcombine.low %v16498_v34, %v16499_v36  ;;  %v3275_v47 = vrot.slane %v3259_v37, %v17898_v43  ;;  %v1643_v48 = vrot.slane %v16424_v29, %v17898_v43  ;;  %v16430_v33 = vld.sshfl [vmem:[%s17869_s1 + $0x90] sm:$0x33 pattern:$0x75316420] }
  0x7b   : > { %v1666_v49 = vrot.slane %v16425_v35, %v17898_v43  ;;  %v3257_v50 = vcombine.low %v3249_v32, %v3256_v41  ;;  %v3261_v51 = vcombine.low %v16500_v42, %v1605_v8  ;;  %v3307_v3 = vcombine.low %v1612_v30, %v1613_v38  ;;  %4554 = vperm.xlu0 %17249, %v4355_v40   ;;  %v16431_v42 = vld.sshfl [vmem:[%s17869_s1 + $0x94] sm:$0x1 pattern:$0x75316420] }
  0x7c   : > { %v1650_v52 = vrot.slane %v1636_v45, %v17898_v43  ;;  %v3282_v13 = vrot.slane %v3260_v46, %v17898_v43  ;;  %v3290_v53 = vcombine.low %v3268_v28, %v3275_v47  ;;  %v1651_v54 = vcombine.high %v1643_v48, %v1643_v48  ;;  %v16432_v47 = vld.sshfl [vmem:[%s17869_s1 + $0x98] sm:$0x33 pattern:$0x75316420] }
  0x7d   : > { %v2563_v55 = vunpack.i.h.s16 %v1643_v48  ;;  %v3289_v57 = vrot.slane %v3261_v51, %v17898_v43  ;;  %v16501_v60 = vpack.i.b16 %v1643_v48, %v1628_v44  ;;  %v3317_v1 = vrot.slane %v3307_v3, %v17898_v43 }
  0x7e   : > { %v1652_v58 = vcombine.high %v1650_v52, %v1650_v52  ;;  %v2565_v59 = vunpack.i.h.s16 %v1650_v52  ;;  %v3298_v62 = vrot.slane %v3290_v53, %v17898_v43  ;;  %v2567_v63 = vunpack.i.h.s16 %v1651_v54 }
  0x7f   : > { %v16502_v0 = vpack.i.b16 %v1650_v52, %v2563_v55  ;;  %v3291_v4 = vcombine.low %v3282_v13, %v3289_v57  ;;  %v3308_v9 = vcombine.low %v1614_v39, %v16501_v60  ;;  %v1674_v12 = vcombine.high %v16426_v56, %v16426_v56 }
  0x80   : > { %v2569_v5 = vunpack.i.h.s16 %v1652_v58  ;;  %v16503_v8 = vpack.i.b16 %v1651_v54, %v2565_v59  ;;  %v16504_v11 = vpack.i.b16 %v1652_v58, %v2567_v63  ;;  %v1681_v15 = vrot.slane %v16426_v56, %v17898_v43  ;;  %v16433_v59 = vld.sshfl [vmem:[%s17869_s1 + $0x9c] sm:$0x1 pattern:$0x75316420] }
  0x81   : > { %v1704_v16 = vrot.slane %v16427_v61, %v17898_v43  ;;  %17007 = vmatmul.mubr.msk.bf16.gmra.mrb[32].mxu1 %vm807_vm0, %v3257_v50  ;;  %v3305_v17 = vrot.slane %v3291_v4, %v17898_v43  ;;  %v3324_v20 = vrot.slane %v3308_v9, %v17898_v43  ;;  %v1688_v21 = vrot.slane %v1674_v12, %v17898_v43 }
  0x82   : > { %v16505_v18 = vpack.i.b16 %v1666_v49, %v2569_v5  ;;  %v3309_v19 = vcombine.low %v16502_v0, %v16503_v8  ;;  %17010 = vmatprep.mubr.msk.bf16.mxu1 %vm17639_vm1, %v20680_v6  ;;  %v1712_v22 = vcombine.high %v16428_v2, %v16428_v2  ;;  %v1719_v23 = vrot.slane %v16428_v2, %v17898_v43  ;;  %v16434_v5 = vld.sshfl [vmem:[%s17869_s1 + $0xa0] sm:$0x33 pattern:$0x75316420] }
  0x83   : > { %v1742_v24 = vrot.slane %v18157_v10, %v17898_v43  ;;  %v3306_v25 = vcombine.low %v3298_v62, %v3305_v17  ;;  %v3339_v28 = vcombine.low %v3317_v1, %v3324_v20  ;;  %v3356_v36 = vcombine.low %v1681_v15, %v1688_v21 }
  0x84   : > { %v3310_v26 = vcombine.low %v16504_v11, %v16505_v18  ;;  %v3331_v27 = vrot.slane %v3309_v19, %v17898_v43  ;;  %v1726_v29 = vrot.slane %v1712_v22, %v17898_v43  ;;  %v1727_v30 = vcombine.high %v1719_v23, %v1719_v23  ;;  %v16435_v11 = vld.sshfl [vmem:[%s17869_s1 + $0xa4] sm:$0x1 pattern:$0x75316420] }
  0x85   : > { %v2581_v31 = vunpack.i.h.s16 %v1719_v23  ;;  %v16506_v32 = vpack.i.b16 %v1719_v23, %v1704_v16  ;;  %v3347_v35 = vrot.slane %v3339_v28, %v17898_v43  ;;  %v16560_v37 = vcombine.high %v1681_v15, %v1688_v21  ;;  %v16436_v19 = vld.sshfl [vmem:[%s17869_s1 + $0xa8] sm:$0x33 pattern:$0x75316420] }
  0x86   : > { %v3338_v34 = vrot.slane %v3310_v26, %v17898_v43  ;;  %v1728_v38 = vcombine.high %v1726_v29, %v1726_v29  ;;  %v2583_v39 = vunpack.i.h.s16 %v1726_v29  ;;  %v2585_v40 = vunpack.i.h.s16 %v1727_v30 }
  0x87   : > { %v16507_v41 = vpack.i.b16 %v1726_v29, %v2581_v31  ;;  %v3366_v45 = vrot.slane %v3356_v36, %v17898_v43  ;;  %v3373_v46 = vrot.slane %v16560_v37, %v17898_v43  ;;  %v1750_v48 = vcombine.high %v16430_v33, %v16430_v33 }
  0x88   : > { %v3340_v44 = vcombine.low %v3331_v27, %v3338_v34  ;;  %v16508_v49 = vpack.i.b16 %v1727_v30, %v2583_v39  ;;  %v16509_v50 = vpack.i.b16 %v1728_v38, %v2585_v40  ;;  %v1757_v52 = vrot.slane %v16430_v33, %v17898_v43  ;;  %v16437_v40 = vld.sshfl [vmem:[%s17869_s1 + $0xac] sm:$0x1 pattern:$0x75316420] }
  0x89   : > { %v3358_v51 = vcombine.low %v16506_v32, %v16507_v41  ;;  %17011 = vmatmul.mubr.msk.bf16.gmra.mrb[36].mxu1 %vm807_vm0, %v3306_v25  ;;  %v3388_v13 = vcombine.low %v3366_v45, %v3373_v46  ;;  %v1764_v53 = vrot.slane %v1750_v48, %v17898_v43  ;;  %v1780_v54 = vrot.slane %v16431_v42, %v17898_v43  ;;  %v16438_v46 = vld.sshfl [vmem:[%s17869_s1 + $0xb0] sm:$0x33 pattern:$0x75316420] }
  0x8a   : > { %v3354_v3 = vrot.slane %v3340_v44, %v17898_v43  ;;  %17014 = vmatprep.mubr.msk.bf16.mxu1 %vm17639_vm1, %v20680_v6  ;;  %v3359_v55 = vcombine.low %v16508_v49, %v16509_v50  ;;  %v1765_v57 = vcombine.high %v1757_v52, %v1757_v52  ;;  %v1788_v58 = vcombine.high %v16432_v47, %v16432_v47 }
  0x8b   : > { %v3380_v56 = vrot.slane %v3358_v51, %v17898_v43  ;;  %v18189_v61 = vrot.slane %v3388_v13, %v17898_v43  ;;  %v1766_v62 = vcombine.high %v1764_v53, %v1764_v53  ;;  %v1795_v63 = vrot.slane %v16432_v47, %v17898_v43  ;;  %v16439_v51 = vld.sshfl [vmem:[%s17869_s1 + $0xb4] sm:$0x1 pattern:$0x75316420] }
  0x8c   : > { %v3355_v60 = vcombine.low %v3347_v35, %v3354_v3  ;;  %v3387_v0 = vrot.slane %v3359_v55, %v17898_v43  ;;  %v1802_v1 = vrot.slane %v1788_v58, %v17898_v43  ;;  %v2587_v2 = vunpack.i.h.s16 %v1728_v38 }
  0x8d   : > { %v3406_v4 = vcombine.low %v1764_v53, %v1765_v57  ;;  %v1803_v8 = vcombine.high %v1795_v63, %v1795_v63  ;;  %v2599_v9 = vunpack.i.h.s16 %v1795_v63  ;;  %v16511_v10 = vpack.i.b16 %v1795_v63, %v1780_v54  ;;  %v16440_v53 = vld.sshfl [vmem:[%s17869_s1 + $0xb8] sm:$0x33 pattern:$0x75316420] }
  0x8e   : > { %v1818_v12 = vrot.slane %v16433_v59, %v17898_v43  ;;  %v3389_v15 = vcombine.low %v3380_v56, %v3387_v0  ;;  %v2601_v16 = vunpack.i.h.s16 %v1802_v1  ;;  %v16510_v17 = vpack.i.b16 %v1742_v24, %v2587_v2 }
  0x8f   : > { %v3422_v18 = vrot.slane %v3406_v4, %v17898_v43  ;;  %v16512_v20 = vpack.i.b16 %v1802_v1, %v2599_v9  ;;  %v3407_v21 = vcombine.low %v1766_v62, %v16511_v10  ;;  %v1804_v22 = vcombine.high %v1802_v1, %v1802_v1 }
  0x90   : > { %v1826_v23 = vcombine.high %v16434_v5, %v16434_v5  ;;  %v3403_v25 = vrot.slane %v3389_v15, %v17898_v43  ;;  %v16513_v26 = vpack.i.b16 %v1803_v8, %v2601_v16  ;;  %v3405_v27 = vcombine.low %v16510_v17, %v1757_v52 }
  0x91   : > { %v1833_v28 = vrot.slane %v16434_v5, %v17898_v43  ;;  %17015 = vmatmul.mubr.msk.bf16.gmra.mrb[40].mxu1 %vm807_vm0, %v3355_v60  ;;  %v3429_v29 = vrot.slane %v3407_v21, %v17898_v43  ;;  %v1856_v30 = vrot.slane %v16435_v11, %v17898_v43  ;;  %v1864_v31 = vcombine.high %v16436_v19, %v16436_v19 }
  0x92   : > { %v1840_v24 = vrot.slane %v1826_v23, %v17898_v43  ;;  %17018 = vmatprep.mubr.msk.bf16.mxu1 %vm17639_vm1, %v20680_v6  ;;  %v3404_v32 = vcombine.low %v18189_v61, %v3403_v25  ;;  %v3408_v33 = vcombine.low %v16512_v20, %v16513_v26  ;;  %v3415_v34 = vrot.slane %v3405_v27, %v17898_v43  ;;  %v16441_v20 = vld.sshfl [vmem:[%s17869_s1 + $0xbc] sm:$0x1 pattern:$0x75316420] }
  0x93   : > { %v1871_v35 = vrot.slane %v16436_v19, %v17898_v43  ;;  %v1878_v36 = vrot.slane %v1864_v31, %v17898_v43  ;;  %v2603_v37 = vunpack.i.h.s16 %v1803_v8  ;;  %v2605_v38 = vunpack.i.h.s16 %v1804_v22  ;;  %v16442_v25 = vld.sshfl [vmem:[%s17869_s1 + $0xc0] sm:$0x33 pattern:$0x75316420] }
  0x94   : > { %v3455_v39 = vcombine.low %v1833_v28, %v1840_v24  ;;  %v3436_v41 = vrot.slane %v3408_v33, %v17898_v43  ;;  %v3437_v42 = vcombine.low %v3415_v34, %v3422_v18  ;;  %v16561_v49 = vcombine.high %v1833_v28, %v1840_v24 }
  0x95   : > { %v2617_v44 = vunpack.i.h.s16 %v1871_v35  ;;  %v16516_v45 = vpack.i.b16 %v1871_v35, %v1856_v30  ;;  %v16514_v47 = vpack.i.b16 %v1804_v22, %v2603_v37  ;;  %v16515_v48 = vpack.i.b16 %v1818_v12, %v2605_v38  ;;  %v16443_v38 = vld.sshfl [vmem:[%s17869_s1 + $0xc4] sm:$0x1 pattern:$0x75316420] }
  0x96   : > { %v3471_v50 = vrot.slane %v3455_v39, %v17898_v43  ;;  %v3438_v52 = vcombine.low %v3429_v29, %v3436_v41  ;;  %v3445_v3 = vrot.slane %v3437_v42, %v17898_v43  ;;  %v1879_v54 = vcombine.high %v1871_v35, %v1871_v35 }
  0x97   : > { %v16517_v13 = vpack.i.b16 %v1878_v36, %v2617_v44  ;;  %v3454_v55 = vcombine.low %v16514_v47, %v16515_v48  ;;  %v3478_v56 = vrot.slane %v16561_v49, %v17898_v43  ;;  %v1880_v57 = vcombine.high %v1878_v36, %v1878_v36  ;;  %v16444_v48 = vld.sshfl [vmem:[%s17869_s1 + $0xc8] sm:$0x33 pattern:$0x75316420] }
  0x98   : > { %v1894_v58 = vrot.slane %v16437_v40, %v17898_v43  ;;  %v3452_v59 = vrot.slane %v3438_v52, %v17898_v43  ;;  %v1902_v61 = vcombine.high %v16438_v46, %v16438_v46  ;;  %v1909_v62 = vrot.slane %v16438_v46, %v17898_v43  ;;  %v16445_v52 = vld.sshfl [vmem:[%s17869_s1 + $0xcc] sm:$0x1 pattern:$0x75316420] }
  0x99   : > { %v3457_v60 = vcombine.low %v16516_v45, %v16517_v13  ;;  %17019 = vmatmul.mubr.msk.bf16.gmra.mrb[44].mxu1 %vm807_vm0, %v3404_v32  ;;  %v3464_v63 = vrot.slane %v3454_v55, %v17898_v43  ;;  %v1932_v0 = vrot.slane %v16439_v51, %v17898_v43  ;;  %v1947_v1 = vrot.slane %v16440_v53, %v17898_v43 }
  0x9a   : > { %v2619_v2 = vunpack.i.h.s16 %v1878_v36  ;;  %17022 = vmatprep.mubr.msk.bf16.mxu1 %vm17639_vm1, %v20680_v6  ;;  %v3453_v4 = vcombine.low %v3445_v3, %v3452_v59  ;;  %v1916_v8 = vrot.slane %v1902_v61, %v17898_v43  ;;  %v1917_v9 = vcombine.high %v1909_v62, %v1909_v62  ;;  %v16446_v59 = vld.sshfl [vmem:[%s17869_s1 + $0xd0] sm:$0x33 pattern:$0x75316420] }
  0x9b   : > { %v3485_v5 = vrot.slane %v3457_v60, %v17898_v43  ;;  %v3486_v10 = vcombine.low %v3464_v63, %v3471_v50  ;;  %v2621_v11 = vunpack.i.h.s16 %v1879_v54  ;;  %v2623_v12 = vunpack.i.h.s16 %v1880_v57 }
  0x9c   : > { %v16518_v15 = vpack.i.b16 %v1879_v54, %v2619_v2  ;;  %v1918_v17 = vcombine.high %v1916_v8, %v1916_v8  ;;  %v16521_v18 = vpack.i.b16 %v1947_v1, %v1932_v0  ;;  %v3505_v19 = vcombine.low %v1916_v8, %v1917_v9 }
  0x9d   : > { %v3487_v16 = vcombine.low %v3478_v56, %v3485_v5  ;;  %v3494_v21 = vrot.slane %v3486_v10, %v17898_v43  ;;  %v16519_v22 = vpack.i.b16 %v1880_v57, %v2621_v11  ;;  %v16520_v23 = vpack.i.b16 %v1894_v58, %v2623_v12 }
  0x9e   : > { %v1940_v26 = vcombine.high %v16440_v53, %v16440_v53  ;;  %v3506_v28 = vcombine.low %v1918_v17, %v16521_v18  ;;  %v3527_v29 = vrot.slane %v3505_v19, %v17898_v43  ;;  %v1955_v24 = vcombine.high %v1947_v1, %v1947_v1 }
  0x9f   : > { %v3501_v27 = vrot.slane %v3487_v16, %v17898_v43  ;;  %v3503_v30 = vcombine.low %v16518_v15, %v16519_v22  ;;  %v3504_v31 = vcombine.low %v16520_v23, %v1909_v62  ;;  %v1970_v33 = vrot.slane %v16441_v20, %v17898_v43  ;;  %v16447_v22 = vld.sshfl [vmem:[%s17869_s1 + $0xd4] sm:$0x1 pattern:$0x75316420] }
  0xa0   : > { %v1954_v32 = vrot.slane %v1940_v26, %v17898_v43  ;;  %v3534_v35 = vrot.slane %v3506_v28, %v17898_v43  ;;  %v1978_v36 = vcombine.high %v16442_v25, %v16442_v25  ;;  %v1985_v37 = vrot.slane %v16442_v25, %v17898_v43  ;;  %v16448_v28 = vld.sshfl [vmem:[%s17869_s1 + $0xd8] sm:$0x33 pattern:$0x75316420] }
  0xa1   : > { %v3502_v34 = vcombine.low %v3494_v21, %v3501_v27  ;;  %17023 = vmatmul.mubr.msk.bf16.gmra.mrb[48].mxu1 %vm807_vm0, %v3453_v4  ;;  %v3513_v39 = vrot.slane %v3503_v30, %v17898_v43  ;;  %v3520_v40 = vrot.slane %v3504_v31, %v17898_v43  ;;  %v2635_v42 = vunpack.i.h.s16 %v1947_v1 }
  0xa2   : > { %v1956_v41 = vcombine.high %v1954_v32, %v1954_v32  ;;  %17026 = vmatprep.mubr.msk.bf16.mxu1 %vm17639_vm1, %v20680_v6  ;;  %v3536_v44 = vcombine.low %v3527_v29, %v3534_v35  ;;  %v1992_v45 = vrot.slane %v1978_v36, %v17898_v43  ;;  %v2637_v46 = vunpack.i.h.s16 %v1954_v32  ;;  %v16450_v35 = vld.sshfl [vmem:[%s17869_s1 + $0xe0] sm:$0x33 pattern:$0x75316420] }
  0xa3   : > { %v2639_v47 = vunpack.i.h.s16 %v1955_v24  ;;  %v3535_v49 = vcombine.low %v3513_v39, %v3520_v40  ;;  %v16522_v51 = vpack.i.b16 %v1954_v32, %v2635_v42  ;;  %v2008_v3 = vrot.slane %v16443_v38, %v17898_v43  ;;  %v16449_v32 = vld.sshfl [vmem:[%s17869_s1 + $0xdc] sm:$0x1 pattern:$0x75316420] }
  0xa4   : > { %v2641_v50 = vunpack.i.h.s16 %v1956_v41  ;;  %v3550_v13 = vrot.slane %v3536_v44, %v17898_v43  ;;  %v16523_v53 = vpack.i.b16 %v1955_v24, %v2637_v46  ;;  %v3554_v55 = vcombine.low %v1985_v37, %v1992_v45 }
  0xa5   : > { %v16524_v54 = vpack.i.b16 %v1956_v41, %v2639_v47  ;;  %v3543_v56 = vrot.slane %v3535_v49, %v17898_v43  ;;  %v16562_v58 = vcombine.high %v1985_v37, %v1992_v45  ;;  %v2016_v60 = vcombine.high %v16444_v48, %v16444_v48 }
  0xa6   : > { %v16525_v57 = vpack.i.b16 %v1970_v33, %v2641_v50  ;;  %v3552_v61 = vcombine.low %v16522_v51, %v16523_v53  ;;  %v3576_v62 = vrot.slane %v3554_v55, %v17898_v43  ;;  %v2023_v63 = vrot.slane %v16444_v48, %v17898_v43 }
  0xa7   : > { %v2046_v0 = vrot.slane %v16445_v52, %v17898_v43  ;;  %v3551_v1 = vcombine.low %v3543_v56, %v3550_v13  ;;  %v3583_v4 = vrot.slane %v16562_v58, %v17898_v43  ;;  %v2030_v5 = vrot.slane %v2016_v60, %v17898_v43 }
  0xa8   : > { %v3553_v2 = vcombine.low %v16524_v54, %v16525_v57  ;;  %v3562_v8 = vrot.slane %v3552_v61, %v17898_v43  ;;  %v2031_v9 = vcombine.high %v2023_v63, %v2023_v63  ;;  %v2054_v10 = vcombine.high %v16446_v59, %v16446_v59  ;;  %v16451_v57 = vld.sshfl [vmem:[%s17869_s1 + $0xe4] sm:$0x1 pattern:$0x75316420] }
  0xa9   : > { %v2061_v11 = vrot.slane %v16446_v59, %v17898_v43  ;;  %17027 = vmatmul.mubr.msk.bf16.gmra.mrb[52].mxu1 %vm807_vm0, %v3502_v34  ;;  %v3585_v15 = vcombine.low %v3576_v62, %v3583_v4  ;;  %v2032_v16 = vcombine.high %v2030_v5, %v2030_v5  ;;  %v2653_v17 = vunpack.i.h.s16 %v2023_v63  ;;  %v16452_v62 = vld.sshfl [vmem:[%s17869_s1 + $0xe8] sm:$0x33 pattern:$0x75316420] }
  0xaa   : > { %v3569_v12 = vrot.slane %v3553_v2, %v17898_v43  ;;  %17030 = vmatprep.mubr.msk.bf16.mxu1 %vm17639_vm1, %v20680_v6  ;;  %v2068_v18 = vrot.slane %v2054_v10, %v17898_v43  ;;  %v2655_v20 = vunpack.i.h.s16 %v2030_v5  ;;  %v2657_v21 = vunpack.i.h.s16 %v2031_v9 }
  0xab   : > { %v2069_v19 = vcombine.high %v2061_v11, %v2061_v11  ;;  %v18266_v25 = vrot.slane %v3585_v15, %v17898_v43  ;;  %v2659_v26 = vunpack.i.h.s16 %v2032_v16  ;;  %v16526_v27 = vpack.i.b16 %v2023_v63, %v2008_v3 }
  0xac   : > { %v3584_v23 = vcombine.low %v3562_v8, %v3569_v12  ;;  %v16527_v29 = vpack.i.b16 %v2030_v5, %v2653_v17  ;;  %v16528_v24 = vpack.i.b16 %v2031_v9, %v2655_v20  ;;  %v16529_v30 = vpack.i.b16 %v2032_v16, %v2657_v21  ;;  %v16453_v9 = vld.sshfl [vmem:[%s17869_s1 + $0xec] sm:$0x1 pattern:$0x75316420] }
  0xad   : > { %v3604_v31 = vcombine.low %v2068_v18, %v2069_v19  ;;  %v16530_v34 = vpack.i.b16 %v2046_v0, %v2659_v26  ;;  %v2070_v36 = vcombine.high %v2068_v18, %v2068_v18  ;;  %v2084_v37 = vrot.slane %v16447_v22, %v17898_v43  ;;  %v16454_v22 = vld.sshfl [vmem:[%s17869_s1 + $0xf0] sm:$0x33 pattern:$0x75316420] }
  0xae   : > { %v3592_v33 = vrot.slane %v3584_v23, %v17898_v43  ;;  %v3601_v38 = vcombine.low %v16526_v27, %v16527_v29  ;;  %v3602_v39 = vcombine.low %v16528_v24, %v16529_v30  ;;  %v2092_v41 = vcombine.high %v16448_v28, %v16448_v28 }
  0xaf   : > { %v3632_v40 = vrot.slane %v3604_v31, %v17898_v43  ;;  %v3603_v44 = vcombine.low %v16530_v34, %v2061_v11  ;;  %v2099_v45 = vrot.slane %v16448_v28, %v17898_v43  ;;  %v2122_v46 = vrot.slane %v16449_v32, %v17898_v43 }
  0xb0   : > { %v3600_v42 = vcombine.low %v3592_v33, %v18266_v25  ;;  %v3611_v47 = vrot.slane %v3601_v38, %v17898_v43  ;;  %v3618_v48 = vrot.slane %v3602_v39, %v17898_v43  ;;  %v2106_v49 = vrot.slane %v2092_v41, %v17898_v43  ;;  %v16455_v33 = vld.sshfl [vmem:[%s17869_s1 + $0xf4] sm:$0x1 pattern:$0x75316420] }
  0xb1   : > { %v2130_v50 = vcombine.high %v16450_v35, %v16450_v35  ;;  %17031 = vmatmul.mubr.msk.bf16.gmra.mrb[56].mxu1 %vm807_vm0, %v3551_v1  ;;  %v3625_v51 = vrot.slane %v3603_v44, %v17898_v43  ;;  %v2107_v52 = vcombine.high %v2099_v45, %v2099_v45  ;;  %v2137_v3 = vrot.slane %v16450_v35, %v17898_v43 }
  0xb2   : > { %v2671_v13 = vunpack.i.h.s16 %v2099_v45  ;;  %17034 = vmatprep.mubr.msk.bf16.mxu1 %vm17639_vm1, %v20680_v6  ;;  %v3633_v53 = vcombine.low %v3611_v47, %v3618_v48  ;;  %v2108_v54 = vcombine.high %v2106_v49, %v2106_v49  ;;  %v2673_v56 = vunpack.i.h.s16 %v2106_v49  ;;  %v16457_v47 = vld.sshfl [vmem:[%s17869_s1 + $0xfc] sm:$0x1 pattern:$0x75316420] }
  0xb3   : > { %v2144_v55 = vrot.slane %v2130_v50, %v17898_v43  ;;  %v3634_v58 = vcombine.low %v3625_v51, %v3632_v40  ;;  %v2675_v59 = vunpack.i.h.s16 %v2107_v52  ;;  %v16531_v60 = vpack.i.b16 %v2099_v45, %v2084_v37  ;;  %v16456_v37 = vld.sshfl [vmem:[%s17869_s1 + $0xf8] sm:$0x33 pattern:$0x75316420] }
  0xb4   : > { %v16532_v61 = vpack.i.b16 %v2106_v49, %v2671_v13  ;;  %v3641_v63 = vrot.slane %v3633_v53, %v17898_v43  ;;  %v2677_v0 = vunpack.i.h.s16 %v2108_v54  ;;  %v16533_v1 = vpack.i.b16 %v2107_v52, %v2673_v56 }
  0xb5   : > { %v3653_v2 = vcombine.low %v2137_v3, %v2144_v55  ;;  %v3648_v4 = vrot.slane %v3634_v58, %v17898_v43  ;;  %v16534_v5 = vpack.i.b16 %v2108_v54, %v2675_v59  ;;  %v3650_v8 = vcombine.low %v2070_v36, %v16531_v60 }
  0xb6   : > { %v2160_v10 = vrot.slane %v16451_v57, %v17898_v43  ;;  %v16535_v11 = vpack.i.b16 %v2122_v46, %v2677_v0  ;;  %v3651_v12 = vcombine.low %v16532_v61, %v16533_v1  ;;  %v2168_v15 = vcombine.high %v16452_v62, %v16452_v62 }
  0xb7   : > { %v3649_v16 = vcombine.low %v3641_v63, %v3648_v4  ;;  %v3660_v17 = vrot.slane %v3650_v8, %v17898_v43  ;;  %v3681_v18 = vrot.slane %v3653_v2, %v17898_v43  ;;  %v2175_v19 = vrot.slane %v16452_v62, %v17898_v43  ;;  %v16458_v4 = vld.sshfl [vmem:[%s17869_s1 + $0x100] sm:$0x33 pattern:$0x75316420] }
  0xb8   : > { %v3652_v20 = vcombine.low %v16534_v5, %v16535_v11  ;;  %v3667_v21 = vrot.slane %v3651_v12, %v17898_v43  ;;  %v2182_v23 = vrot.slane %v2168_v15, %v17898_v43  ;;  %v2198_v25 = vrot.slane %v16453_v9, %v17898_v43  ;;  %v16459_v11 = vld.sshfl [vmem:[%s17869_s1 + $0x104] sm:$0x1 pattern:$0x75316420] }
  0xb9   : > { %17035 = vmatmul.mubr.msk.bf16.gmra.mrb[60].mxu1 %vm807_vm0, %v3600_v42  ;;  %v2183_v26 = vcombine.high %v2175_v19, %v2175_v19  ;;  %v2689_v27 = vunpack.i.h.s16 %v2175_v19  ;;  %v16536_v28 = vpack.i.b16 %v2175_v19, %v2160_v10  ;;  %v16563_v29 = vcombine.high %v2137_v3, %v2144_v55 }
  0xba   : > { %17038 = vmatprep.mubr.msk.bf16.mxu1 %vm17639_vm1, %v20680_v6  ;;  %v3674_v24 = vrot.slane %v3652_v20, %v17898_v43  ;;  %v3682_v30 = vcombine.low %v3660_v17, %v3667_v21  ;;  %v2184_v31 = vcombine.high %v2182_v23, %v2182_v23  ;;  %v2691_v32 = vunpack.i.h.s16 %v2182_v23 }
  0xbb   : > { %v2213_v34 = vrot.slane %v16454_v22, %v17898_v43  ;;  %v2693_v35 = vunpack.i.h.s16 %v2183_v26  ;;  %v16537_v36 = vpack.i.b16 %v2182_v23, %v2689_v27  ;;  %v2206_v38 = vcombine.high %v16454_v22, %v16454_v22 }
  0xbc   : > { %v3683_v39 = vcombine.low %v3674_v24, %v3681_v18  ;;  %v2695_v40 = vunpack.i.h.s16 %v2184_v31  ;;  %v16538_v41 = vpack.i.b16 %v2183_v26, %v2691_v32  ;;  %v3709_v42 = vrot.slane %v16563_v29, %v17898_v43  ;;  %v16460_v18 = vld.sshfl [vmem:[%s17869_s1 + $0x108] sm:$0x33 pattern:$0x75316420] }
  0xbd   : > { %v3690_v44 = vrot.slane %v3682_v30, %v17898_v43  ;;  %v16539_v45 = vpack.i.b16 %v2184_v31, %v2693_v35  ;;  %v3700_v46 = vcombine.low %v16536_v28, %v16537_v36  ;;  %v2220_v48 = vrot.slane %v2206_v38, %v17898_v43 }
  0xbe   : > { %v16540_v49 = vpack.i.b16 %v2198_v25, %v2695_v40  ;;  %v2221_v50 = vcombine.high %v2213_v34, %v2213_v34  ;;  %v2236_v51 = vrot.slane %v16455_v33, %v17898_v43  ;;  %v2244_v52 = vcombine.high %v16456_v37, %v16456_v37 }
  0xbf   : > { %v3697_v3 = vrot.slane %v3683_v39, %v17898_v43  ;;  %v3701_v13 = vcombine.low %v16538_v41, %v16539_v45  ;;  %v3716_v53 = vrot.slane %v3700_v46, %v17898_v43  ;;  %v2251_v54 = vrot.slane %v16456_v37, %v17898_v43 }
  0xc0   : > { %v3702_v55 = vcombine.low %v16540_v49, %v2213_v34  ;;  %v2222_v56 = vcombine.high %v2220_v48, %v2220_v48  ;;  %v2258_v57 = vrot.slane %v2244_v52, %v17898_v43  ;;  %v2274_v58 = vrot.slane %v16457_v47, %v17898_v43  ;;  %v16463_v49 = vld.sshfl [vmem:[%s17869_s1 + $0x114] sm:$0x1 pattern:$0x75316420] }
  0xc1   : > { %17039 = vmatmul.mubr.msk.bf16.gmra.mrb[64].mxu1 %vm807_vm0, %v3649_v16  ;;  %v3723_v59 = vrot.slane %v3701_v13, %v17898_v43  ;;  %v3731_v60 = vcombine.low %v3709_v42, %v3716_v53  ;;  %v2259_v61 = vcombine.high %v2251_v54, %v2251_v54  ;;  %v2707_v62 = vunpack.i.h.s16 %v2251_v54  ;;  %v16461_v42 = vld.sshfl [vmem:[%s17869_s1 + $0x10c] sm:$0x1 pattern:$0x75316420] }
  0xc2   : > { %17042 = vmatprep.mubr.msk.bf16.mxu1 %vm17639_vm1, %v20680_v6  ;;  %v3730_v63 = vrot.slane %v3702_v55, %v17898_v43  ;;  %v2260_v0 = vcombine.high %v2258_v57, %v2258_v57  ;;  %v2709_v1 = vunpack.i.h.s16 %v2258_v57  ;;  %v16541_v2 = vpack.i.b16 %v2251_v54, %v2236_v51 }
  0xc3   : > { %v3698_v5 = vcombine.low %v3690_v44, %v3697_v3  ;;  %v2711_v8 = vunpack.i.h.s16 %v2259_v61  ;;  %v16542_v9 = vpack.i.b16 %v2258_v57, %v2707_v62  ;;  %v3748_v10 = vcombine.low %v2220_v48, %v2221_v50  ;;  %v16462_v44 = vld.sshfl [vmem:[%s17869_s1 + $0x110] sm:$0x33 pattern:$0x75316420] }
  0xc4   : > { %v3732_v12 = vcombine.low %v3723_v59, %v3730_v63  ;;  %v2713_v15 = vunpack.i.h.s16 %v2260_v0  ;;  %v16543_v16 = vpack.i.b16 %v2259_v61, %v2709_v1  ;;  %v3749_v17 = vcombine.low %v2222_v56, %v16541_v2  ;;  %v16464_v3 = vld.sshfl [vmem:[%s17869_s1 + $0x118] sm:$0x33 pattern:$0x75316420] }
  0xc5   : > { %v3739_v19 = vrot.slane %v3731_v60, %v17898_v43  ;;  %v16544_v20 = vpack.i.b16 %v2260_v0, %v2711_v8  ;;  %v3758_v21 = vrot.slane %v3748_v10, %v17898_v43  ;;  %v2282_v22 = vcombine.high %v16458_v4, %v16458_v4 }
  0xc6   : > { %v16545_v23 = vpack.i.b16 %v2274_v58, %v2713_v15  ;;  %v3750_v25 = vcombine.low %v16542_v9, %v16543_v16  ;;  %v3765_v26 = vrot.slane %v3749_v17, %v17898_v43  ;;  %v2289_v27 = vrot.slane %v16458_v4, %v17898_v43 }
  0xc7   : > { %v2296_v28 = vrot.slane %v2282_v22, %v17898_v43  ;;  %v2312_v29 = vrot.slane %v16459_v11, %v17898_v43  ;;  %v2320_v24 = vcombine.high %v16460_v18, %v16460_v18  ;;  %v2327_v30 = vrot.slane %v16460_v18, %v17898_v43 }
  0xc8   : > { %v3746_v31 = vrot.slane %v3732_v12, %v17898_v43  ;;  %v3751_v32 = vcombine.low %v16544_v20, %v16545_v23  ;;  %v3772_v33 = vrot.slane %v3750_v25, %v17898_v43  ;;  %v3780_v34 = vcombine.low %v3758_v21, %v3765_v26 }
  0xc9   : > { %17043 = vmatmul.mubr.msk.bf16.gmra.mrb[68].mxu1 %vm807_vm0, %v3698_v5  ;;  %v2334_v35 = vrot.slane %v2320_v24, %v17898_v43  ;;  %v2335_v36 = vcombine.high %v2327_v30, %v2327_v30  ;;  %v2725_v37 = vunpack.i.h.s16 %v2327_v30  ;;  %v16546_v38 = vpack.i.b16 %v2327_v30, %v2312_v29 }
  0xca   : > { %17046 = vmatprep.mubr.msk.bf16.mxu1 %vm17639_vm1, %v20680_v6  ;;  %v3779_v39 = vrot.slane %v3751_v32, %v17898_v43  ;;  %v3797_v40 = vcombine.low %v2289_v27, %v2296_v28  ;;  %v16564_v41 = vcombine.high %v2289_v27, %v2296_v28  ;;  %v3747_v50 = vcombine.low %v3739_v19, %v3746_v31 }
  0xcb   : > { %v2336_v45 = vcombine.high %v2334_v35, %v2334_v35  ;;  %v2727_v46 = vunpack.i.h.s16 %v2334_v35  ;;  %v2729_v47 = vunpack.i.h.s16 %v2335_v36  ;;  %v16547_v48 = vpack.i.b16 %v2334_v35, %v2725_v37 }
  0xcc   : > { %v3781_v51 = vcombine.low %v3772_v33, %v3779_v39  ;;  %v3788_v52 = vrot.slane %v3780_v34, %v17898_v43  ;;  %v2358_v55 = vcombine.high %v16462_v44, %v16462_v44  ;;  %v3807_v56 = vrot.slane %v3797_v40, %v17898_v43  ;;  %v18381_v39 = vpop.permute.xlu1 %4414  ;;  %v18383_v40 = vpop.permute.xlu0 %4409 }
  0xcd   : > { %v16548_v13 = vpack.i.b16 %v2335_v36, %v2727_v46  ;;  %v16549_v53 = vpack.i.b16 %v2336_v45, %v2729_v47  ;;  %v3799_v54 = vcombine.low %v16546_v38, %v16547_v48  ;;  %v3814_v57 = vrot.slane %v16564_v41, %v17898_v43 }
  0xce   : > { %v2365_v58 = vrot.slane %v16462_v44, %v17898_v43  ;;  %v2388_v59 = vrot.slane %v16463_v49, %v17898_v43  ;;  %v2350_v61 = vrot.slane %v16461_v42, %v17898_v43  ;;  %v2372_v62 = vrot.slane %v2358_v55, %v17898_v43 }
  0xcf   : > { %v3800_v60 = vcombine.low %v16548_v13, %v16549_v53  ;;  %v2396_v63 = vcombine.high %v16464_v3, %v16464_v3  ;;  %v3795_v0 = vrot.slane %v3781_v51, %v17898_v43  ;;  %v3821_v1 = vrot.slane %v3799_v54, %v17898_v43 }
  0xd0   : > { %v2373_v2 = vcombine.high %v2365_v58, %v2365_v58  ;;  %v2403_v4 = vrot.slane %v16464_v3, %v17898_v43  ;;  %v2374_v8 = vcombine.high %v2372_v62, %v2372_v62  ;;  %v2731_v10 = vunpack.i.h.s16 %v2336_v45  ;;  %v18385_v41 = vpop.permute.xlu1 %4464  ;;  %v4365_v42 = vpop.permute.xlu0 %4364 }
  0xd1   : > { %17047 = vmatmul.mubr.msk.bf16.gmra.mrb[72].mxu1 %vm807_vm0, %v3747_v50  ;;  %v3828_v5 = vrot.slane %v3800_v60, %v17898_v43  ;;  %v18355_v9 = vrot.slane %v2396_v63, %v17898_v43  ;;  %v3796_v18 = vcombine.low %v3788_v52, %v3795_v0  ;;  %v3829_v19 = vcombine.low %v3807_v56, %v3814_v57  ;;  %v18431_v63 = vld [vmem:[%s20657_s7] ss:$0 sm:$0xff] }
  0xd2   : > { %17050 = vmatprep.mubr.msk.bf16.mxu1 %vm17639_vm1, %v20680_v6  ;;  %v18359_v11 = vcombine.high %v2403_v4, %v2403_v4  ;;  %v2743_v12 = vunpack.i.h.s16 %v2403_v4  ;;  %v16551_v15 = vpack.i.b16 %v2403_v4, %v2388_v59  ;;  %v16550_v17 = vpack.i.b16 %v2350_v61, %v2731_v10  ;;  %v18422_v59 = vld [vmem:[%s20656_s6] ss:$0 sm:$0xff] }
  0xd3   : > { %20733 = vst [vmem:[#allocation16_spill] sm:$0xff] %v18355_v9  ;;  %v2745_v16 = vunpack.i.h.s16 %v18355_v9  ;;  %v3847_v21 = vcombine.low %v2372_v62, %v2373_v2  ;;  %v3830_v22 = vcombine.low %v3821_v1, %v3828_v5  ;;  %v3837_v28 = vrot.slane %v3829_v19, %v17898_v43 }
  0xd4   : > { %20734 = vst [vmem:[#allocation17_spill] sm:$0xff] %v18359_v11  ;;  %v16552_v20 = vpack.i.b16 %v18355_v9, %v2743_v12  ;;  %v3846_v25 = vcombine.low %v16550_v17, %v2365_v58  ;;  %v3848_v26 = vcombine.low %v2374_v8, %v16551_v15  ;;  %v18387_v44 = vpop.permute.xlu1 %4509  ;;  %v4360_v45 = vpop.permute.xlu0 %4359 }
  0xd5   : > { %v16553_v23 = vpack.i.b16 %v18359_v11, %v2745_v16  ;;  %v3863_v29 = vrot.slane %v3847_v21, %v17898_v43  ;;  %v3844_v24 = vrot.slane %v3830_v22, %v17898_v43 }
  0xd6   : > { %v3856_v30 = vrot.slane %v3846_v25, %v17898_v43  ;;  %v3870_v31 = vrot.slane %v3848_v26, %v17898_v43 }
  0xd7   : > { %v3849_v27 = vcombine.low %v16552_v20, %v16553_v23  ;;  %v3845_v33 = vcombine.low %v3837_v28, %v3844_v24 }
  0xd8   : > { %v3878_v34 = vcombine.low %v3856_v30, %v3863_v29  ;;  %v18389_v46 = vpop.permute.xlu1 %4459  ;;  %v18395_v49 = vpop.permute.xlu0 %4419 }
  0xd9   : > { %17051 = vmatmul.mubr.msk.bf16.gmra.mrb[76].mxu1 %vm807_vm0, %v3796_v18  ;;  %v3877_v32 = vrot.slane %v3849_v27, %v17898_v43 }
  0xda   : > { %17054 = vmatprep.mubr.msk.bf16.mxu1 %vm17639_vm1, %v20680_v6  ;;  %v3886_v36 = vrot.slane %v3878_v34, %v17898_v43 }
  0xdb   : > { %v3879_v35 = vcombine.low %v3870_v31, %v3877_v32 }
  0xdc   : > { %v18399_v51 = vpop.permute.xlu1 %4469  ;;  %v18403_v3 = vpop.permute.xlu0 %4514 }
  0xdd   : > { %v3893_v37 = vrot.slane %v3879_v35, %v17898_v43 }
  0xdf   : > { %v3894_v38 = vcombine.low %v3886_v36, %v3893_v37 }
  0xe0   : > { %v18405_v13 = vpop.permute.xlu1 %4519  ;;  %v18415_v57 = vpop.permute.xlu0 %4369 }
  0xe1   : > { %17055 = vmatmul.mubr.msk.bf16.gmra.mrb[80].mxu1 %vm807_vm0, %v3845_v33 }
  0xe2   : > { %17058 = vmatprep.mubr.msk.bf16.mxu1 %vm17639_vm1, %v20680_v6 }
  0xe4   : > { %v18417_v58 = vpop.permute.xlu1 %4424  ;;  %v18424_v60 = vpop.permute.xlu0 %4374 }
  0xe8   : > { %v18426_v61 = vpop.permute.xlu1 %4429  ;;  %v18436_v12 = vpop.permute.xlu0 %4474 }
  0xe9   : > { %17059 = vmatmul.mubr.msk.bf16.gmra.mrb[84].mxu1 %vm807_vm0, %v3894_v38 }
  0xea   : > { %17062 = vmatprep.mubr.msk.bf16.mxu1 %vm17639_vm1, %v20680_v6 }
  0xec   : > { %v18439_v16 = vpop.permute.xlu1 %4379  ;;  %v18444_v24 = vpop.permute.xlu0 %4479 }
  0xf0   : > { %v18448_v33 = vpop.permute.xlu1 %4529 }
 0x10f   : > { %v18391_v47 = vpop.f32.mrb[0].mxu1 }
 0x110   : > { %20735 = vst [vmem:[#allocation18_spill] sm:$0xff] %v18391_v47  ;;  %v18393_v48 = vpop.f32.mrb[1].mxu1 }
 0x111   : > { %20736 = vst [vmem:[#allocation19_spill] sm:$0xff] %v18393_v48  ;;  %v18397_v50 = vpop.f32.mrb[2].mxu1 }
 0x112   : > { %20737 = vst [vmem:[#allocation20_spill] sm:$0xff] %v18397_v50  ;;  %v18401_v52 = vpop.f32.mrb[3].mxu1 }
 0x113   : > { %20738 = vst [vmem:[#allocation21_spill] sm:$0xff] %v18401_v52 }
 0x118   : > { %v18407_v53 = vpop.f32.mrb[4].mxu1 }
 0x119   : > { %20739 = vst [vmem:[#allocation22_spill] sm:$0xff] %v18407_v53  ;;  %v18409_v54 = vpop.f32.mrb[5].mxu1 }
 0x11a   : > { %20740 = vst [vmem:[#allocation23_spill] sm:$0xff] %v18409_v54  ;;  %v18411_v55 = vpop.f32.mrb[6].mxu1 }
 0x11b   : > { %20741 = vst [vmem:[#allocation24_spill] sm:$0xff] %v18411_v55  ;;  %v18413_v56 = vpop.f32.mrb[7].mxu1 }
 0x11c   : > { %20742 = vst [vmem:[#allocation25_spill] sm:$0xff] %v18413_v56 }
 0x124   : > { %v4013_v62 = vpop.f32.mrb[8].mxu1 }
 0x125   : > { %v4186_v0 = vmul.f32 %v18422_v59, %v4013_v62  ;;  %v16984_v1 = vpop.f32.mrb[9].mxu1 }
 0x126   : > { %v4016_v2 = vpop.f32.mrb[10].mxu1 }
 0x127   : > { %v4234_v4 = vadd.f32 %v18431_v63, %v4186_v0  ;;  %v4187_v5 = vmul.f32 %v18422_v59, %v4016_v2  ;;  %v16985_v8 = vpop.f32.mrb[11].mxu1 }
 0x129   : > { %v4275_v10 = vmax.f32 %v4234_v4, 0.0  ;;  %v4235_v15 = vadd.f32 %v18431_v63, %v4187_v5 }
 0x12b   : > { %v4562_v17 = vmul.f32 %v4360_v45, %v4275_v10  ;;  %v4276_v18 = vmax.f32 %v4235_v15, 0.0 }
 0x12c   : > { %v4021_v19 = vpop.f32.mrb[12].mxu1 }
 0x12d   : > { %v4644_v20 = vcombine.high %v4562_v17, %v4562_v17  ;;  %v4651_v21 = vrot.slane %v4562_v17, %v17898_v43  ;;  %v4563_v22 = vmul.f32 %v4365_v42, %v4276_v18  ;;  %v4188_v23 = vmul.f32 %v18422_v59, %v4021_v19  ;;  %v16988_v25 = vpop.f32.mrb[13].mxu1 }
 0x12e   : > { %v4024_v26 = vpop.f32.mrb[14].mxu1  ;;  %v18463_v25 = vpop.permute.xlu0 %4524 }
 0x12f   : > { %v4658_v27 = vrot.slane %v4644_v20, %v17898_v43  ;;  %v4659_v28 = vcombine.high %v4651_v21, %v4651_v21  ;;  %v4693_v29 = vcombine.high %v4563_v22, %v4563_v22  ;;  %v16989_v30 = vpop.f32.mrb[15].mxu1  ;;  %v4667_v31 = vrot.slane %v4651_v21, %v17898_v43 }
 0x130   : > { %v4700_v32 = vrot.slane %v4563_v22, %v17898_v43  ;;  %v4236_v34 = vadd.f32 %v18431_v63, %v4188_v23  ;;  %v4189_v35 = vmul.f32 %v18422_v59, %v4024_v26 }
 0x131   : > { %v4660_v36 = vcombine.high %v4658_v27, %v4658_v27  ;;  %v4674_v37 = vrot.slane %v4658_v27, %v17898_v43  ;;  %v4681_v38 = vrot.slane %v4659_v28, %v17898_v43  ;;  %v4707_v42 = vrot.slane %v4693_v29, %v17898_v43 }
 0x132   : > { %v4708_v45 = vcombine.high %v4700_v32, %v4700_v32  ;;  %v4716_v62 = vrot.slane %v4700_v32, %v17898_v43  ;;  %v4277_v0 = vmax.f32 %v4236_v34, 0.0  ;;  %v4237_v1 = vadd.f32 %v18431_v63, %v4189_v35 }
 0x133   : > { %v4688_v2 = vrot.slane %v4660_v36, %v17898_v43  ;;  %v6628_v4 = vcombine.low %v4667_v31, %v4681_v38  ;;  %v16589_v5 = vcombine.high %v4667_v31, %v4681_v38  ;;  %v4709_v8 = vcombine.high %v4707_v42, %v4707_v42  ;;  %v18467_v31 = vpop.permute.xlu1 %4384 }
 0x134   : > { %v4723_v10 = vrot.slane %v4707_v42, %v17898_v43  ;;  %v4730_v15 = vrot.slane %v4708_v45, %v17898_v43  ;;  %v4738_v17 = vcombine.high %v4716_v62, %v4716_v62  ;;  %v6683_v18 = vrot.slane %v4716_v62, %v17898_v43  ;;  %v4029_v19 = vpop.f32.mrb[16].mxu1 }
 0x135   : > { %v6630_v20 = vcombine.low %v4674_v37, %v4688_v2  ;;  %v16590_v21 = vcombine.high %v4674_v37, %v4688_v2  ;;  %v6638_v22 = vrot.slane %v6628_v4, %v17898_v43  ;;  %v6645_v23 = vrot.slane %v16589_v5, %v17898_v43  ;;  %v16992_v26 = vpop.f32.mrb[17].mxu1 }
 0x136   : > { %v4737_v27 = vrot.slane %v4709_v8, %v17898_v43  ;;  %v4739_v28 = vcombine.high %v4723_v10, %v4723_v10  ;;  %v4740_v29 = vcombine.high %v4730_v15, %v4730_v15  ;;  %v6690_v30 = vrot.slane %v6683_v18, %v17898_v43  ;;  %v4032_v32 = vpop.f32.mrb[18].mxu1 }
 0x137   : > { %v6652_v34 = vrot.slane %v6630_v20, %v17898_v43  ;;  %v6659_v35 = vrot.slane %v16590_v21, %v17898_v43  ;;  %v6660_v36 = vcombine.low %v6638_v22, %v6645_v23  ;;  %v6691_v37 = vcombine.low %v4730_v15, %v4738_v17  ;;  %v16993_v38 = vpop.f32.mrb[19].mxu1  ;;  %v18480_v22 = vpop.permute.xlu0 %4434 }
 0x138   : > { %v6692_v42 = vcombine.low %v4740_v29, %v4723_v10  ;;  %v6693_v45 = vcombine.low %v4737_v27, %v4739_v28  ;;  %8970 = vst.msk [vmem:[#allocation2 + $0x8] sm:$0x1] %vm8969_vm2, %v6690_v30  ;;  %v4564_v62 = vmul.f32 %v18415_v57, %v4277_v0  ;;  %v4741_v2 = vcombine.high %v4737_v27, %v4737_v27  ;;  %v18488_v29 = vpop.permute.xlu1 %4484 }
 0x139   : > { %v6661_v4 = vcombine.low %v6652_v34, %v6659_v35  ;;  %v6668_v5 = vrot.slane %v6660_v36, %v17898_v43  ;;  %v6701_v8 = vrot.slane %v6691_v37, %v17898_v43  ;;  %v4278_v18 = vmax.f32 %v4237_v1, 0.0 }
 0x13a   : > { %v6708_v20 = vrot.slane %v6692_v42, %v17898_v43  ;;  %v4742_v26 = vcombine.high %v4564_v62, %v4564_v62  ;;  %v4749_v21 = vrot.slane %v4564_v62, %v17898_v43  ;;  %v6715_v15 = vrot.slane %v6693_v45, %v17898_v43 }
 0x13b   : > { %v6675_v10 = vrot.slane %v6661_v4, %v17898_v43  ;;  %v4565_v17 = vmul.f32 %v18424_v60, %v4278_v18  ;;  %v4190_v57 = vmul.f32 %v18422_v59, %v4029_v19  ;;  %v18484_v0 = vmul.f32 %v18422_v59, %v4032_v32 }
 0x13c   : > { %v6723_v23 = vcombine.low %v6701_v8, %v6708_v20  ;;  %v4756_v1 = vrot.slane %v4742_v26, %v17898_v43  ;;  %v4757_v27 = vcombine.high %v4749_v21, %v4749_v21  ;;  %v4765_v28 = vrot.slane %v4749_v21, %v17898_v43  ;;  %v18490_v30 = vpop.f32.mrb[20].mxu1 }
 0x13d   : > { %v6676_v34 = vcombine.low %v6668_v5, %v6675_v10  ;;  %v4791_v35 = vcombine.high %v4565_v17, %v4565_v17  ;;  %v4798_v60 = vrot.slane %v4565_v17, %v17898_v43  ;;  %v4238_v36 = vadd.f32 %v18431_v63, %v4190_v57  ;;  %v16996_v19 = vpop.f32.mrb[21].mxu1 }
 0x13e   : > { %v6731_v32 = vrot.slane %v6723_v23, %v17898_v43  ;;  %v4758_v37 = vcombine.high %v4756_v1, %v4756_v1  ;;  %v4772_v38 = vrot.slane %v4756_v1, %v17898_v43  ;;  %v4779_v42 = vrot.slane %v4757_v27, %v17898_v43  ;;  %v4040_v45 = vpop.f32.mrb[22].mxu1  ;;  %v18509_v19 = vpop.permute.xlu1 %4489 }
 0x13f   : > { %8968 = vst.msk [vmem:[#allocation2] sm:$0xff] %vm807_vm0, %v6676_v34  ;;  %v6694_v62 = vcombine.low %v4741_v2, %v4765_v28  ;;  %v4805_v4 = vrot.slane %v4791_v35, %v17898_v43  ;;  %v4806_v5 = vcombine.high %v4798_v60, %v4798_v60  ;;  %v4814_v8 = vrot.slane %v4798_v60, %v17898_v43  ;;  %v16997_v18 = vpop.f32.mrb[23].mxu1  ;;  %v18505_v2 = vpop.permute.xlu0 %4439 }
 0x140   : > { %v4786_v20 = vrot.slane %v4758_v37, %v17898_v43  ;;  %v6746_v26 = vrot.slane %v4779_v42, %v17898_v43  ;;  %v16591_v21 = vcombine.high %v4765_v28, %v4779_v42  ;;  %v4279_v10 = vmax.f32 %v4238_v36, 0.0 }
 0x141   : > { %v6722_v17 = vrot.slane %v6694_v62, %v17898_v43  ;;  %v4807_v57 = vcombine.high %v4805_v4, %v4805_v4  ;;  %v4821_v23 = vrot.slane %v4805_v4, %v17898_v43  ;;  %v4828_v1 = vrot.slane %v4806_v5, %v17898_v43 }
 0x142   : > { %v6753_v27 = vrot.slane %v6746_v26, %v17898_v43  ;;  %v6755_v34 = vcombine.low %v4772_v38, %v4786_v20  ;;  %v16592_v35 = vcombine.high %v4772_v38, %v4786_v20  ;;  %v6764_v60 = vrot.slane %v16591_v21, %v17898_v43 }
 0x143   : > { %v6724_v37 = vcombine.low %v6715_v15, %v6722_v17  ;;  %v4835_v28 = vrot.slane %v4807_v57, %v17898_v43  ;;  %v4836_v36 = vcombine.high %v4814_v8, %v4814_v8  ;;  %v4837_v42 = vcombine.high %v4821_v23, %v4821_v23 }
 0x144   : > { %v6771_v62 = vrot.slane %v6755_v34, %v17898_v43  ;;  %v6778_v4 = vrot.slane %v16592_v35, %v17898_v43  ;;  %8972 = vst.msk [vmem:[#allocation2 + $0x18] sm:$0x1] %vm8969_vm2, %v6753_v27  ;;  %v4838_v5 = vcombine.high %v4828_v1, %v4828_v1  ;;  %v6757_v18 = vcombine.low %v4814_v8, %v4828_v1  ;;  %v4045_v26 = vpop.f32.mrb[24].mxu1 }
 0x145   : > { %v6738_v38 = vrot.slane %v6724_v37, %v17898_v43  ;;  %v6809_v20 = vrot.slane %v4836_v36, %v17898_v43  ;;  %v6818_v21 = vcombine.low %v4835_v28, %v4837_v42  ;;  %v4566_v15 = vmul.f32 %v18439_v16, %v4279_v10  ;;  %v17000_v17 = vpop.f32.mrb[25].mxu1  ;;  %v4390_v37 = vpop.permute.xlu0 %4389 }
 0x146   : > { %v6786_v57 = vcombine.low %v6764_v60, %v6771_v62  ;;  %v6785_v6 = vrot.slane %v6757_v18, %v17898_v43  ;;  %v6817_v7 = vcombine.low %v4838_v5, %v4821_v23  ;;  %v4839_v34 = vcombine.high %v4835_v28, %v4835_v28  ;;  %v18519_v56 = vpop.f32.mrb[26].mxu1  ;;  %v18526_v60 = vpop.permute.xlu1 %4539 }
 0x147   : > { %v6739_v35 = vcombine.low %v6731_v32, %v6738_v38  ;;  %v6816_v27 = vrot.slane %v6809_v20, %v17898_v43  ;;  %v6834_v8 = vrot.slane %v6818_v21, %v17898_v43  ;;  %v4840_v1 = vcombine.high %v4566_v15, %v4566_v15  ;;  %v17001_v55 = vpop.f32.mrb[27].mxu1 }
 0x148   : > { %v6794_v36 = vrot.slane %v6786_v57, %v17898_v43  ;;  %v6787_v42 = vcombine.low %v6778_v4, %v6785_v6  ;;  %v6827_v16 = vrot.slane %v6817_v7, %v17898_v43  ;;  %v4847_v10 = vrot.slane %v4566_v15, %v17898_v43 }
 0x149   : > { %8971 = vst.msk [vmem:[#allocation2 + $0x10] sm:$0xff] %vm807_vm0, %v6739_v35  ;;  %v4854_v32 = vrot.slane %v4840_v1, %v17898_v43  ;;  %v4239_v23 = vadd.f32 %v18431_v63, %v18484_v0  ;;  %v4192_v55 = vmul.f32 %v18422_v59, %v18490_v30  ;;  %v4193_v6 = vmul.f32 %v18422_v59, %v4040_v45 }
 0x14a   : > { %8974 = vst.msk [vmem:[#allocation2 + $0x28] sm:$0x1] %vm8969_vm2, %v6816_v27  ;;  %v6801_v7 = vrot.slane %v6787_v42, %v17898_v43  ;;  %v6849_v28 = vcombine.low %v6827_v16, %v6834_v8  ;;  %v4855_v62 = vcombine.high %v4847_v10, %v4847_v10  ;;  %v4863_v4 = vrot.slane %v4847_v10, %v17898_v43  ;;  %v18546_v8 = vpop.permute.xlu0 %4534  ;;  %v18549_v16 = vpop.permute.xlu1 %4444 }
 0x14b   : > { %v4856_v5 = vcombine.high %v4854_v32, %v4854_v32  ;;  %v4870_v18 = vrot.slane %v4854_v32, %v17898_v43  ;;  %v4280_v38 = vmax.f32 %v4239_v23, 0.0  ;;  %v4240_v20 = vadd.f32 %v18431_v63, %v4192_v55 }
 0x14c   : > { %v6802_v21 = vcombine.low %v6794_v36, %v6801_v7  ;;  %v6857_v0 = vrot.slane %v6849_v28, %v17898_v43  ;;  %v4877_v15 = vrot.slane %v4855_v62, %v17898_v43  ;;  %v4885_v30 = vcombine.high %v4863_v4, %v4863_v4  ;;  %v18542_v17 = vpop.f32.mrb[28].mxu1 }
 0x14d   : > { %v4884_v45 = vrot.slane %v4856_v5, %v17898_v43  ;;  %v6819_v57 = vcombine.low %v4839_v34, %v4863_v4  ;;  %v4567_v35 = vmul.f32 %v18467_v31, %v4280_v38  ;;  %v4281_v27 = vmax.f32 %v4240_v20, 0.0  ;;  %v17004_v1 = vpop.f32.mrb[29].mxu1 }
 0x14e   : > { %8973 = vst.msk [vmem:[#allocation2 + $0x20] sm:$0xff] %vm807_vm0, %v6802_v21  ;;  %v4887_v42 = vcombine.high %v4877_v15, %v4877_v15  ;;  %v6820_v36 = vcombine.low %v4877_v15, %v4885_v30  ;;  %v4241_v10 = vadd.f32 %v18431_v63, %v4193_v6  ;;  %v18553_v32 = vmul.f32 %v18422_v59, %v4045_v26  ;;  %v18555_v23 = vpop.f32.mrb[30].mxu1 }
 0x14f   : > { %v6841_v34 = vrot.slane %v6819_v57, %v17898_v43  ;;  %v6880_v31 = vcombine.low %v4870_v18, %v4884_v45  ;;  %v16593_v55 = vcombine.high %v4870_v18, %v4884_v45  ;;  %v4889_v7 = vcombine.high %v4567_v35, %v4567_v35  ;;  %v17005_v28 = vpop.f32.mrb[31].mxu1 }
 0x150   : > { %v6848_v62 = vrot.slane %v6820_v36, %v17898_v43  ;;  %v6872_v4 = vrot.slane %v4887_v42, %v17898_v43  ;;  %v4896_v5 = vrot.slane %v4567_v35, %v17898_v43  ;;  %v4568_v38 = vmul.f32 %v4390_v37, %v4281_v27  ;;  %v4395_v35 = vpop.permute.xlu0 %4394  ;;  %v9093_v14 = vld [vmem:[#allocation2 + $0x10] sm:$0xff] }
 0x151   : > { %v6890_v6 = vrot.slane %v6880_v31, %v17898_v43  ;;  %v6897_v26 = vrot.slane %v16593_v55, %v17898_v43  ;;  %v4903_v20 = vrot.slane %v4889_v7, %v17898_v43  ;;  %v4282_v21 = vmax.f32 %v4241_v10, 0.0 }
 0x152   : > { %v6850_v15 = vcombine.low %v6841_v34, %v6848_v62  ;;  %v6879_v30 = vrot.slane %v6872_v4, %v17898_v43  ;;  %v4904_v18 = vcombine.high %v4896_v5, %v4896_v5  ;;  %v4912_v45 = vrot.slane %v4896_v5, %v17898_v43  ;;  %v18571_v34 = vpop.permute.xlu1 %4499 }
 0x153   : > { %v6912_v57 = vcombine.low %v6890_v6, %v6897_v26  ;;  %v4905_v1 = vcombine.high %v4903_v20, %v4903_v20  ;;  %v4919_v42 = vrot.slane %v4903_v20, %v17898_v43  ;;  %v4938_v36 = vcombine.high %v4568_v38, %v4568_v38 }
 0x154   : > { %v6864_v37 = vrot.slane %v6850_v15, %v17898_v43  ;;  %8976 = vst.msk [vmem:[#allocation2 + $0x38] sm:$0x1] %vm8969_vm2, %v6879_v30  ;;  %v4926_v27 = vrot.slane %v4904_v18, %v17898_v43  ;;  %v4945_v10 = vrot.slane %v4568_v38, %v17898_v43  ;;  %v4569_v31 = vmul.f32 %v4395_v35, %v4282_v21  ;;  %v18573_v55 = vpop.f32.mrb[32].mxu1 }
 0x155   : > { %v6920_v7 = vrot.slane %v6912_v57, %v17898_v43  ;;  %v4933_v28 = vrot.slane %v4905_v1, %v17898_v43  ;;  %v4935_v62 = vcombine.high %v4919_v42, %v4919_v42  ;;  %v6935_v4 = vrot.slane %v4919_v42, %v17898_v43  ;;  %v17008_v5 = vpop.f32.mrb[33].mxu1 }
 0x156   : > { %v6865_v6 = vcombine.low %v6857_v0, %v6864_v37  ;;  %v6882_v26 = vcombine.low %v4912_v45, %v4926_v27  ;;  %v16594_v20 = vcombine.high %v4912_v45, %v4926_v27  ;;  %v4952_v15 = vrot.slane %v4938_v36, %v17898_v43  ;;  %v18579_v30 = vpop.f32.mrb[34].mxu1 }
 0x157   : > { %v6942_v38 = vrot.slane %v6935_v4, %v17898_v43  ;;  %v6943_v21 = vcombine.low %v4933_v28, %v4935_v62  ;;  %v4937_v18 = vcombine.high %v4933_v28, %v4933_v28  ;;  %v4953_v35 = vcombine.high %v4945_v10, %v4945_v10  ;;  %v17009_v54 = vpop.f32.mrb[35].mxu1  ;;  %v18590_v28 = vpop.permute.xlu0 %4449 }
 0x158   : > { %8975 = vst.msk [vmem:[#allocation2 + $0x30] sm:$0xff] %vm807_vm0, %v6865_v6  ;;  %v6904_v57 = vrot.slane %v6882_v26, %v17898_v43  ;;  %v6911_v1 = vrot.slane %v16594_v20, %v17898_v43  ;;  %v4954_v42 = vcombine.high %v4952_v15, %v4952_v15  ;;  %v4961_v0 = vrot.slane %v4945_v10, %v17898_v43  ;;  %v18593_v6 = vpop.permute.xlu1 %4544 }
 0x159   : > { %8978 = vst.msk [vmem:[#allocation2 + $0x48] sm:$0x1] %vm8969_vm2, %v6942_v38  ;;  %v4968_v45 = vrot.slane %v4952_v15, %v17898_v43  ;;  %v4975_v36 = vrot.slane %v4953_v35, %v17898_v43  ;;  %v6953_v37 = vrot.slane %v6943_v21, %v17898_v43  ;;  %v4987_v27 = vcombine.high %v4569_v31, %v4569_v31 }
 0x15a   : > { %v6913_v54 = vcombine.low %v6904_v57, %v6911_v1  ;;  %v4982_v62 = vrot.slane %v4954_v42, %v17898_v43  ;;  %v4983_v4 = vcombine.high %v4961_v0, %v4961_v0  ;;  %v6944_v5 = vcombine.low %v4937_v18, %v4961_v0 }
 0x15b   : > { %v4985_v26 = vcombine.high %v4975_v36, %v4975_v36  ;;  %v4994_v10 = vrot.slane %v4569_v31, %v17898_v43  ;;  %v5001_v20 = vrot.slane %v4987_v27, %v17898_v43  ;;  %v4242_v15 = vadd.f32 %v18431_v63, %v18553_v32 }
 0x15c   : > { %v6927_v38 = vrot.slane %v6913_v54, %v17898_v43  ;;  %v6945_v21 = vcombine.low %v4975_v36, %v4983_v4  ;;  %v6960_v35 = vrot.slane %v6944_v5, %v17898_v43  ;;  %v6998_v57 = vrot.slane %v4982_v62, %v17898_v43  ;;  %v18602_v1 = vpop.f32.mrb[36].mxu1 }
 0x15d   : > { %v6946_v18 = vcombine.low %v4985_v26, %v4968_v45  ;;  %v16595_v42 = vcombine.high %v4968_v45, %v4982_v62  ;;  %v5002_v0 = vcombine.high %v4994_v10, %v4994_v10  ;;  %v5003_v53 = vcombine.high %v5001_v20, %v5001_v20  ;;  %v17012_v52 = vpop.f32.mrb[37].mxu1  ;;  %v4400_v45 = vpop.permute.xlu0 %4399 }
 0x15e   : > { %v6928_v31 = vcombine.low %v6920_v7, %v6927_v38  ;;  %v6967_v27 = vrot.slane %v6945_v21, %v17898_v43  ;;  %v6975_v50 = vcombine.low %v6953_v37, %v6960_v35  ;;  %v7005_v32 = vrot.slane %v6998_v57, %v17898_v43  ;;  %v18606_v48 = vpop.f32.mrb[38].mxu1  ;;  %v18617_v38 = vpop.permute.xlu1 %4549 }
 0x15f   : > { %v6974_v36 = vrot.slane %v6946_v18, %v17898_v43  ;;  %v5010_v54 = vrot.slane %v4994_v10, %v17898_v43  ;;  %v5017_v4 = vrot.slane %v5001_v20, %v17898_v43  ;;  %v5024_v5 = vrot.slane %v5002_v0, %v17898_v43  ;;  %v17013_v62 = vpop.f32.mrb[39].mxu1  ;;  %v9061_v11 = vld [vmem:[#allocation2 + $0x31] sm:$0xff] }
 0x160   : > { %8977 = vst.msk [vmem:[#allocation2 + $0x40] sm:$0xff] %vm807_vm0, %v6928_v31  ;;  %v6983_v52 = vrot.slane %v6975_v50, %v17898_v43  ;;  %v5031_v7 = vrot.slane %v5003_v53, %v17898_v43  ;;  %v7016_v37 = vrot.slane %v16595_v42, %v17898_v43  ;;  %v4283_v26 = vmax.f32 %v4242_v15, 0.0 }
 0x161   : > { %8980 = vst.msk [vmem:[#allocation2 + $0x58] sm:$0x1] %vm8969_vm2, %v7005_v32  ;;  %v6976_v10 = vcombine.low %v6967_v27, %v6974_v36  ;;  %v5033_v21 = vcombine.high %v5017_v4, %v5017_v4  ;;  %v7007_v20 = vcombine.low %v5010_v54, %v5024_v5  ;;  %v16596_v35 = vcombine.high %v5010_v54, %v5024_v5 }
 0x162   : > { %v7009_v57 = vcombine.low %v5017_v4, %v5031_v7  ;;  %v4195_v18 = vmul.f32 %v18422_v59, %v18519_v56  ;;  %v4570_v0 = vmul.f32 %v4400_v45, %v4283_v26  ;;  %v5035_v31 = vcombine.high %v5031_v7, %v5031_v7  ;;  %v18628_v4 = vld [vmem:[#allocation2 + $0x11] sm:$0xff] }
 0x163   : > { %v6990_v50 = vrot.slane %v6976_v10, %v17898_v43  ;;  %v7023_v32 = vrot.slane %v7007_v20, %v17898_v43  ;;  %v7030_v53 = vrot.slane %v16596_v35, %v17898_v43  ;;  %v7061_v15 = vrot.slane %v5033_v21, %v17898_v43 }
 0x164   : > { %v7037_v42 = vrot.slane %v7009_v57, %v17898_v43  ;;  %v4243_v27 = vadd.f32 %v18431_v63, %v4195_v18  ;;  %v5036_v36 = vcombine.high %v4570_v0, %v4570_v0  ;;  %v5043_v54 = vrot.slane %v4570_v0, %v17898_v43  ;;  %v18630_v56 = vpop.f32.mrb[40].mxu1  ;;  %v4405_v57 = vpop.permute.xlu1 %4404  ;;  %v9058_v18 = vld [vmem:[#allocation2 + $0x1] sm:$0xff] }
 0x165   : > { %v6991_v5 = vcombine.low %v6983_v52, %v6990_v50  ;;  %v7038_v45 = vcombine.low %v7016_v37, %v7023_v32  ;;  %v7068_v62 = vrot.slane %v7061_v15, %v17898_v43  ;;  %v4196_v7 = vmul.f32 %v18422_v59, %v18542_v17  ;;  %v17016_v26 = vpop.f32.mrb[41].mxu1 }
 0x166   : > { %v7039_v10 = vcombine.low %v7030_v53, %v7037_v42  ;;  %v4284_v21 = vmax.f32 %v4243_v27, 0.0  ;;  %v5050_v20 = vrot.slane %v5036_v36, %v17898_v43  ;;  %v5051_v35 = vcombine.high %v5043_v54, %v5043_v54  ;;  %v18636_v0 = vpop.f32.mrb[42].mxu1 }
 0x167   : > { %8979 = vst.msk [vmem:[#allocation2 + $0x50] sm:$0xff] %vm807_vm0, %v6991_v5  ;;  %v7046_v52 = vrot.slane %v7038_v45, %v17898_v43  ;;  %v5059_v37 = vrot.slane %v5043_v54, %v17898_v43  ;;  %v4244_v17 = vadd.f32 %v18431_v63, %v4196_v7  ;;  %v17251_v50 = vpack.i.bf16 %v18628_v4, %v9058_v18  ;;  %v17017_v32 = vpop.f32.mrb[43].mxu1 }
 0x168   : > { %8982 = vst.msk [vmem:[#allocation2 + $0x68] sm:$0x1] %vm8969_vm2, %v7068_v62  ;;  %v7053_v53 = vrot.slane %v7039_v10, %v17898_v43  ;;  %v5052_v15 = vcombine.high %v5050_v20, %v5050_v20  ;;  %v5066_v42 = vrot.slane %v5050_v20, %v17898_v43  ;;  %v5073_v27 = vrot.slane %v5051_v35, %v17898_v43 }
 0x169   : > { %v5081_v36 = vcombine.high %v5059_v37, %v5059_v37  ;;  %v7069_v5 = vcombine.low %v5035_v31, %v5059_v37  ;;  %v4571_v26 = vmul.f32 %v4405_v57, %v4284_v21  ;;  %v4285_v45 = vmax.f32 %v4244_v17, 0.0  ;;  %17252 = vrot.lane.b32.xlu1 %v17251_v50, %s20696_s29 }
 0x16a   : > { %v7054_v54 = vcombine.low %v7046_v52, %v7053_v53  ;;  %v5080_v62 = vrot.slane %v5052_v15, %v17898_v43  ;;  %v5082_v7 = vcombine.high %v5066_v42, %v5066_v42  ;;  %v5083_v18 = vcombine.high %v5073_v27, %v5073_v27 }
 0x16b   : > { %v7070_v32 = vcombine.low %v5073_v27, %v5081_v36  ;;  %v7079_v10 = vrot.slane %v7069_v5, %v17898_v43  ;;  %v5085_v47 = vcombine.high %v4571_v26, %v4571_v26  ;;  %v5092_v20 = vrot.slane %v4571_v26, %v17898_v43 }
 0x16c   : > { %8981 = vst.msk [vmem:[#allocation2 + $0x60] sm:$0xff] %vm807_vm0, %v7054_v54  ;;  %v5084_v35 = vcombine.high %v5080_v62, %v5080_v62  ;;  %v7071_v31 = vcombine.low %v5083_v18, %v5066_v42  ;;  %v7072_v21 = vcombine.low %v5080_v62, %v5082_v7  ;;  %v4572_v57 = vmul.f32 %v18383_v40, %v4285_v45  ;;  %v18653_v37 = vpop.f32.mrb[44].mxu1 }
 0x16d   : > { %v7086_v52 = vrot.slane %v7070_v32, %v17898_v43  ;;  %v5099_v17 = vrot.slane %v5085_v47, %v17898_v43  ;;  %v5100_v50 = vcombine.high %v5092_v20, %v5092_v20  ;;  %v5108_v53 = vrot.slane %v5092_v20, %v17898_v43  ;;  %v17020_v15 = vpop.f32.mrb[45].mxu1 }
 0x16e   : > { %v7093_v27 = vrot.slane %v7071_v31, %v17898_v43  ;;  %v7100_v36 = vrot.slane %v7072_v21, %v17898_v43  ;;  %v7124_v5 = vrot.slane %v5084_v35, %v17898_v43  ;;  %v5134_v42 = vcombine.high %v4572_v57, %v4572_v57  ;;  %v18661_v26 = vpop.f32.mrb[46].mxu1 }
 0x16f   : > { %v7101_v40 = vcombine.low %v7079_v10, %v7086_v52  ;;  %v5101_v45 = vcombine.high %v5099_v17, %v5099_v17  ;;  %v5115_v54 = vrot.slane %v5099_v17, %v17898_v43  ;;  %v5122_v62 = vrot.slane %v5100_v50, %v17898_v43  ;;  %v17021_v47 = vpop.f32.mrb[47].mxu1 }
 0x170   : > { %v7102_v7 = vcombine.low %v7093_v27, %v7100_v36  ;;  %v7131_v18 = vrot.slane %v7124_v5, %v17898_v43  ;;  %v5141_v32 = vrot.slane %v4572_v57, %v17898_v43  ;;  %v5148_v20 = vrot.slane %v5134_v42, %v17898_v43 }
 0x171   : > { %v7109_v31 = vrot.slane %v7101_v40, %v17898_v43  ;;  %v5129_v35 = vrot.slane %v5101_v45, %v17898_v43  ;;  %v7132_v21 = vcombine.low %v5108_v53, %v5122_v62  ;;  %v16597_v15 = vcombine.high %v5108_v53, %v5122_v62 }
 0x172   : > { %v7116_v10 = vrot.slane %v7102_v7, %v17898_v43  ;;  %8984 = vst.msk [vmem:[#allocation2 + $0x78] sm:$0x1] %vm8969_vm2, %v7131_v18  ;;  %v5149_v52 = vcombine.high %v5141_v32, %v5141_v32  ;;  %v5150_v17 = vcombine.high %v5148_v20, %v5148_v20  ;;  %v5157_v50 = vrot.slane %v5141_v32, %v17898_v43 }
 0x173   : > { %v7134_v27 = vcombine.low %v5115_v54, %v5129_v35  ;;  %v16598_v36 = vcombine.high %v5115_v54, %v5129_v35  ;;  %v7142_v57 = vrot.slane %v7132_v21, %v17898_v43  ;;  %v7149_v5 = vrot.slane %v16597_v15, %v17898_v43  ;;  %v9111_v15 = vld [vmem:[#allocation2 + $0x21] sm:$0xff] }
 0x174   : > { %v7117_v42 = vcombine.low %v7109_v31, %v7116_v10  ;;  %v5164_v40 = vrot.slane %v5148_v20, %v17898_v43  ;;  %v5171_v45 = vrot.slane %v5149_v52, %v17898_v43  ;;  %v18678_v53 = vrot.slane %v5150_v17, %v17898_v43  ;;  %v18680_v62 = vpop.f32.mrb[48].mxu1  ;;  %v9094_v10 = vld [vmem:[#allocation2 + $0x20] sm:$0xff] }
 0x175   : > { %v7156_v47 = vrot.slane %v7134_v27, %v17898_v43  ;;  %v7163_v7 = vrot.slane %v16598_v36, %v17898_v43  ;;  %v7164_v18 = vcombine.low %v7142_v57, %v7149_v5  ;;  %v5179_v54 = vcombine.high %v5157_v50, %v5157_v50  ;;  %v17024_v32 = vpop.f32.mrb[49].mxu1 }
 0x176   : > { %8983 = vst.msk [vmem:[#allocation2 + $0x70] sm:$0xff] %vm807_vm0, %v7117_v42  ;;  %v5180_v35 = vcombine.high %v5164_v40, %v5164_v40  ;;  %v5181_v31 = vcombine.high %v5171_v45, %v5171_v45  ;;  %v7187_v20 = vrot.slane %v5157_v50, %v17898_v43  ;;  %v4197_v21 = vmul.f32 %v18422_v59, %v18555_v23  ;;  %v18688_v52 = vpop.f32.mrb[50].mxu1 }
 0x177   : > { %v7165_v17 = vcombine.low %v7156_v47, %v7163_v7  ;;  %v7172_v27 = vrot.slane %v7164_v18, %v17898_v43  ;;  %v7195_v36 = vcombine.low %v5171_v45, %v5179_v54  ;;  %v5182_v57 = vcombine.high %v18678_v53, %v18678_v53  ;;  %v17025_v5 = vpop.f32.mrb[51].mxu1  ;;  %v9096_v18 = vld [vmem:[#allocation2 + $0x40] sm:$0xff] }
 0x178   : > { %v7194_v42 = vrot.slane %v7187_v20, %v17898_v43  ;;  %v7196_v32 = vcombine.low %v5181_v31, %v5164_v40  ;;  %v18695_v50 = vcombine.low %v18678_v53, %v5180_v35  ;;  %v4245_v23 = vadd.f32 %v18431_v63, %v4197_v21  ;;  %v9095_v20 = vld [vmem:[#allocation2 + $0x30] sm:$0xff] }
 0x179   : > { %v7179_v9 = vrot.slane %v7165_v17, %v17898_v43  ;;  %v7205_v47 = vrot.slane %v7195_v36, %v17898_v43  ;;  %v9405_v45 = vpack.c.bf16 %v9111_v15, %v18628_v4  ;;  %v17256_v7 = vpack.i.bf16 %v9094_v10, %v9093_v14 }
 0x17a   : > { %v7212_v54 = vrot.slane %v7196_v32, %v17898_v43  ;;  %8986 = vst.msk [vmem:[#allocation2 + $0x88] sm:$0x1] %vm8969_vm2, %v7194_v42  ;;  %v4286_v40 = vmax.f32 %v4245_v23, 0.0  ;;  %v7219_v53 = vrot.slane %v18695_v50, %v17898_v43  ;;  %v4198_v35 = vmul.f32 %v18422_v59, %v18573_v55 }
 0x17b   : > { %v7180_v31 = vcombine.low %v7172_v27, %v7179_v9  ;;  %16634 = vmatprep.mubr.msk.bf16.mxu0 %vm807_vm0, %v9405_v45  ;;  %17257 = vrot.lane.b32.xlu1 %v17256_v7, %s20694_s28  ;;  %v4199_v14 = vmul.f32 %v18422_v59, %v18579_v30  ;;  %v17261_v4 = vpack.i.bf16 %v9061_v11, %v9111_v15 }
 0x17c   : > { %v18711_v21 = vcombine.low %v7205_v47, %v7212_v54  ;;  %v4573_v10 = vmul.f32 %v18381_v39, %v4286_v40  ;;  %v4246_v17 = vadd.f32 %v18431_v63, %v4198_v35  ;;  %v17266_v36 = vpack.i.bf16 %v9096_v18, %v9095_v20  ;;  %v18715_v5 = vpop.f32.mrb[52].mxu1 }
 0x17d   : > { %8985 = vst.msk [vmem:[#allocation2 + $0x80] sm:$0xff] %vm807_vm0, %v7180_v31  ;;  %v4247_v9 = vadd.f32 %v18431_v63, %v4199_v14  ;;  %17262 = vrot.lane.b32.xlu0 %v17261_v4, %s20696_s29  ;;  %v4200_v55 = vmul.f32 %v18422_v59, %v18602_v1  ;;  %v4201_v11 = vmul.f32 %v18422_v59, %v18606_v48  ;;  %v17028_v30 = vpop.f32.mrb[53].mxu1 }
 0x17e   : > { %v4202_v39 = vmul.f32 %v18422_v59, %v18630_v56  ;;  %v7235_v15 = vrot.slane %v18711_v21, %v17898_v43  ;;  %v5183_v27 = vcombine.high %v4573_v10, %v4573_v10  ;;  %v5190_v42 = vrot.slane %v4573_v10, %v17898_v43  ;;  %v18729_v50 = vpop.f32.mrb[54].mxu1 }
 0x17f   : > { %v4287_v32 = vmax.f32 %v4246_v17, 0.0  ;;  %v4288_v23 = vmax.f32 %v4247_v9, 0.0  ;;  %v18732_v47 = vadd.f32 %v18431_v63, %v4200_v55  ;;  %v18735_v1 = vadd.f32 %v18431_v63, %v4201_v11  ;;  %v17029_v59 = vpop.f32.mrb[55].mxu1 }
 0x180   : > { %v18738_v48 = vadd.f32 %v18431_v63, %v4202_v39  ;;  %v5197_v56 = vrot.slane %v5183_v27, %v17898_v43  ;;  %v5198_v45 = vcombine.high %v5190_v42, %v5190_v42  ;;  %v5206_v7 = vrot.slane %v5190_v42, %v17898_v43 }
 0x181   : > { %v4574_v18 = vmul.f32 %v18395_v49, %v4287_v32  ;;  %v4575_v54 = vmul.f32 %v18417_v58, %v4288_v23  ;;  %17267 = vrot.lane.b32.xlu0 %v17266_v36, %s20694_s28  ;;  %v4289_v40 = vmax.f32 %v18732_v47, 0.0  ;;  %v4290_v35 = vmax.f32 %v18735_v1, 0.0 }
 0x182   : > { %v4291_v31 = vmax.f32 %v18738_v48, 0.0  ;;  %v5199_v63 = vcombine.high %v5197_v56, %v5197_v56  ;;  %v5213_v14 = vrot.slane %v5197_v56, %v17898_v43  ;;  %v5220_v4 = vrot.slane %v5198_v45, %v17898_v43 }
 0x183   : > { %v7198_v20 = vcombine.low %v5182_v57, %v5206_v7  ;;  %v5232_v21 = vcombine.high %v4574_v18, %v4574_v18  ;;  %v5239_v10 = vrot.slane %v4574_v18, %v17898_v43  ;;  %v5281_v49 = vcombine.high %v4575_v54, %v4575_v54 }
 0x184   : > { %v5288_v58 = vrot.slane %v4575_v54, %v17898_v43  ;;  %v5227_v17 = vrot.slane %v5199_v63, %v17898_v43  ;;  %v16599_v9 = vcombine.high %v5206_v7, %v5220_v4  ;;  %v18754_v55 = vpop.f32.mrb[56].mxu1 }
 0x185   : > { %v7226_v36 = vrot.slane %v7198_v20, %v17898_v43  ;;  %v5246_v11 = vrot.slane %v5232_v21, %v17898_v43  ;;  %v5247_v39 = vcombine.high %v5239_v10, %v5239_v10  ;;  %v5255_v30 = vrot.slane %v5239_v10, %v17898_v43  ;;  %v17032_v27 = vpop.f32.mrb[57].mxu1 }
 0x186   : > { %v5295_v57 = vrot.slane %v5281_v49, %v17898_v43  ;;  %v7259_v32 = vcombine.low %v5213_v14, %v5227_v17  ;;  %v16600_v23 = vcombine.high %v5213_v14, %v5227_v17  ;;  %v18759_v47 = vpop.f32.mrb[58].mxu1  ;;  %v7268_v1 = vrot.slane %v16599_v9, %v17898_v43 }
 0x187   : > { %v7228_v42 = vcombine.low %v7219_v53, %v7226_v36  ;;  %v5248_v59 = vcombine.high %v5246_v11, %v5246_v11  ;;  %v5262_v56 = vrot.slane %v5246_v11, %v17898_v43  ;;  %v5269_v45 = vrot.slane %v5247_v39, %v17898_v43  ;;  %v17033_v7 = vpop.f32.mrb[59].mxu1 }
 0x188   : > { %v7275_v54 = vrot.slane %v7259_v32, %v17898_v43  ;;  %v7282_v63 = vrot.slane %v16600_v23, %v17898_v43  ;;  %v5296_v49 = vcombine.high %v5288_v58, %v5288_v58  ;;  %v5297_v27 = vcombine.high %v5295_v57, %v5295_v57 }
 0x189   : > { %v7242_v18 = vrot.slane %v7228_v42, %v17898_v43  ;;  %v5276_v53 = vrot.slane %v5248_v59, %v17898_v43  ;;  %v5278_v4 = vcombine.high %v5262_v56, %v5262_v56  ;;  %v5279_v14 = vcombine.high %v5269_v45, %v5269_v45 }
 0x18a   : > { %v7261_v20 = vcombine.low %v5255_v30, %v5269_v45  ;;  %v7290_v10 = vcombine.low %v7268_v1, %v7275_v54  ;;  %v5304_v42 = vrot.slane %v5288_v58, %v17898_v43  ;;  %v5311_v1 = vrot.slane %v5295_v57, %v17898_v43 }
 0x18b   : > { %v7243_v21 = vcombine.low %v7235_v15, %v7242_v18  ;;  %v7321_v36 = vcombine.low %v5279_v14, %v5262_v56  ;;  %v7322_v9 = vcombine.low %v5276_v53, %v5278_v4  ;;  %v5280_v11 = vcombine.high %v5276_v53, %v5276_v53 }
 0x18c   : > { %v7289_v17 = vrot.slane %v7261_v20, %v17898_v43  ;;  %v7298_v39 = vrot.slane %v7290_v10, %v17898_v43  ;;  %v18772_v32 = vpop.f32.mrb[60].mxu1  ;;  %v5318_v56 = vrot.slane %v5296_v49, %v17898_v43  ;;  %v5325_v45 = vrot.slane %v5297_v27, %v17898_v43 }
 0x18d   : > { %8987 = vst.msk [vmem:[#allocation2 + $0x90] sm:$0xff] %vm807_vm0, %v7243_v21  ;;  %v7331_v30 = vrot.slane %v7321_v36, %v17898_v43  ;;  %v7338_v15 = vrot.slane %v7322_v9, %v17898_v43  ;;  %v17036_v59 = vpop.f32.mrb[61].mxu1  ;;  %v5326_v7 = vcombine.high %v5304_v42, %v5304_v42  ;;  %v7323_v18 = vcombine.low %v5280_v11, %v5304_v42 }
 0x18e   : > { %v7291_v23 = vcombine.low %v7282_v63, %v7289_v17  ;;  %v18779_v54 = vpop.f32.mrb[62].mxu1  ;;  %v4576_v63 = vmul.f32 %v18426_v61, %v4289_v40  ;;  %v4577_v4 = vmul.f32 %v18480_v22, %v4290_v35  ;;  %v7384_v21 = vcombine.low %v5311_v1, %v5325_v45 }
 0x18f   : > { %v7353_v53 = vcombine.low %v7331_v30, %v7338_v15  ;;  %v17037_v14 = vpop.f32.mrb[63].mxu1  ;;  %v7324_v20 = vcombine.low %v5318_v56, %v5326_v7  ;;  %v7345_v57 = vrot.slane %v7323_v18, %v17898_v43  ;;  %v16601_v17 = vcombine.high %v5311_v1, %v5325_v45 }
 0x190   : > { %v7305_v58 = vrot.slane %v7291_v23, %v17898_v43  ;;  %v5330_v36 = vcombine.high %v4576_v63, %v4576_v63  ;;  %v7394_v11 = vrot.slane %v7384_v21, %v17898_v43  ;;  %v5337_v27 = vrot.slane %v4576_v63, %v17898_v43 }
 0x191   : > { %v7361_v49 = vrot.slane %v7353_v53, %v17898_v43  ;;  %v7352_v9 = vrot.slane %v7324_v20, %v17898_v43  ;;  %v7401_v61 = vrot.slane %v16601_v17, %v17898_v43  ;;  %v5379_v40 = vcombine.high %v4577_v4, %v4577_v4 }
 0x192   : > { %v7306_v10 = vcombine.low %v7298_v39, %v7305_v58  ;;  %v5344_v22 = vrot.slane %v5330_v36, %v17898_v43  ;;  %v5386_v35 = vrot.slane %v4577_v4, %v17898_v43  ;;  %v5345_v42 = vcombine.high %v5337_v27, %v5337_v27 }
 0x193   : > { %v7354_v39 = vcombine.low %v7345_v57, %v7352_v9  ;;  %v5353_v23 = vrot.slane %v5337_v27, %v17898_v43  ;;  %v7416_v15 = vcombine.low %v7394_v11, %v7401_v61  ;;  %v5393_v56 = vrot.slane %v5379_v40, %v17898_v43 }
 0x194   : > { %8989 = vst.msk [vmem:[#allocation2 + $0xa0] sm:$0xff] %vm807_vm0, %v7306_v10  ;;  %v18794_v30 = vpop.f32.mrb[64].mxu1  ;;  %v5346_v1 = vcombine.high %v5344_v22, %v5344_v22  ;;  %v5360_v59 = vrot.slane %v5344_v22, %v17898_v43  ;;  %v5367_v18 = vrot.slane %v5345_v42, %v17898_v43  ;;  %v5394_v58 = vcombine.high %v5386_v35, %v5386_v35 }
 0x195   : > { %v17040_v45 = vpop.f32.mrb[65].mxu1  ;;  %v7368_v7 = vrot.slane %v7354_v39, %v17898_v43  ;;  %v5402_v53 = vrot.slane %v5386_v35, %v17898_v43  ;;  %v7424_v4 = vrot.slane %v7416_v15, %v17898_v43  ;;  %v5395_v36 = vcombine.high %v5393_v56, %v5393_v56 }
 0x196   : > { %v18801_v63 = vpop.f32.mrb[66].mxu1  ;;  %v5374_v14 = vrot.slane %v5346_v1, %v17898_v43  ;;  %v5376_v20 = vcombine.high %v5360_v59, %v5360_v59  ;;  %v7386_v10 = vcombine.low %v5353_v23, %v5367_v18  ;;  %v16602_v17 = vcombine.high %v5353_v23, %v5367_v18 }
 0x197   : > { %v17041_v57 = vpop.f32.mrb[67].mxu1  ;;  %v7369_v21 = vcombine.low %v7361_v49, %v7368_v7  ;;  %v5409_v27 = vrot.slane %v5393_v56, %v17898_v43  ;;  %v5416_v40 = vrot.slane %v5394_v58, %v17898_v43  ;;  %v5423_v35 = vrot.slane %v5395_v36, %v17898_v43 }
 0x198   : > { %v7447_v9 = vcombine.low %v5374_v14, %v5376_v20  ;;  %v5378_v11 = vcombine.high %v5374_v14, %v5374_v14  ;;  %v7408_v61 = vrot.slane %v7386_v10, %v17898_v43  ;;  %v7415_v22 = vrot.slane %v16602_v17, %v17898_v43 }
 0x199   : > { %8991 = vst.msk [vmem:[#allocation2 + $0xb0] sm:$0xff] %vm807_vm0, %v7369_v21  ;;  %v5424_v39 = vcombine.high %v5402_v53, %v5402_v53  ;;  %v4578_v23 = vmul.f32 %v18505_v2, %v4291_v31  ;;  %v5426_v1 = vcombine.high %v5416_v40, %v5416_v40  ;;  %v16603_v59 = vcombine.high %v5409_v27, %v5423_v35 }
 0x19a   : > { %v7448_v42 = vcombine.low %v5378_v11, %v5402_v53  ;;  %v7457_v49 = vrot.slane %v7447_v9, %v17898_v43  ;;  %v7417_v15 = vcombine.low %v7408_v61, %v7415_v22 }
 0x19b   : > { %v7449_v45 = vcombine.low %v5416_v40, %v5424_v39  ;;  %v5428_v18 = vcombine.high %v4578_v23, %v4578_v23  ;;  %v5435_v58 = vrot.slane %v4578_v23, %v17898_v43  ;;  %v7450_v20 = vcombine.low %v5426_v1, %v5409_v27  ;;  %v18830_v27 = vld [vmem:[%s20656_s6] ss:$0 sm:$0xff]  ;;  %v18846_v23 = vpop.permute.xlu0 %4494 }
 0x19c   : > { %v18815_v56 = vpop.f32.mrb[68].mxu1  ;;  %v7464_v7 = vrot.slane %v7448_v42, %v17898_v43  ;;  %v7431_v53 = vrot.slane %v7417_v15, %v17898_v43  ;;  %v7520_v57 = vrot.slane %v16603_v59, %v17898_v43  ;;  %v4203_v61 = vmul.f32 %v18830_v27, %v18636_v0  ;;  %v18841_v42 = vld [vmem:[%s20657_s7] ss:$0 sm:$0xff] }
 0x19d   : > { %v17044_v14 = vpop.f32.mrb[69].mxu1  ;;  %v7471_v2 = vrot.slane %v7449_v45, %v17898_v43  ;;  %v5442_v21 = vrot.slane %v5428_v18, %v17898_v43  ;;  %v5443_v10 = vcombine.high %v5435_v58, %v5435_v58  ;;  %v7478_v9 = vrot.slane %v7450_v20, %v17898_v43 }
 0x19e   : > { %v18821_v48 = vpop.f32.mrb[70].mxu1  ;;  %v7479_v31 = vcombine.low %v7457_v49, %v7464_v7  ;;  %v7432_v36 = vcombine.low %v7424_v4, %v7431_v53  ;;  %v5451_v11 = vrot.slane %v5435_v58, %v17898_v43  ;;  %v4251_v49 = vadd.f32 %v18841_v42, %v4203_v61 }
 0x19f   : > { %v17045_v17 = vpop.f32.mrb[71].mxu1  ;;  %v5444_v40 = vcombine.high %v5442_v21, %v5442_v21  ;;  %v5458_v35 = vrot.slane %v5442_v21, %v17898_v43  ;;  %v5465_v39 = vrot.slane %v5443_v10, %v17898_v43  ;;  %v7480_v4 = vcombine.low %v7471_v2, %v7478_v9 }
 0x1a0   : > { %v7487_v22 = vrot.slane %v7479_v31, %v17898_v43  ;;  %8993 = vst.msk [vmem:[#allocation2 + $0xc0] sm:$0xff] %vm807_vm0, %v7432_v36  ;;  %v4204_v0 = vmul.f32 %v18830_v27, %v18653_v37  ;;  %v4205_v15 = vmul.f32 %v18830_v27, %v18661_v26  ;;  %v4292_v18 = vmax.f32 %v4251_v49, 0.0  ;;  %v4455_v49 = vpop.permute.xlu0 %4454 }
 0x1a1   : > { %v5472_v1 = vrot.slane %v5444_v40, %v17898_v43  ;;  %v7511_v59 = vcombine.low %v5451_v11, %v5465_v39  ;;  %v16604_v45 = vcombine.high %v5451_v11, %v5465_v39  ;;  %v7494_v7 = vrot.slane %v7480_v4, %v17898_v43 }
 0x1a2   : > { %v4252_v58 = vadd.f32 %v18841_v42, %v4204_v0  ;;  %v4253_v14 = vadd.f32 %v18841_v42, %v4205_v15  ;;  %v4579_v21 = vmul.f32 %v18549_v16, %v4292_v18  ;;  %v18867_v16 = vmul.f32 %v18830_v27, %v18680_v62 }
 0x1a3   : > { %v7513_v20 = vcombine.low %v5458_v35, %v5472_v1  ;;  %v7527_v37 = vrot.slane %v7511_v59, %v17898_v43  ;;  %v7534_v2 = vrot.slane %v16604_v45, %v17898_v43  ;;  %v7495_v26 = vcombine.low %v7487_v22, %v7494_v7 }
 0x1a4   : > { %v18854_v53 = vpop.f32.mrb[72].mxu1  ;;  %v5476_v10 = vcombine.high %v5472_v1, %v5472_v1  ;;  %v4293_v17 = vmax.f32 %v4252_v58, 0.0  ;;  %v4294_v61 = vmax.f32 %v4253_v14, 0.0  ;;  %v5477_v35 = vcombine.high %v4579_v21, %v4579_v21 }
 0x1a5   : > { %v17048_v31 = vpop.f32.mrb[73].mxu1  ;;  %v7541_v9 = vrot.slane %v7513_v20, %v17898_v43  ;;  %v7542_v11 = vcombine.low %v7520_v57, %v7527_v37  ;;  %8995 = vst.msk [vmem:[#allocation2 + $0xd0] sm:$0xff] %vm807_vm0, %v7495_v26  ;;  %v5484_v39 = vrot.slane %v4579_v21, %v17898_v43  ;;  %v18872_v57 = vmul.f32 %v18830_v27, %v18688_v52 }
 0x1a6   : > { %v18859_v36 = vpop.f32.mrb[74].mxu1  ;;  %v4580_v4 = vmul.f32 %v18590_v28, %v4293_v17  ;;  %v4581_v15 = vmul.f32 %v4455_v49, %v4294_v61  ;;  %v5491_v1 = vrot.slane %v5477_v35, %v17898_v43 }
 0x1a7   : > { %v17049_v40 = vpop.f32.mrb[75].mxu1  ;;  %v7543_v22 = vcombine.low %v7534_v2, %v7541_v9  ;;  %v7550_v0 = vrot.slane %v7542_v11, %v17898_v43  ;;  %v5492_v59 = vcombine.high %v5484_v39, %v5484_v39  ;;  %v5500_v45 = vrot.slane %v5484_v39, %v17898_v43 }
 0x1a8   : > { %v5526_v7 = vcombine.high %v4580_v4, %v4580_v4  ;;  %v5533_v18 = vrot.slane %v4580_v4, %v17898_v43  ;;  %v5575_v62 = vcombine.high %v4581_v15, %v4581_v15  ;;  %v5582_v58 = vrot.slane %v4581_v15, %v17898_v43 }
 0x1a9   : > { %v7557_v28 = vrot.slane %v7543_v22, %v17898_v43  ;;  %v5493_v14 = vcombine.high %v5491_v1, %v5491_v1  ;;  %v5507_v20 = vrot.slane %v5491_v1, %v17898_v43  ;;  %v5514_v37 = vrot.slane %v5492_v59, %v17898_v43 }
 0x1aa   : > { %v5522_v52 = vcombine.high %v5500_v45, %v5500_v45  ;;  %v7573_v26 = vcombine.low %v5476_v10, %v5500_v45  ;;  %v5540_v21 = vrot.slane %v5526_v7, %v17898_v43  ;;  %v5541_v17 = vcombine.high %v5533_v18, %v5533_v18 }
 0x1ab   : > { %v7558_v31 = vcombine.low %v7550_v0, %v7557_v28  ;;  %v5521_v11 = vrot.slane %v5493_v14, %v17898_v43  ;;  %v5523_v61 = vcombine.high %v5507_v20, %v5507_v20  ;;  %v5524_v40 = vcombine.high %v5514_v37, %v5514_v37 }
 0x1ac   : > { %v18881_v2 = vpop.f32.mrb[76].mxu1  ;;  %v7574_v35 = vcombine.low %v5514_v37, %v5522_v52  ;;  %v7583_v4 = vrot.slane %v7573_v26, %v17898_v43  ;;  %v5542_v49 = vcombine.high %v5540_v21, %v5540_v21  ;;  %v5549_v22 = vrot.slane %v5533_v18, %v17898_v43 }
 0x1ad   : > { %v17052_v9 = vpop.f32.mrb[77].mxu1  ;;  %8997 = vst.msk [vmem:[#allocation2 + $0xe0] sm:$0xff] %vm807_vm0, %v7558_v31  ;;  %v5556_v10 = vrot.slane %v5540_v21, %v17898_v43  ;;  %v7575_v15 = vcombine.low %v5524_v40, %v5507_v20  ;;  %v7576_v1 = vcombine.low %v5521_v11, %v5523_v61  ;;  %v5563_v45 = vrot.slane %v5541_v17, %v17898_v43 }
 0x1ae   : > { %v18885_v39 = vpop.f32.mrb[78].mxu1  ;;  %v7590_v59 = vrot.slane %v7574_v35, %v17898_v43  ;;  %v5570_v7 = vrot.slane %v5542_v49, %v17898_v43  ;;  %v5589_v28 = vrot.slane %v5575_v62, %v17898_v43  ;;  %v5590_v14 = vcombine.high %v5582_v58, %v5582_v58 }
 0x1af   : > { %v17053_v0 = vpop.f32.mrb[79].mxu1  ;;  %v7597_v37 = vrot.slane %v7575_v15, %v17898_v43  ;;  %v7604_v52 = vrot.slane %v7576_v1, %v17898_v43  ;;  %v7636_v18 = vcombine.low %v5549_v22, %v5563_v45  ;;  %v16605_v26 = vcombine.high %v5549_v22, %v5563_v45 }
 0x1b0   : > { %v7605_v31 = vcombine.low %v7583_v4, %v7590_v59  ;;  %v7638_v21 = vcombine.low %v5556_v10, %v5570_v7  ;;  %v16606_v9 = vcombine.high %v5556_v10, %v5570_v7  ;;  %v5591_v61 = vcombine.high %v5589_v28, %v5589_v28 }
 0x1b1   : > { %v7606_v20 = vcombine.low %v7597_v37, %v7604_v52  ;;  %v7646_v17 = vrot.slane %v7636_v18, %v17898_v43  ;;  %v7653_v62 = vrot.slane %v16605_v26, %v17898_v43  ;;  %v5598_v22 = vrot.slane %v5582_v58, %v17898_v43 }
 0x1b2   : > { %v7613_v11 = vrot.slane %v7605_v31, %v17898_v43  ;;  %v7660_v35 = vrot.slane %v7638_v21, %v17898_v43  ;;  %v7667_v49 = vrot.slane %v16606_v9, %v17898_v43  ;;  %v5605_v10 = vrot.slane %v5589_v28, %v17898_v43  ;;  %v9051_v9 = vld [vmem:[#allocation2 + $0xa0] sm:$0xff] }
 0x1b3   : > { %v7620_v4 = vrot.slane %v7606_v20, %v17898_v43  ;;  %v5612_v15 = vrot.slane %v5590_v14, %v17898_v43  ;;  %v7668_v59 = vcombine.low %v7646_v17, %v7653_v62  ;;  %v5619_v7 = vrot.slane %v5591_v61, %v17898_v43 }
 0x1b4   : > { %v18898_v40 = vpop.f32.mrb[80].mxu1  ;;  %v7669_v45 = vcombine.low %v7660_v35, %v7667_v49  ;;  %v4254_v37 = vadd.f32 %v18841_v42, %v18867_v16  ;;  %v5620_v18 = vcombine.high %v5598_v22, %v5598_v22  ;;  %v5621_v26 = vcombine.high %v5605_v10, %v5605_v10  ;;  %v9050_v35 = vld [vmem:[#allocation2 + $0x90] sm:$0xff] }
 0x1b5   : > { %v17056_v0 = vpop.f32.mrb[81].mxu1  ;;  %v7621_v31 = vcombine.low %v7613_v11, %v7620_v4  ;;  %v5622_v21 = vcombine.high %v5612_v15, %v5612_v15  ;;  %v7676_v58 = vrot.slane %v7668_v59, %v17898_v43  ;;  %v5623_v14 = vcombine.high %v5619_v7, %v5619_v7  ;;  %v9103_v49 = vld [vmem:[#allocation2 + $0xb0] sm:$0xff]  ;;  %v9053_v4 = vld [vmem:[#allocation2 + $0xc0] sm:$0xff] }
 0x1b6   : > { %v18908_v1 = vpop.f32.mrb[82].mxu1  ;;  %v7683_v28 = vrot.slane %v7669_v45, %v17898_v43  ;;  %v7699_v20 = vcombine.low %v5612_v15, %v5620_v18  ;;  %v7701_v62 = vcombine.low %v5619_v7, %v5621_v26  ;;  %v4295_v61 = vmax.f32 %v4254_v37, 0.0  ;;  %v18922_v15 = vld [vmem:[#allocation2 + $0xd0] sm:$0xff] }
 0x1b7   : > { %v17057_v52 = vpop.f32.mrb[83].mxu1  ;;  %8999 = vst.msk [vmem:[#allocation2 + $0xf0] sm:$0xff] %vm807_vm0, %v7621_v31  ;;  %v7700_v17 = vcombine.low %v5622_v21, %v5605_v10  ;;  %v4255_v11 = vadd.f32 %v18841_v42, %v18872_v57  ;;  %v17271_v0 = vpack.i.bf16 %v9051_v9, %v9050_v35  ;;  %v17276_v57 = vpack.i.bf16 %v9103_v49, %v9051_v9 }
 0x1b8   : > { %v7684_v16 = vcombine.low %v7676_v58, %v7683_v28  ;;  %v7709_v22 = vrot.slane %v7699_v20, %v17898_v43  ;;  %v7723_v45 = vrot.slane %v7701_v62, %v17898_v43  ;;  %v4582_v52 = vmul.f32 %v18389_v46, %v4295_v61 }
 0x1b9   : > { %v7716_v59 = vrot.slane %v7700_v17, %v17898_v43  ;;  %v4296_v7 = vmax.f32 %v4255_v11, 0.0  ;;  %17272 = vrot.lane.b32.xlu0 %v17271_v0, %s20690_s0  ;;  %v4208_v37 = vmul.f32 %v18830_v27, %v18715_v5  ;;  %v4209_v31 = vmul.f32 %v18830_v27, %v18729_v50 }
 0x1ba   : > { %9001 = vst.msk [vmem:[#allocation2 + $0x100] sm:$0xff] %vm807_vm0, %v7684_v16  ;;  %v5624_v46 = vcombine.high %v4582_v52, %v4582_v52  ;;  %v5631_v21 = vrot.slane %v4582_v52, %v17898_v43  ;;  %v17281_v58 = vpack.i.bf16 %v9053_v4, %v9103_v49  ;;  %v17286_v62 = vpack.i.bf16 %v18922_v15, %v9053_v4 }
 0x1bb   : > { %v7731_v26 = vcombine.low %v7709_v22, %v7716_v59  ;;  %v4583_v20 = vmul.f32 %v18385_v41, %v4296_v7  ;;  %v4256_v17 = vadd.f32 %v18841_v42, %v4208_v37  ;;  %v4257_v9 = vadd.f32 %v18841_v42, %v4209_v31 }
 0x1bc   : > { %v18924_v10 = vpop.f32.mrb[84].mxu1  ;;  %v5638_v50 = vrot.slane %v5624_v46, %v17898_v43  ;;  %v5639_v35 = vcombine.high %v5631_v21, %v5631_v21  ;;  %v5647_v16 = vrot.slane %v5631_v21, %v17898_v43  ;;  %17282 = vrot.lane.b32.xlu1 %v17281_v58, %s20690_s0 }
 0x1bd   : > { %v17060_v18 = vpop.f32.mrb[85].mxu1  ;;  %v7739_v61 = vrot.slane %v7731_v26, %v17898_v43  ;;  %v5673_v49 = vcombine.high %v4583_v20, %v4583_v20  ;;  %v5680_v11 = vrot.slane %v4583_v20, %v17898_v43  ;;  %17277 = vrot.lane.b32.xlu0 %v17276_v57, %s20688_s18  ;;  %v4297_v41 = vmax.f32 %v4256_v17, 0.0 }
 0x1be   : > { %v18933_v28 = vpop.f32.mrb[86].mxu1  ;;  %v4298_v0 = vmax.f32 %v4257_v9, 0.0  ;;  %v5640_v22 = vcombine.high %v5638_v50, %v5638_v50  ;;  %v5654_v4 = vrot.slane %v5638_v50, %v17898_v43  ;;  %v5661_v59 = vrot.slane %v5639_v35, %v17898_v43 }
 0x1bf   : > { %v17061_v5 = vpop.f32.mrb[87].mxu1  ;;  %v7702_v52 = vcombine.low %v5623_v14, %v5647_v16  ;;  %v5687_v7 = vrot.slane %v5673_v49, %v17898_v43  ;;  %v5688_v37 = vcombine.high %v5680_v11, %v5680_v11  ;;  %v5696_v31 = vrot.slane %v5680_v11, %v17898_v43 }
 0x1c0   : > { %v4584_v18 = vmul.f32 %v18399_v51, %v4297_v41  ;;  %v5668_v26 = vrot.slane %v5640_v22, %v17898_v43  ;;  %v16607_v57 = vcombine.high %v5647_v16, %v5661_v59  ;;  %17287 = vrot.lane.b32.xlu1 %v17286_v62, %s20688_s18 }
 0x1c1   : > { %v7730_v46 = vrot.slane %v7702_v52, %v17898_v43  ;;  %v5689_v21 = vcombine.high %v5687_v7, %v5687_v7  ;;  %v5703_v58 = vrot.slane %v5687_v7, %v17898_v43  ;;  %v5710_v20 = vrot.slane %v5688_v37, %v17898_v43 }
 0x1c2   : > { %v5718_v14 = vcombine.high %v5696_v31, %v5696_v31  ;;  %v7763_v9 = vcombine.low %v5654_v4, %v5668_v26  ;;  %v16608_v5 = vcombine.high %v5654_v4, %v5668_v26  ;;  %v7772_v50 = vrot.slane %v16607_v57, %v17898_v43 }
 0x1c3   : > { %v7732_v17 = vcombine.low %v7723_v45, %v7730_v46  ;;  %v5717_v51 = vrot.slane %v5689_v21, %v17898_v43  ;;  %v5719_v35 = vcombine.high %v5703_v58, %v5703_v58  ;;  %v5720_v49 = vcombine.high %v5710_v20, %v5710_v20 }
 0x1c4   : > { %v7779_v16 = vrot.slane %v7763_v9, %v17898_v43  ;;  %v7786_v62 = vrot.slane %v16608_v5, %v17898_v43  ;;  %v7765_v41 = vcombine.low %v5696_v31, %v5710_v20  ;;  %v7817_v22 = vrot.slane %v5718_v14, %v17898_v43 }
 0x1c5   : > { %v7746_v11 = vrot.slane %v7732_v17, %v17898_v43  ;;  %v7825_v59 = vcombine.low %v5720_v49, %v5703_v58  ;;  %v7826_v52 = vcombine.low %v5717_v51, %v5719_v35  ;;  %v5721_v45 = vcombine.high %v5717_v51, %v5717_v51 }
 0x1c6   : > { %v7794_v4 = vcombine.low %v7772_v50, %v7779_v16  ;;  %v7793_v37 = vrot.slane %v7765_v41, %v17898_v43  ;;  %v5722_v26 = vcombine.high %v4584_v18, %v4584_v18  ;;  %v7824_v46 = vrot.slane %v7817_v22, %v17898_v43 }
 0x1c7   : > { %v7747_v7 = vcombine.low %v7739_v61, %v7746_v11  ;;  %v7835_v57 = vrot.slane %v7825_v59, %v17898_v43  ;;  %v7842_v21 = vrot.slane %v7826_v52, %v17898_v43  ;;  %v5729_v17 = vrot.slane %v4584_v18, %v17898_v43 }
 0x1c8   : > { %v7802_v31 = vrot.slane %v7794_v4, %v17898_v43  ;;  %v7795_v58 = vcombine.low %v7786_v62, %v7793_v37  ;;  %v5736_v20 = vrot.slane %v5722_v26, %v17898_v43  ;;  %v4585_v61 = vmul.f32 %v18436_v12, %v4298_v0  ;;  %9006 = vst.msk [vmem:[#allocation2 + $0x128] sm:$0x1] %vm8969_vm2, %v7824_v46 }
 0x1c9   : > { %9003 = vst.msk [vmem:[#allocation2 + $0x110] sm:$0xff] %vm807_vm0, %v7747_v7  ;;  %v7857_v14 = vcombine.low %v7835_v57, %v7842_v21  ;;  %v5737_v9 = vcombine.high %v5729_v17, %v5729_v17  ;;  %v5745_v5 = vrot.slane %v5729_v17, %v17898_v43  ;;  %v4210_v50 = vmul.f32 %v18830_v27, %v18754_v55 }
 0x1ca   : > { %v7809_v18 = vrot.slane %v7795_v58, %v17898_v43  ;;  %v5738_v51 = vcombine.high %v5736_v20, %v5736_v20  ;;  %v5752_v35 = vrot.slane %v5736_v20, %v17898_v43  ;;  %v5771_v49 = vcombine.high %v4585_v61, %v4585_v61 }
 0x1cb   : > { %v7865_v11 = vrot.slane %v7857_v14, %v17898_v43  ;;  %v5759_v16 = vrot.slane %v5737_v9, %v17898_v43  ;;  %v5767_v12 = vcombine.high %v5745_v5, %v5745_v5  ;;  %v7827_v0 = vcombine.low %v5721_v45, %v5745_v5 }
 0x1cc   : > { %v7810_v62 = vcombine.low %v7802_v31, %v7809_v18  ;;  %v5766_v41 = vrot.slane %v5738_v51, %v17898_v43  ;;  %v5778_v22 = vrot.slane %v4585_v61, %v17898_v43  ;;  %v5785_v59 = vrot.slane %v5771_v49, %v17898_v43 }
 0x1cd   : > { %v5769_v55 = vcombine.high %v5759_v16, %v5759_v16  ;;  %v7828_v52 = vcombine.low %v5759_v16, %v5767_v12  ;;  %v7849_v7 = vrot.slane %v7827_v0, %v17898_v43  ;;  %v4258_v4 = vadd.f32 %v18841_v42, %v4210_v50  ;;  %v9055_v12 = vld [vmem:[#allocation2 + $0xe0] sm:$0xff] }
 0x1ce   : > { %9005 = vst.msk [vmem:[#allocation2 + $0x120] sm:$0xff] %vm807_vm0, %v7810_v62  ;;  %v7888_v37 = vcombine.low %v5752_v35, %v5766_v41  ;;  %v16609_v26 = vcombine.high %v5752_v35, %v5766_v41  ;;  %v5786_v46 = vcombine.high %v5778_v22, %v5778_v22  ;;  %v5787_v57 = vcombine.high %v5785_v59, %v5785_v59 }
 0x1cf   : > { %v7856_v45 = vrot.slane %v7828_v52, %v17898_v43  ;;  %v7880_v21 = vrot.slane %v5769_v55, %v17898_v43  ;;  %v5794_v17 = vrot.slane %v5778_v22, %v17898_v43  ;;  %v5801_v31 = vrot.slane %v5785_v59, %v17898_v43 }
 0x1d0   : > { %v7898_v58 = vrot.slane %v7888_v37, %v17898_v43  ;;  %v7905_v20 = vrot.slane %v16609_v26, %v17898_v43  ;;  %v5808_v61 = vrot.slane %v5786_v46, %v17898_v43  ;;  %v5815_v14 = vrot.slane %v5787_v57, %v17898_v43 }
 0x1d1   : > { %v7858_v9 = vcombine.low %v7849_v7, %v7856_v45  ;;  %v7887_v5 = vrot.slane %v7880_v21, %v17898_v43  ;;  %v5817_v50 = vcombine.high %v5801_v31, %v5801_v31  ;;  %v7943_v18 = vrot.slane %v5801_v31, %v17898_v43 }
 0x1d2   : > { %v7920_v51 = vcombine.low %v7898_v58, %v7905_v20  ;;  %v7890_v35 = vcombine.low %v5794_v17, %v5808_v61  ;;  %v16610_v49 = vcombine.high %v5794_v17, %v5808_v61  ;;  %v4299_v16 = vmax.f32 %v4258_v4, 0.0 }
 0x1d3   : > { %v7872_v0 = vrot.slane %v7858_v9, %v17898_v43  ;;  %9008 = vst.msk [vmem:[#allocation2 + $0x138] sm:$0x1] %vm8969_vm2, %v7887_v5  ;;  %v7950_v62 = vrot.slane %v7943_v18, %v17898_v43  ;;  %v7951_v41 = vcombine.low %v5815_v14, %v5817_v50  ;;  %v5819_v22 = vcombine.high %v5815_v14, %v5815_v14 }
 0x1d4   : > { %v7928_v59 = vrot.slane %v7920_v51, %v17898_v43  ;;  %v7912_v55 = vrot.slane %v7890_v35, %v17898_v43  ;;  %v7919_v52 = vrot.slane %v16610_v49, %v17898_v43  ;;  %v4586_v7 = vmul.f32 %v18444_v24, %v4299_v16 }
 0x1d5   : > { %v7873_v37 = vcombine.low %v7865_v11, %v7872_v0  ;;  %9010 = vst.msk [vmem:[#allocation2 + $0x148] sm:$0x1] %vm8969_vm2, %v7950_v62  ;;  %v7961_v4 = vrot.slane %v7951_v41, %v17898_v43  ;;  %v4211_v26 = vmul.f32 %v18830_v27, %v18759_v47  ;;  %v17291_v46 = vpack.i.bf16 %v9055_v12, %v18922_v15 }
 0x1d6   : > { %v7921_v57 = vcombine.low %v7912_v55, %v7919_v52  ;;  %v5820_v45 = vcombine.high %v4586_v7, %v4586_v7  ;;  %v5827_v21 = vrot.slane %v4586_v7, %v17898_v43  ;;  %v4212_v17 = vmul.f32 %v18830_v27, %v18772_v32 }
 0x1d7   : > { %9007 = vst.msk [vmem:[#allocation2 + $0x130] sm:$0xff] %vm807_vm0, %v7873_v37  ;;  %v4259_v24 = vadd.f32 %v18841_v42, %v4211_v26  ;;  %17292 = vrot.lane.b32.xlu0 %v17291_v46, %s20690_s0  ;;  %v4213_v11 = vmul.f32 %v18830_v27, %v18779_v54  ;;  %v4214_v47 = vmul.f32 %v18830_v27, %v18794_v30  ;;  %s20746_s0 = smov 112  }
 0x1d8   : > { %v19018_v15 = vmul.f32 %v18830_v27, %v18801_v63  ;;  %v7935_v31 = vrot.slane %v7921_v57, %v17898_v43  ;;  %v5834_v32 = vrot.slane %v5820_v45, %v17898_v43  ;;  %v5835_v58 = vcombine.high %v5827_v21, %v5827_v21 }
 0x1d9   : > { %v5843_v20 = vrot.slane %v5827_v21, %v17898_v43  ;;  %v4300_v61 = vmax.f32 %v4259_v24, 0.0  ;;  %v4260_v14 = vadd.f32 %v18841_v42, %v4212_v17  ;;  %v4261_v9 = vadd.f32 %v18841_v42, %v4213_v11 }
 0x1da   : > { %v19026_v54 = vadd.f32 %v18841_v42, %v4214_v47  ;;  %v7936_v30 = vcombine.low %v7928_v59, %v7935_v31  ;;  %v5836_v5 = vcombine.high %v5834_v32, %v5834_v32  ;;  %v5850_v63 = vrot.slane %v5834_v32, %v17898_v43 }
 0x1db   : > { %v5857_v50 = vrot.slane %v5835_v58, %v17898_v43  ;;  %v5865_v18 = vcombine.high %v5843_v20, %v5843_v20  ;;  %v7952_v51 = vcombine.low %v5819_v22, %v5843_v20  ;;  %v4587_v35 = vmul.f32 %v18488_v29, %v4300_v61 }
 0x1dc   : > { %v4301_v49 = vmax.f32 %v4260_v14, 0.0  ;;  %9009 = vst.msk [vmem:[#allocation2 + $0x140] sm:$0xff] %vm807_vm0, %v7936_v30  ;;  %v5864_v16 = vrot.slane %v5836_v5, %v17898_v43  ;;  %v4302_v0 = vmax.f32 %v4261_v9, 0.0  ;;  %v4303_v62 = vmax.f32 %v19026_v54, 0.0 }
 0x1dd   : > { %v5867_v12 = vcombine.high %v5857_v50, %v5857_v50  ;;  %v7953_v41 = vcombine.low %v5857_v50, %v5865_v18  ;;  %v7968_v59 = vrot.slane %v7952_v51, %v17898_v43  ;;  %v5869_v55 = vcombine.high %v4587_v35, %v4587_v35 }
 0x1de   : > { %v5876_v52 = vrot.slane %v4587_v35, %v17898_v43  ;;  %v8006_v22 = vrot.slane %v5864_v16, %v17898_v43  ;;  %v16611_v37 = vcombine.high %v5850_v63, %v5864_v16  ;;  %v4588_v29 = vmul.f32 %v18509_v19, %v4301_v49 }
 0x1df   : > { %v7954_v7 = vcombine.low %v5867_v12, %v5850_v63  ;;  %v7975_v26 = vrot.slane %v7953_v41, %v17898_v43  ;;  %v7983_v46 = vcombine.low %v7961_v4, %v7968_v59  ;;  %v5883_v57 = vrot.slane %v5869_v55, %v17898_v43 }
 0x1e0   : > { %v5884_v45 = vcombine.high %v5876_v52, %v5876_v52  ;;  %v8013_v17 = vrot.slane %v8006_v22, %v17898_v43  ;;  %v8024_v24 = vrot.slane %v16611_v37, %v17898_v43  ;;  %v5892_v11 = vrot.slane %v5876_v52, %v17898_v43 }
 0x1e1   : > { %v7982_v21 = vrot.slane %v7954_v7, %v17898_v43  ;;  %v7991_v47 = vrot.slane %v7983_v46, %v17898_v43  ;;  %v5885_v31 = vcombine.high %v5883_v57, %v5883_v57  ;;  %v5899_v32 = vrot.slane %v5883_v57, %v17898_v43 }
 0x1e2   : > { %v5906_v19 = vrot.slane %v5884_v45, %v17898_v43  ;;  %9012 = vst.msk [vmem:[#allocation2 + $0x158] sm:$0x1] %vm8969_vm2, %v8013_v17  ;;  %v5918_v4 = vcombine.high %v4588_v29, %v4588_v29  ;;  %v5925_v20 = vrot.slane %v4588_v29, %v17898_v43  ;;  %v4589_v61 = vmul.f32 %v18846_v23, %v4302_v0 }
 0x1e3   : > { %v7984_v58 = vcombine.low %v7975_v26, %v7982_v21  ;;  %v5913_v14 = vrot.slane %v5885_v31, %v17898_v43  ;;  %v5915_v9 = vcombine.high %v5899_v32, %v5899_v32 }
 0x1e4   : > { %v8015_v30 = vcombine.low %v5892_v11, %v5906_v19  ;;  %v16612_v5 = vcombine.high %v5892_v11, %v5906_v19  ;;  %v5932_v50 = vrot.slane %v5918_v4, %v17898_v43  ;;  %v5933_v18 = vcombine.high %v5925_v20, %v5925_v20 }
 0x1e5   : > { %v7998_v63 = vrot.slane %v7984_v58, %v17898_v43  ;;  %v5941_v51 = vrot.slane %v5925_v20, %v17898_v43  ;;  %v8017_v35 = vcombine.low %v5899_v32, %v5913_v14  ;;  %v8069_v12 = vrot.slane %v5915_v9, %v17898_v43 }
 0x1e6   : > { %v8031_v49 = vrot.slane %v8015_v30, %v17898_v43  ;;  %v8038_v16 = vrot.slane %v16612_v5, %v17898_v43  ;;  %v5917_v0 = vcombine.high %v5913_v14, %v5913_v14  ;;  %v5934_v41 = vcombine.high %v5932_v50, %v5932_v50 }
 0x1e7   : > { %v7999_v23 = vcombine.low %v7991_v47, %v7998_v63  ;;  %v5948_v59 = vrot.slane %v5932_v50, %v17898_v43  ;;  %v8045_v55 = vrot.slane %v8017_v35, %v17898_v43  ;;  %v8076_v7 = vrot.slane %v8069_v12, %v17898_v43 }
 0x1e8   : > { %v8046_v52 = vcombine.low %v8024_v24, %v8031_v49  ;;  %v5955_v22 = vrot.slane %v5933_v18, %v17898_v43  ;;  %v5962_v37 = vrot.slane %v5934_v41, %v17898_v43  ;;  %v5963_v29 = vcombine.high %v5941_v51, %v5941_v51 }
 0x1e9   : > { %9011 = vst.msk [vmem:[#allocation2 + $0x150] sm:$0xff] %vm807_vm0, %v7999_v23  ;;  %v5964_v26 = vcombine.high %v5948_v59, %v5948_v59  ;;  %v8077_v46 = vcombine.low %v5917_v0, %v5941_v51  ;;  %v8047_v57 = vcombine.low %v8038_v16, %v8045_v55  ;;  %v5967_v17 = vcombine.high %v4589_v61, %v4589_v61 }
 0x1ea   : > { %v8054_v45 = vrot.slane %v8046_v52, %v17898_v43  ;;  %9014 = vst.msk [vmem:[#allocation2 + $0x168] sm:$0x1] %vm8969_vm2, %v8076_v7  ;;  %v5965_v21 = vcombine.high %v5955_v22, %v5955_v22  ;;  %v5966_v11 = vcombine.high %v5962_v37, %v5962_v37  ;;  %v8078_v24 = vcombine.low %v5955_v22, %v5963_v29 }
 0x1eb   : > { %v8080_v47 = vcombine.low %v5962_v37, %v5964_v26  ;;  %v8087_v31 = vrot.slane %v8077_v46, %v17898_v43  ;;  %v8061_v32 = vrot.slane %v8047_v57, %v17898_v43  ;;  %v5974_v58 = vrot.slane %v4589_v61, %v17898_v43 }
 0x1ec   : > { %v8079_v19 = vcombine.low %v5965_v21, %v5948_v59  ;;  %v5981_v4 = vrot.slane %v5967_v17, %v17898_v43  ;;  %v8094_v20 = vrot.slane %v8078_v24, %v17898_v43  ;;  %v8132_v9 = vrot.slane %v5966_v11, %v17898_v43 }
 0x1ed   : > { %v8108_v14 = vrot.slane %v8080_v47, %v17898_v43  ;;  %v4590_v30 = vmul.f32 %v18571_v34, %v4303_v62  ;;  %v8062_v5 = vcombine.low %v8054_v45, %v8061_v32  ;;  %v5982_v50 = vcombine.high %v5974_v58, %v5974_v58 }
 0x1ee   : > { %v8101_v63 = vrot.slane %v8079_v19, %v17898_v43  ;;  %v5983_v18 = vcombine.high %v5981_v4, %v5981_v4  ;;  %v8109_v51 = vcombine.low %v8087_v31, %v8094_v20  ;;  %v8139_v61 = vrot.slane %v8132_v9, %v17898_v43  ;;  %v4505_v19 = vpop.permute.xlu1 %4504 }
 0x1ef   : > { %v5990_v35 = vrot.slane %v5974_v58, %v17898_v43  ;;  %v5997_v49 = vrot.slane %v5981_v4, %v17898_v43  ;;  %9013 = vst.msk [vmem:[#allocation2 + $0x160] sm:$0xff] %vm807_vm0, %v8062_v5  ;;  %v6004_v12 = vrot.slane %v5982_v50, %v17898_v43  ;;  %v6016_v34 = vcombine.high %v4590_v30, %v4590_v30 }
 0x1f0   : > { %v8110_v16 = vcombine.low %v8101_v63, %v8108_v14  ;;  %v6011_v54 = vrot.slane %v5983_v18, %v17898_v43  ;;  %v8117_v62 = vrot.slane %v8109_v51, %v17898_v43  ;;  %9016 = vst.msk [vmem:[#allocation2 + $0x178] sm:$0x1] %vm8969_vm2, %v8139_v61  ;;  %v6023_v23 = vrot.slane %v4590_v30, %v17898_v43 }
 0x1f1   : > { %v4263_v0 = vadd.f32 %v18841_v42, %v19018_v15  ;;  %v4216_v41 = vmul.f32 %v18830_v27, %v18815_v56  ;;  %v8140_v55 = vcombine.low %v5990_v35, %v6004_v12  ;;  %v16613_v52 = vcombine.high %v5990_v35, %v6004_v12  ;;  %v9068_v12 = vld [vmem:[#allocation2 + $0x130] sm:$0xff] }
 0x1f2   : > { %v8124_v59 = vrot.slane %v8110_v16, %v17898_v43  ;;  %v8142_v7 = vcombine.low %v5997_v49, %v6011_v54  ;;  %v16614_v22 = vcombine.high %v5997_v49, %v6011_v54  ;;  %v6030_v37 = vrot.slane %v6016_v34, %v17898_v43  ;;  %v9085_v54 = vld [vmem:[#allocation2 + $0x131] sm:$0xff] }
 0x1f3   : > { %v6031_v29 = vcombine.high %v6023_v23, %v6023_v23  ;;  %v6039_v26 = vrot.slane %v6023_v23, %v17898_v43  ;;  %v8150_v57 = vrot.slane %v8140_v55, %v17898_v43  ;;  %v8157_v45 = vrot.slane %v16613_v52, %v17898_v43 }
 0x1f4   : > { %v8125_v46 = vcombine.low %v8117_v62, %v8124_v59  ;;  %v8164_v15 = vrot.slane %v8142_v7, %v17898_v43  ;;  %v8171_v56 = vrot.slane %v16614_v22, %v17898_v43  ;;  %v6032_v21 = vcombine.high %v6030_v37, %v6030_v37  ;;  %v9067_v7 = vld [vmem:[#allocation2 + $0x120] sm:$0xff] }
 0x1f5   : > { %v6046_v17 = vrot.slane %v6030_v37, %v17898_v43  ;;  %v6053_v11 = vrot.slane %v6031_v29, %v17898_v43  ;;  %v8172_v24 = vcombine.low %v8150_v57, %v8157_v45  ;;  %v6061_v47 = vcombine.high %v6039_v26, %v6039_v26  ;;  %v9084_v22 = vld [vmem:[#allocation2 + $0x121] sm:$0xff] }
 0x1f6   : > { %9015 = vst.msk [vmem:[#allocation2 + $0x170] sm:$0xff] %vm807_vm0, %v8125_v46  ;;  %v8195_v31 = vrot.slane %v6039_v26, %v17898_v43  ;;  %v4304_v32 = vmax.f32 %v4263_v0, 0.0  ;;  %v8173_v58 = vcombine.low %v8164_v15, %v8171_v56  ;;  %v6060_v4 = vrot.slane %v6032_v21, %v17898_v43 }
 0x1f7   : > { %v6062_v20 = vcombine.high %v6046_v17, %v6046_v17  ;;  %v6063_v14 = vcombine.high %v6053_v11, %v6053_v11  ;;  %v8180_v9 = vrot.slane %v8172_v24, %v17898_v43  ;;  %v8203_v5 = vcombine.low %v6053_v11, %v6061_v47 }
 0x1f8   : > { %v8202_v30 = vrot.slane %v8195_v31, %v17898_v43  ;;  %v4591_v63 = vmul.f32 %v4505_v19, %v4304_v32  ;;  %v8187_v50 = vrot.slane %v8173_v58, %v17898_v43  ;;  %v6064_v61 = vcombine.high %v6060_v4, %v6060_v4 }
 0x1f9   : > { %v8204_v18 = vcombine.low %v6063_v14, %v6046_v17  ;;  %v8205_v51 = vcombine.low %v6060_v4, %v6062_v20  ;;  %v8213_v35 = vrot.slane %v8203_v5, %v17898_v43  ;;  %v4264_v16 = vadd.f32 %v18841_v42, %v4216_v41 }
 0x1fa   : > { %9018 = vst.msk [vmem:[#allocation2 + $0x188] sm:$0x1] %vm8969_vm2, %v8202_v30  ;;  %v6072_v49 = vrot.slane %v4591_v63, %v17898_v43  ;;  %v8188_v34 = vcombine.low %v8180_v9, %v8187_v50  ;;  %v4217_v0 = vmul.f32 %v18830_v27, %v18821_v48  ;;  %v17296_v29 = vpack.i.bf16 %v9068_v12, %v9067_v7 }
 0x1fb   : > { %v8220_v62 = vrot.slane %v8204_v18, %v17898_v43  ;;  %v8227_v23 = vrot.slane %v8205_v51, %v17898_v43  ;;  %v4305_v52 = vmax.f32 %v4264_v16, 0.0  ;;  %v17301_v26 = vpack.i.bf16 %v9085_v54, %v9084_v22  ;;  %v17533_v51 = vld [vmem:[%s20658_s8] sm:$0xff]  }
 0x1fc   : > { %v6080_v59 = vcombine.high %v6072_v49, %v6072_v49  ;;  %v6088_v55 = vrot.slane %v6072_v49, %v17898_v43  ;;  %9017 = vst.msk [vmem:[#allocation2 + $0x180] sm:$0xff] %vm807_vm0, %v8188_v34  ;;  %v4265_v41 = vadd.f32 %v18841_v42, %v4217_v0  ;;  %17297 = vrot.lane.b32.xlu0 %v17296_v29, %s20692_s23  ;;  %v17534_v34 = vld [vmem:[%s20658_s8 + $0x8] sm:$0xff]  }
 0x1fd   : > { %v8235_v37 = vcombine.low %v8213_v35, %v8220_v62  ;;  %v4592_v48 = vmul.f32 %v18387_v44, %v4305_v52  ;;  %v4218_v56 = vmul.f32 %v18830_v27, %v18854_v53  ;;  %9497 = vmatpush1.bf16.msra.mxu0 %v17533_v51  ;;  %v9071_v51 = vld [vmem:[#allocation2 + $0x160] sm:$0xff] }
 0x1fe   : > { %v6102_v46 = vrot.slane %v6080_v59, %v17898_v43  ;;  %v8206_v57 = vcombine.low %v6064_v61, %v6088_v55  ;;  %v4306_v15 = vmax.f32 %v4265_v41, 0.0  ;;  %v20743_v59 = vmov 0  }
 0x1ff   : > { %v8243_v45 = vrot.slane %v8235_v37, %v17898_v43  ;;  %v6114_v11 = vcombine.high %v4592_v48, %v4592_v48  ;;  %v6121_v24 = vrot.slane %v4592_v48, %v17898_v43  ;;  %v4266_v31 = vadd.f32 %v18841_v42, %v4218_v56  ;;  %9498 = vmatprep.subr.bf16.mxu0 %v20743_v59 }
 0x200   : > { %v8234_v21 = vrot.slane %v8206_v57, %v17898_v43  ;;  %v8258_v17 = vrot.slane %v6102_v46, %v17898_v43  ;;  %v4593_v47 = vmul.f32 %v18403_v3, %v4306_v15  ;;  %17302 = vrot.lane.b32.xlu0 %v17301_v26, %s20698_s26  ;;  %v9070_v57 = vld [vmem:[#allocation2 + $0x150] sm:$0xff] }
 0x201   : > { %v6128_v19 = vrot.slane %v6114_v11, %v17898_v43  ;;  %v6129_v58 = vcombine.high %v6121_v24, %v6121_v24  ;;  %v4307_v7 = vmax.f32 %v4266_v31, 0.0  ;;  %9499 = vmatpush1.bf16.msra.mxu0 %v17534_v34  ;;  %v9087_v24 = vld [vmem:[#allocation2 + $0x151] sm:$0xff]  ;;  %v19164_v31 = vld [vmem:[%s20656_s6] ss:$0 sm:$0xff] }
 0x202   : > { %v8236_v32 = vcombine.low %v8227_v23, %v8234_v21  ;;  %v8265_v44 = vrot.slane %v8258_v17, %v17898_v43  ;;  %v6163_v53 = vcombine.high %v4593_v47, %v4593_v47  ;;  %v6170_v14 = vrot.slane %v4593_v47, %v17898_v43  ;;  %9500 = vmatprep.subr.bf16.mxu0 %v20743_v59 }
 0x203   : > { %v6130_v4 = vcombine.high %v6128_v19, %v6128_v19  ;;  %v6144_v20 = vrot.slane %v6128_v19, %v17898_v43  ;;  %v6151_v3 = vrot.slane %v6129_v58, %v17898_v43  ;;  %v4594_v46 = vmul.f32 %v18405_v13, %v4307_v7  ;;  %v9069_v13 = vld [vmem:[#allocation2 + $0x140] sm:$0xff] }
 0x204   : > { %v8250_v27 = vrot.slane %v8236_v32, %v17898_v43  ;;  %9020 = vst.msk [vmem:[#allocation2 + $0x198] sm:$0x1] %vm8969_vm2, %v8265_v44  ;;  %v6177_v9 = vrot.slane %v6163_v53, %v17898_v43  ;;  %v6178_v50 = vcombine.high %v6170_v14, %v6170_v14  ;;  %v6186_v16 = vrot.slane %v6170_v14, %v17898_v43 }
 0x205   : > { %v6158_v30 = vrot.slane %v6130_v4, %v17898_v43  ;;  %v6160_v5 = vcombine.high %v6144_v20, %v6144_v20  ;;  %v6161_v63 = vcombine.high %v6151_v3, %v6151_v3  ;;  %v6212_v17 = vcombine.high %v4594_v46, %v4594_v46  ;;  %v9072_v3 = vld [vmem:[#allocation2 + $0x170] sm:$0xff] }
 0x206   : > { %v8251_v42 = vcombine.low %v8243_v45, %v8250_v27  ;;  %v6179_v18 = vcombine.high %v6177_v9, %v6177_v9  ;;  %v6193_v12 = vrot.slane %v6177_v9, %v17898_v43  ;;  %v6200_v54 = vrot.slane %v6178_v50, %v17898_v43  ;;  %v17535_v45 = vld [vmem:[%s20658_s8 + $0x10] sm:$0xff]  }
 0x207   : > { %v8329_v61 = vcombine.low %v6161_v63, %v6144_v20  ;;  %v8330_v35 = vcombine.low %v6158_v30, %v6160_v5  ;;  %v6162_v49 = vcombine.high %v6158_v30, %v6158_v30  ;;  %v6208_v55 = vcombine.high %v6186_v16, %v6186_v16  ;;  %v9086_v20 = vld [vmem:[#allocation2 + $0x141] sm:$0xff]  ;;  %9501 = vmatpush1.bf16.msra.mxu0 %v17535_v45 }
 0x208   : > { %9019 = vst.msk [vmem:[#allocation2 + $0x190] sm:$0xff] %vm807_vm0, %v8251_v42  ;;  %v6207_v0 = vrot.slane %v6179_v18, %v17898_v43  ;;  %v6219_v11 = vrot.slane %v4594_v46, %v17898_v43  ;;  %v4219_v32 = vmul.f32 %v19164_v31, %v18859_v36  ;;  %v17306_v44 = vpack.i.bf16 %v9070_v57, %v9069_v13  ;;  %v17536_v42 = vld [vmem:[%s20658_s8 + $0x18] sm:$0xff]   ;;  %v19181_v36 = vld [vmem:[%s20657_s7] ss:$0 sm:$0xff]  ;;  %v17538_v45 = vld [vmem:[%s20658_s8 + $0x28] sm:$0xff]  }
 0x209   : > { %v8339_v62 = vrot.slane %v8329_v61, %v17898_v43  ;;  %v8346_v23 = vrot.slane %v8330_v35, %v17898_v43  ;;  %v8331_v52 = vcombine.low %v6162_v49, %v6186_v16  ;;  %v8332_v29 = vcombine.low %v6200_v54, %v6208_v55  ;;  %9502 = vmatprep.subr.bf16.mxu0 %v20743_v59 }
 0x20a   : > { %v8392_v37 = vcombine.low %v6193_v12, %v6207_v0  ;;  %v16617_v41 = vcombine.high %v6193_v12, %v6207_v0  ;;  %v4220_v19 = vmul.f32 %v19164_v31, %v18881_v2  ;;  %v6226_v27 = vrot.slane %v6212_v17, %v17898_v43  ;;  %17307 = vrot.lane.b32.xlu1 %v17306_v44, %s20692_s23 }
 0x20b   : > { %v8361_v22 = vcombine.low %v8339_v62, %v8346_v23  ;;  %v8353_v26 = vrot.slane %v8331_v52, %v17898_v43  ;;  %v8360_v21 = vrot.slane %v8332_v29, %v17898_v43  ;;  %v6227_v53 = vcombine.high %v6219_v11, %v6219_v11  ;;  %9503 = vmatpush1.bf16.msra.mxu0 %v17536_v42  ;;  %v17537_v23 = vld [vmem:[%s20658_s8 + $0x20] sm:$0xff]  }
 0x20c   : > { %v8402_v15 = vrot.slane %v8392_v37, %v17898_v43  ;;  %v8409_v56 = vrot.slane %v16617_v41, %v17898_v43  ;;  %v6235_v4 = vrot.slane %v6219_v11, %v17898_v43  ;;  %v4267_v2 = vadd.f32 %v19181_v36, %v4219_v32  ;;  %9504 = vmatprep.subr.bf16.mxu0 %v20743_v59 }
 0x20d   : > { %v8369_v48 = vrot.slane %v8361_v22, %v17898_v43  ;;  %v8362_v58 = vcombine.low %v8353_v26, %v8360_v21  ;;  %v4268_v9 = vadd.f32 %v19181_v36, %v4220_v19  ;;  %v17311_v30 = vpack.i.bf16 %v9087_v24, %v9086_v20  ;;  %v17539_v20 = vld [vmem:[%s20658_s8 + $0x30] sm:$0xff]  }
 0x20e   : > { %v8424_v47 = vcombine.low %v8402_v15, %v8409_v56  ;;  %v6228_v63 = vcombine.high %v6226_v27, %v6226_v27  ;;  %v6242_v50 = vrot.slane %v6226_v27, %v17898_v43  ;;  %v6249_v18 = vrot.slane %v6227_v53, %v17898_v43 }
 0x20f   : > { %v8376_v5 = vrot.slane %v8362_v58, %v17898_v43  ;;  %v4308_v61 = vmax.f32 %v4267_v2, 0.0  ;;  %v4309_v35 = vmax.f32 %v4268_v9, 0.0  ;;  %v4221_v49 = vmul.f32 %v19164_v31, %v18885_v39  ;;  %17312 = vrot.lane.b32.xlu1 %v17311_v30, %s20698_s26  ;;  %9505 = vmatpush1.bf16.msra.mxu0 %v17537_v23 }
 0x210   : > { %v19176_v14 = vrot.slane %v8424_v47, %v17898_v43  ;;  %v17326_v16 = vpack.i.bf16 %v9072_v3, %v9071_v51  ;;  %v6256_v54 = vrot.slane %v6228_v63, %v17898_v43  ;;  %v6258_v34 = vcombine.high %v6242_v50, %v6242_v50  ;;  %9506 = vmatprep.subr.bf16.mxu0 %v20743_v59 }
 0x211   : > { %v8377_v12 = vcombine.low %v8369_v48, %v8376_v5  ;;  %v8394_v62 = vcombine.low %v6235_v4, %v6249_v18  ;;  %v16618_v0 = vcombine.high %v6235_v4, %v6249_v18  ;;  %v4595_v55 = vmul.f32 %v18463_v25, %v4308_v61 }
 0x212   : > { %v4596_v52 = vmul.f32 %v18448_v33, %v4309_v35  ;;  %v8455_v7 = vcombine.low %v6256_v54, %v6258_v34  ;;  %v6260_v22 = vcombine.high %v6256_v54, %v6256_v54  ;;  %v4269_v37 = vadd.f32 %v19181_v36, %v4221_v49  ;;  %17327 = vrot.lane.b32.xlu0 %v17326_v16, %s20692_s23 }
 0x213   : > { %9023 = vst.msk [vmem:[#allocation2 + $0x1b0] sm:$0xff] %vm807_vm0, %v8377_v12  ;;  %v8416_v39 = vrot.slane %v8394_v62, %v17898_v43  ;;  %v8423_v41 = vrot.slane %v16618_v0, %v17898_v43  ;;  %v6261_v29 = vcombine.high %v4595_v55, %v4595_v55  ;;  %v6268_v26 = vrot.slane %v4595_v55, %v17898_v43 }
 0x214   : > { %v8465_v33 = vrot.slane %v8455_v7, %v17898_v43  ;;  %v6310_v25 = vcombine.high %v4596_v52, %v4596_v52  ;;  %v6317_v46 = vrot.slane %v4596_v52, %v17898_v43  ;;  %v4310_v57 = vmax.f32 %v4269_v37, 0.0  ;;  %9507 = vmatpush1.bf16.msra.mxu0 %v17538_v45 }
 0x215   : > { %v8425_v48 = vcombine.low %v8416_v39, %v8423_v41  ;;  %v6275_v15 = vrot.slane %v6261_v29, %v17898_v43  ;;  %v6276_v56 = vcombine.high %v6268_v26, %v6268_v26  ;;  %v6284_v21 = vrot.slane %v6268_v26, %v17898_v43  ;;  %9508 = vmatprep.subr.bf16.mxu0 %v20743_v59 }
 0x216   : > { %v6324_v17 = vrot.slane %v6310_v25, %v17898_v43  ;;  %v6325_v11 = vcombine.high %v6317_v46, %v6317_v46  ;;  %v6333_v13 = vrot.slane %v6317_v46, %v17898_v43  ;;  %v4597_v24 = vmul.f32 %v18546_v8, %v4310_v57 }
 0x217   : > { %v8439_v47 = vrot.slane %v8425_v48, %v17898_v43  ;;  %v6277_v32 = vcombine.high %v6275_v15, %v6275_v15  ;;  %v6291_v44 = vrot.slane %v6275_v15, %v17898_v43  ;;  %v6298_v19 = vrot.slane %v6276_v56, %v17898_v43 }
 0x218   : > { %v6306_v58 = vcombine.high %v6284_v21, %v6284_v21  ;;  %v8456_v27 = vcombine.low %v6260_v22, %v6284_v21  ;;  %v6326_v53 = vcombine.high %v6324_v17, %v6324_v17  ;;  %v6340_v4 = vrot.slane %v6324_v17, %v17898_v43  ;;  %9509 = vmatpush1.bf16.msra.mxu0 %v17539_v20 }
 0x219   : > { %v8440_v3 = vcombine.low %v19176_v14, %v8439_v47  ;;  %v6305_v8 = vrot.slane %v6277_v32, %v17898_v43  ;;  %v6308_v42 = vcombine.high %v6298_v19, %v6298_v19  ;;  %v6347_v2 = vrot.slane %v6325_v11, %v17898_v43  ;;  %9510 = vmatprep.subr.bf16.mxu0 %v20743_v59 }
 0x21a   : > { %v8457_v9 = vcombine.low %v6298_v19, %v6306_v58  ;;  %v8472_v30 = vrot.slane %v8456_v27, %v17898_v43  ;;  %v6354_v5 = vrot.slane %v6326_v53, %v17898_v43  ;;  %v6359_v52 = vcombine.high %v4597_v24, %v4597_v24 }
 0x21b   : > { %9025 = vst.msk [vmem:[#allocation2 + $0x1c0] sm:$0xff] %vm807_vm0, %v8440_v3  ;;  %v8458_v63 = vcombine.low %v6308_v42, %v6291_v44  ;;  %v16619_v50 = vcombine.high %v6291_v44, %v6305_v8  ;;  %v8519_v18 = vcombine.low %v6333_v13, %v6347_v2  ;;  %v16620_v61 = vcombine.high %v6333_v13, %v6347_v2 }
 0x21c   : > { %v8479_v51 = vrot.slane %v8457_v9, %v17898_v43  ;;  %v8487_v14 = vcombine.low %v8465_v33, %v8472_v30  ;;  %v8521_v35 = vcombine.low %v6340_v4, %v6354_v5  ;;  %v6358_v55 = vcombine.high %v6354_v5, %v6354_v5 }
 0x21d   : > { %v8486_v49 = vrot.slane %v8458_v63, %v17898_v43  ;;  %v8528_v16 = vrot.slane %v16619_v50, %v17898_v43  ;;  %v8535_v12 = vrot.slane %v8519_v18, %v17898_v43  ;;  %v8542_v34 = vrot.slane %v16620_v61, %v17898_v43 }
 0x21e   : > { %v8495_v54 = vrot.slane %v8487_v14, %v17898_v43  ;;  %v8549_v62 = vrot.slane %v8521_v35, %v17898_v43  ;;  %v6366_v7 = vrot.slane %v4597_v24, %v17898_v43  ;;  %v4222_v22 = vmul.f32 %v19164_v31, %v18898_v40 }
 0x21f   : > { %v8488_v23 = vcombine.low %v8479_v51, %v8486_v49  ;;  %v8550_v0 = vcombine.low %v8528_v16, %v8535_v12  ;;  %v6373_v29 = vrot.slane %v6359_v52, %v17898_v43  ;;  %v4223_v26 = vmul.f32 %v19164_v31, %v18908_v1 }
 0x220   : > { %v8551_v39 = vcombine.low %v8542_v34, %v8549_v62  ;;  %v6374_v25 = vcombine.high %v6366_v7, %v6366_v7  ;;  %v6382_v46 = vrot.slane %v6366_v7, %v17898_v43  ;;  %v4270_v57 = vadd.f32 %v19181_v36, %v4222_v22 }
 0x221   : > { %v8502_v37 = vrot.slane %v8488_v23, %v17898_v43  ;;  %v8558_v41 = vrot.slane %v8550_v0, %v17898_v43  ;;  %v6375_v48 = vcombine.high %v6373_v29, %v6373_v29  ;;  %v6389_v40 = vrot.slane %v6373_v29, %v17898_v43 }
 0x222   : > { %v8565_v33 = vrot.slane %v8551_v39, %v17898_v43  ;;  %v4271_v15 = vadd.f32 %v19181_v36, %v4223_v26  ;;  %v6396_v21 = vrot.slane %v6374_v25, %v17898_v43  ;;  %v6404_v17 = vcombine.high %v6382_v46, %v6382_v46  ;;  %v17540_v39 = vld [vmem:[%s20658_s8 + $0x38] sm:$0xff]  }
 0x223   : > { %v8503_v45 = vcombine.low %v8495_v54, %v8502_v37  ;;  %v8581_v11 = vcombine.low %v6358_v55, %v6382_v46  ;;  %v6403_v1 = vrot.slane %v6375_v48, %v17898_v43  ;;  %v6405_v13 = vcombine.high %v6389_v40, %v6389_v40  ;;  %9511 = vmatpush1.bf16.msra.mxu0 %v17540_v39 }
 0x224   : > { %v8566_v56 = vcombine.low %v8558_v41, %v8565_v33  ;;  %v4311_v24 = vmax.f32 %v4270_v57, 0.0  ;;  %v4312_v47 = vmax.f32 %v4271_v15, 0.0  ;;  %v6406_v32 = vcombine.high %v6396_v21, %v6396_v21  ;;  %9512 = vmatprep.subr.bf16.mxu0 %v20743_v59  ;;  %v17541_v15 = vld [vmem:[%s20658_s8 + $0x40] sm:$0xff]  }
 0x225   : > { %9027 = vst.msk [vmem:[#allocation2 + $0x1d0] sm:$0xff] %vm807_vm0, %v8503_v45  ;;  %v8582_v44 = vcombine.low %v6396_v21, %v6404_v17  ;;  %v8591_v19 = vrot.slane %v8581_v11, %v17898_v43  ;;  %v4224_v58 = vmul.f32 %v19164_v31, %v18924_v10  ;;  %v8584_v27 = vcombine.low %v6403_v1, %v6405_v13  ;;  %v9077_v11 = vld [vmem:[#allocation2 + $0x1c0] sm:$0xff] }
 0x226   : > { %9029 = vst.msk [vmem:[#allocation2 + $0x1e0] sm:$0xff] %vm807_vm0, %v8566_v56  ;;  %v4598_v53 = vmul.f32 %v18526_v60, %v4311_v24  ;;  %v4599_v4 = vmul.f32 %v18593_v6, %v4312_v47  ;;  %v8583_v20 = vcombine.low %v6406_v32, %v6389_v40  ;;  %v4225_v41 = vmul.f32 %v19164_v31, %v18933_v28 }
 0x227   : > { %v8598_v3 = vrot.slane %v8582_v44, %v17898_v43  ;;  %v8612_v8 = vrot.slane %v8584_v27, %v17898_v43  ;;  %v4272_v60 = vadd.f32 %v19181_v36, %v4224_v58  ;;  %9513 = vmatpush1.bf16.msra.mxu0 %v17541_v15  ;;  %v20744_v32 = vmov 0.0  }
 0x228   : > { %v6408_v42 = vcombine.high %v4598_v53, %v4598_v53  ;;  %v6415_v2 = vrot.slane %v4598_v53, %v17898_v43  ;;  %v8605_v9 = vrot.slane %v8583_v20, %v17898_v43  ;;  %v6457_v5 = vcombine.high %v4599_v4, %v4599_v4  ;;  %17066 = vmatprep.subr.bf16.mxu0 %v20744_v32  ;;  %v9076_v53 = vld [vmem:[#allocation2 + $0x1b0] sm:$0xff] }
 0x229   : > { %v8613_v30 = vcombine.low %v8591_v19, %v8598_v3  ;;  %v6464_v63 = vrot.slane %v4599_v4, %v17898_v43  ;;  %v4313_v31 = vmax.f32 %v4272_v60, 0.0  ;;  %v4273_v47 = vadd.f32 %v19181_v36, %v4225_v41  ;;  %v4555_v3 = vpop.permute.xlu0 %4554 }
 0x22a   : > { %v6422_v10 = vrot.slane %v6408_v42, %v17898_v43  ;;  %v6423_v50 = vcombine.high %v6415_v2, %v6415_v2  ;;  %v8614_v6 = vcombine.low %v8605_v9, %v8612_v8  ;;  %v6471_v51 = vrot.slane %v6457_v5, %v17898_v43  ;;  %v19303_v9 = vld [vmem:[#allocation2 + $0x51] sm:$0xff] }
 0x22b   : > { %v8621_v18 = vrot.slane %v8613_v30, %v17898_v43  ;;  %v6472_v14 = vcombine.high %v6464_v63, %v6464_v63  ;;  %v6431_v35 = vrot.slane %v6415_v2, %v17898_v43  ;;  %v6480_v16 = vrot.slane %v6464_v63, %v17898_v43 }
 0x22c   : > { %v6424_v61 = vcombine.high %v6422_v10, %v6422_v10  ;;  %v6445_v49 = vrot.slane %v6423_v50, %v17898_v43  ;;  %v8628_v12 = vrot.slane %v8614_v6, %v17898_v43  ;;  %v6473_v54 = vcombine.high %v6471_v51, %v6471_v51  ;;  %v19309_v6 = vld [vmem:[#allocation2 + $0x41] sm:$0xff] }
 0x22d   : > { %v6487_v34 = vrot.slane %v6471_v51, %v17898_v43  ;;  %v6494_v62 = vrot.slane %v6472_v14, %v17898_v43  ;;  %v6438_v23 = vrot.slane %v6422_v10, %v17898_v43  ;;  %v6502_v22 = vcombine.high %v6480_v16, %v6480_v16  ;;  %v19317_v16 = vld [vmem:[#allocation2 + $0x60] sm:$0xff] }
 0x22e   : > { %v6452_v0 = vrot.slane %v6424_v61, %v17898_v43  ;;  %v8644_v55 = vcombine.low %v6431_v35, %v6445_v49  ;;  %v16621_v52 = vcombine.high %v6431_v35, %v6445_v49  ;;  %v8629_v7 = vcombine.low %v8621_v18, %v8628_v12 }
 0x22f   : > { %v6504_v37 = vcombine.high %v6494_v62, %v6494_v62  ;;  %v6501_v46 = vrot.slane %v6473_v54, %v17898_v43  ;;  %v6503_v57 = vcombine.high %v6487_v34, %v6487_v34  ;;  %v8707_v56 = vcombine.low %v6494_v62, %v6502_v22 }
 0x230   : > { %v8646_v29 = vcombine.low %v6438_v23, %v6452_v0  ;;  %v16622_v26 = vcombine.high %v6438_v23, %v6452_v0  ;;  %v8654_v33 = vrot.slane %v8644_v55, %v17898_v43  ;;  %v8661_v25 = vrot.slane %v16621_v52, %v17898_v43  ;;  %9031 = vst.msk [vmem:[#allocation2 + $0x1f0] sm:$0xff] %vm807_vm0, %v8629_v7  ;;  %v19321_v0 = vld [vmem:[#allocation2 + $0x50] sm:$0xff]  ;;  %v9079_v55 = vld [vmem:[#allocation2 + $0x1e0] sm:$0xff] }
 0x231   : > { %v8708_v45 = vcombine.low %v6504_v37, %v6487_v34  ;;  %v4600_v17 = vmul.f32 %v18617_v38, %v4313_v31  ;;  %v8709_v1 = vcombine.low %v6501_v46, %v6503_v57  ;;  %v6505_v24 = vcombine.high %v6501_v46, %v6501_v46 }
 0x232   : > { %v8668_v48 = vrot.slane %v8646_v29, %v17898_v43  ;;  %v8675_v40 = vrot.slane %v16622_v26, %v17898_v43  ;;  %v8676_v28 = vcombine.low %v8654_v33, %v8661_v25  ;;  %v8717_v38 = vrot.slane %v8707_v56, %v17898_v43  ;;  %v9078_v29 = vld [vmem:[#allocation2 + $0x1d0] sm:$0xff]  ;;  %v9057_v26 = vld [vmem:[#allocation2 + $0x100] sm:$0xff] }
 0x233   : > { %v8724_v13 = vrot.slane %v8708_v45, %v17898_v43  ;;  %v6506_v58 = vcombine.high %v4600_v17, %v4600_v17  ;;  %v6513_v27 = vrot.slane %v4600_v17, %v17898_v43  ;;  %v4314_v4 = vmax.f32 %v4273_v47, 0.0  ;;  %v9088_v56 = vld [vmem:[#allocation2 + $0x161] sm:$0xff]  ;;  %v9074_v47 = vld [vmem:[#allocation2 + $0x190] sm:$0xff] }
 0x234   : > { %v8677_v21 = vcombine.low %v8668_v48, %v8675_v40  ;;  %v8684_v44 = vrot.slane %v8676_v28, %v17898_v43  ;;  %v17316_v20 = vpack.i.bf16 %v9077_v11, %v9076_v53  ;;  %v8731_v30 = vrot.slane %v8709_v1, %v17898_v43  ;;  %v9056_v48 = vld [vmem:[#allocation2 + $0xf0] sm:$0xff] }
 0x235   : > { %v6520_v42 = vrot.slane %v6506_v58, %v17898_v43  ;;  %v6521_v2 = vcombine.high %v6513_v27, %v6513_v27  ;;  %v6529_v36 = vrot.slane %v6513_v27, %v17898_v43  ;;  %v4601_v5 = vmul.f32 %v4555_v3, %v4314_v4  ;;  %v9089_v40 = vld [vmem:[#allocation2 + $0x171] sm:$0xff]  ;;  %v19340_v27 = vld [vmem:[#allocation2 + $0x61] sm:$0xff] }
 0x236   : > { %v8691_v19 = vrot.slane %v8677_v21, %v17898_v43  ;;  %17317 = vrot.lane.b32.xlu1 %v17316_v20, %s20704_s2  ;;  %v8739_v63 = vcombine.low %v8717_v38, %v8724_v13  ;;  %v17321_v14 = vpack.i.bf16 %v19303_v9, %v19309_v6  ;;  %v17341_v22 = vpack.i.bf16 %v19317_v16, %v19321_v0  ;;  %v19342_v53 = vld [vmem:[#allocation2 + $0x71] sm:$0xff]  ;;  %v9073_v38 = vld [vmem:[#allocation2 + $0x180] sm:$0xff] }
 0x237   : > { %v6522_v10 = vcombine.high %v6520_v42, %v6520_v42  ;;  %v6543_v50 = vrot.slane %v6521_v2, %v17898_v43  ;;  %v8710_v60 = vcombine.low %v6505_v24, %v6529_v36  ;;  %v6536_v18 = vrot.slane %v6520_v42, %v17898_v43  ;;  %v9080_v21 = vld [vmem:[#allocation2 + $0x1f0] sm:$0xff]  ;;  %v9090_v42 = vld [vmem:[#allocation2 + $0x181] sm:$0xff] }
 0x238   : > { %v8692_v8 = vcombine.low %v8684_v44, %v8691_v19  ;;  %v6562_v51 = vrot.slane %v4601_v5, %v17898_v43  ;;  %v8747_v52 = vrot.slane %v8739_v63, %v17898_v43  ;;  %v17331_v46 = vpack.i.bf16 %v9079_v55, %v9078_v29  ;;  %v17564_v19 = vld [vmem:[#allocation2 + $0xe0] sm:$0xff]  ;;  %v9091_v20 = vld [vmem:[#allocation2 + $0x191] sm:$0xff] }
 0x239   : > { %v6550_v61 = vrot.slane %v6522_v10, %v17898_v43  ;;  %v8738_v35 = vrot.slane %v8710_v60, %v17898_v43  ;;  %v16623_v49 = vcombine.high %v6529_v36, %v6543_v50  ;;  %v17351_v15 = vpack.i.bf16 %v9057_v26, %v9056_v48  ;;  %v9109_v36 = vld [vmem:[#allocation2 + $0x110] sm:$0xff]  ;;  %v9100_v50 = vld [vmem:[#allocation2 + $0x80] sm:$0xff] }
 0x23a   : > { %9033 = vst.msk [vmem:[#allocation2 + $0x200] sm:$0xff] %vm807_vm0, %v8692_v8  ;;  %v6570_v12 = vcombine.high %v6562_v51, %v6562_v51  ;;  %v6578_v54 = vrot.slane %v6562_v51, %v17898_v43  ;;  %17322 = vrot.lane.b32.xlu1 %v17321_v14, %s20696_s29  ;;  %17332 = vrot.lane.b32.xlu0 %v17331_v46, %s20704_s2  ;;  %v19355_v60 = vld [vmem:[#allocation2 + $0x70] sm:$0xff] }
 0x23b   : > { %v8740_v34 = vcombine.low %v8731_v30, %v8738_v35  ;;  %v8771_v62 = vcombine.low %v6536_v18, %v6550_v61  ;;  %v16624_v23 = vcombine.high %v6536_v18, %v6550_v61  ;;  %v8780_v39 = vrot.slane %v16623_v49, %v17898_v43 }
 0x23c   : > { %v6592_v7 = vrot.slane %v6570_v12, %v17898_v43  ;;  %v17336_v1 = vpack.i.bf16 %v9089_v40, %v9088_v56  ;;  %v17346_v58 = vpack.i.bf16 %v9056_v48, %v17564_v19  ;;  %v17366_v4 = vpack.i.bf16 %v9074_v47, %v9073_v38 }
 0x23d   : > { %v8754_v37 = vrot.slane %v8740_v34, %v17898_v43  ;;  %v8787_v41 = vrot.slane %v8771_v62, %v17898_v43  ;;  %v8794_v33 = vrot.slane %v16624_v23, %v17898_v43  ;;  %v17356_v3 = vpack.i.bf16 %v19342_v53, %v19340_v27 }
 0x23e   : > { %v8773_v25 = vcombine.low %v6578_v54, %v6592_v7  ;;  %17342 = vrot.lane.b32.xlu1 %v17341_v22, %s20694_s28  ;;  %17337 = vrot.lane.b32.xlu0 %v17336_v1, %s20698_s26  ;;  %v9409_v8 = vpack.c.bf16 %v19340_v27, %v19303_v9  ;;  %v17371_v2 = vpack.i.bf16 %v9091_v20, %v9090_v42  ;;  %s20747_s28 = sld [smem:[#allocation29_spill]]  ;;  %v19398_v7 = vpop.permute.xlu0 %17262  ;;  %v17253_v22 = vpop.permute.xlu1 %17252 }
 0x23f   : > { %v8755_v57 = vcombine.low %v8747_v52, %v8754_v37  ;;  %v8802_v45 = vcombine.low %v8780_v39, %v8787_v41  ;;  %v17386_v10 = vpack.i.bf16 %v9109_v36, %v9057_v26  ;;  %v17381_v51 = vpack.i.bf16 %v9100_v50, %v19355_v60 }
 0x240   : > { %v8801_v31 = vrot.slane %v8773_v25, %v17898_v43 }
 0x241   : > { %v9081_v28 = vld [vmem:[#allocation2 + $0x200] sm:$0xff]  ;;  %9035 = vst.msk [vmem:[#allocation2 + $0x210] sm:$0xff] %vm807_vm0, %v8755_v57  ;;  %v8810_v17 = vrot.slane %v8802_v45, %v17898_v43 }
 0x242   : > { %v8803_v11 = vcombine.low %v8794_v33, %v8801_v31  ;;  %17352 = vrot.lane.b32.xlu1 %v17351_v15, %s20745_s30  ;;  %v17361_v13 = vpack.i.bf16 %v9081_v28, %v9080_v21  ;;  %17347 = vrot.lane.b32.xlu0 %v17346_v58, %s20746_s0  ;;  %v19400_v37 = vpop.permute.xlu0 %17267  ;;  %v17258_v41 = vpop.permute.xlu1 %17257  ;;  %v9041_v28 = vld [vmem:[#allocation2] sm:$0xff]  ;;  %v9042_v31 = vld [vmem:[#allocation2 + $0x10] sm:$0xff] }
 0x243   : > { %v17259_v47 = vunpack.i.l.bf16 %v17258_v41 }
 0x244   : > { %v8817_v24 = vrot.slane %v8803_v11, %v17898_v43  ;;  %v12988_v18 = vld [vmem:[%s20747_s28 + $0x8] sm:$0xff]  ;;  %v12987_v14 = vld [vmem:[%s20747_s28] sm:$0xff]  ;;  %v12990_v61 = vld [vmem:[%s20747_s28 + $0x18] sm:$0xff]  ;;  %v17254_v11 = vunpack.i.l.bf16 %v17253_v22 }
 0x245   : > { %v12989_v35 = vld [vmem:[%s20747_s28 + $0x10] sm:$0xff]  ;;  %v12992_v49 = vld [vmem:[%s20747_s28 + $0x28] sm:$0xff]  ;;  %v12991_v12 = vld [vmem:[%s20747_s28 + $0x20] sm:$0xff] }
 0x246   : > { %v8818_v44 = vcombine.low %v8810_v17, %v8817_v24  ;;  %17362 = vrot.lane.b32.xlu1 %v17361_v13, %s20704_s2  ;;  %17357 = vrot.lane.b32.xlu0 %v17356_v3, %s20696_s29  ;;  %s20748_s29 = smov 96   ;;  %v12994_v54 = vld [vmem:[%s20747_s28 + $0x38] sm:$0xff]  ;;  %v12993_v34 = vld [vmem:[%s20747_s28 + $0x30] sm:$0xff]  ;;  %v17273_v29 = vpop.permute.xlu0 %17272  ;;  %v17283_v26 = vpop.permute.xlu1 %17282  ;;  %v17255_v17 = vunpack.i.h.bf16 %v17253_v22  ;;  %v17260_v24 = vunpack.i.h.bf16 %v17258_v41 }
 0x247   : > { %v12996_v62 = vld [vmem:[%s20747_s28 + $0x48] sm:$0xff]  ;;  %v12995_v23 = vld [vmem:[%s20747_s28 + $0x40] sm:$0xff]  ;;  %v12998_v55 = vld [vmem:[%s20747_s28 + $0x58] sm:$0xff]  ;;  %v17275_v45 = vunpack.i.h.bf16 %v17273_v29  ;;  %v17274_v48 = vunpack.i.l.bf16 %v17273_v29  ;;  %v17284_v19 = vunpack.i.l.bf16 %v17283_v26  ;;  %v17264_v29 = vunpack.i.l.bf16 %v19398_v7 }
 0x248   : > { %9037 = vst.msk [vmem:[#allocation2 + $0x220] sm:$0xff] %vm807_vm0, %v8818_v44  ;;  %v9082_v30 = vld [vmem:[#allocation2 + $0x210] sm:$0xff]  ;;  %v12999_v39 = vld [vmem:[%s20747_s28 + $0x60] sm:$0xff]  ;;  %v17542_v41 = vld [vmem:[%s20732_s22 + $0x8] sm:$0xff]  }
 0x249   : > { %v12997_v52 = vld [vmem:[%s20747_s28 + $0x50] sm:$0xff]  ;;  %v9343_v56 = vsel %vm807_vm0, %v9042_v31, %v17275_v45  ;;  %v9342_v21 = vsel %vm807_vm0, %v9041_v28, %v17274_v48 }
 0x24a   : > { %17367 = vrot.lane.b32.xlu1 %v17366_v4, %s20692_s23  ;;  %v17278_v33 = vpop.permute.xlu0 %17277  ;;  %v19402_v25 = vpop.permute.xlu1 %17287  ;;  %v9351_v58 = vsel %vm9350_vm3, %v9342_v21, %v17254_v11  ;;  %v9352_v38 = vsel %vm9350_vm3, %v9343_v56, %v17255_v17  ;;  %s20749_s23 = sld [smem:[#allocation27_spill]]  ;;  %v9112_v48 = vld [vmem:[#allocation2 + $0x31] sm:$0xff]  ;;  %v9045_v11 = vld [vmem:[#allocation2 + $0x40] sm:$0xff] }
 0x24b   : > { %v17280_v50 = vunpack.i.h.bf16 %v17278_v33  ;;  %v9407_v21 = vpack.c.bf16 %v19309_v6, %v9112_v48 }
 0x24e   : > { %17372 = vrot.lane.b32.xlu1 %v17371_v2, %s20698_s26  ;;  %v19404_v46 = vpop.permute.xlu0 %17292 }
 0x24f   : > { %v9083_v5 = vld [vmem:[#allocation2 + $0x220] sm:$0xff] }
 0x250   : > { %v17376_v63 = vpack.i.bf16 %v9083_v5, %v9082_v30  ;;  %v17285_v5 = vunpack.i.h.bf16 %v17283_v26  ;;  %s19422_s18 = scalar_lea.vmem %s20749_s23, %s17195_s3  ;;  %v17270_v26 = vunpack.i.h.bf16 %v19400_v37  ;;  %s20760_s3 = sld [smem:[#allocation32_spill]] }
 0x251   : > { %v16642_v17 = vld.sshfl [vmem:[%s19422_s18 + $0x8] sm:$0x33 pattern:$0x75316420] }
 0x252   : > { %17377 = vrot.lane.b32.xlu0 %v17376_v63, %s20704_s2  ;;  %17387 = vrot.lane.b32.xlu1 %v17386_v10, %s20746_s0  ;;  %s20767_s2 = sld [smem:[#allocation10_spill]] }
 0x256   : > { %17382 = vrot.lane.b32.xlu0 %v17381_v51, %s20748_s29  ;;  %13044 = vperm.xlu1 %17250, %v12988_v18   ;;  %v17279_v18 = vunpack.i.l.bf16 %v17278_v33 }
 0x258   : > { %s16826_s23 = sshll.u32 %s20767_s2, 10 }
 0x25a   : > { %13039 = vperm.xlu0 %17249, %v12987_v14   ;;  %13054 = vperm.xlu1 %17250, %v12990_v61  }
 0x25e   : > { %13049 = vperm.xlu0 %17249, %v12989_v35   ;;  %13064 = vperm.xlu1 %17250, %v12992_v49   ;;  %v17265_v35 = vunpack.i.h.bf16 %v19398_v7  ;;  %v9043_v49 = vld [vmem:[#allocation2 + $0x20] sm:$0xff]  ;;  %v17290_v7 = vunpack.i.h.bf16 %v19402_v25 }
 0x262   : > { %13059 = vperm.xlu0 %17249, %v12991_v12   ;;  %13074 = vperm.xlu1 %17250, %v12994_v54   ;;  %v17295_v12 = vunpack.i.h.bf16 %v19404_v46 }
 0x266   : > { %13069 = vperm.xlu0 %17249, %v12993_v34   ;;  %13084 = vperm.xlu1 %17250, %v12996_v62   ;;  %v9044_v62 = vld [vmem:[#allocation2 + $0x30] sm:$0xff] }
 0x267   : > { %v9345_v33 = vsel %vm807_vm0, %v9044_v62, %v17285_v5 }
 0x26a   : > { %13079 = vperm.xlu0 %17249, %v12995_v23   ;;  %13094 = vperm.xlu1 %17250, %v12998_v55   ;;  %v9344_v23 = vsel %vm807_vm0, %v9043_v49, %v17284_v19  ;;  %v17294_v55 = vunpack.i.l.bf16 %v19404_v46  ;;  %v16640_v46 = vld.sshfl [vmem:[%s19422_s18] sm:$0x33 pattern:$0x75316420] }
 0x26e   : > { %13089 = vperm.xlu0 %17249, %v12997_v52   ;;  %v17298_v40 = vpop.permute.xlu0 %17297 }
 0x26f   : > { %v17300_v1 = vunpack.i.h.bf16 %v17298_v40  ;;  %v17299_v13 = vunpack.i.l.bf16 %v17298_v40  ;;  %v17269_v40 = vunpack.i.l.bf16 %v19400_v37  ;;  %v17289_v37 = vunpack.i.l.bf16 %v19402_v25 }
 0x271   : > { %v9361_v42 = vsel %vm9359_vm4, %v9352_v38, %v17300_v1  ;;  %v9360_v2 = vsel %vm9359_vm4, %v9351_v58, %v17299_v13  ;;  %v9347_v1 = vsel %vm807_vm0, %v19321_v0, %v17295_v12  ;;  %v9353_v13 = vsel %vm9350_vm3, %v9344_v23, %v17264_v29 }
 0x272   : > { %13099 = vperm.xlu0 %17249, %v12999_v39   ;;  %v17303_v44 = vpop.permute.xlu0 %17302  ;;  %v9804_v0 = vcombine.high %v16642_v17, %v16642_v17 }
 0x273   : > { %v17305_v36 = vunpack.i.h.bf16 %v17303_v44  ;;  %v17304_v30 = vunpack.i.l.bf16 %v17303_v44  ;;  %v9766_v44 = vcombine.high %v16640_v46, %v16640_v46 }
 0x274   : > { %v19484_v49 = vrot.slane %v9804_v0, %v17898_v43 }
 0x27c   : > { %v19406_v57 = vpop.permute.xlu1 %17307 }
 0x27d   : > { %v17310_v28 = vunpack.i.h.bf16 %v19406_v57  ;;  %v17309_v31 = vunpack.i.l.bf16 %v19406_v57  ;;  %v9346_v57 = vsel %vm807_vm0, %v9045_v11, %v17294_v55 }
 0x281   : > { %v19408_v15 = vpop.permute.xlu1 %17312 }
 0x282   : > { %v17315_v25 = vunpack.i.h.bf16 %v19408_v15 }
 0x284   : > { %v19432_v52 = vpop.permute.xlu0 %17327 }
 0x285   : > { %v17330_v12 = vunpack.i.h.bf16 %v19432_v52 }
 0x2a8   : > { %v17318_v4 = vpop.permute.xlu1 %17317 }
 0x2a9   : > { %v17320_v20 = vunpack.i.h.bf16 %v17318_v4  ;;  %v17319_v3 = vunpack.i.l.bf16 %v17318_v4  ;;  %v19459_v4 = vld.sshfl [vmem:[%s19422_s18 + $0x4] sm:$0x1 pattern:$0x75316420] }
 0x2ab   : > { %v9370_v63 = vsel %vm9368_vm5, %v9361_v42, %v17320_v20  ;;  %v9369_v10 = vsel %vm9368_vm5, %v9360_v2, %v17319_v3  ;;  %v9362_v3 = vsel %vm9359_vm4, %v9353_v13, %v17309_v31  ;;  %v17314_v42 = vunpack.i.l.bf16 %v19408_v15 }
 0x2ac   : > { %v17323_v51 = vpop.permute.xlu1 %17322  ;;  %v9378_v14 = vsel %vm9377_vm6, %v9369_v10, %v17304_v30  ;;  %v9379_v61 = vsel %vm9377_vm6, %v9370_v63, %v17305_v36  ;;  %v17333_v6 = vpop.permute.xlu0 %17332  ;;  %v19471_v63 = vrot.slane %v16640_v46, %v17898_v43  ;;  %v17329_v10 = vunpack.i.l.bf16 %v19432_v52 }
 0x2ad   : > { %v9387_v54 = vsel %vm9386_vm7, %v9378_v14, %v17259_v47  ;;  %v9388_v34 = vsel %vm9386_vm7, %v9379_v61, %v17260_v24  ;;  %v17324_v24 = vunpack.i.l.bf16 %v17323_v51  ;;  %v9354_v47 = vsel %vm9350_vm3, %v9345_v33, %v17265_v35 }
 0x2ae   : > { %v9396_v39 = vsel %vm9395_vm8, %v9387_v54, %v17279_v18  ;;  %v9397_v22 = vsel %vm9395_vm8, %v9388_v34, %v17280_v50  ;;  %v17325_v19 = vunpack.i.h.bf16 %v17323_v51  ;;  %v17335_v58 = vunpack.i.h.bf16 %v17333_v6 }
 0x2af   : > { %v9404_v45 = vpack.c.bf16 %v9397_v22, %v9396_v39  ;;  %v17334_v38 = vunpack.i.l.bf16 %v17333_v6  ;;  %v9363_v20 = vsel %vm9359_vm4, %v9354_v47, %v17310_v28  ;;  %v9355_v36 = vsel %vm9350_vm3, %v9346_v57, %v17324_v24  ;;  %v9117_v24 = vld [vmem:[#allocation2 + $0x81] sm:$0xff] }
 0x2b0   : > { %v19446_v56 = vpop.permute.xlu1 %17342  ;;  %v9372_v30 = vsel %vm9368_vm5, %v9363_v20, %v17335_v58  ;;  %v17338_v50 = vpop.permute.xlu0 %17337  ;;  %v9796_v15 = vrot.slane %v19459_v4, %v17898_v43  ;;  %v9356_v14 = vsel %vm9350_vm3, %v9347_v1, %v17325_v19  ;;  %v19480_v61 = vrot.slane %v9766_v44, %v17898_v43  ;;  %v16644_v1 = vld.sshfl [vmem:[%s19422_s18 + $0x10] sm:$0x33 pattern:$0x75316420] }
 0x2b1   : > { %9529 = vmatmul.mubr.bf16.vlgmr.msra.gmra.mrb[0].mxu0 %v9404_v45  ;;  %v9371_v5 = vsel %vm9368_vm5, %v9362_v3, %v17334_v38  ;;  %v9381_v51 = vsel %vm9377_vm6, %v9372_v30, %v17315_v25  ;;  %v9811_v35 = vrot.slane %v16642_v17, %v17898_v43  ;;  %v9364_v54 = vsel %vm9359_vm4, %v9355_v36, %v17329_v10  ;;  %v16646_v30 = vld.sshfl [vmem:[%s19422_s18 + $0x18] sm:$0x33 pattern:$0x75316420] }
 0x2b2   : > { %16635 = vmatprep.mubr.msk.bf16.mxu0 %vm807_vm0, %v9407_v21  ;;  %17067 = vmatpush3.bf16.msra.mxu0 %v17542_v41  ;;  %v9380_v18 = vsel %vm9377_vm6, %v9371_v5, %v17314_v42  ;;  %v9390_v23 = vsel %vm9386_vm7, %v9381_v51, %v17270_v26  ;;  %v17340_v29 = vunpack.i.h.bf16 %v17338_v50  ;;  %v17339_v33 = vunpack.i.l.bf16 %v17338_v50  ;;  %v16645_v42 = vld.sshfl [vmem:[%s19422_s18 + $0x14] sm:$0x1 pattern:$0x75316420] }
 0x2b3   : > { %v9389_v62 = vsel %vm9386_vm7, %v9380_v18, %v17269_v40  ;;  %v9399_v41 = vsel %vm9395_vm8, %v9390_v23, %v17290_v7  ;;  %v9365_v48 = vsel %vm9359_vm4, %v9356_v14, %v17330_v12  ;;  %v17345_v46 = vunpack.i.h.bf16 %v19446_v56 }
 0x2b4   : > { %v19465_v2 = vpop.permute.xlu1 %17352  ;;  %v9398_v22 = vsel %vm9395_vm8, %v9389_v62, %v17289_v37  ;;  %v17348_v45 = vpop.permute.xlu0 %17347  ;;  %v17344_v28 = vunpack.i.l.bf16 %v19446_v56  ;;  %v9819_v37 = vcombine.high %v9811_v35, %v9811_v35  ;;  %v11282_v57 = vcombine.low %v19471_v63, %v19480_v61 }
 0x2b5   : > { %v9406_v52 = vpack.c.bf16 %v9399_v41, %v9398_v22  ;;  %v17350_v31 = vunpack.i.h.bf16 %v17348_v45  ;;  %v17349_v21 = vunpack.i.l.bf16 %v17348_v45  ;;  %v17355_v47 = vunpack.i.h.bf16 %v19465_v2 }
 0x2b6   : > { %v17354_v6 = vunpack.i.l.bf16 %v19465_v2  ;;  %v9842_v38 = vcombine.high %v16644_v1, %v16644_v1  ;;  %v9411_v20 = vpack.c.bf16 %v9117_v24, %v19342_v53  ;;  %v16722_v3 = vcombine.high %v19471_v63, %v19480_v61 }
 0x2b7   : > { %v11284_v25 = vcombine.low %v9796_v15, %v9811_v35  ;;  %v11285_v2 = vcombine.low %v19484_v49, %v9819_v37  ;;  %v19519_v36 = vrot.slane %v11282_v57, %v17898_v43  ;;  %v9820_v5 = vcombine.high %v19484_v49, %v19484_v49  ;;  %v16647_v37 = vld.sshfl [vmem:[%s19422_s18 + $0x1c] sm:$0x1 pattern:$0x75316420] }
 0x2b8   : > { %v17363_v34 = vpop.permute.xlu1 %17362  ;;  %v17358_v44 = vpop.permute.xlu0 %17357  ;;  %v9349_v50 = vsel %vm807_vm0, %v19355_v60, %v17355_v47  ;;  %v9348_v53 = vsel %vm807_vm0, %v19317_v16, %v17354_v6  ;;  %v9849_v14 = vrot.slane %v16644_v1, %v17898_v43  ;;  %v9856_v61 = vrot.slane %v9842_v38, %v17898_v43  ;;  %v16650_v38 = vld.sshfl [vmem:[%s19422_s18 + $0x28] sm:$0x33 pattern:$0x75316420] }
 0x2b9   : > { %v17365_v55 = vunpack.i.h.bf16 %v17363_v34  ;;  %v17364_v39 = vunpack.i.l.bf16 %v17363_v34  ;;  %9537 = vmatmul.mubr.bf16.gmra.mrb[4].mxu0 %v9406_v52  ;;  %v17360_v19 = vunpack.i.h.bf16 %v17358_v44  ;;  %v17359_v58 = vunpack.i.l.bf16 %v17358_v44 }
 0x2ba   : > { %16636 = vmatprep.mubr.msk.bf16.mxu0 %vm807_vm0, %v9409_v8  ;;  %v16643_v8 = vld.sshfl [vmem:[%s19422_s18 + $0xc] sm:$0x1 pattern:$0x75316420]  ;;  %v11299_v49 = vrot.slane %v16722_v3, %v17898_v43  ;;  %v11306_v12 = vrot.slane %v11284_v25, %v17898_v43  ;;  %v9872_v60 = vrot.slane %v16645_v42, %v17898_v43  ;;  %v9887_v16 = vrot.slane %v16646_v30, %v17898_v43 }
 0x2bb   : > { %v9374_v40 = vsel %vm9368_vm5, %v9365_v48, %v17365_v55  ;;  %v9373_v26 = vsel %vm9368_vm5, %v9364_v54, %v17364_v39  ;;  %v9834_v10 = vrot.slane %v16643_v8, %v17898_v43  ;;  %v9358_v51 = vsel %vm9350_vm3, %v9349_v50, %v17360_v19 }
 0x2bc   : > { %v9383_v17 = vsel %vm9377_vm6, %v9374_v40, %v17340_v29  ;;  %v9382_v7 = vsel %vm9377_vm6, %v9373_v26, %v17339_v33  ;;  %v17368_v11 = vpop.permute.xlu1 %17367  ;;  %v9357_v15 = vsel %vm9350_vm3, %v9348_v53, %v17359_v58  ;;  %v11313_v23 = vrot.slane %v11285_v2, %v17898_v43 }
 0x2bd   : > { %v9391_v56 = vsel %vm9386_vm7, %v9382_v7, %v17344_v28  ;;  %v9392_v13 = vsel %vm9386_vm7, %v9383_v17, %v17345_v46  ;;  %v17370_v63 = vunpack.i.h.bf16 %v17368_v11  ;;  %v17369_v18 = vunpack.i.l.bf16 %v17368_v11  ;;  %v16648_v46 = vld.sshfl [vmem:[%s19422_s18 + $0x20] sm:$0x33 pattern:$0x75316420] }
 0x2be   : > { %v9400_v9 = vsel %vm9395_vm8, %v9391_v56, %v17349_v21  ;;  %v9401_v27 = vsel %vm9395_vm8, %v9392_v13, %v17350_v31  ;;  %v9880_v55 = vcombine.high %v16646_v30, %v16646_v30  ;;  %v11331_v48 = vcombine.low %v9820_v5, %v9834_v10  ;;  %v16652_v10 = vld.sshfl [vmem:[%s19422_s18 + $0x30] sm:$0x33 pattern:$0x75316420] }
 0x2bf   : > { %v9408_v0 = vpack.c.bf16 %v9401_v27, %v9400_v9  ;;  %v9367_v39 = vsel %vm9359_vm4, %v9358_v51, %v17370_v63  ;;  %v9366_v22 = vsel %vm9359_vm4, %v9357_v15, %v17369_v18  ;;  %v11332_v52 = vcombine.low %v9849_v14, %v9856_v61  ;;  %v16649_v18 = vld.sshfl [vmem:[%s19422_s18 + $0x24] sm:$0x1 pattern:$0x75316420] }
 0x2c0   : > { %v17373_v4 = vpop.permute.xlu1 %17372  ;;  %v16723_v31 = vcombine.high %v9849_v14, %v9856_v61  ;;  %v11334_v21 = vcombine.low %v9872_v60, %v9887_v16  ;;  %v11314_v11 = vcombine.low %v19519_v36, %v11299_v49  ;;  %v9894_v1 = vrot.slane %v9880_v55, %v17898_v43  ;;  %v16654_v14 = vld.sshfl [vmem:[%s19422_s18 + $0x38] sm:$0x33 pattern:$0x75316420] }
 0x2c1   : > { %9545 = vmatmul.mubr.bf16.gmra.mrb[8].mxu0 %v9408_v0  ;;  %v17375_v41 = vunpack.i.h.bf16 %v17373_v4  ;;  %v17374_v29 = vunpack.i.l.bf16 %v17373_v4  ;;  %v11315_v24 = vcombine.low %v11306_v12, %v11313_v23  ;;  %v9918_v57 = vcombine.high %v16648_v46, %v16648_v46 }
 0x2c2   : > { %16637 = vmatprep.mubr.msk.bf16.mxu0 %vm807_vm0, %v9411_v20  ;;  %v11341_v44 = vrot.slane %v11331_v48, %v17898_v43  ;;  %v11348_v9 = vrot.slane %v11332_v52, %v17898_v43  ;;  %v11355_v19 = vrot.slane %v16723_v31, %v17898_v43  ;;  %v11362_v58 = vrot.slane %v11334_v21, %v17898_v43  ;;  %v16653_v52 = vld.sshfl [vmem:[%s19422_s18 + $0x34] sm:$0x1 pattern:$0x75316420] }
 0x2c3   : > { %v9895_v0 = vcombine.high %v9887_v16, %v9887_v16  ;;  %v9896_v20 = vcombine.high %v9894_v1, %v9894_v1  ;;  %v9910_v3 = vrot.slane %v16647_v37, %v17898_v43  ;;  %v9925_v25 = vrot.slane %v16648_v46, %v17898_v43  ;;  %v16655_v21 = vld.sshfl [vmem:[%s19422_s18 + $0x3c] sm:$0x1 pattern:$0x75316420] }
 0x2c4   : > { %v17378_v35 = vpop.permute.xlu0 %17377  ;;  %v17388_v62 = vpop.permute.xlu1 %17387  ;;  %v9932_v42 = vrot.slane %v9918_v57, %v17898_v43  ;;  %v11322_v2 = vrot.slane %v11314_v11, %v17898_v43  ;;  %v11329_v36 = vrot.slane %v11315_v24, %v17898_v43  ;;  %v9956_v30 = vcombine.high %v16650_v38, %v16650_v38 }
 0x2c5   : > { %v17380_v54 = vunpack.i.h.bf16 %v17378_v35  ;;  %v17379_v34 = vunpack.i.l.bf16 %v17378_v35  ;;  %v17390_v28 = vunpack.i.h.bf16 %v17388_v62  ;;  %v17389_v40 = vunpack.i.l.bf16 %v17388_v62  ;;  %v16651_v35 = vld.sshfl [vmem:[%s19422_s18 + $0x2c] sm:$0x1 pattern:$0x75316420] }
 0x2c6   : > { %v11363_v5 = vcombine.low %v11341_v44, %v11348_v9  ;;  %v11364_v50 = vcombine.low %v11355_v19, %v11362_v58  ;;  %v11380_v53 = vcombine.low %v9894_v1, %v9895_v0  ;;  %v11381_v63 = vcombine.low %v9896_v20, %v9910_v3  ;;  %v16658_v19 = vld.sshfl [vmem:[%s19422_s18 + $0x48] sm:$0x33 pattern:$0x75316420] }
 0x2c7   : > { %v9376_v33 = vsel %vm9368_vm5, %v9367_v39, %v17380_v54  ;;  %v9375_v45 = vsel %vm9368_vm5, %v9366_v22, %v17379_v34  ;;  %v11382_v51 = vcombine.low %v9925_v25, %v9932_v42  ;;  %v16724_v15 = vcombine.high %v9925_v25, %v9932_v42 }
 0x2c8   : > { %v17383_v26 = vpop.permute.xlu0 %17382  ;;  %v9384_v56 = vsel %vm9377_vm6, %v9375_v45, %v17374_v29  ;;  %v9385_v13 = vsel %vm9377_vm6, %v9376_v33, %v17375_v41  ;;  %v11330_v61 = vcombine.low %v11322_v2, %v11329_v36  ;;  %v9963_v49 = vrot.slane %v16650_v38, %v17898_v43 }
 0x2c9   : > { %v17385_v17 = vunpack.i.h.bf16 %v17383_v26  ;;  %v17384_v7 = vunpack.i.l.bf16 %v17383_v26  ;;  %v9970_v12 = vrot.slane %v9956_v30, %v17898_v43  ;;  %v9994_v60 = vcombine.high %v16652_v10, %v16652_v10  ;;  %v16657_v30 = vld.sshfl [vmem:[%s19422_s18 + $0x44] sm:$0x1 pattern:$0x75316420] }
 0x2ca   : > { %v11371_v16 = vrot.slane %v11363_v5, %v17898_v43  ;;  %v11378_v54 = vrot.slane %v11364_v50, %v17898_v43  ;;  %v11390_v34 = vrot.slane %v11380_v53, %v17898_v43  ;;  %v11397_v62 = vrot.slane %v11381_v63, %v17898_v43 }
 0x2cb   : > { %v9393_v47 = vsel %vm9386_vm7, %v9384_v56, %v17384_v7  ;;  %v9394_v6 = vsel %vm9386_vm7, %v9385_v13, %v17385_v17  ;;  %v10032_v23 = vcombine.high %v16654_v14, %v16654_v14  ;;  %v11404_v55 = vrot.slane %v11382_v51, %v17898_v43 }
 0x2cc   : > { %v9402_v27 = vsel %vm9395_vm8, %v9393_v47, %v17389_v40  ;;  %v9403_v8 = vsel %vm9395_vm8, %v9394_v6, %v17390_v28  ;;  %v11411_v39 = vrot.slane %v16724_v15, %v17898_v43  ;;  %v9948_v22 = vrot.slane %v16649_v18, %v17898_v43  ;;  %v16656_v6 = vld.sshfl [vmem:[%s19422_s18 + $0x40] sm:$0x33 pattern:$0x75316420] }
 0x2cd   : > { %v9410_v4 = vpack.c.bf16 %v9403_v8, %v9402_v27  ;;  %v9986_v41 = vrot.slane %v16651_v35, %v17898_v43  ;;  %v9971_v29 = vcombine.high %v9963_v49, %v9963_v49  ;;  %v9972_v33 = vcombine.high %v9970_v12, %v9970_v12 }
 0x2ce   : > { %v10001_v45 = vrot.slane %v16652_v10, %v17898_v43  ;;  %v10008_v48 = vrot.slane %v9994_v60, %v17898_v43  ;;  %v10039_v46 = vrot.slane %v16654_v14, %v17898_v43  ;;  %v10046_v28 = vrot.slane %v10032_v23, %v17898_v43  ;;  %v16659_v23 = vld.sshfl [vmem:[%s19422_s18 + $0x4c] sm:$0x1 pattern:$0x75316420] }
 0x2cf   : > { %9553 = vmatmul.mubr.bf16.gmra.mrb[12].mxu0 %v9410_v4  ;;  %v11379_v40 = vcombine.low %v11371_v16, %v11378_v54  ;;  %v11412_v26 = vcombine.low %v11390_v34, %v11397_v62  ;;  %v11413_v31 = vcombine.low %v11404_v55, %v11411_v39  ;;  %v11429_v17 = vcombine.low %v9948_v22, %v9963_v49  ;;  %v16660_v49 = vld.sshfl [vmem:[%s19422_s18 + $0x50] sm:$0x33 pattern:$0x75316420] }
 0x2d0   : > { %17068 = vmatprep.mubr.msk.bf16.mxu0 %vm17639_vm1, %v20744_v32  ;;  %v11430_v7 = vcombine.low %v9970_v12, %v9971_v29  ;;  %v11431_v11 = vcombine.low %v9972_v33, %v9986_v41  ;;  %v11432_v1 = vcombine.low %v10001_v45, %v10008_v48  ;;  %v10024_v56 = vrot.slane %v16653_v52, %v17898_v43  ;;  %v16661_v39 = vld.sshfl [vmem:[%s19422_s18 + $0x54] sm:$0x1 pattern:$0x75316420] }
 0x2d1   : > { %v10047_v13 = vcombine.high %v10039_v46, %v10039_v46  ;;  %v10048_v24 = vcombine.high %v10046_v28, %v10046_v28  ;;  %v10062_v37 = vrot.slane %v16655_v21, %v17898_v43  ;;  %v11420_v57 = vrot.slane %v11412_v26, %v17898_v43  ;;  %v19620_v41 = vld.sshfl [vmem:[%s19422_s18 + $0x58] sm:$0x33 pattern:$0x75316420] }
 0x2d2   : > { %v11427_v47 = vrot.slane %v11413_v31, %v17898_v43  ;;  %v11439_v44 = vrot.slane %v11429_v17, %v17898_v43  ;;  %v11446_v9 = vrot.slane %v11430_v7, %v17898_v43  ;;  %v11453_v27 = vrot.slane %v11431_v11, %v17898_v43 }
 0x2d3   : > { %v11460_v8 = vrot.slane %v11432_v1, %v17898_v43  ;;  %v16725_v58 = vcombine.high %v10001_v45, %v10008_v48  ;;  %v11479_v38 = vcombine.low %v10024_v56, %v10039_v46  ;;  %v11480_v4 = vcombine.low %v10046_v28, %v10047_v13 }
 0x2d4   : > { %v11481_v0 = vcombine.low %v10048_v24, %v10062_v37  ;;  %v10070_v20 = vcombine.high %v16656_v6, %v16656_v6  ;;  %v10108_v3 = vcombine.high %v16658_v19, %v16658_v19  ;;  %v10115_v25 = vrot.slane %v16658_v19, %v17898_v43 }
 0x2d5   : > { %v11428_v42 = vcombine.low %v11420_v57, %v11427_v47  ;;  %v11461_v2 = vcombine.low %v11439_v44, %v11446_v9  ;;  %v11462_v36 = vcombine.low %v11453_v27, %v11460_v8  ;;  %v11488_v5 = vrot.slane %v16725_v58, %v17898_v43 }
 0x2d6   : > { %v11495_v10 = vrot.slane %v11479_v38, %v17898_v43  ;;  %v11502_v50 = vrot.slane %v11480_v4, %v17898_v43  ;;  %v11509_v53 = vrot.slane %v11481_v0, %v17898_v43  ;;  %v10077_v63 = vrot.slane %v16656_v6, %v17898_v43 }
 0x2d7   : > { %17069 = vmatmul.mubr.msk.bf16.vlgmr.msra.gmra.mrb[16].mxu0 %vm807_vm0, %v11330_v61  ;;  %v10084_v18 = vrot.slane %v10070_v20, %v17898_v43  ;;  %v10100_v51 = vrot.slane %v16657_v30, %v17898_v43  ;;  %v10122_v15 = vrot.slane %v10108_v3, %v17898_v43  ;;  %v10123_v14 = vcombine.high %v10115_v25, %v10115_v25  ;;  %v17543_v20 = vld [vmem:[%s20658_s8 + $0x48] sm:$0xff]   ;;  %v17544_v3 = vld [vmem:[%s20658_s8 + $0x50] sm:$0xff]  }
 0x2d8   : > { %17072 = vmatprep.mubr.msk.bf16.mxu0 %vm17639_vm1, %v20744_v32  ;;  %v11469_v61 = vrot.slane %v11461_v2, %v17898_v43  ;;  %v11476_v35 = vrot.slane %v11462_v36, %v17898_v43  ;;  %v11510_v12 = vcombine.low %v11488_v5, %v11495_v10  ;;  %v11511_v60 = vcombine.low %v11502_v50, %v11509_v53  ;;  %v20751_v36 = vld [vmem:[#allocation17_spill] sm:$0xff] }
 0x2d9   : > { %v11527_v16 = vcombine.low %v10077_v63, %v10084_v18  ;;  %v16726_v54 = vcombine.high %v10077_v63, %v10084_v18  ;;  %v11529_v34 = vcombine.low %v10100_v51, %v10115_v25  ;;  %v11530_v62 = vcombine.low %v10122_v15, %v10123_v14  ;;  %15806 = vmatpush1.bf16.msra.mxu1 %v17543_v20  ;;  %v16465_v25 = vld.sshfl [vmem:[%s17869_s1 + $0x11c] sm:$0x1 pattern:$0x75316420]  ;;  %v17546_v14 = vld [vmem:[%s20658_s8 + $0x60] sm:$0xff]  }
 0x2da   : > { %v11477_v55 = vcombine.low %v11469_v61, %v11476_v35  ;;  %v10146_v22 = vcombine.high %v16660_v49, %v16660_v49  ;;  %v11518_v29 = vrot.slane %v11510_v12, %v17898_v43  ;;  %v11525_v33 = vrot.slane %v11511_v60, %v17898_v43  ;;  %15807 = vmatprep.subr.bf16.mxu1 %v20743_v59  ;;  %v17545_v63 = vld [vmem:[%s20658_s8 + $0x58] sm:$0xff]   ;;  %v17547_v60 = vld [vmem:[%s20658_s8 + $0x68] sm:$0xff]  }
 0x2db   : > { %v11537_v45 = vrot.slane %v11527_v16, %v17898_v43  ;;  %v11544_v48 = vrot.slane %v16726_v54, %v17898_v43  ;;  %v11551_v52 = vrot.slane %v11529_v34, %v17898_v43  ;;  %v11558_v46 = vrot.slane %v11530_v62, %v17898_v43  ;;  %v17548_v16 = vld [vmem:[%s20658_s8 + $0x70] sm:$0xff]   ;;  %v17549_v54 = vld [vmem:[%s20658_s8 + $0x78] sm:$0xff]  }
 0x2dc   : > { %v10124_v28 = vcombine.high %v10122_v15, %v10122_v15  ;;  %v10153_v26 = vrot.slane %v16660_v49, %v17898_v43  ;;  %v10160_v31 = vrot.slane %v10146_v22, %v17898_v43  ;;  %v10176_v21 = vrot.slane %v16661_v39, %v17898_v43 }
 0x2dd   : > { %v19635_v17 = vrot.slane %v19620_v41, %v17898_v43  ;;  %v11526_v7 = vcombine.low %v11518_v29, %v11525_v33  ;;  %v11559_v11 = vcombine.low %v11537_v45, %v11544_v48  ;;  %v11560_v1 = vcombine.low %v11551_v52, %v11558_v46  ;;  %15808 = vmatpush1.bf16.msra.mxu1 %v17544_v3 }
 0x2de   : > { %v11577_v13 = vcombine.low %v10153_v26, %v10160_v31  ;;  %v16727_v24 = vcombine.high %v10153_v26, %v10160_v31  ;;  %15809 = vmatprep.subr.bf16.mxu1 %v20743_v59  ;;  %v2747_v30 = vunpack.i.h.s16 %v20751_v36  ;;  %v2426_v5 = vrot.slane %v16465_v25, %v17898_v43  ;;  %v19716_v31 = vld [vmem:[%s20656_s6 + $0x1] ss:$0 sm:$0xff] }
 0x2df   : > { %17073 = vmatmul.mubr.msk.bf16.gmra.mrb[20].mxu0 %vm807_vm0, %v11379_v40  ;;  %v10138_v40 = vrot.slane %v16659_v23, %v17898_v43  ;;  %v11579_v37 = vcombine.low %v10176_v21, %v19635_v17  ;;  %v11567_v57 = vrot.slane %v11559_v11, %v17898_v43  ;;  %v11574_v47 = vrot.slane %v11560_v1, %v17898_v43  ;;  %v19721_v21 = vld [vmem:[%s20657_s7 + $0x1] ss:$0 sm:$0xff] }
 0x2e0   : > { %17076 = vmatprep.mubr.msk.bf16.mxu0 %vm17639_vm1, %v20744_v32  ;;  %v11593_v44 = vrot.slane %v11577_v13, %v17898_v43  ;;  %v11600_v9 = vrot.slane %v16727_v24, %v17898_v43 }
 0x2e1   : > { %v11576_v56 = vcombine.low %v10124_v28, %v10138_v40  ;;  %v11607_v27 = vrot.slane %v11579_v37, %v17898_v43  ;;  %v11575_v8 = vcombine.low %v11567_v57, %v11574_v47  ;;  %15810 = vmatpush1.bf16.msra.mxu1 %v17545_v63  ;;  %v17647_v40 = vmov 1983009808   ;;  %v20752_v47 = vld [vmem:[#allocation15_spill] sm:$0xff] }
 0x2e2   : > { %15811 = vmatprep.subr.bf16.mxu1 %v20743_v59  ;;  %v13389_v26 = vunpack.c.l.s4 %v17647_v40 }
 0x2e3   : > { %v11586_v6 = vrot.slane %v11576_v56, %v17898_v43  ;;  %v11609_v58 = vcombine.low %v11600_v9, %v11607_v27  ;;  %v13040_v9 = vpop.permute.xlu0 %13039 }
 0x2e4   : > { %v13390_v11 = vunpack.c.0.s8 %v13389_v26 }
 0x2e5   : > { %v11608_v19 = vcombine.low %v11586_v6, %v11593_v44  ;;  %v11623_v4 = vrot.slane %v11609_v58, %v17898_v43  ;;  %15812 = vmatpush1.bf16.msra.mxu1 %v17546_v14 }
 0x2e6   : > { %15813 = vmatprep.subr.bf16.mxu1 %v20743_v59  ;;  %v19727_v6 = vsub.s32 %v13390_v11, %v20752_v47 }
 0x2e7   : > { %17077 = vmatmul.mubr.msk.bf16.gmra.mrb[24].mxu0 %vm807_vm0, %v11428_v42  ;;  %v11616_v38 = vrot.slane %v11608_v19, %v17898_v43  ;;  %v20750_v42 = vld [vmem:[#allocation16_spill] sm:$0xff]  ;;  %v13045_v19 = vpop.permute.xlu1 %13044 }
 0x2e8   : > { %17080 = vmatprep.mubr.msk.bf16.mxu0 %vm17639_vm1, %v20744_v32  ;;  %v2412_v2 = vcombine.high %v20750_v42, %v20750_v42 }
 0x2e9   : > { %v11624_v0 = vcombine.low %v11616_v38, %v11623_v4  ;;  %15814 = vmatpush1.bf16.msra.mxu1 %v17547_v60 }
 0x2ea   : > { %v2749_v10 = vunpack.i.h.s16 %v2412_v2  ;;  %v16554_v50 = vpack.i.b16 %v2412_v2, %v2747_v30  ;;  %15815 = vmatprep.subr.bf16.mxu1 %v20743_v59 }
 0x2ec   : > { %v16555_v53 = vpack.i.b16 %v2426_v5, %v2749_v10 }
 0x2ed   : > { %15816 = vmatpush1.bf16.msra.mxu1 %v17548_v16 }
 0x2ee   : > { %v3895_v18 = vcombine.low %v16554_v50, %v16555_v53  ;;  %15817 = vmatprep.subr.bf16.mxu1 %v20743_v59 }
 0x2ef   : > { %17081 = vmatmul.mubr.msk.bf16.gmra.mrb[28].mxu0 %vm807_vm0, %v11477_v55  ;;  %v17550_v55 = vld [vmem:[%s20658_s8 + $0x80] sm:$0xff]  }
 0x2f0   : > { %17084 = vmatprep.mubr.msk.bf16.mxu0 %vm17639_vm1, %v20744_v32  ;;  %v3902_v51 = vrot.slane %v3895_v18, %v17898_v43 }
 0x2f1   : > { %15818 = vmatpush1.bf16.msra.mxu1 %v17549_v54 }
 0x2f2   : > { %v3909_v15 = vrot.slane %v3902_v51, %v17898_v43  ;;  %15819 = vmatprep.subr.bf16.mxu1 %v20743_v59 }
 0x2f4   : > { %17063 = vmatmul.mubr.msk.bf16.gmra.mrb[88].mxu1 %vm807_vm0, %v3909_v15 }
 0x2f5   : > { %15820 = vmatpush1.bf16.msra.mxu1 %v17550_v55  ;;  %v13055_v55 = vpop.permute.xlu1 %13054 }
 0x2f6   : > { %15821 = vmatprep.subr.bf16.mxu1 %v20743_v59 }
 0x2f7   : > { %17085 = vmatmul.mubr.msk.bf16.gmra.mrb[32].mxu0 %vm807_vm0, %v11526_v7 }
 0x2f8   : > { %17088 = vmatprep.mubr.msk.bf16.mxu0 %vm17639_vm1, %v20744_v32 }
 0x2ff   : > { %17089 = vmatmul.mubr.msk.bf16.gmra.mrb[36].mxu0 %vm807_vm0, %v11575_v8 }
 0x300   : > { %17092 = vmatprep.mubr.msk.bf16.mxu0 %vm17639_vm1, %v20744_v32 }
 0x307   : > { %17093 = vmatmul.mubr.msk.bf16.gmra.mrb[40].mxu0 %vm807_vm0, %v11624_v0 }
 0x308   : > { %17096 = vmatprep.mubr.msk.bf16.mxu0 %vm17639_vm1, %v20744_v32 }
 0x384   : > { %v19681_v61 = vpop.f32.mrb[0].mxu0 }
 0x385   : > { %v9532_v35 = vpop.f32.mrb[1].mxu0 }
 0x386   : > { %v19683_v49 = vpop.f32.mrb[2].mxu0 }
 0x387   : > { %v9535_v12 = vpop.f32.mrb[3].mxu0 }
 0x388   : > { %v13050_v12 = vpop.permute.xlu0 %13049 }
 0x38c   : > { %v19696_v34 = vpop.f32.mrb[4].mxu0 }
 0x38d   : > { %v9540_v62 = vpop.f32.mrb[5].mxu0 }
 0x38e   : > { %v19698_v23 = vpop.f32.mrb[6].mxu0 }
 0x38f   : > { %v9543_v39 = vpop.f32.mrb[7].mxu0 }
 0x394   : > { %v19705_v22 = vpop.f32.mrb[8].mxu0 }
 0x395   : > { %v9548_v29 = vpop.f32.mrb[9].mxu0 }
 0x396   : > { %v19707_v33 = vpop.f32.mrb[10].mxu0 }
 0x397   : > { %v9551_v45 = vpop.f32.mrb[11].mxu0 }
 0x3a2   : > { %v19709_v48 = vpop.f32.mrb[12].mxu0 }
 0x3a3   : > { %v9556_v52 = vpop.f32.mrb[13].mxu0 }
 0x3a4   : > { %v19711_v46 = vpop.f32.mrb[14].mxu0 }
 0x3a5   : > { %v9559_v28 = vpop.f32.mrb[15].mxu0 }
 0x3aa   : > { %v12622_v59 = vpop.f32.mrb[16].mxu0 }
 0x3ab   : > { %v12829_v7 = vmul.f32 %v19716_v31, %v12622_v59  ;;  %v17070_v1 = vpop.f32.mrb[17].mxu0 }
 0x3ac   : > { %v12625_v56 = vpop.f32.mrb[18].mxu0 }
 0x3ad   : > { %v12887_v13 = vadd.f32 %v19721_v21, %v12829_v7  ;;  %v12830_v24 = vmul.f32 %v19716_v31, %v12625_v56  ;;  %v17071_v37 = vpop.f32.mrb[19].mxu0 }
 0x3af   : > { %v12937_v57 = vmax.f32 %v12887_v13, 0.0  ;;  %v12888_v44 = vadd.f32 %v19721_v21, %v12830_v24 }
 0x3b1   : > { %v13287_v27 = vmul.f32 %v13040_v9, %v12937_v57  ;;  %v12938_v8 = vmax.f32 %v12888_v44, 0.0 }
 0x3b2   : > { %v12630_v58 = vpop.f32.mrb[20].mxu0 }
 0x3b3   : > { %v13387_v38 = vcombine.high %v13287_v27, %v13287_v27  ;;  %v13394_v4 = vrot.slane %v13287_v27, %v19727_v6  ;;  %v13288_v0 = vmul.f32 %v13045_v19, %v12938_v8  ;;  %v12831_v20 = vmul.f32 %v19716_v31, %v12630_v58  ;;  %v17074_v3 = vpop.f32.mrb[21].mxu0 }
 0x3b4   : > { %v12633_v25 = vpop.f32.mrb[22].mxu0 }
 0x3b5   : > { %v13401_v42 = vrot.slane %v13387_v38, %v19727_v6  ;;  %v13402_v2 = vcombine.high %v13394_v4, %v13394_v4  ;;  %v13404_v36 = vcombine.high %v13288_v0, %v13288_v0  ;;  %v13411_v30 = vrot.slane %v13288_v0, %v19727_v6  ;;  %v17075_v5 = vpop.f32.mrb[23].mxu0  ;;  %v13060_v38 = vpop.permute.xlu0 %13059 }
 0x3b6   : > { %v12889_v10 = vadd.f32 %v19721_v21, %v12831_v20  ;;  %v12832_v50 = vmul.f32 %v19716_v31, %v12633_v25 }
 0x3b7   : > { %v13403_v53 = vcombine.high %v13401_v42, %v13401_v42  ;;  %v14237_v63 = vcombine.low %v13394_v4, %v13402_v2  ;;  %v13418_v18 = vrot.slane %v13404_v36, %v19727_v6  ;;  %v13419_v51 = vcombine.high %v13411_v30, %v13411_v30  ;;  %v13065_v36 = vpop.permute.xlu1 %13064 }
 0x3b8   : > { %v14260_v15 = vrot.slane %v13411_v30, %v19727_v6  ;;  %v12939_v14 = vmax.f32 %v12889_v10, 0.0  ;;  %v12890_v35 = vadd.f32 %v19721_v21, %v12832_v50 }
 0x3b9   : > { %v14238_v60 = vcombine.low %v13401_v42, %v13403_v53  ;;  %v14245_v39 = vrot.slane %v14237_v63, %v19727_v6  ;;  %v14261_v45 = vcombine.low %v13419_v51, %v13418_v18  ;;  %v13420_v40 = vcombine.high %v13418_v18, %v13418_v18 }
 0x3ba   : > { %15279 = vst.msk [vmem:[#allocation3 + $0x8] sm:$0x3] %vm15278_vm9, %v14260_v15  ;;  %v13289_v16 = vmul.f32 %v13050_v12, %v12939_v14  ;;  %v12940_v54 = vmax.f32 %v12890_v35, 0.0  ;;  %v12638_v62 = vpop.f32.mrb[24].mxu0 }
 0x3bb   : > { %v14252_v29 = vrot.slane %v14238_v60, %v19727_v6  ;;  %v12833_v52 = vmul.f32 %v19716_v31, %v12638_v62  ;;  %v17078_v28 = vpop.f32.mrb[25].mxu0  ;;  %v14269_v27 = vrot.slane %v14261_v45, %v19727_v6 }
 0x3bc   : > { %v13421_v26 = vcombine.high %v13289_v16, %v13289_v16  ;;  %v13428_v59 = vrot.slane %v13289_v16, %v19727_v6  ;;  %v13290_v7 = vmul.f32 %v13055_v55, %v12940_v54  ;;  %v12641_v11 = vpop.f32.mrb[26].mxu0 }
 0x3bd   : > { %v14253_v1 = vcombine.low %v14245_v39, %v14252_v29  ;;  %v12891_v56 = vadd.f32 %v19721_v21, %v12833_v52  ;;  %v12834_v13 = vmul.f32 %v19716_v31, %v12641_v11  ;;  %v17079_v24 = vpop.f32.mrb[27].mxu0 }
 0x3be   : > { %v13435_v37 = vrot.slane %v13421_v26, %v19727_v6  ;;  %v13436_v57 = vcombine.high %v13428_v59, %v13428_v59  ;;  %v14262_v44 = vcombine.low %v13420_v40, %v13428_v59  ;;  %v13438_v9 = vcombine.high %v13290_v7, %v13290_v7 }
 0x3bf   : > { %15277 = vst.msk [vmem:[#allocation3] sm:$0xff] %vm807_vm0, %v14253_v1  ;;  %v13445_v8 = vrot.slane %v13290_v7, %v19727_v6  ;;  %v12941_v19 = vmax.f32 %v12891_v56, 0.0  ;;  %v12892_v58 = vadd.f32 %v19721_v21, %v12834_v13  ;;  %v13070_v13 = vpop.permute.xlu0 %13069 }
 0x3c0   : > { %v13437_v4 = vcombine.high %v13435_v37, %v13435_v37  ;;  %v14276_v0 = vrot.slane %v14262_v44, %v19727_v6  ;;  %v14284_v20 = vrot.slane %v13436_v57, %v19727_v6  ;;  %v13452_v3 = vrot.slane %v13438_v9, %v19727_v6 }
 0x3c1   : > { %v13453_v25 = vcombine.high %v13445_v8, %v13445_v8  ;;  %v13291_v42 = vmul.f32 %v13060_v38, %v12941_v19  ;;  %v12942_v2 = vmax.f32 %v12892_v58, 0.0 }
 0x3c2   : > { %v14277_v30 = vcombine.low %v14269_v27, %v14276_v0  ;;  %v14285_v5 = vcombine.low %v13435_v37, %v13437_v4  ;;  %15281 = vst.msk [vmem:[#allocation3 + $0x18] sm:$0x3] %vm15278_vm9, %v14284_v20  ;;  %v14308_v10 = vrot.slane %v13452_v3, %v19727_v6  ;;  %v13454_v50 = vcombine.high %v13452_v3, %v13452_v3  ;;  %v12646_v53 = vpop.f32.mrb[28].mxu0  ;;  %v13075_v20 = vpop.permute.xlu1 %13074 }
 0x3c3   : > { %v14286_v63 = vcombine.low %v13445_v8, %v13453_v25  ;;  %v13455_v18 = vcombine.high %v13291_v42, %v13291_v42  ;;  %v13462_v51 = vrot.slane %v13291_v42, %v19727_v6  ;;  %v13292_v15 = vmul.f32 %v13065_v36, %v12942_v2  ;;  %v17082_v14 = vpop.f32.mrb[29].mxu0 }
 0x3c4   : > { %v14293_v35 = vrot.slane %v14285_v5, %v19727_v6  ;;  %15280 = vst.msk [vmem:[#allocation3 + $0x10] sm:$0xff] %vm807_vm0, %v14277_v30  ;;  %v12835_v12 = vmul.f32 %v19716_v31, %v12646_v53  ;;  %v12649_v60 = vpop.f32.mrb[30].mxu0 }
 0x3c5   : > { %15283 = vst.msk [vmem:[#allocation3 + $0x28] sm:$0x3] %vm15278_vm9, %v14308_v10  ;;  %v14300_v16 = vrot.slane %v14286_v63, %v19727_v6  ;;  %v13469_v54 = vrot.slane %v13455_v18, %v19727_v6  ;;  %v13470_v62 = vcombine.high %v13462_v51, %v13462_v51  ;;  %v14309_v55 = vcombine.low %v13454_v50, %v13462_v51  ;;  %v17083_v39 = vpop.f32.mrb[31].mxu0 }
 0x3c6   : > { %v13472_v29 = vcombine.high %v13292_v15, %v13292_v15  ;;  %v13479_v45 = vrot.slane %v13292_v15, %v19727_v6  ;;  %v12893_v52 = vadd.f32 %v19721_v21, %v12835_v12  ;;  %v12836_v28 = vmul.f32 %v19716_v31, %v12649_v60  ;;  %v15374_v30 = vld [vmem:[#allocation3 + $0x2] sm:$0xff] }
 0x3c7   : > { %v14301_v40 = vcombine.low %v14293_v35, %v14300_v16  ;;  %v13471_v26 = vcombine.high %v13469_v54, %v13469_v54  ;;  %v14310_v59 = vcombine.low %v13470_v62, %v13469_v54  ;;  %v14317_v24 = vrot.slane %v14309_v55, %v19727_v6  ;;  %v15366_v62 = vld [vmem:[#allocation3 + $0x1] sm:$0xff]  ;;  %v13080_v55 = vpop.permute.xlu0 %13079 }
 0x3c8   : > { %v13486_v7 = vrot.slane %v13472_v29, %v19727_v6  ;;  %v13487_v11 = vcombine.high %v13479_v45, %v13479_v45  ;;  %v12943_v1 = vmax.f32 %v12893_v52, 0.0  ;;  %v12894_v56 = vadd.f32 %v19721_v21, %v12836_v28 }
 0x3c9   : > { %15282 = vst.msk [vmem:[#allocation3 + $0x20] sm:$0xff] %vm807_vm0, %v14301_v40  ;;  %v14324_v37 = vrot.slane %v14310_v59, %v19727_v6  ;;  %v14332_v57 = vrot.slane %v13471_v26, %v19727_v6 }
 0x3ca   : > { %v13488_v44 = vcombine.high %v13486_v7, %v13486_v7  ;;  %v14333_v9 = vcombine.low %v13479_v45, %v13487_v11  ;;  %v13293_v27 = vmul.f32 %v13070_v13, %v12943_v1  ;;  %v12944_v8 = vmax.f32 %v12894_v56, 0.0  ;;  %v12654_v19 = vpop.f32.mrb[32].mxu0 }
 0x3cb   : > { %v14325_v58 = vcombine.low %v14317_v24, %v14324_v37  ;;  %15285 = vst.msk [vmem:[#allocation3 + $0x38] sm:$0x3] %vm15278_vm9, %v14332_v57  ;;  %v12837_v38 = vmul.f32 %v19716_v31, %v12654_v19  ;;  %v17086_v4 = vpop.f32.mrb[33].mxu0  ;;  %v19774_v0 = vld [vmem:[#allocation3 + $0x12] sm:$0xff] }
 0x3cc   : > { %v14334_v3 = vcombine.low %v13486_v7, %v13488_v44  ;;  %v14341_v25 = vrot.slane %v14333_v9, %v19727_v6  ;;  %v13489_v42 = vcombine.high %v13293_v27, %v13293_v27  ;;  %v13496_v2 = vrot.slane %v13293_v27, %v19727_v6  ;;  %v12657_v36 = vpop.f32.mrb[34].mxu0  ;;  %v15367_v63 = vld [vmem:[#allocation3 + $0x11] sm:$0xff]  ;;  %v13085_v9 = vpop.permute.xlu1 %13084 }
 0x3cd   : > { %15284 = vst.msk [vmem:[#allocation3 + $0x30] sm:$0xff] %vm807_vm0, %v14325_v58  ;;  %v13294_v5 = vmul.f32 %v13075_v20, %v12944_v8  ;;  %v12895_v10 = vadd.f32 %v19721_v21, %v12837_v38  ;;  %v12838_v50 = vmul.f32 %v19716_v31, %v12657_v36  ;;  %v17396_v53 = vpack.i.bf16 %v19774_v0, %v15374_v30  ;;  %v17087_v18 = vpop.f32.mrb[35].mxu0  ;;  %v19794_v1 = vld [vmem:[#allocation3 + $0x10] sm:$0xff] }
 0x3ce   : > { %v14348_v51 = vrot.slane %v14334_v3, %v19727_v6  ;;  %v13503_v15 = vrot.slane %v13489_v42, %v19727_v6  ;;  %v13504_v14 = vcombine.high %v13496_v2, %v13496_v2  ;;  %v14356_v35 = vrot.slane %v13496_v2, %v19727_v6 }
 0x3cf   : > { %v13506_v12 = vcombine.high %v13294_v5, %v13294_v5  ;;  %v13513_v60 = vrot.slane %v13294_v5, %v19727_v6  ;;  %v12945_v16 = vmax.f32 %v12895_v10, 0.0  ;;  %v12896_v54 = vadd.f32 %v19721_v21, %v12838_v50  ;;  %17397 = vrot.lane.b32.xlu0 %v17396_v53, %s20753_s17  ;;  %v17551_v50 = vld [vmem:[%s20658_s8 + $0x88] sm:$0xff]  }
 0x3d0   : > { %v14349_v39 = vcombine.low %v14341_v25, %v14348_v51  ;;  %v14357_v29 = vcombine.low %v13504_v14, %v13503_v15  ;;  %15287 = vst.msk [vmem:[#allocation3 + $0x48] sm:$0x3] %vm15278_vm9, %v14356_v35  ;;  %v13505_v45 = vcombine.high %v13503_v15, %v13503_v15  ;;  %v17391_v52 = vpack.i.bf16 %v15367_v63, %v15366_v62  ;;  %v19789_v28 = vld [vmem:[#allocation3 + $0x20] sm:$0xff] }
 0x3d1   : > { %v19791_v40 = vld [vmem:[#allocation3 + $0x21] sm:$0xff]  ;;  %v13520_v26 = vrot.slane %v13506_v12, %v19727_v6  ;;  %v13521_v59 = vcombine.high %v13513_v60, %v13513_v60  ;;  %v13295_v7 = vmul.f32 %v13080_v55, %v12945_v16  ;;  %v12946_v11 = vmax.f32 %v12896_v54, 0.0  ;;  %15822 = vmatpush1.bf16.msra.mxu1 %v17551_v50 }
 0x3d2   : > { %v19796_v56 = vld [vmem:[#allocation3 + $0x22] sm:$0xff]  ;;  %15286 = vst.msk [vmem:[#allocation3 + $0x40] sm:$0xff] %vm807_vm0, %v14349_v39  ;;  %v14365_v13 = vrot.slane %v14357_v29, %v19727_v6  ;;  %v14358_v24 = vcombine.low %v13505_v45, %v13513_v60  ;;  %17392 = vrot.lane.b32.xlu1 %v17391_v52, %s20745_s30  ;;  %v17401_v37 = vpack.i.bf16 %v19789_v28, %v19794_v1  ;;  %v12662_v44 = vpop.f32.mrb[36].mxu0  ;;  %v13090_v29 = vpop.permute.xlu0 %13089 }
 0x3d3   : > { %v17406_v57 = vpack.i.bf16 %v19791_v40, %v15367_v63  ;;  %v13522_v27 = vcombine.high %v13520_v26, %v13520_v26  ;;  %v14380_v8 = vrot.slane %v13521_v59, %v19727_v6  ;;  %v13523_v19 = vcombine.high %v13295_v7, %v13295_v7  ;;  %v17090_v38 = vpop.f32.mrb[37].mxu0  ;;  %17168 = vmatprep.subr.bf16.mxu1 %v20744_v32 }
 0x3d4   : > { %v13530_v58 = vrot.slane %v13295_v7, %v19727_v6  ;;  %v14372_v4 = vrot.slane %v14358_v24, %v19727_v6  ;;  %v13296_v20 = vmul.f32 %v13085_v9, %v12946_v11  ;;  %v12839_v3 = vmul.f32 %v19716_v31, %v12662_v44  ;;  %v12665_v25 = vpop.f32.mrb[38].mxu0  ;;  %v19820_v51 = vld [vmem:[#allocation3 + $0x30] sm:$0xff] }
 0x3d5   : > { %17407 = vrot.lane.b32.xlu0 %v17406_v57, %s20754_s20  ;;  %v17411_v42 = vpack.i.bf16 %v19796_v56, %v19774_v0  ;;  %v14381_v2 = vcombine.low %v13520_v26, %v13522_v27  ;;  %15289 = vst.msk [vmem:[#allocation3 + $0x58] sm:$0x3] %vm15278_vm9, %v14380_v8  ;;  %v13537_v36 = vrot.slane %v13523_v19, %v19727_v6  ;;  %v17091_v10 = vpop.f32.mrb[39].mxu0  ;;  %v19822_v15 = vld [vmem:[#allocation3 + $0x32] sm:$0xff]  ;;  %v13095_v27 = vpop.permute.xlu1 %13094 }
 0x3d6   : > { %v13538_v30 = vcombine.high %v13530_v58, %v13530_v58  ;;  %v12840_v5 = vmul.f32 %v19716_v31, %v12665_v25  ;;  %v14373_v53 = vcombine.low %v14365_v13, %v14372_v4  ;;  %v13540_v63 = vcombine.high %v13296_v20, %v13296_v20  ;;  %17402 = vrot.lane.b32.xlu1 %v17401_v37, %s20755_s21  ;;  %v19829_v39 = vld [vmem:[#allocation3 + $0x31] sm:$0xff] }
 0x3d7   : > { %v13547_v18 = vrot.slane %v13296_v20, %v19727_v6  ;;  %v12897_v0 = vadd.f32 %v19721_v21, %v12839_v3  ;;  %v14389_v14 = vrot.slane %v14381_v2, %v19727_v6  ;;  %v14404_v12 = vrot.slane %v13537_v36, %v19727_v6 }
 0x3d8   : > { %v14382_v35 = vcombine.low %v13530_v58, %v13538_v30  ;;  %v13539_v60 = vcombine.high %v13537_v36, %v13537_v36  ;;  %15288 = vst.msk [vmem:[#allocation3 + $0x50] sm:$0xff] %vm807_vm0, %v14373_v53  ;;  %v13554_v16 = vrot.slane %v13540_v63, %v19727_v6  ;;  %v12898_v55 = vadd.f32 %v19721_v21, %v12840_v5 }
 0x3d9   : > { %v13555_v54 = vcombine.high %v13547_v18, %v13547_v18  ;;  %v12947_v62 = vmax.f32 %v12897_v0, 0.0  ;;  %15291 = vst.msk [vmem:[#allocation3 + $0x68] sm:$0x3] %vm15278_vm9, %v14404_v12  ;;  %v17416_v26 = vpack.i.bf16 %v19820_v51, %v19789_v28  ;;  %v15713_v59 = vpack.c.bf16 %v19822_v15, %v19796_v56  ;;  %v15386_v25 = vld [vmem:[#allocation3 + $0x40] sm:$0xff] }
 0x3da   : > { %v14396_v45 = vrot.slane %v14382_v35, %v19727_v6  ;;  %v14405_v52 = vcombine.low %v13539_v60, %v13547_v18  ;;  %v13556_v7 = vcombine.high %v13554_v16, %v13554_v16  ;;  %v12948_v24 = vmax.f32 %v12898_v55, 0.0  ;;  %17412 = vrot.lane.b32.xlu1 %v17411_v42, %s20756_s5  ;;  %v12670_v37 = vpop.f32.mrb[40].mxu0  ;;  %v15394_v12 = vld [vmem:[#allocation3 + $0x41] sm:$0xff] }
 0x3db   : > { %v14406_v11 = vcombine.low %v13555_v54, %v13554_v16  ;;  %v13297_v13 = vmul.f32 %v13090_v29, %v12947_v62  ;;  %17417 = vrot.lane.b32.xlu0 %v17416_v26, %s20748_s29  ;;  %16799 = vmatprep.mubr.msk.bf16.mxu1 %vm807_vm0, %v15713_v59  ;;  %v17421_v28 = vpack.i.bf16 %v19829_v39, %v19791_v40  ;;  %v17094_v9 = vpop.f32.mrb[41].mxu0  ;;  %v19864_v54 = vld [vmem:[#allocation3 + $0x42] sm:$0xff] }
 0x3dc   : > { %v14397_v57 = vcombine.low %v14389_v14, %v14396_v45  ;;  %v14413_v44 = vrot.slane %v14405_v52, %v19727_v6  ;;  %v14428_v19 = vrot.slane %v13556_v7, %v19727_v6  ;;  %v12673_v4 = vpop.f32.mrb[42].mxu0  ;;  %v13298_v20 = vmul.f32 %v13095_v27, %v12948_v24 }
 0x3dd   : > { %v14420_v8 = vrot.slane %v14406_v11, %v19727_v6  ;;  %v13557_v58 = vcombine.high %v13297_v13, %v13297_v13  ;;  %v13564_v38 = vrot.slane %v13297_v13, %v19727_v6  ;;  %v12841_v3 = vmul.f32 %v19716_v31, %v12670_v37  ;;  %v17095_v42 = vpop.f32.mrb[43].mxu0 }
 0x3de   : > { %15290 = vst.msk [vmem:[#allocation3 + $0x60] sm:$0xff] %vm807_vm0, %v14397_v57  ;;  %17422 = vrot.lane.b32.xlu1 %v17421_v28, %s20746_s0  ;;  %v13574_v30 = vcombine.high %v13298_v20, %v13298_v20  ;;  %v13581_v5 = vrot.slane %v13298_v20, %v19727_v6  ;;  %v17431_v53 = vpack.i.bf16 %v19822_v15, %v19796_v56 }
 0x3df   : > { %v14421_v2 = vcombine.low %v14413_v44, %v14420_v8  ;;  %15293 = vst.msk [vmem:[#allocation3 + $0x78] sm:$0x3] %vm15278_vm9, %v14428_v19  ;;  %v13571_v40 = vrot.slane %v13557_v58, %v19727_v6  ;;  %v13572_v36 = vcombine.high %v13564_v38, %v13564_v38  ;;  %v12899_v10 = vadd.f32 %v19721_v21, %v12841_v3  ;;  %v19861_v60 = vld [vmem:[#allocation3 + $0x52] sm:$0xff]  ;;  %v13100_v21 = vpop.permute.xlu0 %13099 }
 0x3e0   : > { %17427 = vrot.lane.b32.xlu0 %v17421_v28, %s20745_s30  ;;  %v17436_v63 = vpack.i.bf16 %v15386_v25, %v19820_v51  ;;  %v13588_v18 = vrot.slane %v13574_v30, %v19727_v6  ;;  %v13589_v0 = vcombine.high %v13581_v5, %v13581_v5  ;;  %v14452_v14 = vrot.slane %v13581_v5, %v19727_v6  ;;  %v19876_v11 = vld [vmem:[#allocation3 + $0x50] sm:$0xff] }
 0x3e1   : > { %15292 = vst.msk [vmem:[#allocation3 + $0x70] sm:$0xff] %vm807_vm0, %v14421_v2  ;;  %v13573_v31 = vcombine.high %v13571_v40, %v13571_v40  ;;  %v14429_v50 = vcombine.low %v13564_v38, %v13572_v36  ;;  %v12949_v35 = vmax.f32 %v12899_v10, 0.0  ;;  %v17441_v29 = vpack.i.bf16 %v15394_v12, %v19829_v39  ;;  %v15419_v24 = vld [vmem:[#allocation3 + $0x51] sm:$0xff] }
 0x3e2   : > { %17432 = vrot.lane.b32.xlu1 %v17431_v53, %s20753_s17  ;;  %15295 = vst.msk [vmem:[#allocation3 + $0x88] sm:$0x3] %vm15278_vm9, %v14452_v14  ;;  %v15715_v45 = vpack.c.bf16 %v19861_v60, %v19864_v54  ;;  %v14453_v52 = vcombine.low %v13589_v0, %v13588_v18  ;;  %v13590_v26 = vcombine.high %v13588_v18, %v13588_v18  ;;  %v16663_v53 = vld.sshfl [vmem:[%s19422_s18 + $0x5c] sm:$0x1 pattern:$0x75316420] }
 0x3e3   : > { %v14430_v16 = vcombine.low %v13571_v40, %v13573_v31  ;;  %v13299_v56 = vmul.f32 %v13100_v21, %v12949_v35  ;;  %v14437_v62 = vrot.slane %v14429_v50, %v19727_v6  ;;  %v17446_v7 = vpack.i.bf16 %v19864_v54, %v19822_v15  ;;  %v16664_v35 = vld.sshfl [vmem:[%s19422_s18 + $0x60] sm:$0x33 pattern:$0x75316420] }
 0x3e4   : > { %17437 = vrot.lane.b32.xlu0 %v17436_v63, %s20755_s21  ;;  %v17451_v28 = vpack.i.bf16 %v19876_v11, %v15386_v25  ;;  %v14461_v9 = vrot.slane %v14453_v52, %v19727_v6  ;;  %v17456_v19 = vpack.i.bf16 %v15419_v24, %v15394_v12  ;;  %v17466_v38 = vpack.i.bf16 %v19861_v60, %v19864_v54  ;;  %v16706_v54 = vld.sshfl [vmem:[%s19422_s18 + $0x108] sm:$0x33 pattern:$0x75316420] }
 0x3e5   : > { %v14444_v55 = vrot.slane %v14430_v16, %v19727_v6  ;;  %v13598_v59 = vrot.slane %v13299_v56, %v19727_v6  ;;  %v19880_v39 = vld [vmem:[#allocation3 + $0x62] sm:$0xff]  ;;  %v10184_v63 = vcombine.high %v19620_v41, %v19620_v41  ;;  %v10199_v18 = vcombine.high %v19635_v17, %v19635_v17 }
 0x3e6   : > { %17442 = vrot.lane.b32.xlu1 %v17441_v29, %s20754_s20  ;;  %v15388_v4 = vld [vmem:[#allocation3 + $0x60] sm:$0xff]  ;;  %v17481_v42 = vpack.i.bf16 %v19880_v39, %v19861_v60  ;;  %v10214_v56 = vrot.slane %v16663_v53, %v17898_v43  ;;  %v16666_v17 = vld.sshfl [vmem:[%s19422_s18 + $0x68] sm:$0x33 pattern:$0x75316420] }
 0x3e7   : > { %v14445_v13 = vcombine.low %v14437_v62, %v14444_v55  ;;  %v13606_v37 = vcombine.high %v13598_v59, %v13598_v59  ;;  %v14454_v57 = vcombine.low %v13590_v26, %v13598_v59  ;;  %v15396_v20 = vld [vmem:[#allocation3 + $0x61] sm:$0xff]  ;;  %v10198_v16 = vrot.slane %v10184_v63, %v17898_v43  ;;  %v16671_v53 = vld.sshfl [vmem:[%s19422_s18 + $0x7c] sm:$0x1 pattern:$0x75316420] }
 0x3e8   : > { %17447 = vrot.lane.b32.xlu0 %v17446_v7, %s20756_s5  ;;  %v19882_v44 = vld [vmem:[#allocation3 + $0x72] sm:$0xff]  ;;  %v17476_v3 = vpack.i.bf16 %v15396_v20, %v15419_v24  ;;  %v10222_v62 = vcombine.high %v16664_v35, %v16664_v35  ;;  %v10229_v55 = vrot.slane %v16664_v35, %v17898_v43  ;;  %v16665_v41 = vld.sshfl [vmem:[%s19422_s18 + $0x64] sm:$0x1 pattern:$0x75316420] }
 0x3e9   : > { %15294 = vst.msk [vmem:[#allocation3 + $0x80] sm:$0xff] %vm807_vm0, %v14445_v13  ;;  %v15717_v15 = vpack.c.bf16 %v19882_v44, %v19880_v39  ;;  %v14468_v27 = vrot.slane %v14454_v57, %v19727_v6  ;;  %v14476_v8 = vrot.slane %v13606_v37, %v19727_v6  ;;  %v17471_v6 = vpack.i.bf16 %v15388_v4, %v19876_v11  ;;  %v19901_v25 = vld [vmem:[#allocation3 + $0x70] sm:$0xff]  ;;  %v16667_v7 = vld.sshfl [vmem:[%s19422_s18 + $0x6c] sm:$0x1 pattern:$0x75316420] }
 0x3ea   : > { %17452 = vrot.lane.b32.xlu1 %v17451_v28, %s20748_s29  ;;  %v17486_v2 = vpack.i.bf16 %v19901_v25, %v15388_v4  ;;  %v15421_v40 = vld [vmem:[#allocation3 + $0x71] sm:$0xff]  ;;  %v17501_v5 = vpack.i.bf16 %v19882_v44, %v19880_v39  ;;  %v10252_v29 = vrot.slane %v16665_v41, %v17898_v43  ;;  %v10200_v52 = vcombine.high %v10198_v16, %v10198_v16 }
 0x3eb   : > { %v14469_v58 = vcombine.low %v14461_v9, %v14468_v27  ;;  %15297 = vst.msk [vmem:[#allocation3 + $0x98] sm:$0x3] %vm15278_vm9, %v14476_v8  ;;  %v17491_v36 = vpack.i.bf16 %v15421_v40, %v15396_v20  ;;  %v10236_v26 = vrot.slane %v10222_v62, %v17898_v43  ;;  %v11625_v59 = vcombine.low %v10198_v16, %v10199_v18  ;;  %v16668_v57 = vld.sshfl [vmem:[%s19422_s18 + $0x70] sm:$0x33 pattern:$0x75316420] }
 0x3ec   : > { %17457 = vrot.lane.b32.xlu0 %v17456_v19, %s20746_s0  ;;  %v10260_v13 = vcombine.high %v16666_v17, %v16666_v17  ;;  %v10267_v28 = vrot.slane %v16666_v17, %v17898_v43  ;;  %v10290_v9 = vrot.slane %v16667_v7, %v17898_v43  ;;  %v11626_v27 = vcombine.low %v10200_v52, %v10214_v56 }
 0x3ed   : > { %15296 = vst.msk [vmem:[#allocation3 + $0x90] sm:$0xff] %vm807_vm0, %v14469_v58  ;;  %v11627_v8 = vcombine.low %v10229_v55, %v10236_v26  ;;  %v11635_v58 = vrot.slane %v11625_v59, %v17898_v43  ;;  %v10366_v17 = vrot.slane %v16671_v53, %v17898_v43 }
 0x3ee   : > { %17462 = vrot.lane.b32.xlu1 %v17456_v19, %s20745_s30  ;;  %v16728_v19 = vcombine.high %v10229_v55, %v10236_v26  ;;  %v10274_v4 = vrot.slane %v10260_v13, %v17898_v43  ;;  %v10275_v20 = vcombine.high %v10267_v28, %v10267_v28 }
 0x3f0   : > { %17467 = vrot.lane.b32.xlu0 %v17466_v38, %s20753_s17  ;;  %v15390_v30 = vld [vmem:[#allocation3 + $0x80] sm:$0xff]  ;;  %v16669_v38 = vld.sshfl [vmem:[%s19422_s18 + $0x74] sm:$0x1 pattern:$0x75316420] }
 0x3f1   : > { %v17506_v10 = vpack.i.bf16 %v15390_v30, %v19901_v25  ;;  %v15398_v31 = vld [vmem:[#allocation3 + $0x81] sm:$0xff]  ;;  %v10328_v63 = vrot.slane %v16669_v38, %v17898_v43 }
 0x3f2   : > { %17472 = vrot.lane.b32.xlu1 %v17471_v6, %s20755_s21  ;;  %v19914_v50 = vld [vmem:[#allocation3 + $0x82] sm:$0xff]  ;;  %v17511_v0 = vpack.i.bf16 %v15398_v31, %v15421_v40  ;;  %v10298_v6 = vcombine.high %v16668_v57, %v16668_v57  ;;  %v11649_v40 = vrot.slane %v11627_v8, %v17898_v43 }
 0x3f3   : > { %v17516_v14 = vpack.i.bf16 %v19914_v50, %v19882_v44 }
 0x3f4   : > { %17477 = vrot.lane.b32.xlu0 %v17476_v3, %s20754_s20  ;;  %v15415_v12 = vld [vmem:[#allocation3 + $0x90] sm:$0xff]  ;;  %v10305_v3 = vrot.slane %v16668_v57, %v17898_v43 }
 0x3f5   : > { %v15423_v21 = vld [vmem:[#allocation3 + $0x91] sm:$0xff]  ;;  %v17521_v24 = vpack.i.bf16 %v15415_v12, %v15390_v30  ;;  %v11674_v30 = vcombine.low %v10252_v29, %v10267_v28  ;;  %v16672_v29 = vld.sshfl [vmem:[%s19422_s18 + $0x80] sm:$0x33 pattern:$0x75316420] }
 0x3f6   : > { %17482 = vrot.lane.b32.xlu1 %v17481_v42, %s20756_s5  ;;  %v17526_v37 = vpack.i.bf16 %v15423_v21, %v15398_v31  ;;  %v16670_v42 = vld.sshfl [vmem:[%s19422_s18 + $0x78] sm:$0x33 pattern:$0x75316420]  ;;  %v11675_v31 = vcombine.low %v10274_v4, %v10275_v20 }
 0x3f7   : > { %v10336_v35 = vcombine.high %v16670_v42, %v16670_v42  ;;  %v10343_v56 = vrot.slane %v16670_v42, %v17898_v43  ;;  %v16673_v28 = vld.sshfl [vmem:[%s19422_s18 + $0x84] sm:$0x1 pattern:$0x75316420] }
 0x3f8   : > { %17487 = vrot.lane.b32.xlu0 %v17486_v2, %s20748_s29  ;;  %v11642_v2 = vrot.slane %v11626_v27, %v17898_v43  ;;  %v11691_v16 = vrot.slane %v11675_v31, %v17898_v43  ;;  %v16676_v31 = vld.sshfl [vmem:[%s19422_s18 + $0x90] sm:$0x33 pattern:$0x75316420] }
 0x3f9   : > { %v10350_v41 = vrot.slane %v10336_v35, %v17898_v43  ;;  %v10351_v7 = vcombine.high %v10343_v56, %v10343_v56  ;;  %v11724_v57 = vcombine.low %v10328_v63, %v10343_v56 }
 0x3fa   : > { %17492 = vrot.lane.b32.xlu1 %v17491_v36, %s20746_s0  ;;  %v11657_v18 = vcombine.low %v11635_v58, %v11642_v2  ;;  %v10374_v58 = vcombine.high %v16672_v29, %v16672_v29 }
 0x3fb   : > { %v11725_v8 = vcombine.low %v10350_v41, %v10351_v7  ;;  %v11740_v20 = vrot.slane %v11724_v57, %v17898_v43  ;;  %v10457_v7 = vrot.slane %v16676_v31, %v17898_v43 }
 0x3fc   : > { %17497 = vrot.lane.b32.xlu0 %v17491_v36, %s20745_s30  ;;  %v11656_v36 = vrot.slane %v16728_v19, %v17898_v43  ;;  %v11665_v62 = vrot.slane %v11657_v18, %v17898_v43  ;;  %v16674_v19 = vld.sshfl [vmem:[%s19422_s18 + $0x88] sm:$0x33 pattern:$0x75316420]  ;;  %v10388_v2 = vrot.slane %v10374_v58, %v17898_v43 }
 0x3fd   : > { %v11747_v42 = vrot.slane %v11725_v8, %v17898_v43  ;;  %v16675_v18 = vld.sshfl [vmem:[%s19422_s18 + $0x8c] sm:$0x1 pattern:$0x75316420] }
 0x3fe   : > { %17502 = vrot.lane.b32.xlu1 %v17501_v5, %s20753_s17  ;;  %v10276_v5 = vcombine.high %v10274_v4, %v10274_v4  ;;  %v16679_v58 = vld.sshfl [vmem:[%s19422_s18 + $0x9c] sm:$0x1 pattern:$0x75316420] }
 0x400   : > { %17507 = vrot.lane.b32.xlu0 %v17506_v10, %s20755_s21  ;;  %v10312_v10 = vrot.slane %v10298_v6, %v17898_v43  ;;  %v11676_v12 = vcombine.low %v10276_v5, %v10290_v9  ;;  %v10381_v6 = vrot.slane %v16672_v29, %v17898_v43  ;;  %v10412_v5 = vcombine.high %v16674_v19, %v16674_v19  ;;  %s20769_s21 = sld [smem:[#allocation35_spill]] }
 0x402   : > { %17512 = vrot.lane.b32.xlu1 %v17511_v0, %s20754_s20  ;;  %v11658_v0 = vcombine.low %v11649_v40, %v11656_v36  ;;  %v11677_v21 = vcombine.low %v10305_v3, %v10312_v10  ;;  %v11698_v52 = vrot.slane %v11676_v12, %v17898_v43  ;;  %v10404_v40 = vrot.slane %v16673_v28, %v17898_v43 }
 0x403   : > { %v11772_v53 = vcombine.low %v10381_v6, %v10388_v2  ;;  %v16730_v63 = vcombine.high %v10381_v6, %v10388_v2  ;;  %v10426_v35 = vrot.slane %v10412_v5, %v17898_v43  ;;  %v10518_v5 = vrot.slane %v16679_v58, %v17898_v43 }
 0x404   : > { %17517 = vrot.lane.b32.xlu0 %v17516_v14, %s20756_s5  ;;  %v11684_v14 = vrot.slane %v11674_v30, %v17898_v43  ;;  %v11672_v55 = vrot.slane %v11658_v0, %v17898_v43  ;;  %v11705_v26 = vrot.slane %v11677_v21, %v17898_v43  ;;  %v16677_v21 = vld.sshfl [vmem:[%s19422_s18 + $0x94] sm:$0x1 pattern:$0x75316420] }
 0x405   : > { %v11782_v29 = vrot.slane %v11772_v53, %v17898_v43  ;;  %v10480_v57 = vrot.slane %v16677_v21, %v17898_v43 }
 0x406   : > { %17522 = vrot.lane.b32.xlu1 %v17521_v24, %s20748_s29  ;;  %v11706_v59 = vcombine.low %v11684_v14, %v11691_v16  ;;  %v11673_v13 = vcombine.low %v11665_v62, %v11672_v55  ;;  %v10352_v24 = vcombine.high %v10350_v41, %v10350_v41  ;;  %v11707_v9 = vcombine.low %v11698_v52, %v11705_v26  ;;  %v16678_v62 = vld.sshfl [vmem:[%s19422_s18 + $0x98] sm:$0x33 pattern:$0x75316420]  ;;  %s20758_s29 = sld [smem:[#allocation34_spill]]  ;;  %s20597_s5 = scalar_lea.hbm %s20769_s21, %s16826_s23 }
 0x407   : > { %v10450_v55 = vcombine.high %v16676_v31, %v16676_v31  ;;  %v11789_v52 = vrot.slane %v16730_v63, %v17898_v43  ;;  %v10428_v26 = vcombine.high %v10426_v35, %v10426_v35  ;;  %v10495_v28 = vrot.slane %v16678_v62, %v17898_v43 }
 0x408   : > { %17527 = vrot.lane.b32.xlu0 %v17526_v37, %s20746_s0  ;;  %v16729_v37 = vcombine.high %v10305_v3, %v10312_v10  ;;  %v11714_v27 = vrot.slane %v11706_v59, %v17898_v43  ;;  %17097 = vmatmul.mubr.msk.bf16.gmra.mrb[44].mxu0 %vm807_vm0, %v11673_v13  ;;  %v11726_v38 = vcombine.low %v10352_v24, %v10366_v17  ;;  %s677_s0 = sand.u32 1, %s17626_s25  }
 0x409   : > { %17100 = vmatprep.mubr.msk.bf16.mxu0 %vm17639_vm1, %v20744_v32  ;;  %v11721_v3 = vrot.slane %v11707_v9, %v17898_v43  ;;  %v10419_v10 = vrot.slane %v16674_v19, %v17898_v43  ;;  %v10442_v59 = vrot.slane %v16675_v18, %v17898_v43  ;;  %v10464_v13 = vrot.slane %v10450_v55, %v17898_v43  ;;  %v16680_v9 = vld.sshfl [vmem:[%s19422_s18 + $0xa0] sm:$0x33 pattern:$0x75316420]  ;;  %s16358_s24 = sshll.u32 %s677_s0, 6 }
 0x40a   : > { %v11733_v4 = vrot.slane %v16729_v37, %v17898_v43  ;;  %v11754_v36 = vrot.slane %v11726_v38, %v17898_v43  ;;  %v11804_v19 = vcombine.low %v11782_v29, %v11789_v52  ;;  %v11824_v2 = vcombine.low %v10480_v57, %v10495_v28  ;;  %v16686_v57 = vld.sshfl [vmem:[%s19422_s18 + $0xb8] sm:$0x33 pattern:$0x75316420]  ;;  %s20579_s1 = scalar_lea.vmem [#allocation4], %s16358_s24 }
 0x40b   : > { %v11722_v0 = vcombine.low %v11714_v27, %v11721_v3  ;;  %v10427_v12 = vcombine.high %v10419_v10, %v10419_v10  ;;  %v11774_v56 = vcombine.low %v10404_v40, %v10419_v10  ;;  %v10488_v27 = vcombine.high %v16678_v62, %v16678_v62  ;;  %v16682_v3 = vld.sshfl [vmem:[%s19422_s18 + $0xa8] sm:$0x33 pattern:$0x75316420]  ;;  %s16268_s17 = sshll.u32 %s20579_s1, 4  ;;  %s20599_s17 = int_to_ptr.vmem [resolvable:$true] %s16268_s17 }
 0x40c   : > { %v11755_v30 = vcombine.low %v11733_v4, %v11740_v20  ;;  %v11756_v14 = vcombine.low %v11747_v42, %v11754_v36  ;;  %v11821_v38 = vcombine.low %v10428_v26, %v10442_v59  ;;  %v11822_v4 = vcombine.low %v10457_v7, %v10464_v13  ;;  %v16683_v59 = vld.sshfl [vmem:[%s19422_s18 + $0xac] sm:$0x1 pattern:$0x75316420] }
 0x40d   : > { %v11775_v17 = vcombine.low %v10426_v35, %v10427_v12  ;;  %v11796_v24 = vrot.slane %v11774_v56, %v17898_v43  ;;  %v16731_v20 = vcombine.high %v10457_v7, %v10464_v13  ;;  %v10502_v6 = vrot.slane %v10488_v27, %v17898_v43 }
 0x40e   : > { %v11763_v16 = vrot.slane %v11755_v30, %v17898_v43  ;;  %v11770_v41 = vrot.slane %v11756_v14, %v17898_v43  ;;  %v10503_v40 = vcombine.high %v10495_v28, %v10495_v28  ;;  %v10526_v36 = vcombine.high %v16680_v9, %v16680_v9  ;;  %v16684_v14 = vld.sshfl [vmem:[%s19422_s18 + $0xb0] sm:$0x33 pattern:$0x75316420] }
 0x40f   : > { %v11803_v37 = vrot.slane %v11775_v17, %v17898_v43  ;;  %v10504_v30 = vcombine.high %v10502_v6, %v10502_v6  ;;  %v10533_v10 = vrot.slane %v16680_v9, %v17898_v43  ;;  %v10564_v53 = vcombine.high %v16682_v3, %v16682_v3 }
 0x410   : > { %17101 = vmatmul.mubr.msk.bf16.gmra.mrb[48].mxu0 %vm807_vm0, %v11722_v0  ;;  %v11771_v8 = vcombine.low %v11763_v16, %v11770_v41  ;;  %v10540_v31 = vrot.slane %v10526_v36, %v17898_v43  ;;  %v11812_v63 = vrot.slane %v11804_v19, %v17898_v43  ;;  %v11831_v18 = vrot.slane %v11821_v38, %v17898_v43  ;;  %v16681_v41 = vld.sshfl [vmem:[%s19422_s18 + $0xa4] sm:$0x1 pattern:$0x75316420] }
 0x411   : > { %17104 = vmatprep.mubr.msk.bf16.mxu0 %vm17639_vm1, %v20744_v32  ;;  %v11805_v42 = vcombine.low %v11796_v24, %v11803_v37  ;;  %v11838_v0 = vrot.slane %v11822_v4, %v17898_v43  ;;  %v11845_v12 = vrot.slane %v16731_v20, %v17898_v43  ;;  %v11852_v21 = vrot.slane %v11824_v2, %v17898_v43 }
 0x412   : > { %v11870_v16 = vcombine.low %v10502_v6, %v10503_v40  ;;  %v11871_v56 = vcombine.low %v10504_v30, %v10518_v5  ;;  %v11872_v62 = vcombine.low %v10533_v10, %v10540_v31  ;;  %v16732_v55 = vcombine.high %v10533_v10, %v10540_v31  ;;  %v16690_v30 = vld.sshfl [vmem:[%s19422_s18 + $0xc8] sm:$0x33 pattern:$0x75316420] }
 0x413   : > { %v11819_v35 = vrot.slane %v11805_v42, %v17898_v43  ;;  %v10571_v17 = vrot.slane %v16682_v3, %v17898_v43  ;;  %v10578_v29 = vrot.slane %v10564_v53, %v17898_v43  ;;  %v10602_v52 = vcombine.high %v16684_v14, %v16684_v14  ;;  %v16688_v42 = vld.sshfl [vmem:[%s19422_s18 + $0xc0] sm:$0x33 pattern:$0x75316420] }
 0x414   : > { %v11853_v26 = vcombine.low %v11831_v18, %v11838_v0  ;;  %v11854_v13 = vcombine.low %v11845_v12, %v11852_v21  ;;  %v11880_v24 = vrot.slane %v11870_v16, %v17898_v43  ;;  %v10556_v37 = vrot.slane %v16681_v41, %v17898_v43  ;;  %v16685_v53 = vld.sshfl [vmem:[%s19422_s18 + $0xb4] sm:$0x1 pattern:$0x75316420] }
 0x415   : > { %v11820_v7 = vcombine.low %v11812_v63, %v11819_v35  ;;  %v11887_v28 = vrot.slane %v11871_v56, %v17898_v43  ;;  %v11894_v9 = vrot.slane %v11872_v62, %v17898_v43  ;;  %v11901_v27 = vrot.slane %v16732_v55, %v17898_v43  ;;  %v16687_v63 = vld.sshfl [vmem:[%s19422_s18 + $0xbc] sm:$0x1 pattern:$0x75316420] }
 0x416   : > { %v10580_v19 = vcombine.high %v10578_v29, %v10578_v29  ;;  %v10594_v58 = vrot.slane %v16683_v59, %v17898_v43  ;;  %v20025_v38 = vrot.slane %v16684_v14, %v17898_v43  ;;  %v20028_v4 = vrot.slane %v10602_v52, %v17898_v43  ;;  %v16689_v41 = vld.sshfl [vmem:[%s19422_s18 + $0xc4] sm:$0x1 pattern:$0x75316420] }
 0x417   : > { %v10640_v20 = vcombine.high %v16686_v57, %v16686_v57  ;;  %v11861_v6 = vrot.slane %v11853_v26, %v17898_v43  ;;  %v11868_v3 = vrot.slane %v11854_v13, %v17898_v43  ;;  %v11902_v2 = vcombine.low %v11880_v24, %v11887_v28  ;;  %v16692_v59 = vld.sshfl [vmem:[%s19422_s18 + $0xd0] sm:$0x33 pattern:$0x75316420] }
 0x418   : > { %17105 = vmatmul.mubr.msk.bf16.gmra.mrb[52].mxu0 %vm807_vm0, %v11771_v8  ;;  %v10579_v8 = vcombine.high %v10571_v17, %v10571_v17  ;;  %v11903_v40 = vcombine.low %v11894_v9, %v11901_v27  ;;  %v11919_v36 = vcombine.low %v10556_v37, %v10571_v17  ;;  %v11921_v10 = vcombine.low %v10580_v19, %v10594_v58  ;;  %v16691_v27 = vld.sshfl [vmem:[%s19422_s18 + $0xcc] sm:$0x1 pattern:$0x75316420] }
 0x419   : > { %17108 = vmatprep.mubr.msk.bf16.mxu0 %vm17639_vm1, %v20744_v32  ;;  %v11922_v31 = vcombine.low %v20025_v38, %v20028_v4  ;;  %v10647_v18 = vrot.slane %v16686_v57, %v17898_v43  ;;  %v10654_v0 = vrot.slane %v10640_v20, %v17898_v43  ;;  %v10678_v14 = vcombine.high %v16688_v42, %v16688_v42  ;;  %v16693_v19 = vld.sshfl [vmem:[%s19422_s18 + $0xd4] sm:$0x1 pattern:$0x75316420] }
 0x41a   : > { %v11920_v5 = vcombine.low %v10578_v29, %v10579_v8  ;;  %v11869_v35 = vcombine.low %v11861_v6, %v11868_v3  ;;  %v10716_v12 = vcombine.high %v16690_v30, %v16690_v30  ;;  %v10723_v21 = vrot.slane %v16690_v30, %v17898_v43 }
 0x41b   : > { %v11910_v16 = vrot.slane %v11902_v2, %v17898_v43  ;;  %v11917_v56 = vrot.slane %v11903_v40, %v17898_v43  ;;  %v11929_v62 = vrot.slane %v11919_v36, %v17898_v43  ;;  %v10632_v55 = vrot.slane %v16685_v53, %v17898_v43  ;;  %v16694_v2 = vld.sshfl [vmem:[%s19422_s18 + $0xd8] sm:$0x33 pattern:$0x75316420] }
 0x41c   : > { %v11936_v17 = vrot.slane %v11920_v5, %v17898_v43  ;;  %v11943_v29 = vrot.slane %v11921_v10, %v17898_v43  ;;  %v11950_v52 = vrot.slane %v11922_v31, %v17898_v43  ;;  %v10670_v26 = vrot.slane %v16687_v63, %v17898_v43 }
 0x41d   : > { %v10656_v13 = vcombine.high %v10654_v0, %v10654_v0  ;;  %v10685_v24 = vrot.slane %v16688_v42, %v17898_v43  ;;  %v10692_v37 = vrot.slane %v10678_v14, %v17898_v43  ;;  %v10708_v57 = vrot.slane %v16689_v41, %v17898_v43 }
 0x41e   : > { %v10730_v28 = vrot.slane %v10716_v12, %v17898_v43  ;;  %v10731_v9 = vcombine.high %v10723_v21, %v10723_v21  ;;  %v16733_v8 = vcombine.high %v20025_v38, %v20028_v4  ;;  %v10754_v58 = vcombine.high %v16692_v59, %v16692_v59 }
 0x41f   : > { %v11918_v20 = vcombine.low %v11910_v16, %v11917_v56  ;;  %v11951_v6 = vcombine.low %v11929_v62, %v11936_v17  ;;  %v11952_v3 = vcombine.low %v11943_v29, %v11950_v52  ;;  %v11969_v42 = vcombine.low %v10632_v55, %v10647_v18  ;;  %v16696_v52 = vld.sshfl [vmem:[%s19422_s18 + $0xe0] sm:$0x33 pattern:$0x75316420] }
 0x420   : > { %17109 = vmatmul.mubr.msk.bf16.gmra.mrb[56].mxu0 %vm807_vm0, %v11820_v7  ;;  %v10655_v7 = vcombine.high %v10647_v18, %v10647_v18  ;;  %v11971_v36 = vcombine.low %v10656_v13, %v10670_v26  ;;  %v12017_v30 = vcombine.low %v10685_v24, %v10692_v37  ;;  %v16734_v5 = vcombine.high %v10685_v24, %v10692_v37 }
 0x421   : > { %17112 = vmatprep.mubr.msk.bf16.mxu0 %vm17639_vm1, %v20744_v32  ;;  %v12019_v10 = vcombine.low %v10708_v57, %v10723_v21  ;;  %v12020_v31 = vcombine.low %v10730_v28, %v10731_v9  ;;  %v10732_v53 = vcombine.high %v10730_v28, %v10730_v28  ;;  %v10746_v63 = vrot.slane %v16691_v27, %v17898_v43 }
 0x422   : > { %v11970_v40 = vcombine.low %v10654_v0, %v10655_v7  ;;  %v10761_v14 = vrot.slane %v16692_v59, %v17898_v43  ;;  %v10768_v38 = vrot.slane %v10754_v58, %v17898_v43  ;;  %v10784_v4 = vrot.slane %v16693_v19, %v17898_v43  ;;  %v16695_v19 = vld.sshfl [vmem:[%s19422_s18 + $0xdc] sm:$0x1 pattern:$0x75316420] }
 0x423   : > { %v11959_v18 = vrot.slane %v11951_v6, %v17898_v43  ;;  %v11978_v0 = vrot.slane %v16733_v8, %v17898_v43  ;;  %v11985_v12 = vrot.slane %v11969_v42, %v17898_v43  ;;  %v11966_v21 = vrot.slane %v11952_v3, %v17898_v43 }
 0x424   : > { %v11992_v16 = vrot.slane %v11970_v40, %v17898_v43  ;;  %v11999_v56 = vrot.slane %v11971_v36, %v17898_v43  ;;  %v10792_v62 = vcombine.high %v16694_v2, %v16694_v2  ;;  %v12027_v55 = vrot.slane %v12017_v30, %v17898_v43 }
 0x425   : > { %v12034_v41 = vrot.slane %v16734_v5, %v17898_v43  ;;  %v12041_v17 = vrot.slane %v12019_v10, %v17898_v43  ;;  %v12048_v29 = vrot.slane %v12020_v31, %v17898_v43  ;;  %v12066_v26 = vcombine.low %v10732_v53, %v10746_v63  ;;  %v16698_v5 = vld.sshfl [vmem:[%s19422_s18 + $0xe8] sm:$0x33 pattern:$0x75316420] }
 0x426   : > { %v12067_v59 = vcombine.low %v10761_v14, %v10768_v38  ;;  %v16735_v7 = vcombine.high %v10761_v14, %v10768_v38  ;;  %v12000_v24 = vcombine.low %v11978_v0, %v11985_v12  ;;  %v10806_v37 = vrot.slane %v10792_v62, %v17898_v43 }
 0x427   : > { %v10830_v57 = vcombine.high %v16696_v52, %v16696_v52  ;;  %v11967_v28 = vcombine.low %v11959_v18, %v11966_v21  ;;  %v12001_v9 = vcombine.low %v11992_v16, %v11999_v56  ;;  %v12049_v27 = vcombine.low %v12027_v55, %v12034_v41  ;;  %v16697_v18 = vld.sshfl [vmem:[%s19422_s18 + $0xe4] sm:$0x1 pattern:$0x75316420] }
 0x428   : > { %17113 = vmatmul.mubr.msk.bf16.gmra.mrb[60].mxu0 %vm807_vm0, %v11869_v35  ;;  %v10799_v35 = vrot.slane %v16694_v2, %v17898_v43  ;;  %v12050_v8 = vcombine.low %v12041_v17, %v12048_v29  ;;  %v12076_v58 = vrot.slane %v12066_v26, %v17898_v43  ;;  %v12090_v6 = vrot.slane %v16735_v7, %v17898_v43 }
 0x429   : > { %17116 = vmatprep.mubr.msk.bf16.mxu0 %vm17639_vm1, %v20744_v32  ;;  %v10808_v2 = vcombine.high %v10806_v37, %v10806_v37  ;;  %v10822_v40 = vrot.slane %v16695_v19, %v17898_v43  ;;  %v10837_v36 = vrot.slane %v16696_v52, %v17898_v43  ;;  %v10844_v30 = vrot.slane %v10830_v57, %v17898_v43  ;;  %v16700_v52 = vld.sshfl [vmem:[%s19422_s18 + $0xf0] sm:$0x33 pattern:$0x75316420] }
 0x42a   : > { %v12069_v13 = vcombine.low %v10784_v4, %v10799_v35  ;;  %v10807_v42 = vcombine.high %v10799_v35, %v10799_v35  ;;  %v12008_v10 = vrot.slane %v12000_v24, %v17898_v43  ;;  %v12015_v31 = vrot.slane %v12001_v9, %v17898_v43  ;;  %v16699_v24 = vld.sshfl [vmem:[%s19422_s18 + $0xec] sm:$0x1 pattern:$0x75316420]  ;;  %v15358_v9 = vld [vmem:[#allocation3] sm:$0xff] }
 0x42b   : > { %v12057_v53 = vrot.slane %v12049_v27, %v17898_v43  ;;  %v12064_v63 = vrot.slane %v12050_v8, %v17898_v43  ;;  %v10868_v0 = vcombine.high %v16698_v5, %v16698_v5  ;;  %v12116_v12 = vcombine.low %v10808_v2, %v10822_v40 }
 0x42c   : > { %v12097_v3 = vrot.slane %v12069_v13, %v17898_v43  ;;  %v12115_v35 = vcombine.low %v10806_v37, %v10807_v42  ;;  %v12117_v21 = vcombine.low %v10837_v36, %v10844_v30  ;;  %v12016_v16 = vcombine.low %v12008_v10, %v12015_v31  ;;  %v4173_v42 = vpop.f32.mrb[88].mxu1 }
 0x42d   : > { %v20103_v56 = vcombine.low %v12057_v53, %v12064_v63  ;;  %v10875_v62 = vrot.slane %v16698_v5, %v17898_v43  ;;  %v16736_v29 = vcombine.high %v10837_v36, %v10844_v30  ;;  %v10860_v26 = vrot.slane %v16697_v18, %v17898_v43  ;;  %v17064_v5 = vpop.f32.mrb[89].mxu1 }
 0x42e   : > { %v12099_v38 = vcombine.low %v12090_v6, %v12097_v3  ;;  %v12125_v13 = vrot.slane %v12115_v35, %v17898_v43  ;;  %v10882_v37 = vrot.slane %v10868_v0, %v17898_v43  ;;  %v12132_v27 = vrot.slane %v12116_v12, %v17898_v43  ;;  %v16702_v12 = vld.sshfl [vmem:[%s19422_s18 + $0xf8] sm:$0x33 pattern:$0x75316420] }
 0x42f   : > { %v12139_v8 = vrot.slane %v12117_v21, %v17898_v43  ;;  %v10883_v6 = vcombine.high %v10875_v62, %v10875_v62  ;;  %v10906_v3 = vcombine.high %v16700_v52, %v16700_v52  ;;  %v12146_v36 = vrot.slane %v16736_v29, %v17898_v43 }
 0x430   : > { %17117 = vmatmul.mubr.msk.bf16.gmra.mrb[64].mxu0 %vm807_vm0, %v11918_v20  ;;  %v12083_v20 = vrot.slane %v12067_v59, %v17898_v43  ;;  %v12113_v17 = vrot.slane %v12099_v38, %v17898_v43  ;;  %v12164_v30 = vcombine.low %v10860_v26, %v10875_v62  ;;  %v10884_v53 = vcombine.high %v10882_v37, %v10882_v37  ;;  %v4176_v38 = vpop.f32.mrb[90].mxu1 }
 0x431   : > { %17120 = vmatprep.mubr.msk.bf16.mxu0 %vm17639_vm1, %v20744_v32  ;;  %v20126_v63 = vrot.slane %v16700_v52, %v17898_v43  ;;  %v17065_v21 = vpop.f32.mrb[91].mxu1  ;;  %v12147_v29 = vcombine.low %v12125_v13, %v12132_v27  ;;  %v12148_v52 = vcombine.low %v12139_v8, %v12146_v36 }
 0x432   : > { %v12098_v14 = vcombine.low %v12076_v58, %v12083_v20  ;;  %v12174_v26 = vrot.slane %v12164_v30, %v17898_v43  ;;  %v10951_v30 = vrot.slane %v16702_v12, %v17898_v43 }
 0x434   : > { %v12106_v41 = vrot.slane %v12098_v14, %v17898_v43  ;;  %v20129_v14 = vld.sshfl [vmem:[%s19422_s18 + $0xf4] sm:$0x1 pattern:$0x75316420] }
 0x436   : > { %v20121_v40 = vcombine.low %v12106_v41, %v12113_v17  ;;  %v12165_v41 = vcombine.low %v10882_v37, %v10883_v6 }
 0x438   : > { %17121 = vmatmul.mubr.msk.bf16.gmra.mrb[68].mxu0 %vm807_vm0, %v11967_v28  ;;  %v12181_v6 = vrot.slane %v12165_v41, %v17898_v43  ;;  %v17565_v41 = vld [vmem:[#allocation3 + $0x20] sm:$0xff] }
 0x439   : > { %17124 = vmatprep.mubr.msk.bf16.mxu0 %vm17639_vm1, %v20744_v32 }
 0x440   : > { %17125 = vmatmul.mubr.msk.bf16.gmra.mrb[72].mxu0 %vm807_vm0, %v12016_v16 }
 0x441   : > { %v17398_v4 = vpop.permute.xlu0 %17397  ;;  %17128 = vmatprep.mubr.msk.bf16.mxu0 %vm17639_vm1, %v20744_v32 }
 0x442   : > { %v17400_v57 = vunpack.i.h.bf16 %v17398_v4  ;;  %v17399_v28 = vunpack.i.l.bf16 %v17398_v4 }
 0x444   : > { %v17393_v55 = vpop.permute.xlu1 %17392 }
 0x445   : > { %v17395_v59 = vunpack.i.h.bf16 %v17393_v55  ;;  %v17394_v7 = vunpack.i.l.bf16 %v17393_v55  ;;  %v20137_v55 = vrot.slane %v10906_v3, %v17898_v43  ;;  %v16703_v3 = vld.sshfl [vmem:[%s19422_s18 + $0xfc] sm:$0x1 pattern:$0x75316420] }
 0x447   : > { %v15657_v19 = vsel %vm807_vm0, %v19794_v1, %v17395_v59  ;;  %v15656_v58 = vsel %vm807_vm0, %v15358_v9, %v17394_v7  ;;  %v17408_v20 = vpop.permute.xlu0 %17407  ;;  %v10898_v1 = vrot.slane %v16699_v24, %v17898_v43  ;;  %v10936_v59 = vrot.slane %v20129_v14, %v17898_v43 }
 0x448   : > { %v17403_v2 = vpop.permute.xlu1 %17402  ;;  %v15664_v4 = vsel %vm9350_vm3, %v15656_v58, %v17399_v28  ;;  %v15665_v35 = vsel %vm9350_vm3, %v15657_v19, %v17400_v57  ;;  %v17410_v18 = vunpack.i.h.bf16 %v17408_v20  ;;  %v17409_v0 = vunpack.i.l.bf16 %v17408_v20  ;;  %17129 = vmatmul.mubr.msk.bf16.gmra.mrb[76].mxu0 %vm807_vm0, %v20103_v56 }
 0x449   : > { %v17405_v10 = vunpack.i.h.bf16 %v17403_v2  ;;  %v17404_v31 = vunpack.i.l.bf16 %v17403_v2  ;;  %v12166_v28 = vcombine.low %v10884_v53, %v10898_v1  ;;  %v10944_v9 = vcombine.high %v16702_v12, %v16702_v12  ;;  %17132 = vmatprep.mubr.msk.bf16.mxu0 %vm17639_vm1, %v20744_v32 }
 0x44a   : > { %v12167_v8 = vcombine.low %v20126_v63, %v20137_v55  ;;  %v12155_v1 = vrot.slane %v12147_v29, %v17898_v43  ;;  %v20165_v12 = vcombine.low %v12174_v26, %v12181_v6 }
 0x44b   : > { %v15673_v16 = vsel %vm9359_vm4, %v15665_v35, %v17405_v10  ;;  %v15672_v62 = vsel %vm9359_vm4, %v15664_v4, %v17404_v31  ;;  %v12162_v31 = vrot.slane %v12148_v52, %v17898_v43  ;;  %v10958_v53 = vrot.slane %v10944_v9, %v17898_v43 }
 0x44c   : > { %v17413_v17 = vpop.permute.xlu1 %17412  ;;  %v15681_v19 = vsel %vm9368_vm5, %v15673_v16, %v17410_v18  ;;  %v15680_v58 = vsel %vm9368_vm5, %v15672_v62, %v17409_v0  ;;  %v12188_v4 = vrot.slane %v12166_v28, %v17898_v43  ;;  %v10974_v35 = vrot.slane %v16703_v3, %v17898_v43 }
 0x44d   : > { %v17415_v7 = vunpack.i.h.bf16 %v17413_v17  ;;  %v17414_v24 = vunpack.i.l.bf16 %v17413_v17  ;;  %v17418_v57 = vpop.permute.xlu0 %17417  ;;  %v12195_v21 = vrot.slane %v12167_v8, %v17898_v43  ;;  %v10959_v52 = vcombine.high %v10951_v30, %v10951_v30 }
 0x44e   : > { %v17420_v20 = vunpack.i.h.bf16 %v17418_v57  ;;  %v17419_v37 = vunpack.i.l.bf16 %v17418_v57  ;;  %v10960_v28 = vcombine.high %v10958_v53, %v10958_v53  ;;  %v16737_v9 = vcombine.high %v20126_v63, %v20137_v55  ;;  %v16704_v63 = vld.sshfl [vmem:[%s19422_s18 + $0x100] sm:$0x33 pattern:$0x75316420] }
 0x44f   : > { %v15688_v13 = vsel %vm9377_vm6, %v15680_v58, %v17414_v24  ;;  %v15689_v27 = vsel %vm9377_vm6, %v15681_v19, %v17415_v7  ;;  %v12163_v58 = vcombine.low %v12155_v1, %v12162_v31  ;;  %v12215_v60 = vcombine.low %v10958_v53, %v10959_v52 }
 0x450   : > { %v15697_v42 = vsel %vm9386_vm7, %v15689_v27, %v17420_v20  ;;  %v15696_v2 = vsel %vm9386_vm7, %v15688_v13, %v17419_v37  ;;  %v17423_v36 = vpop.permute.xlu1 %17422  ;;  %v12214_v20 = vcombine.low %v10936_v59, %v10951_v30  ;;  %17133 = vmatmul.mubr.msk.bf16.gmra.mrb[80].mxu0 %vm807_vm0, %v20121_v40  ;;  %v12197_v13 = vcombine.low %v12188_v4, %v12195_v21 }
 0x451   : > { %v17425_v5 = vunpack.i.h.bf16 %v17423_v36  ;;  %v17424_v56 = vunpack.i.l.bf16 %v17423_v36  ;;  %17136 = vmatprep.mubr.msk.bf16.mxu0 %vm17639_vm1, %v20744_v32  ;;  %v12204_v59 = vrot.slane %v20165_v12, %v17898_v43  ;;  %v12216_v40 = vcombine.low %v10960_v28, %v10974_v35 }
 0x452   : > { %v17428_v10 = vpop.permute.xlu0 %17427  ;;  %v12230_v1 = vrot.slane %v12214_v20, %v17898_v43  ;;  %v10982_v30 = vcombine.high %v16704_v63, %v16704_v63  ;;  %v11020_v31 = vcombine.high %v16706_v54, %v16706_v54  ;;  %v11027_v53 = vrot.slane %v16706_v54, %v17898_v43 }
 0x453   : > { %v17430_v14 = vunpack.i.h.bf16 %v17428_v10  ;;  %v17429_v38 = vunpack.i.l.bf16 %v17428_v10  ;;  %v15705_v18 = vsel %vm9395_vm8, %v15697_v42, %v17425_v5  ;;  %v15704_v0 = vsel %vm9395_vm8, %v15696_v2, %v17424_v56  ;;  %v16705_v10 = vld.sshfl [vmem:[%s19422_s18 + $0x104] sm:$0x1 pattern:$0x75316420] }
 0x454   : > { %v15712_v16 = vpack.c.bf16 %v15705_v18, %v15704_v0  ;;  %v17433_v29 = vpop.permute.xlu1 %17432  ;;  %v12223_v42 = vrot.slane %v16737_v9, %v17898_v43  ;;  %v12211_v35 = vrot.slane %v12197_v13, %v17898_v43  ;;  %v10989_v18 = vrot.slane %v16704_v63, %v17898_v43 }
 0x455   : > { %v15659_v62 = vsel %vm807_vm0, %v19820_v51, %v17430_v14  ;;  %v15658_v17 = vsel %vm807_vm0, %v17565_v41, %v17429_v38  ;;  %v17435_v7 = vunpack.i.h.bf16 %v17433_v29  ;;  %v17434_v24 = vunpack.i.l.bf16 %v17433_v29 }
 0x456   : > { %v17438_v57 = vpop.permute.xlu0 %17437  ;;  %15838 = vmatmul.mubr.bf16.vlgmr.msra.gmra.mrb[92].mxu1 %v15712_v16  ;;  %v12237_v16 = vrot.slane %v12215_v60, %v17898_v43  ;;  %v10996_v29 = vrot.slane %v10982_v30, %v17898_v43  ;;  %v11012_v52 = vrot.slane %v16705_v10, %v17898_v43  ;;  %v11035_v28 = vcombine.high %v11027_v53, %v11027_v53 }
 0x457   : > { %v17440_v26 = vunpack.i.h.bf16 %v17438_v57  ;;  %v17439_v19 = vunpack.i.l.bf16 %v17438_v57  ;;  %v15666_v51 = vsel %vm9350_vm3, %v15658_v17, %v17434_v24  ;;  %v15667_v37 = vsel %vm9350_vm3, %v15659_v62, %v17435_v7  ;;  %16800 = vmatprep.mubr.msk.bf16.mxu1 %vm807_vm0, %v15715_v45 }
 0x458   : > { %v17443_v8 = vpop.permute.xlu1 %17442  ;;  %v12244_v62 = vrot.slane %v12216_v40, %v17898_v43  ;;  %17137 = vmatmul.mubr.msk.bf16.gmra.mrb[84].mxu0 %vm807_vm0, %v12163_v58  ;;  %v20206_v57 = vrot.slane %v11020_v31, %v17898_v43  ;;  %v12212_v20 = vcombine.low %v12204_v59, %v12211_v35  ;;  %v12262_v60 = vcombine.low %v10989_v18, %v10996_v29 }
 0x459   : > { %v15675_v55 = vsel %vm9359_vm4, %v15667_v37, %v17440_v26  ;;  %v15674_v27 = vsel %vm9359_vm4, %v15666_v51, %v17439_v19  ;;  %v17445_v45 = vunpack.i.h.bf16 %v17443_v8  ;;  %v17444_v6 = vunpack.i.l.bf16 %v17443_v8  ;;  %17140 = vmatprep.mubr.msk.bf16.mxu0 %vm17639_vm1, %v20744_v32 }
 0x45a   : > { %v17448_v3 = vpop.permute.xlu0 %17447  ;;  %v12245_v51 = vcombine.low %v12223_v42, %v12230_v1  ;;  %v16738_v54 = vcombine.high %v10989_v18, %v10996_v29  ;;  %v12264_v40 = vcombine.low %v11012_v52, %v11027_v53  ;;  %v12265_v59 = vcombine.low %v20206_v57, %v11035_v28 }
 0x45b   : > { %v17450_v2 = vunpack.i.h.bf16 %v17448_v3  ;;  %v17449_v36 = vunpack.i.l.bf16 %v17448_v3  ;;  %v15683_v5 = vsel %vm9368_vm5, %v15675_v55, %v17445_v45  ;;  %v15682_v56 = vsel %vm9368_vm5, %v15674_v27, %v17444_v6  ;;  %v17566_v6 = vld [vmem:[#allocation3 + $0x40] sm:$0xff] }
 0x45c   : > { %v17453_v4 = vpop.permute.xlu1 %17452  ;;  %v12246_v27 = vcombine.low %v12237_v16, %v12244_v62  ;;  %v12272_v53 = vrot.slane %v12262_v60, %v17898_v43  ;;  %v12286_v39 = vrot.slane %v12264_v40, %v17898_v43  ;;  %v12293_v44 = vrot.slane %v12265_v59, %v17898_v43  ;;  %v17567_v60 = vld [vmem:[#allocation3 + $0x60] sm:$0xff] }
 0x45d   : > { %v15690_v14 = vsel %vm9377_vm6, %v15682_v56, %v17449_v36  ;;  %v15691_v38 = vsel %vm9377_vm6, %v15683_v5, %v17450_v2  ;;  %v17455_v0 = vunpack.i.h.bf16 %v17453_v4  ;;  %v17454_v21 = vunpack.i.l.bf16 %v17453_v4 }
 0x45e   : > { %v17458_v12 = vpop.permute.xlu0 %17457  ;;  %v12253_v5 = vrot.slane %v12245_v51, %v17898_v43  ;;  %v12260_v56 = vrot.slane %v12246_v27, %v17898_v43 }
 0x45f   : > { %v17460_v41 = vunpack.i.h.bf16 %v17458_v12  ;;  %v17459_v17 = vunpack.i.l.bf16 %v17458_v12  ;;  %v15699_v7 = vsel %vm9386_vm7, %v15691_v38, %v17455_v0  ;;  %v15698_v24 = vsel %vm9386_vm7, %v15690_v14, %v17454_v21 }
 0x460   : > { %v17463_v9 = vpop.permute.xlu1 %17462  ;;  %v12279_v14 = vrot.slane %v16738_v54, %v17898_v43  ;;  %17141 = vmatmul.mubr.msk.bf16.gmra.mrb[88].mxu0 %vm807_vm0, %v12212_v20 }
 0x461   : > { %v15706_v26 = vsel %vm9395_vm8, %v15698_v24, %v17459_v17  ;;  %v15707_v19 = vsel %vm9395_vm8, %v15699_v7, %v17460_v41  ;;  %v17465_v37 = vunpack.i.h.bf16 %v17463_v9  ;;  %v17464_v13 = vunpack.i.l.bf16 %v17463_v9  ;;  %17144 = vmatprep.mubr.msk.bf16.mxu0 %vm17639_vm1, %v20744_v32 }
 0x462   : > { %v17468_v63 = vpop.permute.xlu0 %17467  ;;  %v15714_v55 = vpack.c.bf16 %v15707_v19, %v15706_v26  ;;  %v12261_v41 = vcombine.low %v12253_v5, %v12260_v56  ;;  %v12294_v52 = vcombine.low %v12272_v53, %v12279_v14  ;;  %v12295_v7 = vcombine.low %v12286_v39, %v12293_v44 }
 0x463   : > { %v17470_v58 = vunpack.i.h.bf16 %v17468_v63  ;;  %v17469_v8 = vunpack.i.l.bf16 %v17468_v63  ;;  %v15661_v45 = vsel %vm807_vm0, %v19876_v11, %v17465_v37  ;;  %v15660_v3 = vsel %vm807_vm0, %v17566_v6, %v17464_v13  ;;  %v15431_v13 = vld [vmem:[#allocation3 + $0x92] sm:$0xff] }
 0x464   : > { %15846 = vmatmul.mubr.bf16.gmra.mrb[96].mxu1 %v15714_v55  ;;  %v17473_v36 = vpop.permute.xlu1 %17472  ;;  %v12302_v27 = vrot.slane %v12294_v52, %v17898_v43  ;;  %v16707_v52 = vld.sshfl [vmem:[%s19422_s18 + $0x10c] sm:$0x1 pattern:$0x75316420] }
 0x465   : > { %v15668_v42 = vsel %vm9350_vm3, %v15660_v3, %v17469_v8  ;;  %v15669_v2 = vsel %vm9350_vm3, %v15661_v45, %v17470_v58  ;;  %16801 = vmatprep.mubr.msk.bf16.mxu1 %vm807_vm0, %v15717_v15  ;;  %v17475_v1 = vunpack.i.h.bf16 %v17473_v36  ;;  %v17474_v30 = vunpack.i.l.bf16 %v17473_v36 }
 0x466   : > { %v17478_v11 = vpop.permute.xlu0 %17477  ;;  %v12309_v58 = vrot.slane %v12295_v7, %v17898_v43  ;;  %v11036_v7 = vcombine.high %v20206_v57, %v20206_v57  ;;  %v16712_v57 = vld.sshfl [vmem:[%s19422_s18 + $0x120] sm:$0x33 pattern:$0x75316420] }
 0x467   : > { %v17480_v10 = vunpack.i.h.bf16 %v17478_v11  ;;  %v17479_v31 = vunpack.i.l.bf16 %v17478_v11  ;;  %v15677_v38 = vsel %vm9359_vm4, %v15669_v2, %v17475_v1  ;;  %v15676_v4 = vsel %vm9359_vm4, %v15668_v42, %v17474_v30 }
 0x468   : > { %v17483_v18 = vpop.permute.xlu1 %17482  ;;  %17145 = vmatmul.mubr.msk.bf16.gmra.mrb[92].mxu0 %vm807_vm0, %v12261_v41  ;;  %v15719_v42 = vpack.c.bf16 %v15431_v13, %v19914_v50  ;;  %v12310_v30 = vcombine.low %v12302_v27, %v12309_v58 }
 0x469   : > { %v15685_v15 = vsel %vm9368_vm5, %v15677_v38, %v17480_v10  ;;  %v15684_v35 = vsel %vm9368_vm5, %v15676_v4, %v17479_v31  ;;  %v17485_v0 = vunpack.i.h.bf16 %v17483_v18  ;;  %v17484_v21 = vunpack.i.l.bf16 %v17483_v18  ;;  %17148 = vmatprep.mubr.msk.bf16.mxu0 %vm17639_vm1, %v20744_v32 }
 0x46a   : > { %v17488_v12 = vpop.permute.xlu0 %17487 }
 0x46b   : > { %v17490_v16 = vunpack.i.h.bf16 %v17488_v12  ;;  %v17489_v62 = vunpack.i.l.bf16 %v17488_v12  ;;  %v15692_v17 = vsel %vm9377_vm6, %v15684_v35, %v17484_v21  ;;  %v15693_v29 = vsel %vm9377_vm6, %v15685_v15, %v17485_v0 }
 0x46c   : > { %v17493_v9 = vpop.permute.xlu1 %17492 }
 0x46d   : > { %v15701_v24 = vsel %vm9386_vm7, %v15693_v29, %v17490_v16  ;;  %v15700_v28 = vsel %vm9386_vm7, %v15692_v17, %v17489_v62  ;;  %v17495_v26 = vunpack.i.h.bf16 %v17493_v9  ;;  %v17494_v19 = vunpack.i.l.bf16 %v17493_v9  ;;  %v16709_v9 = vld.sshfl [vmem:[%s19422_s18 + $0x114] sm:$0x1 pattern:$0x75316420] }
 0x46e   : > { %v17498_v20 = vpop.permute.xlu0 %17497 }
 0x46f   : > { %v17500_v51 = vunpack.i.h.bf16 %v17498_v20  ;;  %v17499_v37 = vunpack.i.l.bf16 %v17498_v20  ;;  %v15708_v63 = vsel %vm9395_vm8, %v15700_v28, %v17494_v19  ;;  %v15709_v55 = vsel %vm9395_vm8, %v15701_v24, %v17495_v26  ;;  %v16708_v24 = vld.sshfl [vmem:[%s19422_s18 + $0x110] sm:$0x33 pattern:$0x75316420] }
 0x470   : > { %v17503_v45 = vpop.permute.xlu1 %17502  ;;  %v15716_v6 = vpack.c.bf16 %v15709_v55, %v15708_v63  ;;  %17149 = vmatmul.mubr.msk.bf16.gmra.mrb[96].mxu0 %vm807_vm0, %v12310_v30  ;;  %v11050_v28 = vrot.slane %v16707_v52, %v17898_v43  ;;  %v11058_v26 = vcombine.high %v16708_v24, %v16708_v24  ;;  %v11065_v19 = vrot.slane %v16708_v24, %v17898_v43  ;;  %v16710_v20 = vld.sshfl [vmem:[%s19422_s18 + $0x118] sm:$0x33 pattern:$0x75316420] }
 0x471   : > { %v15663_v8 = vsel %vm807_vm0, %v19901_v25, %v17500_v51  ;;  %v15662_v54 = vsel %vm807_vm0, %v17567_v60, %v17499_v37  ;;  %v17505_v3 = vunpack.i.h.bf16 %v17503_v45  ;;  %v17504_v40 = vunpack.i.l.bf16 %v17503_v45  ;;  %17152 = vmatprep.mubr.msk.bf16.mxu0 %vm17639_vm1, %v20744_v32  ;;  %v16711_v55 = vld.sshfl [vmem:[%s19422_s18 + $0x11c] sm:$0x1 pattern:$0x75316420] }
 0x472   : > { %v17508_v59 = vpop.permute.xlu0 %17507  ;;  %15854 = vmatmul.mubr.bf16.gmra.mrb[100].mxu1 %v15716_v6  ;;  %v11088_v51 = vrot.slane %v16709_v9, %v17898_v43  ;;  %v12311_v37 = vcombine.low %v11036_v7, %v11050_v28  ;;  %v11072_v13 = vrot.slane %v11058_v26, %v17898_v43  ;;  %v11103_v63 = vrot.slane %v16710_v20, %v17898_v43 }
 0x473   : > { %v17510_v2 = vunpack.i.h.bf16 %v17508_v59  ;;  %v17509_v36 = vunpack.i.l.bf16 %v17508_v59  ;;  %v15670_v1 = vsel %vm9350_vm3, %v15662_v54, %v17504_v40  ;;  %v15671_v25 = vsel %vm9350_vm3, %v15663_v8, %v17505_v3  ;;  %16802 = vmatprep.mubr.msk.bf16.mxu1 %vm807_vm0, %v15719_v42 }
 0x474   : > { %v17513_v56 = vpop.permute.xlu1 %17512  ;;  %v11096_v27 = vcombine.high %v16710_v20, %v16710_v20  ;;  %v12321_v58 = vrot.slane %v12311_v37, %v17898_v43  ;;  %v11126_v8 = vrot.slane %v16711_v55, %v17898_v43  ;;  %v12312_v60 = vcombine.low %v11065_v19, %v11072_v13 }
 0x475   : > { %v15679_v11 = vsel %vm9359_vm4, %v15671_v25, %v17510_v2  ;;  %v15678_v5 = vsel %vm9359_vm4, %v15670_v1, %v17509_v36  ;;  %v17515_v10 = vunpack.i.h.bf16 %v17513_v56  ;;  %v17514_v31 = vunpack.i.l.bf16 %v17513_v56 }
 0x476   : > { %v17518_v53 = vpop.permute.xlu0 %17517  ;;  %v16739_v54 = vcombine.high %v11065_v19, %v11072_v13  ;;  %v12314_v45 = vcombine.low %v11088_v51, %v11103_v63  ;;  %v11110_v6 = vrot.slane %v11096_v27, %v17898_v43  ;;  %v11111_v3 = vcombine.high %v11103_v63, %v11103_v63 }
 0x477   : > { %v17520_v14 = vunpack.i.h.bf16 %v17518_v53  ;;  %v17519_v50 = vunpack.i.l.bf16 %v17518_v53  ;;  %v15687_v38 = vsel %vm9368_vm5, %v15679_v11, %v17515_v10  ;;  %v15686_v4 = vsel %vm9368_vm5, %v15678_v5, %v17514_v31 }
 0x478   : > { %v17523_v15 = vpop.permute.xlu1 %17522  ;;  %v11134_v40 = vcombine.high %v16712_v57, %v16712_v57  ;;  %v11141_v59 = vrot.slane %v16712_v57, %v17898_v43  ;;  %v12328_v42 = vrot.slane %v12312_v60, %v17898_v43  ;;  %v12335_v2 = vrot.slane %v16739_v54, %v17898_v43 }
 0x479   : > { %v15694_v39 = vsel %vm9377_vm6, %v15686_v4, %v17519_v50  ;;  %v15695_v44 = vsel %vm9377_vm6, %v15687_v38, %v17520_v14  ;;  %v17525_v35 = vunpack.i.h.bf16 %v17523_v15  ;;  %v17524_v18 = vunpack.i.l.bf16 %v17523_v15 }
 0x47a   : > { %v17528_v0 = vpop.permute.xlu0 %17527  ;;  %v12342_v36 = vrot.slane %v12314_v45, %v17898_v43  ;;  %v11112_v1 = vcombine.high %v11110_v6, %v11110_v6  ;;  %v11148_v25 = vrot.slane %v11134_v40, %v17898_v43  ;;  %v12360_v30 = vcombine.low %v11110_v6, %v11111_v3  ;;  %v16717_v45 = vld.sshfl [vmem:[%s19422_s18 + $0x134] sm:$0x1 pattern:$0x75316420] }
 0x47b   : > { %v17530_v21 = vunpack.i.h.bf16 %v17528_v0  ;;  %v17529_v12 = vunpack.i.l.bf16 %v17528_v0  ;;  %v15703_v16 = vsel %vm9386_vm7, %v15695_v44, %v17525_v35  ;;  %v15702_v62 = vsel %vm9386_vm7, %v15694_v39, %v17524_v18  ;;  %v16713_v44 = vld.sshfl [vmem:[%s19422_s18 + $0x124] sm:$0x1 pattern:$0x75316420] }
 0x47c   : > { %v12343_v11 = vcombine.low %v12321_v58, %v12328_v42  ;;  %v12344_v5 = vcombine.low %v12335_v2, %v12342_v36  ;;  %v12361_v56 = vcombine.low %v11112_v1, %v11126_v8  ;;  %v12362_v10 = vcombine.low %v11141_v59, %v11148_v25  ;;  %v16714_v18 = vld.sshfl [vmem:[%s19422_s18 + $0x128] sm:$0x33 pattern:$0x75316420] }
 0x47d   : > { %v15710_v41 = vsel %vm9395_vm8, %v15702_v62, %v17529_v12  ;;  %v15711_v17 = vsel %vm9395_vm8, %v15703_v16, %v17530_v21  ;;  %v16740_v31 = vcombine.high %v11141_v59, %v11148_v25  ;;  %v12370_v53 = vrot.slane %v12360_v30, %v17898_v43  ;;  %v16715_v12 = vld.sshfl [vmem:[%s19422_s18 + $0x12c] sm:$0x1 pattern:$0x75316420] }
 0x47e   : > { %v15718_v29 = vpack.c.bf16 %v15711_v17, %v15710_v41  ;;  %v12351_v14 = vrot.slane %v12343_v11, %v17898_v43  ;;  %v12358_v50 = vrot.slane %v12344_v5, %v17898_v43  ;;  %v12377_v38 = vrot.slane %v12361_v56, %v17898_v43  ;;  %v16716_v17 = vld.sshfl [vmem:[%s19422_s18 + $0x130] sm:$0x33 pattern:$0x75316420] }
 0x47f   : > { %v12384_v4 = vrot.slane %v12362_v10, %v17898_v43  ;;  %v12391_v39 = vrot.slane %v16740_v31, %v17898_v43  ;;  %v11164_v0 = vrot.slane %v16713_v44, %v17898_v43  ;;  %v11172_v16 = vcombine.high %v16714_v18, %v16714_v18  ;;  %v16718_v40 = vld.sshfl [vmem:[%s19422_s18 + $0x138] sm:$0x33 pattern:$0x75316420] }
 0x480   : > { %15862 = vmatmul.mubr.bf16.gmra.mrb[104].mxu1 %v15718_v29  ;;  %v12359_v15 = vcombine.low %v12351_v14, %v12358_v50  ;;  %v12392_v35 = vcombine.low %v12370_v53, %v12377_v38  ;;  %v11179_v62 = vrot.slane %v16714_v18, %v17898_v43  ;;  %v11202_v29 = vrot.slane %v16715_v12, %v17898_v43  ;;  %v16719_v42 = vld.sshfl [vmem:[%s19422_s18 + $0x13c] sm:$0x1 pattern:$0x75316420]  ;;  %v16804_v18 = vld [vmem:[%s20659_s9 + $0x1] ss:$0 sm:$0xff] }
 0x481   : > { %17172 = vmatprep.mubr.msk.bf16.mxu1 %vm17639_vm1, %v20744_v32  ;;  %v12393_v21 = vcombine.low %v12384_v4, %v12391_v39  ;;  %v11186_v7 = vrot.slane %v11172_v16, %v17898_v43  ;;  %v11210_v28 = vcombine.high %v16716_v17, %v16716_v17  ;;  %v11217_v9 = vrot.slane %v16716_v17, %v17898_v43  ;;  %s17648_s18 = smov [#allocation4]  }
 0x482   : > { %17153 = vmatmul.mubr.msk.bf16.gmra.mrb[100].mxu0 %vm807_vm0, %v12359_v15  ;;  %v12400_v41 = vrot.slane %v12392_v35, %v17898_v43  ;;  %v11187_v24 = vcombine.high %v11179_v62, %v11179_v62  ;;  %v12409_v26 = vcombine.low %v11164_v0, %v11179_v62  ;;  %v11240_v59 = vrot.slane %v16717_v45, %v17898_v43 }
 0x483   : > { %17156 = vmatprep.mubr.msk.bf16.mxu0 %vm17639_vm1, %v20744_v32  ;;  %v12407_v52 = vrot.slane %v12393_v21, %v17898_v43  ;;  %v11188_v19 = vcombine.high %v11186_v7, %v11186_v7  ;;  %v11224_v20 = vrot.slane %v11210_v28, %v17898_v43  ;;  %v11248_v2 = vcombine.high %v16718_v40, %v16718_v40  ;;  %v16806_v21 = vld [vmem:[%s20660_s10 + $0x1] ss:$0 sm:$0xff] }
 0x484   : > { %v12410_v51 = vcombine.low %v11186_v7, %v11187_v24  ;;  %v12419_v13 = vrot.slane %v12409_v26, %v17898_v43  ;;  %v11255_v36 = vrot.slane %v16718_v40, %v17898_v43  ;;  %v11278_v5 = vrot.slane %v16719_v42, %v17898_v43 }
 0x485   : > { %v12408_v37 = vcombine.low %v12400_v41, %v12407_v52  ;;  %v12411_v63 = vcombine.low %v11188_v19, %v11202_v29  ;;  %v12412_v55 = vcombine.low %v11217_v9, %v11224_v20  ;;  %v16741_v6 = vcombine.high %v11217_v9, %v11224_v20 }
 0x486   : > { %v12426_v27 = vrot.slane %v12410_v51, %v17898_v43  ;;  %v11262_v30 = vrot.slane %v11248_v2, %v17898_v43  ;;  %v11263_v11 = vcombine.high %v11255_v36, %v11255_v36  ;;  %v12459_v56 = vcombine.low %v11240_v59, %v11255_v36 }
 0x487   : > { %v12433_v58 = vrot.slane %v12411_v63, %v17898_v43  ;;  %v12440_v57 = vrot.slane %v12412_v55, %v17898_v43  ;;  %v12468_v25 = vrot.slane %v16741_v6, %v17898_v43  ;;  %v17552_v55 = vld [vmem:[%s20661_s11] sm:$0xff]  }
 0x488   : > { %v12441_v8 = vcombine.low %v12419_v13, %v12426_v27  ;;  %v11264_v10 = vcombine.high %v11262_v30, %v11262_v30  ;;  %v12460_v31 = vcombine.low %v11262_v30, %v11263_v11  ;;  %v12475_v53 = vrot.slane %v12459_v56, %v17898_v43  ;;  %17169 = vmatpush3.bf16.msra.mxu1 %v17552_v55 }
 0x489   : > { %v12442_v60 = vcombine.low %v12433_v58, %v12440_v57  ;;  %17170 = vmatprep.subr.bf16.mxu1 %v20744_v32 }
 0x48a   : > { %17157 = vmatmul.mubr.msk.bf16.gmra.mrb[104].mxu0 %vm807_vm0, %v12408_v37  ;;  %v12449_v54 = vrot.slane %v12441_v8, %v17898_v43  ;;  %v12461_v14 = vcombine.low %v11264_v10, %v11278_v5  ;;  %v12482_v50 = vrot.slane %v12460_v31, %v17898_v43  ;;  %v12490_v38 = vcombine.low %v12468_v25, %v12475_v53  ;;  %v4356_v10 = vld [vmem:[%s20728_s4 + $0x140] sm:$0xf]  ;;  %v13000_v31 = vld [vmem:[%s20747_s28 + $0x68] sm:$0xff]  ;;  %v13001_v53 = vld [vmem:[%s20747_s28 + $0x70] sm:$0xff] }
 0x48b   : > { %17160 = vmatprep.mubr.msk.bf16.mxu0 %vm17639_vm1, %v20744_v32  ;;  %v12456_v3 = vrot.slane %v12442_v60, %v17898_v43 }
 0x48c   : > { %v12489_v4 = vrot.slane %v12461_v14, %v17898_v43  ;;  %v12498_v44 = vrot.slane %v12490_v38, %v17898_v43  ;;  %v13002_v14 = vld [vmem:[%s20747_s28 + $0x78] sm:$0xff] }
 0x48d   : > { %v12457_v1 = vcombine.low %v12449_v54, %v12456_v3 }
 0x48e   : > { %v12491_v39 = vcombine.low %v12482_v50, %v12489_v4  ;;  %v17553_v50 = vld [vmem:[%s20661_s11 + $0x8] sm:$0xff]  }
 0x48f   : > { %17171 = vmatpush3.bf16.msra.mxu1 %v17553_v50  ;;  %v13024_v50 = vld [vmem:[%s20747_s28 + $0x128] sm:$0xff] }
 0x490   : > { %v12505_v15 = vrot.slane %v12491_v39, %v17898_v43  ;;  %v13003_v39 = vld [vmem:[%s20747_s28 + $0x80] sm:$0xff]  ;;  %17176 = vmatprep.subr.bf16.mxu1 %v20744_v32 }
 0x492   : > { %17161 = vmatmul.mubr.msk.bf16.gmra.mrb[108].mxu0 %vm807_vm0, %v12457_v1  ;;  %v12506_v35 = vcombine.low %v12498_v44, %v12505_v15 }
 0x493   : > { %17164 = vmatprep.mubr.msk.bf16.mxu0 %vm17639_vm1, %v20744_v32 }
 0x49a   : > { %17165 = vmatmul.mubr.msk.bf16.gmra.mrb[112].mxu0 %vm807_vm0, %v12506_v35  ;;  %v13004_v35 = vld [vmem:[%s20747_s28 + $0x88] sm:$0xff] }
 0x4db   : > { %v12678_v38 = vpop.f32.mrb[44].mxu0 }
 0x4dc   : > { %v17098_v4 = vpop.f32.mrb[45].mxu0 }
 0x4dd   : > { %v12681_v44 = vpop.f32.mrb[46].mxu0 }
 0x4de   : > { %v17099_v15 = vpop.f32.mrb[47].mxu0 }
 0x4df   : > { %v13027_v15 = vld [vmem:[%s20747_s28 + $0x140] sm:$0xff] }
 0x529   : > { %v15839_v0 = vpop.f32.mrb[92].mxu1 }
 0x52a   : > { %v15878_v12 = vmul.f32 %v16804_v18, %v15839_v0  ;;  %v15841_v16 = vpop.f32.mrb[93].mxu1 }
 0x52b   : > { %v15842_v62 = vpop.f32.mrb[94].mxu1 }
 0x52c   : > { %v15894_v41 = vadd.f32 %v16806_v21, %v15878_v12  ;;  %v15879_v17 = vmul.f32 %v16804_v18, %v15842_v62  ;;  %v15844_v29 = vpop.f32.mrb[95].mxu1  ;;  %v13006_v62 = vld [vmem:[%s20747_s28 + $0x98] sm:$0xff] }
 0x52d   : > { %v13007_v29 = vld [vmem:[%s20747_s28 + $0xa0] sm:$0xff] }
 0x52e   : > { %v15902_v52 = vmax.f32 %v15894_v41, 0.0  ;;  %v15895_v43 = vadd.f32 %v16806_v21, %v15879_v17 }
 0x530   : > { %v15903_v7 = vmax.f32 %v15895_v43, 0.0  ;;  %15918 = vrot.lane.b32.xlu1 %v15902_v52, %s20745_s30  ;;  %v13008_v52 = vld [vmem:[%s20747_s28 + $0xa8] sm:$0xff]  ;;  %v13009_v43 = vld [vmem:[%s20747_s28 + $0xb0] sm:$0xff] }
 0x532   : > { %15920 = vrot.lane.b32.xlu0 %v15903_v7, %s20745_s30 }
 0x537   : > { %v15847_v24 = vpop.f32.mrb[96].mxu1 }
 0x538   : > { %v15880_v28 = vmul.f32 %v16804_v18, %v15847_v24  ;;  %v15849_v9 = vpop.f32.mrb[97].mxu1  ;;  %v13010_v24 = vld [vmem:[%s20747_s28 + $0xb8] sm:$0xff] }
 0x539   : > { %v15850_v26 = vpop.f32.mrb[98].mxu1 }
 0x53a   : > { %v15896_v19 = vadd.f32 %v16806_v21, %v15880_v28  ;;  %v15881_v20 = vmul.f32 %v16804_v18, %v15850_v26  ;;  %v15852_v51 = vpop.f32.mrb[99].mxu1  ;;  %v13011_v26 = vld [vmem:[%s20747_s28 + $0xc0] sm:$0xff] }
 0x53b   : > { %v13012_v51 = vld [vmem:[%s20747_s28 + $0xc8] sm:$0xff] }
 0x53c   : > { %v15904_v37 = vmax.f32 %v15896_v19, 0.0  ;;  %v15897_v13 = vadd.f32 %v16806_v21, %v15881_v20 }
 0x53e   : > { %v15905_v63 = vmax.f32 %v15897_v13, 0.0  ;;  %15922 = vrot.lane.b32.xlu1 %v15904_v37, %s20745_s30 }
 0x540   : > { %15924 = vrot.lane.b32.xlu0 %v15905_v63, %s20745_s30  ;;  %v13013_v63 = vld [vmem:[%s20747_s28 + $0xd0] sm:$0xff] }
 0x545   : > { %v15855_v27 = vpop.f32.mrb[100].mxu1 }
 0x546   : > { %v15882_v58 = vmul.f32 %v16804_v18, %v15855_v27  ;;  %v15857_v57 = vpop.f32.mrb[101].mxu1 }
 0x547   : > { %v15858_v8 = vpop.f32.mrb[102].mxu1 }
 0x548   : > { %v15898_v60 = vadd.f32 %v16806_v21, %v15882_v58  ;;  %v15883_v54 = vmul.f32 %v16804_v18, %v15858_v8  ;;  %v15860_v45 = vpop.f32.mrb[103].mxu1  ;;  %v13014_v58 = vld [vmem:[%s20747_s28 + $0xd8] sm:$0xff] }
 0x54a   : > { %v15906_v6 = vmax.f32 %v15898_v60, 0.0  ;;  %v15899_v3 = vadd.f32 %v16806_v21, %v15883_v54  ;;  %v13015_v60 = vld [vmem:[%s20747_s28 + $0xe0] sm:$0xff] }
 0x54c   : > { %v15907_v40 = vmax.f32 %v15899_v3, 0.0  ;;  %15926 = vrot.lane.b32.xlu1 %v15906_v6, %s20745_s30  ;;  %v13016_v6 = vld [vmem:[%s20747_s28 + $0xe8] sm:$0xff] }
 0x54e   : > { %15928 = vrot.lane.b32.xlu0 %v15907_v40, %s20745_s30 }
 0x553   : > { %v15863_v59 = vpop.f32.mrb[104].mxu1 }
 0x554   : > { %v15884_v42 = vmul.f32 %v16804_v18, %v15863_v59  ;;  %v15865_v2 = vpop.f32.mrb[105].mxu1  ;;  %v13017_v59 = vld [vmem:[%s20747_s28 + $0xf0] sm:$0xff] }
 0x555   : > { %v15866_v36 = vpop.f32.mrb[106].mxu1  ;;  %v13018_v2 = vld [vmem:[%s20747_s28 + $0xf8] sm:$0xff] }
 0x556   : > { %v15900_v1 = vadd.f32 %v16806_v21, %v15884_v42  ;;  %v15885_v25 = vmul.f32 %v16804_v18, %v15866_v36  ;;  %v15868_v30 = vpop.f32.mrb[107].mxu1  ;;  %v12686_v18 = vpop.f32.mrb[48].mxu0  ;;  %v13019_v36 = vld [vmem:[%s20747_s28 + $0x100] sm:$0xff] }
 0x557   : > { %v17102_v0 = vpop.f32.mrb[49].mxu0 }
 0x558   : > { %v15908_v11 = vmax.f32 %v15900_v1, 0.0  ;;  %v15901_v5 = vadd.f32 %v16806_v21, %v15885_v25  ;;  %v13005_v21 = vld [vmem:[%s20747_s28 + $0x90] sm:$0xff]  ;;  %v12689_v12 = vpop.f32.mrb[50].mxu0  ;;  %v13020_v25 = vld [vmem:[%s20747_s28 + $0x108] sm:$0xff] }
 0x559   : > { %v17103_v16 = vpop.f32.mrb[51].mxu0 }
 0x55a   : > { %v15909_v56 = vmax.f32 %v15901_v5, 0.0  ;;  %15930 = vrot.lane.b32.xlu1 %v15908_v11, %s20745_s30  ;;  %v12694_v41 = vpop.f32.mrb[52].mxu0  ;;  %v13022_v5 = vld [vmem:[%s20747_s28 + $0x118] sm:$0xff] }
 0x55b   : > { %v17106_v17 = vpop.f32.mrb[53].mxu0 }
 0x55c   : > { %15932 = vrot.lane.b32.xlu0 %v15909_v56, %s20745_s30  ;;  %v12697_v7 = vpop.f32.mrb[54].mxu0  ;;  %s17572_s30 = scalar_lea.vmem %s20599_s17, 1024 }
 0x55d   : > { %v17107_v28 = vpop.f32.mrb[55].mxu0  ;;  %v13033_v7 = vld [vmem:[%s20747_s28 + $0x170] sm:$0xff]  ;;  %p17573_p11 = scmp.ne.s32.totalorder %s20599_s17, %s17572_s30 }
 0x55e   : > { %4559 = vperm.xlu1 %17250, %v4356_v10   ;;  %v12702_v9 = vpop.f32.mrb[56].mxu0 }
 0x55f   : > { %v17110_v19 = vpop.f32.mrb[57].mxu0  ;;  %v13034_v9 = vld [vmem:[%s20747_s28 + $0x178] sm:$0xff]  ;;  %p17574_p12 = pnand %p17573_p11, %p17799_p5 }
 0x560   : > { %13104 = vperm.xlu0 %17249, %v13000_v31   ;;  %v12705_v20 = vpop.f32.mrb[58].mxu0  ;;  %v13023_v31 = vld [vmem:[%s20747_s28 + $0x120] sm:$0xff]  ;;  %v13021_v19 = vld [vmem:[%s20747_s28 + $0x110] sm:$0xff] }
 0x561   : > { %v17111_v37 = vpop.f32.mrb[59].mxu0  ;;  %p17575_p13 = pneg %p17574_p12 }
 0x562   : > { %13109 = vperm.xlu1 %17250, %v13001_v53   ;;  %v12710_v13 = vpop.f32.mrb[60].mxu0  ;;  %v13026_v37 = vld [vmem:[%s20747_s28 + $0x138] sm:$0xff] }
 0x563   : > { %v17114_v55 = vpop.f32.mrb[61].mxu0 }
 0x564   : > { %13114 = vperm.xlu0 %17249, %v13002_v14   ;;  %v12713_v27 = vpop.f32.mrb[62].mxu0  ;;  %v13031_v55 = vld [vmem:[%s20747_s28 + $0x160] sm:$0xff] }
 0x565   : > { %v17115_v57 = vpop.f32.mrb[63].mxu0 }
 0x566   : > { %13119 = vperm.xlu1 %17250, %v13003_v39   ;;  %v12718_v8 = vpop.f32.mrb[64].mxu0  ;;  %v13025_v39 = vld [vmem:[%s20747_s28 + $0x130] sm:$0xff]  ;;  %v13036_v57 = vld [vmem:[%s20747_s28 + $0x188] sm:$0xff] }
 0x567   : > { %v17118_v54 = vpop.f32.mrb[65].mxu0 }
 0x568   : > { %13124 = vperm.xlu0 %17249, %v13004_v35   ;;  %v12721_v45 = vpop.f32.mrb[66].mxu0  ;;  %v13028_v35 = vld [vmem:[%s20747_s28 + $0x148] sm:$0xff] }
 0x569   : > { %v17119_v3 = vpop.f32.mrb[67].mxu0 }
 0x56a   : > { %13129 = vperm.xlu1 %17250, %v13005_v21   ;;  %v12726_v40 = vpop.f32.mrb[68].mxu0  ;;  %v13029_v21 = vld [vmem:[%s20747_s28 + $0x150] sm:$0xff] }
 0x56b   : > { %v17122_v42 = vpop.f32.mrb[69].mxu0 }
 0x56c   : > { %13134 = vperm.xlu0 %17249, %v13006_v62   ;;  %v12729_v1 = vpop.f32.mrb[70].mxu0  ;;  %v13030_v62 = vld [vmem:[%s20747_s28 + $0x158] sm:$0xff]  ;;  %v16638_v42 = vld [vmem:[%s20659_s9] ss:$0 sm:$0xff] }
 0x56d   : > { %v17123_v30 = vpop.f32.mrb[71].mxu0  ;;  %v9568_v1 = vmul.f32 %v16638_v42, %v19681_v61  ;;  %v9573_v61 = vmul.f32 %v16638_v42, %v19707_v33 }
 0x56e   : > { %13139 = vperm.xlu1 %17250, %v13007_v29   ;;  %v12734_v11 = vpop.f32.mrb[72].mxu0  ;;  %v13032_v29 = vld [vmem:[%s20747_s28 + $0x168] sm:$0xff]  ;;  %v16639_v30 = vld [vmem:[%s20660_s10] ss:$0 sm:$0xff] }
 0x56f   : > { %v17126_v56 = vpop.f32.mrb[73].mxu0  ;;  %v9570_v11 = vmul.f32 %v16638_v42, %v19696_v34 }
 0x570   : > { %13144 = vperm.xlu0 %17249, %v13008_v52   ;;  %v12737_v10 = vpop.f32.mrb[74].mxu0 }
 0x571   : > { %v17127_v53 = vpop.f32.mrb[75].mxu0 }
 0x572   : > { %13149 = vperm.xlu1 %17250, %v13009_v43   ;;  %v12742_v14 = vpop.f32.mrb[76].mxu0 }
 0x573   : > { %v17130_v38 = vpop.f32.mrb[77].mxu0  ;;  %v9571_v14 = vmul.f32 %v16638_v42, %v19698_v23 }
 0x574   : > { %13154 = vperm.xlu0 %17249, %v13010_v24   ;;  %v12745_v4 = vpop.f32.mrb[78].mxu0 }
 0x575   : > { %v17131_v44 = vpop.f32.mrb[79].mxu0  ;;  %v9585_v4 = vadd.f32 %v16639_v30, %v9570_v11 }
 0x576   : > { %13159 = vperm.xlu1 %17250, %v13011_v26   ;;  %v12750_v18 = vpop.f32.mrb[80].mxu0  ;;  %v13035_v26 = vld [vmem:[%s20747_s28 + $0x180] sm:$0xff]  ;;  %v9574_v44 = vmul.f32 %v16638_v42, %v19709_v48 }
 0x577   : > { %v17134_v0 = vpop.f32.mrb[81].mxu0  ;;  %v9593_v23 = vmax.f32 %v9585_v4, 0.0 }
 0x578   : > { %13164 = vperm.xlu0 %17249, %v13012_v51   ;;  %v12753_v12 = vpop.f32.mrb[82].mxu0 }
 0x579   : > { %v17135_v16 = vpop.f32.mrb[83].mxu0 }
 0x57a   : > { %13169 = vperm.xlu1 %17250, %v13013_v63   ;;  %v12758_v41 = vpop.f32.mrb[84].mxu0 }
 0x57b   : > { %v17138_v17 = vpop.f32.mrb[85].mxu0 }
 0x57c   : > { %13174 = vperm.xlu0 %17249, %v13014_v58   ;;  %v12761_v52 = vpop.f32.mrb[86].mxu0  ;;  %v9589_v17 = vadd.f32 %v16639_v30, %v9574_v44 }
 0x57d   : > { %v17139_v43 = vpop.f32.mrb[87].mxu0 }
 0x57e   : > { %13179 = vperm.xlu1 %17250, %v13015_v60   ;;  %v12766_v24 = vpop.f32.mrb[88].mxu0 }
 0x57f   : > { %v17142_v28 = vpop.f32.mrb[89].mxu0 }
 0x580   : > { %13184 = vperm.xlu0 %17249, %v13016_v6   ;;  %v12769_v20 = vpop.f32.mrb[90].mxu0 }
 0x581   : > { %v17143_v51 = vpop.f32.mrb[91].mxu0 }
 0x582   : > { %13189 = vperm.xlu1 %17250, %v13017_v59   ;;  %v12774_v13 = vpop.f32.mrb[92].mxu0 }
 0x583   : > { %v17146_v63 = vpop.f32.mrb[93].mxu0 }
 0x584   : > { %13194 = vperm.xlu0 %17249, %v13018_v2   ;;  %v12777_v27 = vpop.f32.mrb[94].mxu0 }
 0x585   : > { %v17147_v58 = vpop.f32.mrb[95].mxu0 }
 0x586   : > { %13199 = vperm.xlu1 %17250, %v13019_v36   ;;  %v12782_v8 = vpop.f32.mrb[96].mxu0 }
 0x587   : > { %v17150_v60 = vpop.f32.mrb[97].mxu0 }
 0x588   : > { %13204 = vperm.xlu0 %17249, %v13020_v25   ;;  %v12785_v54 = vpop.f32.mrb[98].mxu0  ;;  %v9569_v25 = vmul.f32 %v16638_v42, %v19683_v49 }
 0x589   : > { %v17151_v45 = vpop.f32.mrb[99].mxu0 }
 0x58a   : > { %13214 = vperm.xlu1 %17250, %v13022_v5   ;;  %v12790_v6 = vpop.f32.mrb[100].mxu0  ;;  %v9584_v53 = vadd.f32 %v16639_v30, %v9569_v25 }
 0x58b   : > { %v17154_v3 = vpop.f32.mrb[101].mxu0 }
 0x58c   : > { %13219 = vperm.xlu0 %17249, %v13023_v31   ;;  %v12793_v40 = vpop.f32.mrb[102].mxu0  ;;  %v9583_v31 = vadd.f32 %v16639_v30, %v9568_v1  ;;  %v9592_v0 = vmax.f32 %v9584_v53, 0.0 }
 0x58d   : > { %v17155_v59 = vpop.f32.mrb[103].mxu0 }
 0x58e   : > { %13224 = vperm.xlu1 %17250, %v13024_v50   ;;  %v12798_v2 = vpop.f32.mrb[104].mxu0  ;;  %v9572_v50 = vmul.f32 %v16638_v42, %v19705_v22  ;;  %v9591_v18 = vmax.f32 %v9583_v31, 0.0 }
 0x58f   : > { %v17158_v36 = vpop.f32.mrb[105].mxu0 }
 0x590   : > { %13229 = vperm.xlu0 %17249, %v13025_v39   ;;  %v12801_v5 = vpop.f32.mrb[106].mxu0  ;;  %v9587_v12 = vadd.f32 %v16639_v30, %v9572_v50 }
 0x591   : > { %v17159_v56 = vpop.f32.mrb[107].mxu0 }
 0x592   : > { %13239 = vperm.xlu1 %17250, %v13027_v15   ;;  %v12806_v10 = vpop.f32.mrb[108].mxu0  ;;  %v9575_v15 = vmul.f32 %v16638_v42, %v19711_v46  ;;  %v9595_v48 = vmax.f32 %v9587_v12, 0.0 }
 0x593   : > { %v17162_v38 = vpop.f32.mrb[109].mxu0 }
 0x594   : > { %13244 = vperm.xlu0 %17249, %v13028_v35   ;;  %v12809_v39 = vpop.f32.mrb[110].mxu0  ;;  %v16035_v38 = vld [vmem:[%s20663_s13] sm:$0x3] }
 0x595   : > { %v17163_v34 = vpop.f32.mrb[111].mxu0  ;;  %v16043_v44 = vsel %vm16041_vm10, %v16035_v38, 0 }
 0x596   : > { %13249 = vperm.xlu1 %17250, %v13029_v21   ;;  %v9586_v21 = vadd.f32 %v16639_v30, %v9571_v14  ;;  %v12814_v16 = vpop.f32.mrb[112].mxu0 }
 0x597   : > { %v17166_v41 = vpop.f32.mrb[113].mxu0 }
 0x598   : > { %13254 = vperm.xlu0 %17249, %v13030_v62   ;;  %v9588_v62 = vadd.f32 %v16639_v30, %v9573_v61  ;;  %v9594_v52 = vmax.f32 %v9586_v21, 0.0  ;;  %v12817_v27 = vpop.f32.mrb[114].mxu0 }
 0x599   : > { %v17167_v8 = vpop.f32.mrb[115].mxu0 }
 0x59a   : > { %13264 = vperm.xlu1 %17250, %v13032_v29   ;;  %v9590_v29 = vadd.f32 %v16639_v30, %v9575_v15 }
 0x59c   : > { %13269 = vperm.xlu0 %17249, %v13033_v7   ;;  %v9596_v7 = vmax.f32 %v9588_v62, 0.0 }
 0x59e   : > { %13274 = vperm.xlu1 %17250, %v13034_v9   ;;  %v9597_v9 = vmax.f32 %v9589_v17, 0.0 }
 0x5a0   : > { %13279 = vperm.xlu0 %17249, %v13035_v26   ;;  %v9598_v26 = vmax.f32 %v9590_v29, 0.0 }
 0x5a2   : > { %13209 = vperm.xlu1 %17250, %v13021_v19   ;;  %v15919_v49 = vpop.permute.xlu1 %15918 }
 0x5a3   : > { %v20490_v46 = vsel %vm807_vm0, %v9591_v18, %v15919_v49 }
 0x5a4   : > { %13234 = vperm.xlu0 %17249, %v13026_v37   ;;  %v15921_v35 = vpop.permute.xlu0 %15920  ;;  %v15950_v19 = vsel %vm9350_vm3, %v20490_v46, 0.0 }
 0x5a5   : > { %v20487_v33 = vsel %vm807_vm0, %v9592_v0, %v15921_v35 }
 0x5a6   : > { %13259 = vperm.xlu1 %17250, %v13031_v55   ;;  %v15951_v24 = vsel %vm9350_vm3, %v20487_v33, 0.0 }
 0x5a7   : > { %v15952_v37 = vadd.f32 %v15951_v24, %v15950_v19 }
 0x5a8   : > { %13284 = vperm.xlu0 %17249, %v13036_v57  }
 0x5b0   : > { %v15923_v22 = vpop.permute.xlu1 %15922 }
 0x5b1   : > { %v20493_v43 = vsel %vm807_vm0, %v9593_v23, %v15923_v22 }
 0x5b2   : > { %v15925_v28 = vpop.permute.xlu0 %15924  ;;  %v15953_v20 = vsel %vm9350_vm3, %v20493_v43, 0.0 }
 0x5b3   : > { %v20502_v13 = vsel %vm807_vm0, %v9594_v52, %v15925_v28  ;;  %v15954_v63 = vadd.f32 %v15953_v20, %v15952_v37 }
 0x5b4   : > { %v15955_v58 = vsel %vm9350_vm3, %v20502_v13, 0.0 }
 0x5b5   : > { %v15956_v54 = vadd.f32 %v15955_v58, %v15954_v63 }
 0x5be   : > { %v15927_v51 = vpop.permute.xlu1 %15926 }
 0x5bf   : > { %v20505_v55 = vsel %vm807_vm0, %v9595_v48, %v15927_v51 }
 0x5c0   : > { %v15929_v57 = vpop.permute.xlu0 %15928  ;;  %v15957_v60 = vsel %vm9350_vm3, %v20505_v55, 0.0 }
 0x5c1   : > { %v20512_v45 = vsel %vm807_vm0, %v9596_v7, %v15929_v57  ;;  %v15958_v6 = vadd.f32 %v15957_v60, %v15956_v54 }
 0x5c2   : > { %v15959_v3 = vsel %vm9350_vm3, %v20512_v45, 0.0 }
 0x5c3   : > { %v15960_v59 = vadd.f32 %v15959_v3, %v15958_v6 }
 0x5cc   : > { %v15931_v40 = vpop.permute.xlu1 %15930 }
 0x5cd   : > { %v20517_v42 = vsel %vm807_vm0, %v9597_v9, %v15931_v40  ;;  %v15977_v40 = vld [vmem:[%s20662_s12] sm:$0x1] }
 0x5ce   : > { %v15961_v2 = vsel %vm9350_vm3, %v20517_v42, 0.0  ;;  %v15933_v36 = vpop.permute.xlu0 %15932 }
 0x5cf   : > { %v15962_v1 = vadd.f32 %v15961_v2, %v15960_v59  ;;  %v20522_v25 = vsel %vm807_vm0, %v9598_v26, %v15933_v36 }
 0x5d0   : > { %v15963_v30 = vsel %vm9350_vm3, %v20522_v25, 0.0 }
 0x5d1   : > { %v15964_v11 = vadd.f32 %v15963_v30, %v15962_v1 }
 0x5d3   : > { %v15965_v5 = vrot.slane %v15964_v11, 4 }
 0x5d5   : > { %v15966_v56 = vadd.f32 %v15965_v5, %v15964_v11 }
 0x5d7   : > { %v15967_v10 = vrot.slane %v15966_v56, 2 }
 0x5d9   : > { %v15968_v31 = vadd.f32 %v15967_v10, %v15966_v56  ;;  %v17554_v56 = vld [vmem:[%s20665_s15] sm:$0xff]   ;;  %v17555_v10 = vld [vmem:[%s20665_s15 + $0x8] sm:$0xff]  }
 0x5db   : > { %v15969_v53 = vrot.slane %v15968_v31, 1 }
 0x5dd   : > { %v15970_v14 = vadd.f32 %v15969_v53, %v15968_v31  ;;  %v4560_v50 = vpop.permute.xlu1 %4559  ;;  %v16036_v31 = vld [vmem:[%s20664_s14] sm:$0x1] }
 0x5df   : > { %v15971_v4 = vmul.f32 0.015625, %v15970_v14  ;;  %v13105_v61 = vpop.permute.xlu0 %13104 }
 0x5e1   : > { %v15972_v49 = vpack.c.bf16 %v15971_v4, %v15971_v4  ;;  %v13110_v39 = vpop.permute.xlu1 %13109 }
 0x5e3   : > { %17173 = vmatmul.mubr.msk.bf16.vlgmr.msra.gmra.mrb[108].mxu1 %vm9350_vm3, %v15972_v49  ;;  %v13115_v15 = vpop.permute.xlu0 %13114 }
 0x5e4   : > { %17177 = vmatpush3.bf16.msra.mxu1 %v16043_v44  ;;  %17178 = vmatprep.mubr.msk.bf16.mxu1 %vm17639_vm1, %v20744_v32  ;;  %v16093_v44 = vsub.s32 0, %v20752_v47 }
 0x5e5   : > { %v13120_v34 = vpop.permute.xlu1 %13119  ;;  %17182 = vmatprep.subr.bf16.mxu1 %v17554_v56 }
 0x5e7   : > { %v13125_v35 = vpop.permute.xlu0 %13124 }
 0x5e9   : > { %v13130_v18 = vpop.permute.xlu1 %13129 }
 0x5eb   : > { %v13135_v0 = vpop.permute.xlu0 %13134 }
 0x5ed   : > { %v13140_v21 = vpop.permute.xlu1 %13139 }
 0x5ef   : > { %v13145_v12 = vpop.permute.xlu0 %13144 }
 0x5f1   : > { %v13150_v16 = vpop.permute.xlu1 %13149 }
 0x5f3   : > { %v13155_v23 = vpop.permute.xlu0 %13154 }
 0x5f5   : > { %v13160_v62 = vpop.permute.xlu1 %13159 }
 0x5f7   : > { %v13165_v22 = vpop.permute.xlu0 %13164 }
 0x5f9   : > { %v13170_v41 = vpop.permute.xlu1 %13169 }
 0x5fa   : > { %v20759_v41 = vld [vmem:[#allocation19_spill] sm:$0xff] }
 0x5fb   : > { %v13175_v17 = vpop.permute.xlu0 %13174 }
 0x5fd   : > { %v13180_v29 = vpop.permute.xlu1 %13179 }
 0x5fe   : > { %v16819_v29 = vld [vmem:[%s20760_s3] ss:$0 sm:$0xff]  ;;  %s17576_s3 = sshll.u32 %s17648_s18, 4  ;;  %s17577_s3 = int_to_ptr.vmem [resolvable:$false] %s17576_s3 }
 0x5ff   : > { %v13185_v52 = vpop.permute.xlu0 %13184  ;;  %s17578_s24 = scalar_lea.vmem %s17577_s3, 2048  ;;  %p17579_p0 = scmp.lt.s32.totalorder %s20599_s17, %s17577_s3 }
 0x600   : > { %v20761_v52 = vld [vmem:[#allocation20_spill] sm:$0xff]  ;;  %p17580_p1 = scmp.lt.s32.totalorder %s17578_s24, %s17572_s30 }
 0x601   : > { %v13190_v48 = vpop.permute.xlu1 %13189 }
 0x602   : > { %p17581_p2 = por %p17580_p1, %p17579_p0 }
 0x603   : > { %v13195_v7 = vpop.permute.xlu0 %13194 }
 0x604   : > { %p17582_p3 = pnand %p17581_p2, %p17575_p13 }
 0x605   : > { %v13200_v24 = vpop.permute.xlu1 %13199 }
 0x607   : > { %v13205_v28 = vpop.permute.xlu0 %13204 }
 0x608   : > { %v20762_v28 = vld [vmem:[#allocation21_spill] sm:$0xff] }
 0x609   : > { %v13215_v9 = vpop.permute.xlu1 %13214 }
 0x60b   : > { %v13220_v26 = vpop.permute.xlu0 %13219 }
 0x60d   : > { %v13225_v32 = vpop.permute.xlu1 %13224 }
 0x60f   : > { %v13230_v19 = vpop.permute.xlu0 %13229 }
 0x611   : > { %v13240_v20 = vpop.permute.xlu1 %13239 }
 0x613   : > { %v13245_v51 = vpop.permute.xlu0 %13244 }
 0x615   : > { %v13250_v37 = vpop.permute.xlu1 %13249 }
 0x617   : > { %v13255_v63 = vpop.permute.xlu0 %13254 }
 0x619   : > { %v13265_v27 = vpop.permute.xlu1 %13264 }
 0x61b   : > { %v13270_v58 = vpop.permute.xlu0 %13269 }
 0x61d   : > { %v13275_v57 = vpop.permute.xlu1 %13274 }
 0x61f   : > { %v13280_v8 = vpop.permute.xlu0 %13279 }
 0x621   : > { %v13210_v60 = vpop.permute.xlu1 %13209 }
 0x623   : > { %v13235_v54 = vpop.permute.xlu0 %13234 }
 0x625   : > { %v13260_v6 = vpop.permute.xlu1 %13259 }
 0x627   : > { %v13285_v3 = vpop.permute.xlu0 %13284 }
 0x6b6   : > { %v16027_v59 = vpop.f32.mrb[108].mxu1 }
 0x6b7   : > { %v16028_v2 = vadd.f32 %v16027_v59, %v15977_v40  ;;  %v17174_v36 = vpop.f32.mrb[109].mxu1  ;;  %v20763_v40 = vld [vmem:[#allocation22_spill] sm:$0xff] }
 0x6b8   : > { %v16030_v1 = vpop.f32.mrb[110].mxu1 }
 0x6b9   : > { %v16033_v30 = vmax.f32 %v16028_v2, 0.0  ;;  %v17175_v11 = vpop.f32.mrb[111].mxu1  ;;  %v20764_v1 = vld [vmem:[#allocation23_spill] sm:$0xff] }
 0x6bb   : > { %v16034_v5 = vpack.c.bf16 %v16033_v30, %v16033_v30 }
 0x6bd   : > { %17179 = vmatmul.mubr.msk.bf16.vlgmr.msra.gmra.mrb[112].mxu1 %vm16037_vm11, %v16034_v5 }
 0x6be   : > { %17183 = vmatpush3.bf16.msra.mxu1 %v17554_v56 }
 0x6bf   : > { %17184 = vmatprep.subr.bf16.mxu1 %v17555_v10 }
 0x6c2   : > { %17185 = vmatpush3.bf16.msra.mxu1 %v17555_v10  ;;  %v20765_v10 = vld [vmem:[#allocation24_spill] sm:$0xff] }
 0x790   : > { %v16079_v53 = vpop.f32.mrb[112].mxu1 }
 0x791   : > { %v16080_v14 = vadd.f32 %v16079_v53, %v16036_v31  ;;  %v17180_v50 = vpop.f32.mrb[113].mxu1 }
 0x792   : > { %v16082_v38 = vpop.f32.mrb[114].mxu1 }
 0x793   : > { %v16811_v4 = vmul.f32 -1.442695, %v16080_v14  ;;  %v17181_v61 = vpop.f32.mrb[115].mxu1  ;;  %v20766_v38 = vld [vmem:[#allocation25_spill] sm:$0xff] }
 0x795   : > { %17556 = vpow2.f32 %v16811_v4 }
 0x79f   : > { %v17557_v49 = vpop.eup %17556 }
 0x7a0   : > { %v16088_v39 = vadd.f32 1.0, %v17557_v49 }
 0x7a2   : > { %17558 = vrcp.f32 %v16088_v39 }
 0x7ac   : > { %v17559_v15 = vpop.eup %17558 }
 0x7ad   : > { %v16094_v34 = vrot.slane %v17559_v15, %v16093_v44 }
 0x7af   : > { %v16095_v35 = vmul.f32 %v16094_v34, %v20490_v46  ;;  %v16096_v18 = vmul.f32 %v16094_v34, %v20487_v33  ;;  %v16097_v0 = vmul.f32 %v16094_v34, %v20493_v43  ;;  %v16098_v21 = vmul.f32 %v16094_v34, %v20502_v13  ;;  %v16392_v13 = vld [vmem:[%s20669_s19] ss:$0 sm:$0xff] }
 0x7b0   : > { %v16099_v12 = vmul.f32 %v16094_v34, %v20505_v55  ;;  %v16100_v16 = vmul.f32 %v16094_v34, %v20512_v45  ;;  %v16101_v33 = vmul.f32 %v16094_v34, %v20517_v42  ;;  %v16102_v46 = vmul.f32 %v16094_v34, %v20522_v25  ;;  %v16818_v55 = vld [vmem:[%s20666_s16] ss:$0 sm:$0xff]  ;;  %v20757_v45 = vld [vmem:[#allocation18_spill] sm:$0xff] }
 0x7b1   : > { %v16103_v23 = vpack.c.bf16 %v16096_v18, %v16095_v35  ;;  %v16104_v62 = vpack.c.bf16 %v16098_v21, %v16097_v0  ;;  %v894_v22 = vmul.f32 %v20757_v45, %v16392_v13  ;;  %v16393_v42 = vld [vmem:[%s20758_s29] ss:$0 sm:$0xff]  ;;  %v892_v25 = vmul.f32 %v16392_v13, %v20759_v41  ;;  %s20609_s29 = scalar_lea.sflag [#allocation5], %s677_s0 }
 0x7b2   : > { %v16105_v47 = vpack.c.bf16 %v16100_v16, %v16099_v12  ;;  %v16106_v43 = vpack.c.bf16 %v16102_v46, %v16101_v33  ;;  %v895_v48 = vmul.f32 %v20761_v52, %v16392_v13  ;;  %v893_v9 = vmul.f32 %v16392_v13, %v20762_v28 }
 0x7b3   : > { %17186 = vmatprep.mubr.msk.bf16.mxu1 %vm9350_vm3, %v16103_v23  ;;  %v909_v19 = vadd.f32 %v16393_v42, %v894_v22  ;;  %v907_v63 = vadd.f32 %v16393_v42, %v892_v25  ;;  %v898_v59 = vmul.f32 %v20763_v40, %v16392_v13  ;;  %v896_v30 = vmul.f32 %v16392_v13, %v20764_v1 }
 0x7b4   : > { %17187 = vmatmul.mubr.msk.bf16.vlgmr.msra.gmra.mrb[116].mxu1 %vm9350_vm3, %v16104_v62  ;;  %v910_v57 = vadd.f32 %v16393_v42, %v895_v48  ;;  %v908_v54 = vadd.f32 %v16393_v42, %v893_v9  ;;  %v899_v31 = vmul.f32 %v20765_v10, %v16392_v13  ;;  %v897_v4 = vmul.f32 %v16392_v13, %v20766_v38 }
 0x7b5   : > { %17190 = vmatprep.mubr.msk.bf16.mxu1 %vm9350_vm3, %v16105_v47  ;;  %v913_v44 = vadd.f32 %v16393_v42, %v898_v59  ;;  %v911_v18 = vadd.f32 %v16393_v42, %v896_v30 }
 0x7b6   : > { %v914_v12 = vadd.f32 %v16393_v42, %v899_v31  ;;  %v912_v62 = vadd.f32 %v16393_v42, %v897_v4 }
 0x7bc   : > { %17191 = vmatmul.mubr.msk.bf16.gmra.mrb[120].mxu1 %vm9350_vm3, %v16106_v43 }
 0x887   : > { %v17188_v17 = vpop.f32.mrb[116].mxu1 }
 0x888   : > { %v16209_v7 = vmul.f32 %v17188_v17, %v16818_v55  ;;  %v16169_v24 = vpop.f32.mrb[117].mxu1 }
 0x889   : > { %v16207_v26 = vmul.f32 %v16818_v55, %v16169_v24  ;;  %v17189_v32 = vpop.f32.mrb[118].mxu1 }
 0x88a   : > { %v16224_v20 = vadd.f32 %v16819_v29, %v16209_v7  ;;  %v16210_v51 = vmul.f32 %v17189_v32, %v16818_v55  ;;  %v16172_v37 = vpop.f32.mrb[119].mxu1 }
 0x88b   : > { %v16222_v27 = vadd.f32 %v16819_v29, %v16207_v26  ;;  %v16208_v58 = vmul.f32 %v16818_v55, %v16172_v37 }
 0x88c   : > { %v16232_v8 = vadd.f32 %v16224_v20, %v909_v19  ;;  %v16225_v60 = vadd.f32 %v16819_v29, %v16210_v51 }
 0x88d   : > { %v16230_v6 = vadd.f32 %v16222_v27, %v907_v63  ;;  %v16223_v3 = vadd.f32 %v16819_v29, %v16208_v58 }
 0x88e   : > { %v16240_v2 = vmax.f32 %v16232_v8, 0.0  ;;  %v16233_v36 = vadd.f32 %v16225_v60, %v910_v57 }
 0x88f   : > { %v16238_v11 = vmax.f32 %v16230_v6, 0.0  ;;  %v16231_v5 = vadd.f32 %v16223_v3, %v908_v54  ;;  %v17192_v56 = vpop.f32.mrb[120].mxu1 }
 0x890   : > { %16248 = vst.msk [vmem:[%s20579_s1 + $0x10] sm:$0xff] %vm9350_vm3, %v16240_v2  ;;  %v16241_v53 = vmax.f32 %v16233_v36, 0.0  ;;  %v16213_v14 = vmul.f32 %v17192_v56, %v16818_v55  ;;  %v16185_v50 = vpop.f32.mrb[121].mxu1 }
 0x891   : > { %16246 = vst.msk [vmem:[%s20579_s1] sm:$0xff] %vm9350_vm3, %v16238_v11  ;;  %v16239_v61 = vmax.f32 %v16231_v5, 0.0  ;;  %v16211_v49 = vmul.f32 %v16818_v55, %v16185_v50  ;;  %v17193_v39 = vpop.f32.mrb[122].mxu1 }
 0x892   : > { %16249 = vst.msk [vmem:[%s20579_s1 + $0x18] sm:$0xff] %vm9350_vm3, %v16241_v53  ;;  %v16228_v15 = vadd.f32 %v16819_v29, %v16213_v14  ;;  %v16214_v34 = vmul.f32 %v17193_v39, %v16818_v55  ;;  %v16188_v35 = vpop.f32.mrb[123].mxu1 }
 0x893   : > { %16247 = vst.msk [vmem:[%s20579_s1 + $0x8] sm:$0xff] %vm9350_vm3, %v16239_v61  ;;  %v16226_v0 = vadd.f32 %v16819_v29, %v16211_v49  ;;  %v16212_v21 = vmul.f32 %v16818_v55, %v16188_v35 }
 0x894   : > { %v16236_v16 = vadd.f32 %v16228_v15, %v913_v44  ;;  %v16229_v23 = vadd.f32 %v16819_v29, %v16214_v34 }
 0x895   : > { %v16234_v47 = vadd.f32 %v16226_v0, %v911_v18  ;;  %v16227_v33 = vadd.f32 %v16819_v29, %v16212_v21 }
 0x896   : > { %v16244_v46 = vmax.f32 %v16236_v16, 0.0  ;;  %v16237_v43 = vadd.f32 %v16229_v23, %v914_v12 }
 0x897   : > { %v16242_v13 = vmax.f32 %v16234_v47, 0.0  ;;  %v16235_v45 = vadd.f32 %v16227_v33, %v912_v62 }
 0x898   : > { %16252 = vst.msk [vmem:[%s20579_s1 + $0x30] sm:$0xff] %vm9350_vm3, %v16244_v46  ;;  %v16245_v55 = vmax.f32 %v16237_v43, 0.0 }
 0x899   : > { %16250 = vst.msk [vmem:[%s20579_s1 + $0x20] sm:$0xff] %vm9350_vm3, %v16242_v13  ;;  %v16243_v22 = vmax.f32 %v16235_v45, 0.0 }
 0x89a   : > { %16253 = vst.msk [vmem:[%s20579_s1 + $0x38] sm:$0xff] %vm9350_vm3, %v16245_v55 }
 0x89b   : > { %16251 = vst.msk [vmem:[%s20579_s1 + $0x28] sm:$0xff] %vm9350_vm3, %v16243_v22 }
 0x89c   : > { %17585 = shalt.err (!%p17582_p3)
}
 0x89d   : > { %s17586_s0 = scalar_lea.hbm %s20597_s5, 1024  ;;  %s17590_s23 = scalar_lea.hbm %s20769_s21, 2048 }
 0x89e   : > { %p17587_p4 = scmp.ne.s32.totalorder %s20597_s5, %s17586_s0  ;;  %p17591_p9 = scmp.lt.u32.totalorder %s20597_s5, %s20769_s21 }
 0x89f   : > { %p17592_p10 = scmp.lt.u32.totalorder %s17590_s23, %s17586_s0  ;;  %p17594_p12 = scmp.lt.u32.totalorder %s17586_s0, %s20597_s5 }
 0x8a0   : > { %p17588_p7 = pnand %p17587_p4, %p17799_p5 }
 0x8a1   : > { %p17593_p11 = por %p17592_p10, %p17591_p9 }
 0x8a2   : > { %p17589_p8 = pneg %p17588_p7 }
 0x8a3   : > { %p17595_p13 = por %p17594_p12, %p17593_p11 }
 0x8a5   : > { %p17596_p0 = pnand %p17595_p13, %p17589_p8 }
 0x8a7   : > { %17599 = shalt.err (!%p17596_p0)
}
 0x8a8   : > { %s17649_s30 = smov 128   ;;  %s17650_s18 = smov 8  }
 0x8a9   : > { %17196 = dma.vmem_to_hbm [thread:$0]  (%p17799_p5), %s20599_s17, 1024, %s20597_s5, %s20609_s29, %s17649_s30, %s17649_s30, %s17650_s18  }
 0x8aa PF: > { %s20770_s3 = sld [smem:[#allocation9_spill]]  ;;  %s20771_s24 = sld [smem:[#allocation7_spill]] }
 0x8b0   : > { %p17202_p1 = scmp.ge.s32.totalorder %s20770_s3, 2  ;;  %s16283_s2 = sand.u32 1, %s20771_s24  }
 0x8b1   : > { %s16284_s0 = scalar_lea.sflag [#allocation5], %s16283_s2 }
 0x8b2   : > { %p17199_p2 = pnand %p17202_p1, %p17803_p6 }
 0x8b4   : > { %17617 = dma.done.wait (!%p17199_p2), %s16284_s0, 1024  }
 0x8b5   : > { %17619 = vsyncadd (!%p17199_p2), %s16284_s0, 4294966272  ;;  %s20773_s27 = sld [smem:[#allocation11_spill]]  ;;  %s20774_s23 = sld [smem:[#allocation8_spill]] }
 0x8b6   : > { %s20775_s26 = sld [smem:[#allocation12_spill]]  ;;  %s20776_s2 = smov %s17626_s25 }
 0x8bb   : > { %p31_p3 = scmp.ge.s32.totalorder %s20773_s27, 4   ;;  %s20777_s25 = smov %s20774_s23 }
 0x8bd   :  { %33 = sbr.rel (!%p31_p3) target bundleno = 14 (0xe), region = 161 }
 0x8c4   :  { %16289 = vsyncpa [#allocation5], 1 }
 0x8c5   :  { %16291 = vsyncpa [#allocation5 + $0x1], 1 }

</bundles_post_ra>
